<compile_context>
chip_gen: v6e
topology: v6e:2x2x1
jax: 0.10.0
libtpu: 0.0.40
codegen_flags: <defaults>
</compile_context>

<pallas_src>
import functools

import jax
import jax.numpy as jnp
from jax.experimental import pallas as pl
from jax.experimental.pallas import tpu as pltpu

K = 3              # conv kernel size (fixed by the module)
TAPS = K * K * K   # 27 taps per conv


def _f_inverse_kernel(x_ref, mask_ref, w1_ref, b1_ref, w2_ref, b2_ref, o_ref,
                      col_ref, flat_ref, *, H, W, S):
    # x_ref    : (1, C, M)   f32   one batch item, NCDHW flattened over D*H*W
    # mask_ref : (9, M)      bf16  h/w halo masks per (kh, kw) tap
    # w*_ref   : (3, C, 9*C) bf16  per-kd transposed-im2col weight chunks
    # b*_ref   : (C, 1)      f32
    # o_ref    : (1, C, M)   f32   output, native NC(DHW) layout
    # col_ref  : (2, 9*C, M) bf16  double-buffered transposed-im2col chunk
    # flat_ref : (C, 2*S+M)  bf16  zero-padded flat activation (depth halo)
    _, C, M = x_ref.shape

    # Hoist the 9 (kh, kw) halo masks once; tap j == 4 (oh=ow=0) is all-ones.
    hw_masks = [mask_ref[j:j + 1, :] for j in range(K * K)]

    # Zero only the two flat halo pads; the interior is fully overwritten
    # below.  Per-step zeroing is cheap and stays correct under megacore
    # "parallel" grid sharding (a program_id()==0 guard would not).
    flat_ref[:, 0:S] = jnp.zeros((C, S), jnp.bfloat16)
    flat_ref[:, S + M:S + M + S] = jnp.zeros((C, S), jnp.bfloat16)

    def conv(act_bf16, w_ref, b_ref, chunk0):
        """conv3d(act) + bias in (C, M) layout; bf16 MXU operands, f32 acc."""
        flat_ref[:, S:S + M] = act_bf16                 # aligned full-lane store
        y = jnp.zeros((C, M), jnp.float32)
        for kd in range(K):
            od = kd - 1
            slot = (chunk0 + kd) % 2                    # alternate col buffers
            # Gather 9 shifted slabs into the (9*C, M) chunk: every store is a
            # full-lane (C, M) store at a sublane-aligned offset (no masked
            # 32-lane stores).  Depth halo comes from the zero pads of
            # flat_ref; h/w halo from the precomputed masks.
            for kh in range(K):
                for kw in range(K):
                    j = kh * K + kw
                    s = od * H * W + (kh - 1) * W + (kw - 1)
                    slab = flat_ref[:, S + s:S + s + M]          # (C, M) bf16
                    if j != 4:                                   # center tap: no halo
                        slab = slab * hw_masks[j]
                    col_ref[slot, j * C:(j + 1) * C, :] = slab
            # One 288-deep, M-wide MXU contraction per kd chunk (M on lanes).
            y = y + jnp.dot(w_ref[kd], col_ref[slot],
                            preferred_element_type=jnp.float32)
        return y + b_ref[...]                            # lane-broadcast bias

    act1 = x_ref[0].astype(jnp.bfloat16)                 # single in-kernel downcast
    y1 = jnp.maximum(conv(act1, w1_ref, b1_ref, 0), 0.0)
    y2 = conv(y1.astype(jnp.bfloat16), w2_ref, b2_ref, 3)
    o_ref[0] = y2                                        # f32, native NC(DHW)


def f_inverse_pallas(x_ncdhw, w1, b1, w2, b2):
    """Forward of F_inverse.  x_ncdhw: (N, 32, D, H, W) f32 (PyTorch layout).
    Returns (N, 32, D, H, W) f32."""
    N, C, D, H, W = x_ncdhw.shape
    M = D * H * W
    assert C % 8 == 0, "channel count must be sublane-aligned"

    # Flat-space halo: one depth plane + one row + one voxel, rounded up to a
    # lane multiple so the interior write stays an aligned full-lane store.
    S = ((H * W + W + 1 + 127) // 128) * 128

    # Free views only -- no HBM transpose / cast passes; activations stay NCDHW.
    x = x_ncdhw.reshape(N, C, M)

    # PyTorch weights (Cout, Cin, kd, kh, kw) -> per-kd transposed-im2col
    # chunks (kd, Cout, (kh*3+kw)*Cin + ci), bf16 MXU operands.
    def prep_w(w):
        return (jnp.transpose(w, (2, 0, 3, 4, 1))
                .reshape(K, C, K * K * C).astype(jnp.bfloat16))

    w1m, w2m = prep_w(w1), prep_w(w2)
    b1m = b1.reshape(C, 1).astype(jnp.float32)
    b2m = b2.reshape(C, 1).astype(jnp.float32)

    # 9 (kh, kw) halo masks over the flattened D*H*W axis.  The depth halo is
    # handled by the zero pads of the flat scratch, so masks only need h/w.
    m_idx = jnp.arange(M, dtype=jnp.int32)
    h_idx = (m_idx // W) % H
    w_idx = m_idx % W
    rows = []
    for kh in range(K):
        for kw in range(K):
            oh, ow = kh - 1, kw - 1
            rows.append((h_idx + oh >= 0) & (h_idx + oh < H) &
                        (w_idx + ow >= 0) & (w_idx + ow < W))
    masks = jnp.stack(rows).astype(jnp.bfloat16)          # (9, M)

    # VMEM budget derived from actual block + scratch sizes (2x layout headroom).
    vmem_bytes = (
        2 * C * M * 4                      # x block (f32), double-buffered
        + 2 * C * M * 4                    # out block (f32), double-buffered
        + 2 * 16 * M * 2                   # masks (sublane-padded)
        + 2 * 2 * (K * C * K * K * C * 2)  # w1m + w2m (bf16)
        + 2 * 2 * (C * 128 * 4)            # biases (lane-padded)
        + 2 * (K * K * C) * M * 2          # col chunk scratch (2 buffers)
        + C * (M + 2 * S) * 2              # flat activation scratch
    )
    vmem_limit = int(min(100 * 2 ** 20, max(8 * 2 ** 20, 2 * vmem_bytes)))

    kernel = functools.partial(_f_inverse_kernel, H=H, W=W, S=S)
    out = pl.pallas_call(
        kernel,
        out_shape=jax.ShapeDtypeStruct((N, C, M), jnp.float32),
        grid_spec=pltpu.PrefetchScalarGridSpec(
            num_scalar_prefetch=0,
            grid=(N,),
            in_specs=[
                pl.BlockSpec((1, C, M), lambda n: (n, 0, 0)),        # x
                pl.BlockSpec((K * K, M), lambda n: (0, 0)),          # masks
                pl.BlockSpec((K, C, K * K * C), lambda n: (0, 0, 0)),  # w1
                pl.BlockSpec((C, 1), lambda n: (0, 0)),              # b1
                pl.BlockSpec((K, C, K * K * C), lambda n: (0, 0, 0)),  # w2
                pl.BlockSpec((C, 1), lambda n: (0, 0)),              # b2
            ],
            out_specs=pl.BlockSpec((1, C, M), lambda n: (n, 0, 0)),
            scratch_shapes=[
                pltpu.VMEM((2, K * K * C, M), jnp.bfloat16),   # col chunks
                pltpu.VMEM((C, 2 * S + M), jnp.bfloat16),      # flat padded act
            ],
        ),
        compiler_params=pltpu.CompilerParams(
            dimension_semantics=("parallel",),
            vmem_limit_bytes=vmem_limit,
        ),
    )(x, masks, w1m, b1m, w2m, b2m)

    return out.reshape(N, C, D, H, W)


# ----------------------------- references -----------------------------------
def _conv3d_ref(x_ndhwc, w_pt, b, operand_dtype=None):
    dn = ('NDHWC', 'DHWIO', 'NDHWC')
    wk = jnp.transpose(w_pt, (2, 3, 4, 1, 0))
    if operand_dtype is not None:
        x_ndhwc = x_ndhwc.astype(operand_dtype)
        wk = wk.astype(operand_dtype)
    y = jax.lax.conv_general_dilated(
        x_ndhwc, wk, window_strides=(1, 1, 1), padding=[(1, 1)] * 3,
        dimension_numbers=dn, preferred_element_type=jnp.float32)
    return y + b.reshape(1, 1, 1, 1, -1).astype(jnp.float32)


def _reference(x_ncdhw, w1, b1, w2, b2, bf16_operands=False):
    """Pure-JAX reference of the PyTorch forward (optionally mirroring the
    kernel's bf16-operand / f32-accumulation recipe)."""
    od = jnp.bfloat16 if bf16_operands else None
    x = jnp.transpose(x_ncdhw, (0, 2, 3, 4, 1))
    y = jnp.maximum(_conv3d_ref(x, w1, b1, operand_dtype=od), 0.0)
    y = _conv3d_ref(y, w2, b2, operand_dtype=od)
    return jnp.transpose(y, (0, 4, 1, 2, 3))


if __name__ == "__main__":
    key = jax.random.PRNGKey(0)
    kx, k1, k2, k3, k4 = jax.random.split(key, 5)

    N, C, D, H, W = 2, 32, 4, 8, 8          # channels fixed at 32 by the module
    x = jax.random.normal(kx, (N, C, D, H, W), jnp.float32)

    scale = 0.05
    w1 = scale * jax.random.normal(k1, (C, C, K, K, K), jnp.float32)
    b1 = scale * jax.random.normal(k2, (C,), jnp.float32)
    w2 = scale * jax.random.normal(k3, (C, C, K, K, K), jnp.float32)
    b2 = scale * jax.random.normal(k4, (C,), jnp.float32)

    out = jax.block_until_ready(f_inverse_pallas(x, w1, b1, w2, b2))
    assert out.shape == (N, C, D, H, W)

    # Tight check vs. a reference using the same precision recipe
    # (bf16 operands, f32 accumulation) -> validates indexing / halo math.
    ref_bf16 = _reference(x, w1, b1, w2, b2, bf16_operands=True)
    assert jnp.allclose(out, ref_bf16, atol=5e-3, rtol=5e-3), \
        "mismatch vs bf16-operand reference"

    # Loose check vs. pure-f32 PyTorch semantics (bf16 rounding budget).
    ref_f32 = _reference(x, w1, b1, w2, b2, bf16_operands=False)
    assert jnp.allclose(out, ref_f32, atol=1e-1, rtol=1e-1), \
        "mismatch vs f32 reference"

    print("KERNEL_OK")
</pallas_src>

<mosaic_0001>
module attributes {stable_mosaic.version = 11 : i64} {
  func.func @_f_inverse_kernel(%arg0: i32, %arg1: memref<1x32x256xf32, #tpu.memory_space<vmem>>, %arg2: memref<9x256xbf16, #tpu.memory_space<vmem>>, %arg3: memref<3x32x288xbf16, #tpu.memory_space<vmem>>, %arg4: memref<32x1xf32, #tpu.memory_space<vmem>>, %arg5: memref<3x32x288xbf16, #tpu.memory_space<vmem>>, %arg6: memref<32x1xf32, #tpu.memory_space<vmem>>, %arg7: memref<1x32x256xf32, #tpu.memory_space<vmem>>, %arg8: memref<2x288x256xbf16, #tpu.memory_space<vmem>>, %arg9: memref<32x512xbf16, #tpu.memory_space<vmem>>) attributes {dimension_semantics = [#tpu.dimension_semantics<parallel>], iteration_bounds = array<i64: 2>, scalar_prefetch = 0 : i64, scratch_operands = 2 : i64, tpu.core_type = #tpu.core_type<tc>, window_params = [{transform_indices = @transform_0, window_bounds = array<i64: 1, 32, 256>}, {pipeline_mode = #tpu.pipeline_mode<synchronous>, transform_indices = @transform_1, window_bounds = array<i64: 9, 256>}, {pipeline_mode = #tpu.pipeline_mode<synchronous>, transform_indices = @transform_2, window_bounds = array<i64: 3, 32, 288>}, {pipeline_mode = #tpu.pipeline_mode<synchronous>, transform_indices = @transform_3, window_bounds = array<i64: 32, 1>}, {pipeline_mode = #tpu.pipeline_mode<synchronous>, transform_indices = @transform_4, window_bounds = array<i64: 3, 32, 288>}, {pipeline_mode = #tpu.pipeline_mode<synchronous>, transform_indices = @transform_5, window_bounds = array<i64: 32, 1>}, {transform_indices = @transform_6, window_bounds = array<i64: 1, 32, 256>}]} {
    %c0 = arith.constant 0 : index
    %c0_0 = arith.constant 0 : index
    %0 = vector.load %arg2[%c0, %c0_0] : memref<9x256xbf16, #tpu.memory_space<vmem>>, vector<1x256xbf16>
    %c1 = arith.constant 1 : index
    %c0_1 = arith.constant 0 : index
    %1 = vector.load %arg2[%c1, %c0_1] : memref<9x256xbf16, #tpu.memory_space<vmem>>, vector<1x256xbf16>
    %c2 = arith.constant 2 : index
    %c0_2 = arith.constant 0 : index
    %2 = vector.load %arg2[%c2, %c0_2] : memref<9x256xbf16, #tpu.memory_space<vmem>>, vector<1x256xbf16>
    %c3 = arith.constant 3 : index
    %c0_3 = arith.constant 0 : index
    %3 = vector.load %arg2[%c3, %c0_3] : memref<9x256xbf16, #tpu.memory_space<vmem>>, vector<1x256xbf16>
    %c5 = arith.constant 5 : index
    %c0_4 = arith.constant 0 : index
    %4 = vector.load %arg2[%c5, %c0_4] : memref<9x256xbf16, #tpu.memory_space<vmem>>, vector<1x256xbf16>
    %c6 = arith.constant 6 : index
    %c0_5 = arith.constant 0 : index
    %5 = vector.load %arg2[%c6, %c0_5] : memref<9x256xbf16, #tpu.memory_space<vmem>>, vector<1x256xbf16>
    %c7 = arith.constant 7 : index
    %c0_6 = arith.constant 0 : index
    %6 = vector.load %arg2[%c7, %c0_6] : memref<9x256xbf16, #tpu.memory_space<vmem>>, vector<1x256xbf16>
    %c8 = arith.constant 8 : index
    %c0_7 = arith.constant 0 : index
    %7 = vector.load %arg2[%c8, %c0_7] : memref<9x256xbf16, #tpu.memory_space<vmem>>, vector<1x256xbf16>
    %cst = arith.constant 0.000000e+00 : bf16
    %8 = vector.broadcast %cst : bf16 to vector<32x128xbf16>
    %c0_8 = arith.constant 0 : index
    %c0_9 = arith.constant 0 : index
    %9 = vector.load %arg9[%c0_8, %c0_9] : memref<32x512xbf16, #tpu.memory_space<vmem>>, vector<32x128xbf16>
    tpu.vector_store %arg9[%c0_8, %c0_9], %8 {strides = array<i32>} : memref<32x512xbf16, #tpu.memory_space<vmem>>, vector<32x128xbf16>,
    %cst_10 = arith.constant 0.000000e+00 : bf16
    %10 = vector.broadcast %cst_10 : bf16 to vector<32x128xbf16>
    %c0_11 = arith.constant 0 : index
    %c384 = arith.constant 384 : index
    %11 = vector.load %arg9[%c0_11, %c384] : memref<32x512xbf16, #tpu.memory_space<vmem>>, vector<32x128xbf16>
    tpu.vector_store %arg9[%c0_11, %c384], %10 {strides = array<i32>} : memref<32x512xbf16, #tpu.memory_space<vmem>>, vector<32x128xbf16>,
    %c0_12 = arith.constant 0 : index
    %c0_13 = arith.constant 0 : index
    %c0_14 = arith.constant 0 : index
    %12 = vector.load %arg1[%c0_12, %c0_13, %c0_14] : memref<1x32x256xf32, #tpu.memory_space<vmem>>, vector<1x32x256xf32>
    %13 = vector.shape_cast %12 : vector<1x32x256xf32> to vector<32x256xf32>
    %14 = arith.truncf %13 : vector<32x256xf32> to vector<32x256xbf16>
    %c0_15 = arith.constant 0 : index
    %c128 = arith.constant 128 : index
    %15 = vector.load %arg9[%c0_15, %c128] : memref<32x512xbf16, #tpu.memory_space<vmem>>, vector<32x256xbf16>
    tpu.vector_store %arg9[%c0_15, %c128], %14 {strides = array<i32>} : memref<32x512xbf16, #tpu.memory_space<vmem>>, vector<32x256xbf16>,
    %cst_16 = arith.constant 0.000000e+00 : f32
    %16 = vector.broadcast %cst_16 : f32 to vector<32x256xf32>
    %c0_17 = arith.constant 0 : index
    %c55 = arith.constant 55 : index
    %17 = vector.load %arg9[%c0_17, %c55] : memref<32x512xbf16, #tpu.memory_space<vmem>>, vector<32x256xbf16>
    %18 = vector.broadcast %0 : vector<1x256xbf16> to vector<32x256xbf16>
    %19 = arith.mulf %17, %18 : vector<32x256xbf16>
    %c0_18 = arith.constant 0 : index
    %c0_19 = arith.constant 0 : index
    %c0_20 = arith.constant 0 : index
    %20 = vector.load %arg8[%c0_18, %c0_19, %c0_20] : memref<2x288x256xbf16, #tpu.memory_space<vmem>>, vector<1x32x256xbf16>
    %21 = vector.shape_cast %20 : vector<1x32x256xbf16> to vector<32x256xbf16>
    %22 = vector.shape_cast %19 : vector<32x256xbf16> to vector<1x32x256xbf16>
    tpu.vector_store %arg8[%c0_18, %c0_19, %c0_20], %22 {strides = array<i32>} : memref<2x288x256xbf16, #tpu.memory_space<vmem>>, vector<1x32x256xbf16>,
    %c0_21 = arith.constant 0 : index
    %c56 = arith.constant 56 : index
    %23 = vector.load %arg9[%c0_21, %c56] : memref<32x512xbf16, #tpu.memory_space<vmem>>, vector<32x256xbf16>
    %24 = vector.broadcast %1 : vector<1x256xbf16> to vector<32x256xbf16>
    %25 = arith.mulf %23, %24 : vector<32x256xbf16>
    %c0_22 = arith.constant 0 : index
    %c32 = arith.constant 32 : index
    %c0_23 = arith.constant 0 : index
    %26 = vector.load %arg8[%c0_22, %c32, %c0_23] : memref<2x288x256xbf16, #tpu.memory_space<vmem>>, vector<1x32x256xbf16>
    %27 = vector.shape_cast %26 : vector<1x32x256xbf16> to vector<32x256xbf16>
    %28 = vector.shape_cast %25 : vector<32x256xbf16> to vector<1x32x256xbf16>
    tpu.vector_store %arg8[%c0_22, %c32, %c0_23], %28 {strides = array<i32>} : memref<2x288x256xbf16, #tpu.memory_space<vmem>>, vector<1x32x256xbf16>,
    %c0_24 = arith.constant 0 : index
    %c57 = arith.constant 57 : index
    %29 = vector.load %arg9[%c0_24, %c57] : memref<32x512xbf16, #tpu.memory_space<vmem>>, vector<32x256xbf16>
    %30 = vector.broadcast %2 : vector<1x256xbf16> to vector<32x256xbf16>
    %31 = arith.mulf %29, %30 : vector<32x256xbf16>
    %c0_25 = arith.constant 0 : index
    %c64 = arith.constant 64 : index
    %c0_26 = arith.constant 0 : index
    %32 = vector.load %arg8[%c0_25, %c64, %c0_26] : memref<2x288x256xbf16, #tpu.memory_space<vmem>>, vector<1x32x256xbf16>
    %33 = vector.shape_cast %32 : vector<1x32x256xbf16> to vector<32x256xbf16>
    %34 = vector.shape_cast %31 : vector<32x256xbf16> to vector<1x32x256xbf16>
    tpu.vector_store %arg8[%c0_25, %c64, %c0_26], %34 {strides = array<i32>} : memref<2x288x256xbf16, #tpu.memory_space<vmem>>, vector<1x32x256xbf16>,
    %c0_27 = arith.constant 0 : index
    %c63 = arith.constant 63 : index
    %35 = vector.load %arg9[%c0_27, %c63] : memref<32x512xbf16, #tpu.memory_space<vmem>>, vector<32x256xbf16>
    %36 = vector.broadcast %3 : vector<1x256xbf16> to vector<32x256xbf16>
    %37 = arith.mulf %35, %36 : vector<32x256xbf16>
    %c0_28 = arith.constant 0 : index
    %c96 = arith.constant 96 : index
    %c0_29 = arith.constant 0 : index
    %38 = vector.load %arg8[%c0_28, %c96, %c0_29] : memref<2x288x256xbf16, #tpu.memory_space<vmem>>, vector<1x32x256xbf16>
    %39 = vector.shape_cast %38 : vector<1x32x256xbf16> to vector<32x256xbf16>
    %40 = vector.shape_cast %37 : vector<32x256xbf16> to vector<1x32x256xbf16>
    tpu.vector_store %arg8[%c0_28, %c96, %c0_29], %40 {strides = array<i32>} : memref<2x288x256xbf16, #tpu.memory_space<vmem>>, vector<1x32x256xbf16>,
    %c0_30 = arith.constant 0 : index
    %c64_31 = arith.constant 64 : index
    %41 = vector.load %arg9[%c0_30, %c64_31] : memref<32x512xbf16, #tpu.memory_space<vmem>>, vector<32x256xbf16>
    %c0_32 = arith.constant 0 : index
    %c128_33 = arith.constant 128 : index
    %c0_34 = arith.constant 0 : index
    %42 = vector.load %arg8[%c0_32, %c128_33, %c0_34] : memref<2x288x256xbf16, #tpu.memory_space<vmem>>, vector<1x32x256xbf16>
    %43 = vector.shape_cast %42 : vector<1x32x256xbf16> to vector<32x256xbf16>
    %44 = vector.shape_cast %41 : vector<32x256xbf16> to vector<1x32x256xbf16>
    tpu.vector_store %arg8[%c0_32, %c128_33, %c0_34], %44 {strides = array<i32>} : memref<2x288x256xbf16, #tpu.memory_space<vmem>>, vector<1x32x256xbf16>,
    %c0_35 = arith.constant 0 : index
    %c65 = arith.constant 65 : index
    %45 = vector.load %arg9[%c0_35, %c65] : memref<32x512xbf16, #tpu.memory_space<vmem>>, vector<32x256xbf16>
    %46 = vector.broadcast %4 : vector<1x256xbf16> to vector<32x256xbf16>
    %47 = arith.mulf %45, %46 : vector<32x256xbf16>
    %c0_36 = arith.constant 0 : index
    %c160 = arith.constant 160 : index
    %c0_37 = arith.constant 0 : index
    %48 = vector.load %arg8[%c0_36, %c160, %c0_37] : memref<2x288x256xbf16, #tpu.memory_space<vmem>>, vector<1x32x256xbf16>
    %49 = vector.shape_cast %48 : vector<1x32x256xbf16> to vector<32x256xbf16>
    %50 = vector.shape_cast %47 : vector<32x256xbf16> to vector<1x32x256xbf16>
    tpu.vector_store %arg8[%c0_36, %c160, %c0_37], %50 {strides = array<i32>} : memref<2x288x256xbf16, #tpu.memory_space<vmem>>, vector<1x32x256xbf16>,
    %c0_38 = arith.constant 0 : index
    %c71 = arith.constant 71 : index
    %51 = vector.load %arg9[%c0_38, %c71] : memref<32x512xbf16, #tpu.memory_space<vmem>>, vector<32x256xbf16>
    %52 = vector.broadcast %5 : vector<1x256xbf16> to vector<32x256xbf16>
    %53 = arith.mulf %51, %52 : vector<32x256xbf16>
    %c0_39 = arith.constant 0 : index
    %c192 = arith.constant 192 : index
    %c0_40 = arith.constant 0 : index
    %54 = vector.load %arg8[%c0_39, %c192, %c0_40] : memref<2x288x256xbf16, #tpu.memory_space<vmem>>, vector<1x32x256xbf16>
    %55 = vector.shape_cast %54 : vector<1x32x256xbf16> to vector<32x256xbf16>
    %56 = vector.shape_cast %53 : vector<32x256xbf16> to vector<1x32x256xbf16>
    tpu.vector_store %arg8[%c0_39, %c192, %c0_40], %56 {strides = array<i32>} : memref<2x288x256xbf16, #tpu.memory_space<vmem>>, vector<1x32x256xbf16>,
    %c0_41 = arith.constant 0 : index
    %c72 = arith.constant 72 : index
    %57 = vector.load %arg9[%c0_41, %c72] : memref<32x512xbf16, #tpu.memory_space<vmem>>, vector<32x256xbf16>
    %58 = vector.broadcast %6 : vector<1x256xbf16> to vector<32x256xbf16>
    %59 = arith.mulf %57, %58 : vector<32x256xbf16>
    %c0_42 = arith.constant 0 : index
    %c224 = arith.constant 224 : index
    %c0_43 = arith.constant 0 : index
    %60 = vector.load %arg8[%c0_42, %c224, %c0_43] : memref<2x288x256xbf16, #tpu.memory_space<vmem>>, vector<1x32x256xbf16>
    %61 = vector.shape_cast %60 : vector<1x32x256xbf16> to vector<32x256xbf16>
    %62 = vector.shape_cast %59 : vector<32x256xbf16> to vector<1x32x256xbf16>
    tpu.vector_store %arg8[%c0_42, %c224, %c0_43], %62 {strides = array<i32>} : memref<2x288x256xbf16, #tpu.memory_space<vmem>>, vector<1x32x256xbf16>,
    %c0_44 = arith.constant 0 : index
    %c73 = arith.constant 73 : index
    %63 = vector.load %arg9[%c0_44, %c73] : memref<32x512xbf16, #tpu.memory_space<vmem>>, vector<32x256xbf16>
    %64 = vector.broadcast %7 : vector<1x256xbf16> to vector<32x256xbf16>
    %65 = arith.mulf %63, %64 : vector<32x256xbf16>
    %c0_45 = arith.constant 0 : index
    %c256 = arith.constant 256 : index
    %c0_46 = arith.constant 0 : index
    %66 = vector.load %arg8[%c0_45, %c256, %c0_46] : memref<2x288x256xbf16, #tpu.memory_space<vmem>>, vector<1x32x256xbf16>
    %67 = vector.shape_cast %66 : vector<1x32x256xbf16> to vector<32x256xbf16>
    %68 = vector.shape_cast %65 : vector<32x256xbf16> to vector<1x32x256xbf16>
    tpu.vector_store %arg8[%c0_45, %c256, %c0_46], %68 {strides = array<i32>} : memref<2x288x256xbf16, #tpu.memory_space<vmem>>, vector<1x32x256xbf16>,
    %c0_47 = arith.constant 0 : index
    %c0_48 = arith.constant 0 : index
    %c0_49 = arith.constant 0 : index
    %69 = vector.load %arg3[%c0_47, %c0_48, %c0_49] : memref<3x32x288xbf16, #tpu.memory_space<vmem>>, vector<1x32x288xbf16>
    %70 = vector.shape_cast %69 : vector<1x32x288xbf16> to vector<32x288xbf16>
    %c0_50 = arith.constant 0 : index
    %c0_51 = arith.constant 0 : index
    %c0_52 = arith.constant 0 : index
    %71 = vector.load %arg8[%c0_50, %c0_51, %c0_52] : memref<2x288x256xbf16, #tpu.memory_space<vmem>>, vector<1x288x256xbf16>
    %72 = vector.shape_cast %71 : vector<1x288x256xbf16> to vector<288x256xbf16>
    %cst_53 = arith.constant dense<0.000000e+00> : vector<32x256xf32>
    %73 = tpu.matmul %70, %72, %cst_53 {dimension_numbers = #tpu.dot_dimension_numbers<[1], [0], [0], [1], [0, 0, 1, 1], [], []>} : vector<32x288xbf16>, vector<288x256xbf16>, vector<32x256xf32> -> vector<32x256xf32>
    %74 = arith.addf %16, %73 : vector<32x256xf32>
    %c0_54 = arith.constant 0 : index
    %c119 = arith.constant 119 : index
    %75 = vector.load %arg9[%c0_54, %c119] : memref<32x512xbf16, #tpu.memory_space<vmem>>, vector<32x256xbf16>
    %76 = vector.broadcast %0 : vector<1x256xbf16> to vector<32x256xbf16>
    %77 = arith.mulf %75, %76 : vector<32x256xbf16>
    %c1_55 = arith.constant 1 : index
    %c0_56 = arith.constant 0 : index
    %c0_57 = arith.constant 0 : index
    %78 = vector.load %arg8[%c1_55, %c0_56, %c0_57] : memref<2x288x256xbf16, #tpu.memory_space<vmem>>, vector<1x32x256xbf16>
    %79 = vector.shape_cast %78 : vector<1x32x256xbf16> to vector<32x256xbf16>
    %80 = vector.shape_cast %77 : vector<32x256xbf16> to vector<1x32x256xbf16>
    tpu.vector_store %arg8[%c1_55, %c0_56, %c0_57], %80 {strides = array<i32>} : memref<2x288x256xbf16, #tpu.memory_space<vmem>>, vector<1x32x256xbf16>,
    %c0_58 = arith.constant 0 : index
    %c120 = arith.constant 120 : index
    %81 = vector.load %arg9[%c0_58, %c120] : memref<32x512xbf16, #tpu.memory_space<vmem>>, vector<32x256xbf16>
    %82 = vector.broadcast %1 : vector<1x256xbf16> to vector<32x256xbf16>
    %83 = arith.mulf %81, %82 : vector<32x256xbf16>
    %c1_59 = arith.constant 1 : index
    %c32_60 = arith.constant 32 : index
    %c0_61 = arith.constant 0 : index
    %84 = vector.load %arg8[%c1_59, %c32_60, %c0_61] : memref<2x288x256xbf16, #tpu.memory_space<vmem>>, vector<1x32x256xbf16>
    %85 = vector.shape_cast %84 : vector<1x32x256xbf16> to vector<32x256xbf16>
    %86 = vector.shape_cast %83 : vector<32x256xbf16> to vector<1x32x256xbf16>
    tpu.vector_store %arg8[%c1_59, %c32_60, %c0_61], %86 {strides = array<i32>} : memref<2x288x256xbf16, #tpu.memory_space<vmem>>, vector<1x32x256xbf16>,
    %c0_62 = arith.constant 0 : index
    %c121 = arith.constant 121 : index
    %87 = vector.load %arg9[%c0_62, %c121] : memref<32x512xbf16, #tpu.memory_space<vmem>>, vector<32x256xbf16>
    %88 = vector.broadcast %2 : vector<1x256xbf16> to vector<32x256xbf16>
    %89 = arith.mulf %87, %88 : vector<32x256xbf16>
    %c1_63 = arith.constant 1 : index
    %c64_64 = arith.constant 64 : index
    %c0_65 = arith.constant 0 : index
    %90 = vector.load %arg8[%c1_63, %c64_64, %c0_65] : memref<2x288x256xbf16, #tpu.memory_space<vmem>>, vector<1x32x256xbf16>
    %91 = vector.shape_cast %90 : vector<1x32x256xbf16> to vector<32x256xbf16>
    %92 = vector.shape_cast %89 : vector<32x256xbf16> to vector<1x32x256xbf16>
    tpu.vector_store %arg8[%c1_63, %c64_64, %c0_65], %92 {strides = array<i32>} : memref<2x288x256xbf16, #tpu.memory_space<vmem>>, vector<1x32x256xbf16>,
    %c0_66 = arith.constant 0 : index
    %c127 = arith.constant 127 : index
    %93 = vector.load %arg9[%c0_66, %c127] : memref<32x512xbf16, #tpu.memory_space<vmem>>, vector<32x256xbf16>
    %94 = vector.broadcast %3 : vector<1x256xbf16> to vector<32x256xbf16>
    %95 = arith.mulf %93, %94 : vector<32x256xbf16>
    %c1_67 = arith.constant 1 : index
    %c96_68 = arith.constant 96 : index
    %c0_69 = arith.constant 0 : index
    %96 = vector.load %arg8[%c1_67, %c96_68, %c0_69] : memref<2x288x256xbf16, #tpu.memory_space<vmem>>, vector<1x32x256xbf16>
    %97 = vector.shape_cast %96 : vector<1x32x256xbf16> to vector<32x256xbf16>
    %98 = vector.shape_cast %95 : vector<32x256xbf16> to vector<1x32x256xbf16>
    tpu.vector_store %arg8[%c1_67, %c96_68, %c0_69], %98 {strides = array<i32>} : memref<2x288x256xbf16, #tpu.memory_space<vmem>>, vector<1x32x256xbf16>,
    %c0_70 = arith.constant 0 : index
    %c128_71 = arith.constant 128 : index
    %99 = vector.load %arg9[%c0_70, %c128_71] : memref<32x512xbf16, #tpu.memory_space<vmem>>, vector<32x256xbf16>
    %c1_72 = arith.constant 1 : index
    %c128_73 = arith.constant 128 : index
    %c0_74 = arith.constant 0 : index
    %100 = vector.load %arg8[%c1_72, %c128_73, %c0_74] : memref<2x288x256xbf16, #tpu.memory_space<vmem>>, vector<1x32x256xbf16>
    %101 = vector.shape_cast %100 : vector<1x32x256xbf16> to vector<32x256xbf16>
    %102 = vector.shape_cast %99 : vector<32x256xbf16> to vector<1x32x256xbf16>
    tpu.vector_store %arg8[%c1_72, %c128_73, %c0_74], %102 {strides = array<i32>} : memref<2x288x256xbf16, #tpu.memory_space<vmem>>, vector<1x32x256xbf16>,
    %c0_75 = arith.constant 0 : index
    %c129 = arith.constant 129 : index
    %103 = vector.load %arg9[%c0_75, %c129] : memref<32x512xbf16, #tpu.memory_space<vmem>>, vector<32x256xbf16>
    %104 = vector.broadcast %4 : vector<1x256xbf16> to vector<32x256xbf16>
    %105 = arith.mulf %103, %104 : vector<32x256xbf16>
    %c1_76 = arith.constant 1 : index
    %c160_77 = arith.constant 160 : index
    %c0_78 = arith.constant 0 : index
    %106 = vector.load %arg8[%c1_76, %c160_77, %c0_78] : memref<2x288x256xbf16, #tpu.memory_space<vmem>>, vector<1x32x256xbf16>
    %107 = vector.shape_cast %106 : vector<1x32x256xbf16> to vector<32x256xbf16>
    %108 = vector.shape_cast %105 : vector<32x256xbf16> to vector<1x32x256xbf16>
    tpu.vector_store %arg8[%c1_76, %c160_77, %c0_78], %108 {strides = array<i32>} : memref<2x288x256xbf16, #tpu.memory_space<vmem>>, vector<1x32x256xbf16>,
    %c0_79 = arith.constant 0 : index
    %c135 = arith.constant 135 : index
    %109 = vector.load %arg9[%c0_79, %c135] : memref<32x512xbf16, #tpu.memory_space<vmem>>, vector<32x256xbf16>
    %110 = vector.broadcast %5 : vector<1x256xbf16> to vector<32x256xbf16>
    %111 = arith.mulf %109, %110 : vector<32x256xbf16>
    %c1_80 = arith.constant 1 : index
    %c192_81 = arith.constant 192 : index
    %c0_82 = arith.constant 0 : index
    %112 = vector.load %arg8[%c1_80, %c192_81, %c0_82] : memref<2x288x256xbf16, #tpu.memory_space<vmem>>, vector<1x32x256xbf16>
    %113 = vector.shape_cast %112 : vector<1x32x256xbf16> to vector<32x256xbf16>
    %114 = vector.shape_cast %111 : vector<32x256xbf16> to vector<1x32x256xbf16>
    tpu.vector_store %arg8[%c1_80, %c192_81, %c0_82], %114 {strides = array<i32>} : memref<2x288x256xbf16, #tpu.memory_space<vmem>>, vector<1x32x256xbf16>,
    %c0_83 = arith.constant 0 : index
    %c136 = arith.constant 136 : index
    %115 = vector.load %arg9[%c0_83, %c136] : memref<32x512xbf16, #tpu.memory_space<vmem>>, vector<32x256xbf16>
    %116 = vector.broadcast %6 : vector<1x256xbf16> to vector<32x256xbf16>
    %117 = arith.mulf %115, %116 : vector<32x256xbf16>
    %c1_84 = arith.constant 1 : index
    %c224_85 = arith.constant 224 : index
    %c0_86 = arith.constant 0 : index
    %118 = vector.load %arg8[%c1_84, %c224_85, %c0_86] : memref<2x288x256xbf16, #tpu.memory_space<vmem>>, vector<1x32x256xbf16>
    %119 = vector.shape_cast %118 : vector<1x32x256xbf16> to vector<32x256xbf16>
    %120 = vector.shape_cast %117 : vector<32x256xbf16> to vector<1x32x256xbf16>
    tpu.vector_store %arg8[%c1_84, %c224_85, %c0_86], %120 {strides = array<i32>} : memref<2x288x256xbf16, #tpu.memory_space<vmem>>, vector<1x32x256xbf16>,
    %c0_87 = arith.constant 0 : index
    %c137 = arith.constant 137 : index
    %121 = vector.load %arg9[%c0_87, %c137] : memref<32x512xbf16, #tpu.memory_space<vmem>>, vector<32x256xbf16>
    %122 = vector.broadcast %7 : vector<1x256xbf16> to vector<32x256xbf16>
    %123 = arith.mulf %121, %122 : vector<32x256xbf16>
    %c1_88 = arith.constant 1 : index
    %c256_89 = arith.constant 256 : index
    %c0_90 = arith.constant 0 : index
    %124 = vector.load %arg8[%c1_88, %c256_89, %c0_90] : memref<2x288x256xbf16, #tpu.memory_space<vmem>>, vector<1x32x256xbf16>
    %125 = vector.shape_cast %124 : vector<1x32x256xbf16> to vector<32x256xbf16>
    %126 = vector.shape_cast %123 : vector<32x256xbf16> to vector<1x32x256xbf16>
    tpu.vector_store %arg8[%c1_88, %c256_89, %c0_90], %126 {strides = array<i32>} : memref<2x288x256xbf16, #tpu.memory_space<vmem>>, vector<1x32x256xbf16>,
    %c1_91 = arith.constant 1 : index
    %c0_92 = arith.constant 0 : index
    %c0_93 = arith.constant 0 : index
    %127 = vector.load %arg3[%c1_91, %c0_92, %c0_93] : memref<3x32x288xbf16, #tpu.memory_space<vmem>>, vector<1x32x288xbf16>
    %128 = vector.shape_cast %127 : vector<1x32x288xbf16> to vector<32x288xbf16>
    %c1_94 = arith.constant 1 : index
    %c0_95 = arith.constant 0 : index
    %c0_96 = arith.constant 0 : index
    %129 = vector.load %arg8[%c1_94, %c0_95, %c0_96] : memref<2x288x256xbf16, #tpu.memory_space<vmem>>, vector<1x288x256xbf16>
    %130 = vector.shape_cast %129 : vector<1x288x256xbf16> to vector<288x256xbf16>
    %cst_97 = arith.constant dense<0.000000e+00> : vector<32x256xf32>
    %131 = tpu.matmul %128, %130, %cst_97 {dimension_numbers = #tpu.dot_dimension_numbers<[1], [0], [0], [1], [0, 0, 1, 1], [], []>} : vector<32x288xbf16>, vector<288x256xbf16>, vector<32x256xf32> -> vector<32x256xf32>
    %132 = arith.addf %74, %131 : vector<32x256xf32>
    %c0_98 = arith.constant 0 : index
    %c183 = arith.constant 183 : index
    %133 = vector.load %arg9[%c0_98, %c183] : memref<32x512xbf16, #tpu.memory_space<vmem>>, vector<32x256xbf16>
    %134 = vector.broadcast %0 : vector<1x256xbf16> to vector<32x256xbf16>
    %135 = arith.mulf %133, %134 : vector<32x256xbf16>
    %c0_99 = arith.constant 0 : index
    %c0_100 = arith.constant 0 : index
    %c0_101 = arith.constant 0 : index
    %136 = vector.load %arg8[%c0_99, %c0_100, %c0_101] : memref<2x288x256xbf16, #tpu.memory_space<vmem>>, vector<1x32x256xbf16>
    %137 = vector.shape_cast %136 : vector<1x32x256xbf16> to vector<32x256xbf16>
    %138 = vector.shape_cast %135 : vector<32x256xbf16> to vector<1x32x256xbf16>
    tpu.vector_store %arg8[%c0_99, %c0_100, %c0_101], %138 {strides = array<i32>} : memref<2x288x256xbf16, #tpu.memory_space<vmem>>, vector<1x32x256xbf16>,
    %c0_102 = arith.constant 0 : index
    %c184 = arith.constant 184 : index
    %139 = vector.load %arg9[%c0_102, %c184] : memref<32x512xbf16, #tpu.memory_space<vmem>>, vector<32x256xbf16>
    %140 = vector.broadcast %1 : vector<1x256xbf16> to vector<32x256xbf16>
    %141 = arith.mulf %139, %140 : vector<32x256xbf16>
    %c0_103 = arith.constant 0 : index
    %c32_104 = arith.constant 32 : index
    %c0_105 = arith.constant 0 : index
    %142 = vector.load %arg8[%c0_103, %c32_104, %c0_105] : memref<2x288x256xbf16, #tpu.memory_space<vmem>>, vector<1x32x256xbf16>
    %143 = vector.shape_cast %142 : vector<1x32x256xbf16> to vector<32x256xbf16>
    %144 = vector.shape_cast %141 : vector<32x256xbf16> to vector<1x32x256xbf16>
    tpu.vector_store %arg8[%c0_103, %c32_104, %c0_105], %144 {strides = array<i32>} : memref<2x288x256xbf16, #tpu.memory_space<vmem>>, vector<1x32x256xbf16>,
    %c0_106 = arith.constant 0 : index
    %c185 = arith.constant 185 : index
    %145 = vector.load %arg9[%c0_106, %c185] : memref<32x512xbf16, #tpu.memory_space<vmem>>, vector<32x256xbf16>
    %146 = vector.broadcast %2 : vector<1x256xbf16> to vector<32x256xbf16>
    %147 = arith.mulf %145, %146 : vector<32x256xbf16>
    %c0_107 = arith.constant 0 : index
    %c64_108 = arith.constant 64 : index
    %c0_109 = arith.constant 0 : index
    %148 = vector.load %arg8[%c0_107, %c64_108, %c0_109] : memref<2x288x256xbf16, #tpu.memory_space<vmem>>, vector<1x32x256xbf16>
    %149 = vector.shape_cast %148 : vector<1x32x256xbf16> to vector<32x256xbf16>
    %150 = vector.shape_cast %147 : vector<32x256xbf16> to vector<1x32x256xbf16>
    tpu.vector_store %arg8[%c0_107, %c64_108, %c0_109], %150 {strides = array<i32>} : memref<2x288x256xbf16, #tpu.memory_space<vmem>>, vector<1x32x256xbf16>,
    %c0_110 = arith.constant 0 : index
    %c191 = arith.constant 191 : index
    %151 = vector.load %arg9[%c0_110, %c191] : memref<32x512xbf16, #tpu.memory_space<vmem>>, vector<32x256xbf16>
    %152 = vector.broadcast %3 : vector<1x256xbf16> to vector<32x256xbf16>
    %153 = arith.mulf %151, %152 : vector<32x256xbf16>
    %c0_111 = arith.constant 0 : index
    %c96_112 = arith.constant 96 : index
    %c0_113 = arith.constant 0 : index
    %154 = vector.load %arg8[%c0_111, %c96_112, %c0_113] : memref<2x288x256xbf16, #tpu.memory_space<vmem>>, vector<1x32x256xbf16>
    %155 = vector.shape_cast %154 : vector<1x32x256xbf16> to vector<32x256xbf16>
    %156 = vector.shape_cast %153 : vector<32x256xbf16> to vector<1x32x256xbf16>
    tpu.vector_store %arg8[%c0_111, %c96_112, %c0_113], %156 {strides = array<i32>} : memref<2x288x256xbf16, #tpu.memory_space<vmem>>, vector<1x32x256xbf16>,
    %c0_114 = arith.constant 0 : index
    %c192_115 = arith.constant 192 : index
    %157 = vector.load %arg9[%c0_114, %c192_115] : memref<32x512xbf16, #tpu.memory_space<vmem>>, vector<32x256xbf16>
    %c0_116 = arith.constant 0 : index
    %c128_117 = arith.constant 128 : index
    %c0_118 = arith.constant 0 : index
    %158 = vector.load %arg8[%c0_116, %c128_117, %c0_118] : memref<2x288x256xbf16, #tpu.memory_space<vmem>>, vector<1x32x256xbf16>
    %159 = vector.shape_cast %158 : vector<1x32x256xbf16> to vector<32x256xbf16>
    %160 = vector.shape_cast %157 : vector<32x256xbf16> to vector<1x32x256xbf16>
    tpu.vector_store %arg8[%c0_116, %c128_117, %c0_118], %160 {strides = array<i32>} : memref<2x288x256xbf16, #tpu.memory_space<vmem>>, vector<1x32x256xbf16>,
    %c0_119 = arith.constant 0 : index
    %c193 = arith.constant 193 : index
    %161 = vector.load %arg9[%c0_119, %c193] : memref<32x512xbf16, #tpu.memory_space<vmem>>, vector<32x256xbf16>
    %162 = vector.broadcast %4 : vector<1x256xbf16> to vector<32x256xbf16>
    %163 = arith.mulf %161, %162 : vector<32x256xbf16>
    %c0_120 = arith.constant 0 : index
    %c160_121 = arith.constant 160 : index
    %c0_122 = arith.constant 0 : index
    %164 = vector.load %arg8[%c0_120, %c160_121, %c0_122] : memref<2x288x256xbf16, #tpu.memory_space<vmem>>, vector<1x32x256xbf16>
    %165 = vector.shape_cast %164 : vector<1x32x256xbf16> to vector<32x256xbf16>
    %166 = vector.shape_cast %163 : vector<32x256xbf16> to vector<1x32x256xbf16>
    tpu.vector_store %arg8[%c0_120, %c160_121, %c0_122], %166 {strides = array<i32>} : memref<2x288x256xbf16, #tpu.memory_space<vmem>>, vector<1x32x256xbf16>,
    %c0_123 = arith.constant 0 : index
    %c199 = arith.constant 199 : index
    %167 = vector.load %arg9[%c0_123, %c199] : memref<32x512xbf16, #tpu.memory_space<vmem>>, vector<32x256xbf16>
    %168 = vector.broadcast %5 : vector<1x256xbf16> to vector<32x256xbf16>
    %169 = arith.mulf %167, %168 : vector<32x256xbf16>
    %c0_124 = arith.constant 0 : index
    %c192_125 = arith.constant 192 : index
    %c0_126 = arith.constant 0 : index
    %170 = vector.load %arg8[%c0_124, %c192_125, %c0_126] : memref<2x288x256xbf16, #tpu.memory_space<vmem>>, vector<1x32x256xbf16>
    %171 = vector.shape_cast %170 : vector<1x32x256xbf16> to vector<32x256xbf16>
    %172 = vector.shape_cast %169 : vector<32x256xbf16> to vector<1x32x256xbf16>
    tpu.vector_store %arg8[%c0_124, %c192_125, %c0_126], %172 {strides = array<i32>} : memref<2x288x256xbf16, #tpu.memory_space<vmem>>, vector<1x32x256xbf16>,
    %c0_127 = arith.constant 0 : index
    %c200 = arith.constant 200 : index
    %173 = vector.load %arg9[%c0_127, %c200] : memref<32x512xbf16, #tpu.memory_space<vmem>>, vector<32x256xbf16>
    %174 = vector.broadcast %6 : vector<1x256xbf16> to vector<32x256xbf16>
    %175 = arith.mulf %173, %174 : vector<32x256xbf16>
    %c0_128 = arith.constant 0 : index
    %c224_129 = arith.constant 224 : index
    %c0_130 = arith.constant 0 : index
    %176 = vector.load %arg8[%c0_128, %c224_129, %c0_130] : memref<2x288x256xbf16, #tpu.memory_space<vmem>>, vector<1x32x256xbf16>
    %177 = vector.shape_cast %176 : vector<1x32x256xbf16> to vector<32x256xbf16>
    %178 = vector.shape_cast %175 : vector<32x256xbf16> to vector<1x32x256xbf16>
    tpu.vector_store %arg8[%c0_128, %c224_129, %c0_130], %178 {strides = array<i32>} : memref<2x288x256xbf16, #tpu.memory_space<vmem>>, vector<1x32x256xbf16>,
    %c0_131 = arith.constant 0 : index
    %c201 = arith.constant 201 : index
    %179 = vector.load %arg9[%c0_131, %c201] : memref<32x512xbf16, #tpu.memory_space<vmem>>, vector<32x256xbf16>
    %180 = vector.broadcast %7 : vector<1x256xbf16> to vector<32x256xbf16>
    %181 = arith.mulf %179, %180 : vector<32x256xbf16>
    %c0_132 = arith.constant 0 : index
    %c256_133 = arith.constant 256 : index
    %c0_134 = arith.constant 0 : index
    %182 = vector.load %arg8[%c0_132, %c256_133, %c0_134] : memref<2x288x256xbf16, #tpu.memory_space<vmem>>, vector<1x32x256xbf16>
    %183 = vector.shape_cast %182 : vector<1x32x256xbf16> to vector<32x256xbf16>
    %184 = vector.shape_cast %181 : vector<32x256xbf16> to vector<1x32x256xbf16>
    tpu.vector_store %arg8[%c0_132, %c256_133, %c0_134], %184 {strides = array<i32>} : memref<2x288x256xbf16, #tpu.memory_space<vmem>>, vector<1x32x256xbf16>,
    %c2_135 = arith.constant 2 : index
    %c0_136 = arith.constant 0 : index
    %c0_137 = arith.constant 0 : index
    %185 = vector.load %arg3[%c2_135, %c0_136, %c0_137] : memref<3x32x288xbf16, #tpu.memory_space<vmem>>, vector<1x32x288xbf16>
    %186 = vector.shape_cast %185 : vector<1x32x288xbf16> to vector<32x288xbf16>
    %c0_138 = arith.constant 0 : index
    %c0_139 = arith.constant 0 : index
    %c0_140 = arith.constant 0 : index
    %187 = vector.load %arg8[%c0_138, %c0_139, %c0_140] : memref<2x288x256xbf16, #tpu.memory_space<vmem>>, vector<1x288x256xbf16>
    %188 = vector.shape_cast %187 : vector<1x288x256xbf16> to vector<288x256xbf16>
    %cst_141 = arith.constant dense<0.000000e+00> : vector<32x256xf32>
    %189 = tpu.matmul %186, %188, %cst_141 {dimension_numbers = #tpu.dot_dimension_numbers<[1], [0], [0], [1], [0, 0, 1, 1], [], []>} : vector<32x288xbf16>, vector<288x256xbf16>, vector<32x256xf32> -> vector<32x256xf32>
    %190 = arith.addf %132, %189 : vector<32x256xf32>
    %c0_142 = arith.constant 0 : index
    %c0_143 = arith.constant 0 : index
    %191 = vector.load %arg4[%c0_142, %c0_143] : memref<32x1xf32, #tpu.memory_space<vmem>>, vector<32x1xf32>
    %192 = vector.broadcast %191 : vector<32x1xf32> to vector<32x256xf32>
    %193 = arith.addf %190, %192 : vector<32x256xf32>
    %cst_144 = arith.constant 0.000000e+00 : f32
    %194 = vector.broadcast %cst_144 : f32 to vector<32x256xf32>
    %195 = arith.maximumf %193, %194 : vector<32x256xf32>
    %196 = arith.truncf %195 : vector<32x256xf32> to vector<32x256xbf16>
    %c0_145 = arith.constant 0 : index
    %c128_146 = arith.constant 128 : index
    %197 = vector.load %arg9[%c0_145, %c128_146] : memref<32x512xbf16, #tpu.memory_space<vmem>>, vector<32x256xbf16>
    tpu.vector_store %arg9[%c0_145, %c128_146], %196 {strides = array<i32>} : memref<32x512xbf16, #tpu.memory_space<vmem>>, vector<32x256xbf16>,
    %cst_147 = arith.constant 0.000000e+00 : f32
    %198 = vector.broadcast %cst_147 : f32 to vector<32x256xf32>
    %c0_148 = arith.constant 0 : index
    %c55_149 = arith.constant 55 : index
    %199 = vector.load %arg9[%c0_148, %c55_149] : memref<32x512xbf16, #tpu.memory_space<vmem>>, vector<32x256xbf16>
    %200 = vector.broadcast %0 : vector<1x256xbf16> to vector<32x256xbf16>
    %201 = arith.mulf %199, %200 : vector<32x256xbf16>
    %c1_150 = arith.constant 1 : index
    %c0_151 = arith.constant 0 : index
    %c0_152 = arith.constant 0 : index
    %202 = vector.load %arg8[%c1_150, %c0_151, %c0_152] : memref<2x288x256xbf16, #tpu.memory_space<vmem>>, vector<1x32x256xbf16>
    %203 = vector.shape_cast %202 : vector<1x32x256xbf16> to vector<32x256xbf16>
    %204 = vector.shape_cast %201 : vector<32x256xbf16> to vector<1x32x256xbf16>
    tpu.vector_store %arg8[%c1_150, %c0_151, %c0_152], %204 {strides = array<i32>} : memref<2x288x256xbf16, #tpu.memory_space<vmem>>, vector<1x32x256xbf16>,
    %c0_153 = arith.constant 0 : index
    %c56_154 = arith.constant 56 : index
    %205 = vector.load %arg9[%c0_153, %c56_154] : memref<32x512xbf16, #tpu.memory_space<vmem>>, vector<32x256xbf16>
    %206 = vector.broadcast %1 : vector<1x256xbf16> to vector<32x256xbf16>
    %207 = arith.mulf %205, %206 : vector<32x256xbf16>
    %c1_155 = arith.constant 1 : index
    %c32_156 = arith.constant 32 : index
    %c0_157 = arith.constant 0 : index
    %208 = vector.load %arg8[%c1_155, %c32_156, %c0_157] : memref<2x288x256xbf16, #tpu.memory_space<vmem>>, vector<1x32x256xbf16>
    %209 = vector.shape_cast %208 : vector<1x32x256xbf16> to vector<32x256xbf16>
    %210 = vector.shape_cast %207 : vector<32x256xbf16> to vector<1x32x256xbf16>
    tpu.vector_store %arg8[%c1_155, %c32_156, %c0_157], %210 {strides = array<i32>} : memref<2x288x256xbf16, #tpu.memory_space<vmem>>, vector<1x32x256xbf16>,
    %c0_158 = arith.constant 0 : index
    %c57_159 = arith.constant 57 : index
    %211 = vector.load %arg9[%c0_158, %c57_159] : memref<32x512xbf16, #tpu.memory_space<vmem>>, vector<32x256xbf16>
    %212 = vector.broadcast %2 : vector<1x256xbf16> to vector<32x256xbf16>
    %213 = arith.mulf %211, %212 : vector<32x256xbf16>
    %c1_160 = arith.constant 1 : index
    %c64_161 = arith.constant 64 : index
    %c0_162 = arith.constant 0 : index
    %214 = vector.load %arg8[%c1_160, %c64_161, %c0_162] : memref<2x288x256xbf16, #tpu.memory_space<vmem>>, vector<1x32x256xbf16>
    %215 = vector.shape_cast %214 : vector<1x32x256xbf16> to vector<32x256xbf16>
    %216 = vector.shape_cast %213 : vector<32x256xbf16> to vector<1x32x256xbf16>
    tpu.vector_store %arg8[%c1_160, %c64_161, %c0_162], %216 {strides = array<i32>} : memref<2x288x256xbf16, #tpu.memory_space<vmem>>, vector<1x32x256xbf16>,
    %c0_163 = arith.constant 0 : index
    %c63_164 = arith.constant 63 : index
    %217 = vector.load %arg9[%c0_163, %c63_164] : memref<32x512xbf16, #tpu.memory_space<vmem>>, vector<32x256xbf16>
    %218 = vector.broadcast %3 : vector<1x256xbf16> to vector<32x256xbf16>
    %219 = arith.mulf %217, %218 : vector<32x256xbf16>
    %c1_165 = arith.constant 1 : index
    %c96_166 = arith.constant 96 : index
    %c0_167 = arith.constant 0 : index
    %220 = vector.load %arg8[%c1_165, %c96_166, %c0_167] : memref<2x288x256xbf16, #tpu.memory_space<vmem>>, vector<1x32x256xbf16>
    %221 = vector.shape_cast %220 : vector<1x32x256xbf16> to vector<32x256xbf16>
    %222 = vector.shape_cast %219 : vector<32x256xbf16> to vector<1x32x256xbf16>
    tpu.vector_store %arg8[%c1_165, %c96_166, %c0_167], %222 {strides = array<i32>} : memref<2x288x256xbf16, #tpu.memory_space<vmem>>, vector<1x32x256xbf16>,
    %c0_168 = arith.constant 0 : index
    %c64_169 = arith.constant 64 : index
    %223 = vector.load %arg9[%c0_168, %c64_169] : memref<32x512xbf16, #tpu.memory_space<vmem>>, vector<32x256xbf16>
    %c1_170 = arith.constant 1 : index
    %c128_171 = arith.constant 128 : index
    %c0_172 = arith.constant 0 : index
    %224 = vector.load %arg8[%c1_170, %c128_171, %c0_172] : memref<2x288x256xbf16, #tpu.memory_space<vmem>>, vector<1x32x256xbf16>
    %225 = vector.shape_cast %224 : vector<1x32x256xbf16> to vector<32x256xbf16>
    %226 = vector.shape_cast %223 : vector<32x256xbf16> to vector<1x32x256xbf16>
    tpu.vector_store %arg8[%c1_170, %c128_171, %c0_172], %226 {strides = array<i32>} : memref<2x288x256xbf16, #tpu.memory_space<vmem>>, vector<1x32x256xbf16>,
    %c0_173 = arith.constant 0 : index
    %c65_174 = arith.constant 65 : index
    %227 = vector.load %arg9[%c0_173, %c65_174] : memref<32x512xbf16, #tpu.memory_space<vmem>>, vector<32x256xbf16>
    %228 = vector.broadcast %4 : vector<1x256xbf16> to vector<32x256xbf16>
    %229 = arith.mulf %227, %228 : vector<32x256xbf16>
    %c1_175 = arith.constant 1 : index
    %c160_176 = arith.constant 160 : index
    %c0_177 = arith.constant 0 : index
    %230 = vector.load %arg8[%c1_175, %c160_176, %c0_177] : memref<2x288x256xbf16, #tpu.memory_space<vmem>>, vector<1x32x256xbf16>
    %231 = vector.shape_cast %230 : vector<1x32x256xbf16> to vector<32x256xbf16>
    %232 = vector.shape_cast %229 : vector<32x256xbf16> to vector<1x32x256xbf16>
    tpu.vector_store %arg8[%c1_175, %c160_176, %c0_177], %232 {strides = array<i32>} : memref<2x288x256xbf16, #tpu.memory_space<vmem>>, vector<1x32x256xbf16>,
    %c0_178 = arith.constant 0 : index
    %c71_179 = arith.constant 71 : index
    %233 = vector.load %arg9[%c0_178, %c71_179] : memref<32x512xbf16, #tpu.memory_space<vmem>>, vector<32x256xbf16>
    %234 = vector.broadcast %5 : vector<1x256xbf16> to vector<32x256xbf16>
    %235 = arith.mulf %233, %234 : vector<32x256xbf16>
    %c1_180 = arith.constant 1 : index
    %c192_181 = arith.constant 192 : index
    %c0_182 = arith.constant 0 : index
    %236 = vector.load %arg8[%c1_180, %c192_181, %c0_182] : memref<2x288x256xbf16, #tpu.memory_space<vmem>>, vector<1x32x256xbf16>
    %237 = vector.shape_cast %236 : vector<1x32x256xbf16> to vector<32x256xbf16>
    %238 = vector.shape_cast %235 : vector<32x256xbf16> to vector<1x32x256xbf16>
    tpu.vector_store %arg8[%c1_180, %c192_181, %c0_182], %238 {strides = array<i32>} : memref<2x288x256xbf16, #tpu.memory_space<vmem>>, vector<1x32x256xbf16>,
    %c0_183 = arith.constant 0 : index
    %c72_184 = arith.constant 72 : index
    %239 = vector.load %arg9[%c0_183, %c72_184] : memref<32x512xbf16, #tpu.memory_space<vmem>>, vector<32x256xbf16>
    %240 = vector.broadcast %6 : vector<1x256xbf16> to vector<32x256xbf16>
    %241 = arith.mulf %239, %240 : vector<32x256xbf16>
    %c1_185 = arith.constant 1 : index
    %c224_186 = arith.constant 224 : index
    %c0_187 = arith.constant 0 : index
    %242 = vector.load %arg8[%c1_185, %c224_186, %c0_187] : memref<2x288x256xbf16, #tpu.memory_space<vmem>>, vector<1x32x256xbf16>
    %243 = vector.shape_cast %242 : vector<1x32x256xbf16> to vector<32x256xbf16>
    %244 = vector.shape_cast %241 : vector<32x256xbf16> to vector<1x32x256xbf16>
    tpu.vector_store %arg8[%c1_185, %c224_186, %c0_187], %244 {strides = array<i32>} : memref<2x288x256xbf16, #tpu.memory_space<vmem>>, vector<1x32x256xbf16>,
    %c0_188 = arith.constant 0 : index
    %c73_189 = arith.constant 73 : index
    %245 = vector.load %arg9[%c0_188, %c73_189] : memref<32x512xbf16, #tpu.memory_space<vmem>>, vector<32x256xbf16>
    %246 = vector.broadcast %7 : vector<1x256xbf16> to vector<32x256xbf16>
    %247 = arith.mulf %245, %246 : vector<32x256xbf16>
    %c1_190 = arith.constant 1 : index
    %c256_191 = arith.constant 256 : index
    %c0_192 = arith.constant 0 : index
    %248 = vector.load %arg8[%c1_190, %c256_191, %c0_192] : memref<2x288x256xbf16, #tpu.memory_space<vmem>>, vector<1x32x256xbf16>
    %249 = vector.shape_cast %248 : vector<1x32x256xbf16> to vector<32x256xbf16>
    %250 = vector.shape_cast %247 : vector<32x256xbf16> to vector<1x32x256xbf16>
    tpu.vector_store %arg8[%c1_190, %c256_191, %c0_192], %250 {strides = array<i32>} : memref<2x288x256xbf16, #tpu.memory_space<vmem>>, vector<1x32x256xbf16>,
    %c0_193 = arith.constant 0 : index
    %c0_194 = arith.constant 0 : index
    %c0_195 = arith.constant 0 : index
    %251 = vector.load %arg5[%c0_193, %c0_194, %c0_195] : memref<3x32x288xbf16, #tpu.memory_space<vmem>>, vector<1x32x288xbf16>
    %252 = vector.shape_cast %251 : vector<1x32x288xbf16> to vector<32x288xbf16>
    %c1_196 = arith.constant 1 : index
    %c0_197 = arith.constant 0 : index
    %c0_198 = arith.constant 0 : index
    %253 = vector.load %arg8[%c1_196, %c0_197, %c0_198] : memref<2x288x256xbf16, #tpu.memory_space<vmem>>, vector<1x288x256xbf16>
    %254 = vector.shape_cast %253 : vector<1x288x256xbf16> to vector<288x256xbf16>
    %cst_199 = arith.constant dense<0.000000e+00> : vector<32x256xf32>
    %255 = tpu.matmul %252, %254, %cst_199 {dimension_numbers = #tpu.dot_dimension_numbers<[1], [0], [0], [1], [0, 0, 1, 1], [], []>} : vector<32x288xbf16>, vector<288x256xbf16>, vector<32x256xf32> -> vector<32x256xf32>
    %256 = arith.addf %198, %255 : vector<32x256xf32>
    %c0_200 = arith.constant 0 : index
    %c119_201 = arith.constant 119 : index
    %257 = vector.load %arg9[%c0_200, %c119_201] : memref<32x512xbf16, #tpu.memory_space<vmem>>, vector<32x256xbf16>
    %258 = vector.broadcast %0 : vector<1x256xbf16> to vector<32x256xbf16>
    %259 = arith.mulf %257, %258 : vector<32x256xbf16>
    %c0_202 = arith.constant 0 : index
    %c0_203 = arith.constant 0 : index
    %c0_204 = arith.constant 0 : index
    %260 = vector.load %arg8[%c0_202, %c0_203, %c0_204] : memref<2x288x256xbf16, #tpu.memory_space<vmem>>, vector<1x32x256xbf16>
    %261 = vector.shape_cast %260 : vector<1x32x256xbf16> to vector<32x256xbf16>
    %262 = vector.shape_cast %259 : vector<32x256xbf16> to vector<1x32x256xbf16>
    tpu.vector_store %arg8[%c0_202, %c0_203, %c0_204], %262 {strides = array<i32>} : memref<2x288x256xbf16, #tpu.memory_space<vmem>>, vector<1x32x256xbf16>,
    %c0_205 = arith.constant 0 : index
    %c120_206 = arith.constant 120 : index
    %263 = vector.load %arg9[%c0_205, %c120_206] : memref<32x512xbf16, #tpu.memory_space<vmem>>, vector<32x256xbf16>
    %264 = vector.broadcast %1 : vector<1x256xbf16> to vector<32x256xbf16>
    %265 = arith.mulf %263, %264 : vector<32x256xbf16>
    %c0_207 = arith.constant 0 : index
    %c32_208 = arith.constant 32 : index
    %c0_209 = arith.constant 0 : index
    %266 = vector.load %arg8[%c0_207, %c32_208, %c0_209] : memref<2x288x256xbf16, #tpu.memory_space<vmem>>, vector<1x32x256xbf16>
    %267 = vector.shape_cast %266 : vector<1x32x256xbf16> to vector<32x256xbf16>
    %268 = vector.shape_cast %265 : vector<32x256xbf16> to vector<1x32x256xbf16>
    tpu.vector_store %arg8[%c0_207, %c32_208, %c0_209], %268 {strides = array<i32>} : memref<2x288x256xbf16, #tpu.memory_space<vmem>>, vector<1x32x256xbf16>,
    %c0_210 = arith.constant 0 : index
    %c121_211 = arith.constant 121 : index
    %269 = vector.load %arg9[%c0_210, %c121_211] : memref<32x512xbf16, #tpu.memory_space<vmem>>, vector<32x256xbf16>
    %270 = vector.broadcast %2 : vector<1x256xbf16> to vector<32x256xbf16>
    %271 = arith.mulf %269, %270 : vector<32x256xbf16>
    %c0_212 = arith.constant 0 : index
    %c64_213 = arith.constant 64 : index
    %c0_214 = arith.constant 0 : index
    %272 = vector.load %arg8[%c0_212, %c64_213, %c0_214] : memref<2x288x256xbf16, #tpu.memory_space<vmem>>, vector<1x32x256xbf16>
    %273 = vector.shape_cast %272 : vector<1x32x256xbf16> to vector<32x256xbf16>
    %274 = vector.shape_cast %271 : vector<32x256xbf16> to vector<1x32x256xbf16>
    tpu.vector_store %arg8[%c0_212, %c64_213, %c0_214], %274 {strides = array<i32>} : memref<2x288x256xbf16, #tpu.memory_space<vmem>>, vector<1x32x256xbf16>,
    %c0_215 = arith.constant 0 : index
    %c127_216 = arith.constant 127 : index
    %275 = vector.load %arg9[%c0_215, %c127_216] : memref<32x512xbf16, #tpu.memory_space<vmem>>, vector<32x256xbf16>
    %276 = vector.broadcast %3 : vector<1x256xbf16> to vector<32x256xbf16>
    %277 = arith.mulf %275, %276 : vector<32x256xbf16>
    %c0_217 = arith.constant 0 : index
    %c96_218 = arith.constant 96 : index
    %c0_219 = arith.constant 0 : index
    %278 = vector.load %arg8[%c0_217, %c96_218, %c0_219] : memref<2x288x256xbf16, #tpu.memory_space<vmem>>, vector<1x32x256xbf16>
    %279 = vector.shape_cast %278 : vector<1x32x256xbf16> to vector<32x256xbf16>
    %280 = vector.shape_cast %277 : vector<32x256xbf16> to vector<1x32x256xbf16>
    tpu.vector_store %arg8[%c0_217, %c96_218, %c0_219], %280 {strides = array<i32>} : memref<2x288x256xbf16, #tpu.memory_space<vmem>>, vector<1x32x256xbf16>,
    %c0_220 = arith.constant 0 : index
    %c128_221 = arith.constant 128 : index
    %281 = vector.load %arg9[%c0_220, %c128_221] : memref<32x512xbf16, #tpu.memory_space<vmem>>, vector<32x256xbf16>
    %c0_222 = arith.constant 0 : index
    %c128_223 = arith.constant 128 : index
    %c0_224 = arith.constant 0 : index
    %282 = vector.load %arg8[%c0_222, %c128_223, %c0_224] : memref<2x288x256xbf16, #tpu.memory_space<vmem>>, vector<1x32x256xbf16>
    %283 = vector.shape_cast %282 : vector<1x32x256xbf16> to vector<32x256xbf16>
    %284 = vector.shape_cast %281 : vector<32x256xbf16> to vector<1x32x256xbf16>
    tpu.vector_store %arg8[%c0_222, %c128_223, %c0_224], %284 {strides = array<i32>} : memref<2x288x256xbf16, #tpu.memory_space<vmem>>, vector<1x32x256xbf16>,
    %c0_225 = arith.constant 0 : index
    %c129_226 = arith.constant 129 : index
    %285 = vector.load %arg9[%c0_225, %c129_226] : memref<32x512xbf16, #tpu.memory_space<vmem>>, vector<32x256xbf16>
    %286 = vector.broadcast %4 : vector<1x256xbf16> to vector<32x256xbf16>
    %287 = arith.mulf %285, %286 : vector<32x256xbf16>
    %c0_227 = arith.constant 0 : index
    %c160_228 = arith.constant 160 : index
    %c0_229 = arith.constant 0 : index
    %288 = vector.load %arg8[%c0_227, %c160_228, %c0_229] : memref<2x288x256xbf16, #tpu.memory_space<vmem>>, vector<1x32x256xbf16>
    %289 = vector.shape_cast %288 : vector<1x32x256xbf16> to vector<32x256xbf16>
    %290 = vector.shape_cast %287 : vector<32x256xbf16> to vector<1x32x256xbf16>
    tpu.vector_store %arg8[%c0_227, %c160_228, %c0_229], %290 {strides = array<i32>} : memref<2x288x256xbf16, #tpu.memory_space<vmem>>, vector<1x32x256xbf16>,
    %c0_230 = arith.constant 0 : index
    %c135_231 = arith.constant 135 : index
    %291 = vector.load %arg9[%c0_230, %c135_231] : memref<32x512xbf16, #tpu.memory_space<vmem>>, vector<32x256xbf16>
    %292 = vector.broadcast %5 : vector<1x256xbf16> to vector<32x256xbf16>
    %293 = arith.mulf %291, %292 : vector<32x256xbf16>
    %c0_232 = arith.constant 0 : index
    %c192_233 = arith.constant 192 : index
    %c0_234 = arith.constant 0 : index
    %294 = vector.load %arg8[%c0_232, %c192_233, %c0_234] : memref<2x288x256xbf16, #tpu.memory_space<vmem>>, vector<1x32x256xbf16>
    %295 = vector.shape_cast %294 : vector<1x32x256xbf16> to vector<32x256xbf16>
    %296 = vector.shape_cast %293 : vector<32x256xbf16> to vector<1x32x256xbf16>
    tpu.vector_store %arg8[%c0_232, %c192_233, %c0_234], %296 {strides = array<i32>} : memref<2x288x256xbf16, #tpu.memory_space<vmem>>, vector<1x32x256xbf16>,
    %c0_235 = arith.constant 0 : index
    %c136_236 = arith.constant 136 : index
    %297 = vector.load %arg9[%c0_235, %c136_236] : memref<32x512xbf16, #tpu.memory_space<vmem>>, vector<32x256xbf16>
    %298 = vector.broadcast %6 : vector<1x256xbf16> to vector<32x256xbf16>
    %299 = arith.mulf %297, %298 : vector<32x256xbf16>
    %c0_237 = arith.constant 0 : index
    %c224_238 = arith.constant 224 : index
    %c0_239 = arith.constant 0 : index
    %300 = vector.load %arg8[%c0_237, %c224_238, %c0_239] : memref<2x288x256xbf16, #tpu.memory_space<vmem>>, vector<1x32x256xbf16>
    %301 = vector.shape_cast %300 : vector<1x32x256xbf16> to vector<32x256xbf16>
    %302 = vector.shape_cast %299 : vector<32x256xbf16> to vector<1x32x256xbf16>
    tpu.vector_store %arg8[%c0_237, %c224_238, %c0_239], %302 {strides = array<i32>} : memref<2x288x256xbf16, #tpu.memory_space<vmem>>, vector<1x32x256xbf16>,
    %c0_240 = arith.constant 0 : index
    %c137_241 = arith.constant 137 : index
    %303 = vector.load %arg9[%c0_240, %c137_241] : memref<32x512xbf16, #tpu.memory_space<vmem>>, vector<32x256xbf16>
    %304 = vector.broadcast %7 : vector<1x256xbf16> to vector<32x256xbf16>
    %305 = arith.mulf %303, %304 : vector<32x256xbf16>
    %c0_242 = arith.constant 0 : index
    %c256_243 = arith.constant 256 : index
    %c0_244 = arith.constant 0 : index
    %306 = vector.load %arg8[%c0_242, %c256_243, %c0_244] : memref<2x288x256xbf16, #tpu.memory_space<vmem>>, vector<1x32x256xbf16>
    %307 = vector.shape_cast %306 : vector<1x32x256xbf16> to vector<32x256xbf16>
    %308 = vector.shape_cast %305 : vector<32x256xbf16> to vector<1x32x256xbf16>
    tpu.vector_store %arg8[%c0_242, %c256_243, %c0_244], %308 {strides = array<i32>} : memref<2x288x256xbf16, #tpu.memory_space<vmem>>, vector<1x32x256xbf16>,
    %c1_245 = arith.constant 1 : index
    %c0_246 = arith.constant 0 : index
    %c0_247 = arith.constant 0 : index
    %309 = vector.load %arg5[%c1_245, %c0_246, %c0_247] : memref<3x32x288xbf16, #tpu.memory_space<vmem>>, vector<1x32x288xbf16>
    %310 = vector.shape_cast %309 : vector<1x32x288xbf16> to vector<32x288xbf16>
    %c0_248 = arith.constant 0 : index
    %c0_249 = arith.constant 0 : index
    %c0_250 = arith.constant 0 : index
    %311 = vector.load %arg8[%c0_248, %c0_249, %c0_250] : memref<2x288x256xbf16, #tpu.memory_space<vmem>>, vector<1x288x256xbf16>
    %312 = vector.shape_cast %311 : vector<1x288x256xbf16> to vector<288x256xbf16>
    %cst_251 = arith.constant dense<0.000000e+00> : vector<32x256xf32>
    %313 = tpu.matmul %310, %312, %cst_251 {dimension_numbers = #tpu.dot_dimension_numbers<[1], [0], [0], [1], [0, 0, 1, 1], [], []>} : vector<32x288xbf16>, vector<288x256xbf16>, vector<32x256xf32> -> vector<32x256xf32>
    %314 = arith.addf %256, %313 : vector<32x256xf32>
    %c0_252 = arith.constant 0 : index
    %c183_253 = arith.constant 183 : index
    %315 = vector.load %arg9[%c0_252, %c183_253] : memref<32x512xbf16, #tpu.memory_space<vmem>>, vector<32x256xbf16>
    %316 = vector.broadcast %0 : vector<1x256xbf16> to vector<32x256xbf16>
    %317 = arith.mulf %315, %316 : vector<32x256xbf16>
    %c1_254 = arith.constant 1 : index
    %c0_255 = arith.constant 0 : index
    %c0_256 = arith.constant 0 : index
    %318 = vector.load %arg8[%c1_254, %c0_255, %c0_256] : memref<2x288x256xbf16, #tpu.memory_space<vmem>>, vector<1x32x256xbf16>
    %319 = vector.shape_cast %318 : vector<1x32x256xbf16> to vector<32x256xbf16>
    %320 = vector.shape_cast %317 : vector<32x256xbf16> to vector<1x32x256xbf16>
    tpu.vector_store %arg8[%c1_254, %c0_255, %c0_256], %320 {strides = array<i32>} : memref<2x288x256xbf16, #tpu.memory_space<vmem>>, vector<1x32x256xbf16>,
    %c0_257 = arith.constant 0 : index
    %c184_258 = arith.constant 184 : index
    %321 = vector.load %arg9[%c0_257, %c184_258] : memref<32x512xbf16, #tpu.memory_space<vmem>>, vector<32x256xbf16>
    %322 = vector.broadcast %1 : vector<1x256xbf16> to vector<32x256xbf16>
    %323 = arith.mulf %321, %322 : vector<32x256xbf16>
    %c1_259 = arith.constant 1 : index
    %c32_260 = arith.constant 32 : index
    %c0_261 = arith.constant 0 : index
    %324 = vector.load %arg8[%c1_259, %c32_260, %c0_261] : memref<2x288x256xbf16, #tpu.memory_space<vmem>>, vector<1x32x256xbf16>
    %325 = vector.shape_cast %324 : vector<1x32x256xbf16> to vector<32x256xbf16>
    %326 = vector.shape_cast %323 : vector<32x256xbf16> to vector<1x32x256xbf16>
    tpu.vector_store %arg8[%c1_259, %c32_260, %c0_261], %326 {strides = array<i32>} : memref<2x288x256xbf16, #tpu.memory_space<vmem>>, vector<1x32x256xbf16>,
    %c0_262 = arith.constant 0 : index
    %c185_263 = arith.constant 185 : index
    %327 = vector.load %arg9[%c0_262, %c185_263] : memref<32x512xbf16, #tpu.memory_space<vmem>>, vector<32x256xbf16>
    %328 = vector.broadcast %2 : vector<1x256xbf16> to vector<32x256xbf16>
    %329 = arith.mulf %327, %328 : vector<32x256xbf16>
    %c1_264 = arith.constant 1 : index
    %c64_265 = arith.constant 64 : index
    %c0_266 = arith.constant 0 : index
    %330 = vector.load %arg8[%c1_264, %c64_265, %c0_266] : memref<2x288x256xbf16, #tpu.memory_space<vmem>>, vector<1x32x256xbf16>
    %331 = vector.shape_cast %330 : vector<1x32x256xbf16> to vector<32x256xbf16>
    %332 = vector.shape_cast %329 : vector<32x256xbf16> to vector<1x32x256xbf16>
    tpu.vector_store %arg8[%c1_264, %c64_265, %c0_266], %332 {strides = array<i32>} : memref<2x288x256xbf16, #tpu.memory_space<vmem>>, vector<1x32x256xbf16>,
    %c0_267 = arith.constant 0 : index
    %c191_268 = arith.constant 191 : index
    %333 = vector.load %arg9[%c0_267, %c191_268] : memref<32x512xbf16, #tpu.memory_space<vmem>>, vector<32x256xbf16>
    %334 = vector.broadcast %3 : vector<1x256xbf16> to vector<32x256xbf16>
    %335 = arith.mulf %333, %334 : vector<32x256xbf16>
    %c1_269 = arith.constant 1 : index
    %c96_270 = arith.constant 96 : index
    %c0_271 = arith.constant 0 : index
    %336 = vector.load %arg8[%c1_269, %c96_270, %c0_271] : memref<2x288x256xbf16, #tpu.memory_space<vmem>>, vector<1x32x256xbf16>
    %337 = vector.shape_cast %336 : vector<1x32x256xbf16> to vector<32x256xbf16>
    %338 = vector.shape_cast %335 : vector<32x256xbf16> to vector<1x32x256xbf16>
    tpu.vector_store %arg8[%c1_269, %c96_270, %c0_271], %338 {strides = array<i32>} : memref<2x288x256xbf16, #tpu.memory_space<vmem>>, vector<1x32x256xbf16>,
    %c0_272 = arith.constant 0 : index
    %c192_273 = arith.constant 192 : index
    %339 = vector.load %arg9[%c0_272, %c192_273] : memref<32x512xbf16, #tpu.memory_space<vmem>>, vector<32x256xbf16>
    %c1_274 = arith.constant 1 : index
    %c128_275 = arith.constant 128 : index
    %c0_276 = arith.constant 0 : index
    %340 = vector.load %arg8[%c1_274, %c128_275, %c0_276] : memref<2x288x256xbf16, #tpu.memory_space<vmem>>, vector<1x32x256xbf16>
    %341 = vector.shape_cast %340 : vector<1x32x256xbf16> to vector<32x256xbf16>
    %342 = vector.shape_cast %339 : vector<32x256xbf16> to vector<1x32x256xbf16>
    tpu.vector_store %arg8[%c1_274, %c128_275, %c0_276], %342 {strides = array<i32>} : memref<2x288x256xbf16, #tpu.memory_space<vmem>>, vector<1x32x256xbf16>,
    %c0_277 = arith.constant 0 : index
    %c193_278 = arith.constant 193 : index
    %343 = vector.load %arg9[%c0_277, %c193_278] : memref<32x512xbf16, #tpu.memory_space<vmem>>, vector<32x256xbf16>
    %344 = vector.broadcast %4 : vector<1x256xbf16> to vector<32x256xbf16>
    %345 = arith.mulf %343, %344 : vector<32x256xbf16>
    %c1_279 = arith.constant 1 : index
    %c160_280 = arith.constant 160 : index
    %c0_281 = arith.constant 0 : index
    %346 = vector.load %arg8[%c1_279, %c160_280, %c0_281] : memref<2x288x256xbf16, #tpu.memory_space<vmem>>, vector<1x32x256xbf16>
    %347 = vector.shape_cast %346 : vector<1x32x256xbf16> to vector<32x256xbf16>
    %348 = vector.shape_cast %345 : vector<32x256xbf16> to vector<1x32x256xbf16>
    tpu.vector_store %arg8[%c1_279, %c160_280, %c0_281], %348 {strides = array<i32>} : memref<2x288x256xbf16, #tpu.memory_space<vmem>>, vector<1x32x256xbf16>,
    %c0_282 = arith.constant 0 : index
    %c199_283 = arith.constant 199 : index
    %349 = vector.load %arg9[%c0_282, %c199_283] : memref<32x512xbf16, #tpu.memory_space<vmem>>, vector<32x256xbf16>
    %350 = vector.broadcast %5 : vector<1x256xbf16> to vector<32x256xbf16>
    %351 = arith.mulf %349, %350 : vector<32x256xbf16>
    %c1_284 = arith.constant 1 : index
    %c192_285 = arith.constant 192 : index
    %c0_286 = arith.constant 0 : index
    %352 = vector.load %arg8[%c1_284, %c192_285, %c0_286] : memref<2x288x256xbf16, #tpu.memory_space<vmem>>, vector<1x32x256xbf16>
    %353 = vector.shape_cast %352 : vector<1x32x256xbf16> to vector<32x256xbf16>
    %354 = vector.shape_cast %351 : vector<32x256xbf16> to vector<1x32x256xbf16>
    tpu.vector_store %arg8[%c1_284, %c192_285, %c0_286], %354 {strides = array<i32>} : memref<2x288x256xbf16, #tpu.memory_space<vmem>>, vector<1x32x256xbf16>,
    %c0_287 = arith.constant 0 : index
    %c200_288 = arith.constant 200 : index
    %355 = vector.load %arg9[%c0_287, %c200_288] : memref<32x512xbf16, #tpu.memory_space<vmem>>, vector<32x256xbf16>
    %356 = vector.broadcast %6 : vector<1x256xbf16> to vector<32x256xbf16>
    %357 = arith.mulf %355, %356 : vector<32x256xbf16>
    %c1_289 = arith.constant 1 : index
    %c224_290 = arith.constant 224 : index
    %c0_291 = arith.constant 0 : index
    %358 = vector.load %arg8[%c1_289, %c224_290, %c0_291] : memref<2x288x256xbf16, #tpu.memory_space<vmem>>, vector<1x32x256xbf16>
    %359 = vector.shape_cast %358 : vector<1x32x256xbf16> to vector<32x256xbf16>
    %360 = vector.shape_cast %357 : vector<32x256xbf16> to vector<1x32x256xbf16>
    tpu.vector_store %arg8[%c1_289, %c224_290, %c0_291], %360 {strides = array<i32>} : memref<2x288x256xbf16, #tpu.memory_space<vmem>>, vector<1x32x256xbf16>,
    %c0_292 = arith.constant 0 : index
    %c201_293 = arith.constant 201 : index
    %361 = vector.load %arg9[%c0_292, %c201_293] : memref<32x512xbf16, #tpu.memory_space<vmem>>, vector<32x256xbf16>
    %362 = vector.broadcast %7 : vector<1x256xbf16> to vector<32x256xbf16>
    %363 = arith.mulf %361, %362 : vector<32x256xbf16>
    %c1_294 = arith.constant 1 : index
    %c256_295 = arith.constant 256 : index
    %c0_296 = arith.constant 0 : index
    %364 = vector.load %arg8[%c1_294, %c256_295, %c0_296] : memref<2x288x256xbf16, #tpu.memory_space<vmem>>, vector<1x32x256xbf16>
    %365 = vector.shape_cast %364 : vector<1x32x256xbf16> to vector<32x256xbf16>
    %366 = vector.shape_cast %363 : vector<32x256xbf16> to vector<1x32x256xbf16>
    tpu.vector_store %arg8[%c1_294, %c256_295, %c0_296], %366 {strides = array<i32>} : memref<2x288x256xbf16, #tpu.memory_space<vmem>>, vector<1x32x256xbf16>,
    %c2_297 = arith.constant 2 : index
    %c0_298 = arith.constant 0 : index
    %c0_299 = arith.constant 0 : index
    %367 = vector.load %arg5[%c2_297, %c0_298, %c0_299] : memref<3x32x288xbf16, #tpu.memory_space<vmem>>, vector<1x32x288xbf16>
    %368 = vector.shape_cast %367 : vector<1x32x288xbf16> to vector<32x288xbf16>
    %c1_300 = arith.constant 1 : index
    %c0_301 = arith.constant 0 : index
    %c0_302 = arith.constant 0 : index
    %369 = vector.load %arg8[%c1_300, %c0_301, %c0_302] : memref<2x288x256xbf16, #tpu.memory_space<vmem>>, vector<1x288x256xbf16>
    %370 = vector.shape_cast %369 : vector<1x288x256xbf16> to vector<288x256xbf16>
    %cst_303 = arith.constant dense<0.000000e+00> : vector<32x256xf32>
    %371 = tpu.matmul %368, %370, %cst_303 {dimension_numbers = #tpu.dot_dimension_numbers<[1], [0], [0], [1], [0, 0, 1, 1], [], []>} : vector<32x288xbf16>, vector<288x256xbf16>, vector<32x256xf32> -> vector<32x256xf32>
    %372 = arith.addf %314, %371 : vector<32x256xf32>
    %c0_304 = arith.constant 0 : index
    %c0_305 = arith.constant 0 : index
    %373 = vector.load %arg6[%c0_304, %c0_305] : memref<32x1xf32, #tpu.memory_space<vmem>>, vector<32x1xf32>
    %374 = vector.broadcast %373 : vector<32x1xf32> to vector<32x256xf32>
    %375 = arith.addf %372, %374 : vector<32x256xf32>
    %c0_306 = arith.constant 0 : index
    %c0_307 = arith.constant 0 : index
    %c0_308 = arith.constant 0 : index
    %376 = vector.load %arg7[%c0_306, %c0_307, %c0_308] : memref<1x32x256xf32, #tpu.memory_space<vmem>>, vector<1x32x256xf32>
    %377 = vector.shape_cast %376 : vector<1x32x256xf32> to vector<32x256xf32>
    %378 = vector.shape_cast %375 : vector<32x256xf32> to vector<1x32x256xf32>
    tpu.vector_store %arg7[%c0_306, %c0_307, %c0_308], %378 {strides = array<i32>} : memref<1x32x256xf32, #tpu.memory_space<vmem>>, vector<1x32x256xf32>,
    return
  }
  func.func @transform_0(%arg0: i32) -> (i32, i32, i32) {
    %c0_i32 = arith.constant 0 : i32
    %c0_i32_0 = arith.constant 0 : i32
    %c0_i32_1 = arith.constant 0 : i32
    return %arg0, %c0_i32, %c0_i32_0 : i32, i32, i32
  }
  func.func @transform_1(%arg0: i32) -> (i32, i32) {
    %c0_i32 = arith.constant 0 : i32
    %c0_i32_0 = arith.constant 0 : i32
    %c0_i32_1 = arith.constant 0 : i32
    return %c0_i32, %c0_i32_0 : i32, i32
  }
  func.func @transform_2(%arg0: i32) -> (i32, i32, i32) {
    %c0_i32 = arith.constant 0 : i32
    %c0_i32_0 = arith.constant 0 : i32
    %c0_i32_1 = arith.constant 0 : i32
    %c0_i32_2 = arith.constant 0 : i32
    return %c0_i32, %c0_i32_0, %c0_i32_1 : i32, i32, i32
  }
  func.func @transform_3(%arg0: i32) -> (i32, i32) {
    %c0_i32 = arith.constant 0 : i32
    %c0_i32_0 = arith.constant 0 : i32
    %c0_i32_1 = arith.constant 0 : i32
    return %c0_i32, %c0_i32_0 : i32, i32
  }
  func.func @transform_4(%arg0: i32) -> (i32, i32, i32) {
    %c0_i32 = arith.constant 0 : i32
    %c0_i32_0 = arith.constant 0 : i32
    %c0_i32_1 = arith.constant 0 : i32
    %c0_i32_2 = arith.constant 0 : i32
    return %c0_i32, %c0_i32_0, %c0_i32_1 : i32, i32, i32
  }
  func.func @transform_5(%arg0: i32) -> (i32, i32) {
    %c0_i32 = arith.constant 0 : i32
    %c0_i32_0 = arith.constant 0 : i32
    %c0_i32_1 = arith.constant 0 : i32
    return %c0_i32, %c0_i32_0 : i32, i32
  }
  func.func @transform_6(%arg0: i32) -> (i32, i32, i32) {
    %c0_i32 = arith.constant 0 : i32
    %c0_i32_0 = arith.constant 0 : i32
    %c0_i32_1 = arith.constant 0 : i32
    return %arg0, %c0_i32, %c0_i32_0 : i32, i32, i32
  }
}

</mosaic_0001>

<bundles_post_ra>
// kernel: tpu_custom_call.1
= control target key start
LH: loop header
LB: loop body
LE: loop exit
PB: predicated region body
PF: predicated region fallthrough
CT: control target
= control target key end

     0   :  { %11 = vsyncpa [#allocation5], 0  ;;  %s9755_s0 = inlined_call_operand.hbm [shape: f32[2,32,256], index: 0, kind: input, shape index: {}]   ;;  %s9756_s1 = inlined_call_operand.vmem [shape: bf16[9,256], index: 1, kind: input, shape index: {}]   ;;  %s9757_s2 = inlined_call_operand.hbm [shape: bf16[3,32,288], index: 2, kind: input, shape index: {}]   ;;  %s9758_s3 = inlined_call_operand.vmem [shape: f32[32,1], index: 3, kind: input, shape index: {}]   ;;  %s9759_s4 = inlined_call_operand.hbm [shape: bf16[3,32,288], index: 4, kind: input, shape index: {}]   ;;  %s9760_s5 = inlined_call_operand.vmem [shape: f32[32,1], index: 5, kind: input, shape index: {}]   ;;  %s9761_s6 = inlined_call_operand.hbm [shape: f32[2,32,256], index: 6, kind: output, shape index: {}]  }
   0x1   :  { %13 = vsyncpa [#allocation5 + $0x1], 0 }
   0x2   :  { %14 = vsyncpa [#allocation8], 0 }
   0x3   :  { %15 = vsyncpa [#allocation6], 0 }
   0x4   :  { %17 = vsyncpa [#allocation6 + $0x1], 0  ;;  %s7083_s21 = smov 0   ;;  %s7085_s22 = smov 0  }
   0x5   :  { %s7087_s23 = smov 0   ;;  %s7089_s24 = smov 0  }
   0x6 LB: > { %s7104_s25 = sadd.s32 4294967295, %s7018_s24   ;;  %s6386_s26 = sadd.s32 4294967294, %s7018_s24   ;;  %s7018_s24 = sphi %s7089_s24, %s10116_s24   ;;  %s7014_s23 = sphi %s7087_s23, %s10115_s23   ;;  %s7010_s22 = sphi %s7085_s22, %s10114_s22   ;;  %s7006_s21 = sphi %s7083_s21, %s10113_s21  }
   0x7   : > { %p43_p0 = scmp.ne.s32.totalorder %s7010_s22, %s7006_s21  ;;  %p9762_p1 = scmp.eq.s32.totalorder %s7104_s25, 0 }
   0x8   : > { %p178_p3 = scmp.eq.s32.totalorder %s6386_s26, 1  ;;  %p6387_p5 = scmp.ge.s32.totalorder %s7018_s24, 1 }
   0x9   : > { %p7113_p4 = por %p9762_p1, %p43_p0  ;;  %p185_p7 = scmp.lt.s32.totalorder %s7018_s24, 3 }
   0xa   : > { %p7118_p6 = por %p178_p3, %p43_p0  ;;  %s7020_s30 = smov [#allocation7]  }
   0xb   : > { %s9872_s27 = scalar_select %p7113_p4, 1, 0 }
   0xc   : > { %s9873_s28 = scalar_select %p7118_p6, 1, 0 }
   0xd   : > { %p7123_p8 = pnand %p6387_p5, %p185_p7  ;;  %s200_s7 = sshll.u32 %s7020_s30, 4  ;;  %s201_s7 = int_to_ptr.vmem [resolvable:$true] %s200_s7 }
   0xe   : > { %s7021_s9 = smov [#allocation9]   ;;  %s6881_s11 = scalar_lea.vmem %s201_s7, 2304 }
   0xf   : > { %s9874_s29 = scalar_select %p7123_p8, 1, 0 }
  0x10   : > { %p6716_p9 = pneg %p7123_p8  ;;  %s216_s10 = sshll.u32 %s7021_s9, 4  ;;  %s217_s10 = int_to_ptr.vmem [resolvable:$true] %s216_s10 }
  0x11   : > { %p6882_p13 = scmp.ne.s32.totalorder %s201_s7, %s6881_s11  ;;  %p6889_p5 = scmp.lt.s32.totalorder %s201_s7, %s201_s7 }
  0x12   : > { %p7132_p11 = pnand %p6716_p9, %p9762_p1  ;;  %p6890_p7 = scmp.lt.s32.totalorder %s6881_s11, %s6881_s11 }
  0x14   : > { %p6872_p12 = pneg %p7132_p11  ;;  %p6891_p10 = por %p6890_p7, %p6889_p5 }
  0x16   : > { %p6884_p0 = pnand %p6882_p13, %p6872_p12 }
  0x18   : > { %p6885_p3 = pneg %p6884_p0 }
  0x1a   : > { %p6892_p9 = pnand %p6891_p10, %p6885_p3 }
  0x1c   : > { %6895 = shalt.err (!%p6892_p9)
}
  0x1d   : > { %s7022_s12 = smov 192   ;;  %s7023_s13 = smov 12  }
  0x1e   : > { %6719 = dma.hbm_to_vmem [thread:$0]  (!%p7132_p11), %s9757_s2, 2304, %s201_s7, [#allocation8], %s7022_s12, %s7022_s12, %s7023_s13  }
  0x1f   : > { %s6907_s16 = scalar_lea.vmem %s217_s10, 2304  ;;  %p6915_p2 = scmp.lt.s32.totalorder %s217_s10, %s217_s10 }
  0x20   : > { %p6908_p1 = scmp.ne.s32.totalorder %s217_s10, %s6907_s16  ;;  %p6916_p6 = scmp.lt.s32.totalorder %s6907_s16, %s6907_s16 }
  0x22   : > { %p6910_p13 = pnand %p6908_p1, %p6872_p12  ;;  %p6917_p5 = por %p6916_p6, %p6915_p2 }
  0x24   : > { %p6911_p0 = pneg %p6910_p13 }
  0x26   : > { %p6918_p10 = pnand %p6917_p5, %p6911_p0 }
  0x28   : > { %6921 = shalt.err (!%p6918_p10)
}
  0x29   : > { %6722 = dma.hbm_to_vmem [thread:$0]  (!%p7132_p11), %s9759_s4, 2304, %s217_s10, [#allocation8], %s7022_s12, %s7022_s12, %s7023_s13  }
  0x2a   : > { %s7155_s19 = sadd.s32 1, %s7018_s24   ;;  %s30_s20 = sadd.s32 1, %s7014_s23 }
  0x2b   : > { %s27_s26 = ssub.s32 %s7018_s24, %s7155_s19  ;;  %p37_p1 = scmp.ne.s32.totalorder %s7014_s23, %s7010_s22 }
  0x2c   : > { %p28_p2 = scmp.eq.s32.totalorder %s27_s26, 0  ;;  %p38_p6 = scmp.eq.s32.totalorder %s7018_s24, 0 }
  0x2d   : > { %p9876_p12 = scmp.eq.s32.totalorder %s7104_s25, 1  ;;  %p6733_p7 = scmp.lt.s32.totalorder %s7018_s24, 2 }
  0x2e   : > { %s7171_s7 = scalar_select %p28_p2, %s7014_s23, %s30_s20  }
  0x2f   : > { %p7165_p3 = por %p9876_p12, %p37_p1  ;;  %p39_p9 = por %p38_p6, %p37_p1 }
  0x30   : > { %s233_s8 = sand.u32 1, %s7014_s23   ;;  %s6694_s10 = sshll.u32 %s7018_s24, 10 }
  0x31   : > { %s9877_s30 = scalar_select %p7165_p3, 1, 0 }
  0x32   : > { %s6391_s9 = sshll.u32 %s233_s8, 6  ;;  %s7178_s13 = scalar_lea.hbm %s9755_s0, %s6694_s10 }
  0x33   : > { %s237_s14 = scalar_lea.vmem [#allocation4], %s6391_s9  ;;  %p7182_p11 = pnand %p6733_p7, %p39_p9 }
  0x34   : > { %s244_s15 = sshll.u32 %s237_s14, 4  ;;  %s7186_s17 = scalar_lea.sflag [#allocation5], %s233_s8  ;;  %s7180_s15 = int_to_ptr.vmem [resolvable:$true] %s244_s15 }
  0x35   : > { %s6922_s18 = scalar_lea.hbm %s7178_s13, 1024  ;;  %p6924_p0 = pneg %p7182_p11 }
  0x36   : > { %p6923_p13 = scmp.ne.s32.totalorder %s7178_s13, %s6922_s18  ;;  %s6927_s9 = scalar_lea.hbm %s9755_s0, 2048 }
  0x37   : > { %p6928_p1 = scmp.lt.s32.totalorder %s7178_s13, %s9755_s0  ;;  %p6929_p2 = scmp.lt.s32.totalorder %s6927_s9, %s6922_s18 }
  0x38   : > { %p6925_p5 = pnand %p6924_p0, %p6923_p13 }
  0x39   : > { %p6930_p6 = por %p6929_p2, %p6928_p1 }
  0x3a   : > { %p6926_p10 = pneg %p6925_p5 }
  0x3c   : > { %p6931_p12 = pnand %p6930_p6, %p6926_p10 }
  0x3e   : > { %6934 = shalt.err (!%p6931_p12)
}
  0x3f   : > { %s6935_s8 = scalar_lea.vmem %s7180_s15, 1024  ;;  %s7024_s12 = smov [#allocation4]  }
  0x40   : > { %p6936_p7 = scmp.ne.s32.totalorder %s7180_s15, %s6935_s8  ;;  %s6940_s14 = sshll.u32 %s7024_s12, 4  ;;  %s6941_s14 = int_to_ptr.vmem [resolvable:$false] %s6940_s14 }
  0x41   : > { %s6942_s20 = scalar_lea.vmem %s6941_s14, 2048  ;;  %p6943_p5 = scmp.lt.s32.totalorder %s7180_s15, %s6941_s14 }
  0x42   : > { %p6938_p9 = pnand %p6936_p7, %p6924_p0  ;;  %p6944_p3 = scmp.lt.s32.totalorder %s6942_s20, %s6935_s8 }
  0x44   : > { %p6939_p13 = pneg %p6938_p9  ;;  %p6945_p4 = por %p6944_p3, %p6943_p5 }
  0x46   : > { %p6946_p8 = pnand %p6945_p4, %p6939_p13 }
  0x48   : > { %6949 = shalt.err (!%p6946_p8)
}
  0x49   : > { %s7025_s18 = smov 256   ;;  %s7026_s26 = smov 16  }
  0x4a   : > { %6726 = dma.hbm_to_vmem [thread:$0]  (!%p7182_p11), %s7178_s13, 1024, %s7180_s15, %s7186_s17, %s7025_s18, %s7025_s18, %s7026_s26  }
  0x4b   : > { %p9879_p0 = scmp.ne.s32.totalorder %s9874_s29, 0 }
  0x4d   : > { %256 = sbr.rel (%p9879_p0) target bundleno = 1741 (0x6cd), region = 44 }
  0x52   : > { %s7210_s9 = sand.u32 1, %s7010_s22   ;;  %p9880_p4 = scmp.ne.s32.totalorder %s9872_s27, 0 }
  0x53   : > { %s9766_s10 = sshll.u32 %s7210_s9, 6  ;;  %s259_s11 = scalar_lea.sflag [#allocation5], %s7210_s9 }
  0x54   : > { %s7216_s8 = scalar_lea.vmem [#allocation4], %s9766_s10 }
  0x55   : > { %6993 = dma.done.wait (%p9880_p4), %s259_s11, 1024  }
  0x56   : > { %6995 = vsyncadd (%p9880_p4), %s259_s11, 4294966272  ;;  %p9881_p8 = scmp.eq.s32.totalorder %s7104_s25, 0 }
  0x58   : > { %6997 = dma.done.wait (%p9881_p8), [#allocation8], 4608   ;;  %p9882_p3 = pmov %p9881_p8 }
  0x59   : > { %v365_v0 = vlaneseq  ;;  %v9771_v1 = vmov 0   ;;  %v304_v6 = vld [vmem:[%s9756_s1 + $0x8] sm:$0x11]  ;;  %v301_v7 = vld [vmem:[%s9756_s1] sm:$0x22]  ;;  %s7028_s26 = smov 9  }
  0x5a   : > { %6999 = vsyncadd (%p9882_p3), [#allocation8], 4294962688  ;;  %311 = vst [vmem:[#allocation3 + $0x2c] sm:$0xf] %v9771_v1  ;;  %2122 = vmatprep.mubr.bf16.mxu1 %v9771_v1  ;;  %6795 = vset.pattern.permute.xlu0 %v9771_v1  ;;  %v300_v8 = vld [vmem:[%s9756_s1] sm:$0x11]  ;;  %v6418_v9 = vcombine.low %v304_v6, %v304_v6  ;;  %v6419_v10 = vcombine.high %v304_v6, %v304_v6 }
  0x5b   : > { %305 = vst [vmem:[#allocation3] sm:$0xf] %v9771_v1  ;;  %306 = vst [vmem:[#allocation3 + $0x10] sm:$0xf] %v9771_v1  ;;  %v7236_v2 = vshrl.u32 %v365_v0, 7  ;;  %6796 = vset.pattern.permute.xlu1 %v9771_v1  ;;  %v6407_v11 = vcombine.low %v301_v7, %v301_v7  ;;  %v6408_v12 = vcombine.high %v301_v7, %v301_v7  ;;  %v313_v39 = vld [vmem:[%s7216_s8] sm:$0xff] }
  0x5c   : > { %307 = vst [vmem:[#allocation3 + $0x20] sm:$0xf] %v9771_v1  ;;  %308 = vst [vmem:[#allocation3 + $0x30] sm:$0xf] %v9771_v1  ;;  %v303_v13 = vld [vmem:[%s9756_s1] sm:$0x88]  ;;  %v6403_v14 = vcombine.low %v300_v8, %v300_v8  ;;  %v6404_v15 = vcombine.high %v300_v8, %v300_v8  ;;  %v1074_v18 = vpack.i.b16 %v6418_v9, %v6418_v9 }
  0x5d   : > { %309 = vst [vmem:[#allocation3 + $0xc] sm:$0xf] %v9771_v1  ;;  %310 = vst [vmem:[#allocation3 + $0x1c] sm:$0xf] %v9771_v1  ;;  %v7240_v3 = vsub.s32 0, %v7236_v2  ;;  %v555_v4 = vsub.s32 1, %v7236_v2  ;;  %v6414_v16 = vcombine.low %v303_v13, %v303_v13  ;;  %v6415_v17 = vcombine.high %v303_v13, %v303_v13 }
  0x5e   : > { %312 = vst [vmem:[#allocation3 + $0x3c] sm:$0xf] %v9771_v1  ;;  %v7244_v5 = vsub.s32 3, %v7236_v2  ;;  %v1081_v19 = vpack.i.b16 %v6419_v10, %v6419_v10  ;;  %v551_v20 = vpack.i.b16 %v6407_v11, %v6407_v11  ;;  %v558_v21 = vpack.i.b16 %v6408_v12, %v6408_v12  ;;  %v302_v30 = vld [vmem:[%s9756_s1] sm:$0x44]  ;;  %v314_v40 = vld [vmem:[%s7216_s8 + $0x8] sm:$0xff] }
  0x5f   : > { %v363_v22 = vpack.i.b16 %v6403_v14, %v6403_v14  ;;  %v370_v23 = vpack.i.b16 %v6404_v15, %v6404_v15  ;;  %v641_v24 = vshrl.u32 %v6407_v11, 16  ;;  %v648_v25 = vshrl.u32 %v6408_v12, 16  ;;  %v317_v45 = vld [vmem:[%s7216_s8 + $0x20] sm:$0xff]  ;;  %v318_v46 = vld [vmem:[%s7216_s8 + $0x28] sm:$0xff]  ;;  %s9827_s11 = smov 57   ;;  %v315_v51 = vld [vmem:[%s7216_s8 + $0x10] sm:$0xff] }
  0x60   : > { %v1079_v26 = vrot.slane %v1074_v18, %v7240_v3  ;;  %v1086_v27 = vrot.slane %v1081_v19, %v7240_v3  ;;  %v556_v28 = vrot.slane %v551_v20, %v555_v4  ;;  %v563_v29 = vrot.slane %v558_v21, %v555_v4  ;;  %v316_v52 = vld [vmem:[%s7216_s8 + $0x18] sm:$0xff]  ;;  %v319_v53 = vld [vmem:[%s7216_s8 + $0x30] sm:$0xff]  ;;  %s9767_s27 = smov 55   ;;  %s7031_s29 = smov 121  }
  0x61   : > { %v368_v31 = vrot.slane %v363_v22, %v7240_v3  ;;  %v375_v32 = vrot.slane %v370_v23, %v7240_v3  ;;  %v642_v33 = vpack.i.b16 %v641_v24, %v641_v24  ;;  %v649_v34 = vpack.i.b16 %v648_v25, %v648_v25  ;;  %v320_v54 = vld [vmem:[%s7216_s8 + $0x38] sm:$0xff]  ;;  %s9825_s8 = smov 63   ;;  %s7033_s13 = smov 71   ;;  %v1710_v21 = vld [vmem:[#allocation3 + $0x2c] sm:$0xf] }
  0x62   : > { %v7265_v35 = vcombine.low %v1079_v26, %v1086_v27  ;;  %v6409_v36 = vcombine.low %v556_v28, %v563_v29  ;;  %v891_v37 = vpack.i.b16 %v6414_v16, %v6414_v16  ;;  %v898_v38 = vpack.i.b16 %v6415_v17, %v6415_v17  ;;  %s9829_s15 = smov 56   ;;  %s9769_s16 = smov 127  }
  0x63   : > { %v7269_v41 = vcombine.low %v368_v31, %v375_v32  ;;  %v647_v42 = vrot.slane %v642_v33, %v555_v4  ;;  %v654_v43 = vrot.slane %v649_v34, %v555_v4  ;;  %v454_v44 = vshrl.u32 %v6403_v14, 16  ;;  %s9821_s17 = smov 72   ;;  %s7037_s12 = smov 120  }
  0x64   : > { %1713 = vrot.lane.b32.xlu0 %v7265_v35, %s7028_s26  ;;  %569 = vrot.lane.b32.xlu1 %v6409_v36, %s9827_s11  ;;  %v896_v47 = vrot.slane %v891_v37, %v7244_v5  ;;  %v903_v48 = vrot.slane %v898_v38, %v7244_v5  ;;  %v461_v49 = vshrl.u32 %v6404_v15, 16  ;;  %v979_v50 = vshrl.u32 %v6414_v16, 16  ;;  %s7038_s14 = smov 119   ;;  %s9818_s20 = smov 65  }
  0x65   : > { %v455_v55 = vpack.i.b16 %v454_v44, %v454_v44  ;;  %v986_v56 = vshrl.u32 %v6415_v17, 16  ;;  %v6411_v57 = vcombine.low %v302_v30, %v302_v30  ;;  %v6410_v58 = vcombine.low %v647_v42, %v654_v43  ;;  %s9781_s18 = smov 7   ;;  %s7041_s10 = smov 8   ;;  %v1712_v25 = vld [vmem:[#allocation3 + $0x3c] sm:$0xf] }
  0x66   : > { %v6416_v59 = vcombine.low %v896_v47, %v903_v48  ;;  %v462_v60 = vpack.i.b16 %v461_v49, %v461_v49  ;;  %v6412_v61 = vcombine.high %v302_v30, %v302_v30  ;;  %v980_v62 = vpack.i.b16 %v979_v50, %v979_v50  ;;  %v1708_v49 = vld [vmem:[#allocation3 + $0x1c] sm:$0xf]  ;;  %p10110_p10 = scmp.ne.s32.totalorder %s9877_s30, 0 }
  0x67   : > { %v987_v63 = vpack.i.b16 %v986_v56, %v986_v56  ;;  %v795_v0 = vshrl.u32 %v6411_v57, 16  ;;  %v7282_v4 = vpack.c.bf16 %v314_v40, %v313_v39  ;;  %v460_v6 = vrot.slane %v455_v55, %v7240_v3 }
  0x68   : > { %381 = vrot.lane.b32.xlu1 %v7269_v41, %s9767_s27  ;;  %1351 = vrot.lane.b32.xlu0 %v6409_v36, %s7031_s29  ;;  %v467_v7 = vrot.slane %v462_v60, %v7240_v3  ;;  %v803_v8 = vshrl.u32 %v6412_v61, 16  ;;  %v7289_v9 = vpack.c.bf16 %v318_v46, %v317_v45  ;;  %v7292_v10 = vpack.c.bf16 %v316_v52, %v315_v51  ;;  %s7042_s27 = smov 1   ;;  %v1706_v45 = vld [vmem:[#allocation3 + $0xc] sm:$0xf] }
  0x69   : > { %345 = vst [vmem:[#allocation3 + $0x4] sm:$0xff] %v7282_v4  ;;  %v7294_v11 = vpack.c.bf16 %v320_v54, %v319_v53  ;;  %v985_v12 = vrot.slane %v980_v62, %v7244_v5  ;;  %v992_v13 = vrot.slane %v987_v63, %v7244_v5  ;;  %v796_v14 = vpack.i.b16 %v795_v0, %v795_v0 }
  0x6a   : > { %347 = vst [vmem:[#allocation3 + $0x24] sm:$0xff] %v7289_v9  ;;  %346 = vst [vmem:[#allocation3 + $0x14] sm:$0xff] %v7292_v10  ;;  %v6406_v3 = vcombine.low %v460_v6, %v467_v7  ;;  %v800_v15 = vsub.s32 2, %v7236_v2  ;;  %v804_v16 = vpack.i.b16 %v803_v8, %v803_v8  ;;  %vm384_vm0 = vcmask 449536  }
  0x6b   : > { %348 = vst [vmem:[#allocation3 + $0x34] sm:$0xff] %v7294_v11  ;;  %v6417_v17 = vcombine.low %v985_v12, %v992_v13  ;;  %vm1254_vm1 = vcmask 72704   ;;  %vm572_vm2 = vcmask 465920   ;;  %vm9831_vm3 = vcmask 457728  }
  0x6c   : > { %660 = vrot.lane.b32.xlu0 %v6410_v58, %s9825_s8  ;;  %909 = vrot.lane.b32.xlu1 %v6416_v59, %s7033_s13  ;;  %v801_v5 = vrot.slane %v796_v14, %v800_v15  ;;  %v809_v18 = vrot.slane %v804_v16, %v800_v15  ;;  %vm663_vm4 = vcmask 515072   ;;  %vm521_vm5 = vcmask 588800  }
  0x6d   : > { %vm1426_vm6 = vcmask 1039360   ;;  %vm617_vm7 = vcmask 580608   ;;  %vm1354_vm8 = vcmask 990208   ;;  %vm708_vm9 = vcmask 531456  }
  0x6e   : > { %v6413_v19 = vcombine.low %v801_v5, %v809_v18  ;;  %vm1282_vm10 = vcmask 982016   ;;  %vm428_vm11 = vcmask 1043456   ;;  %vm9816_vm12 = vcmask 973824  }
  0x6f   : > { %vm9817_vm13 = vcmask 261120   ;;  %vm9820_vm14 = vcmask 64512   ;;  %vm1471_vm15 = vcmask 7168  }
  0x70   : > { %473 = vrot.lane.b32.xlu1 %v6406_v3, %s9829_s15  ;;  %1423 = vrot.lane.b32.xlu0 %v6410_v58, %s9769_s16  ;;  %v350_v26 = vld [vmem:[#allocation3 + $0x8] sm:$0xf]  ;;  %s7043_s16 = smov 73   ;;  %v7377_v62 = vld [vmem:[#allocation3] sm:$0xff] }
  0x71   : > { %v542_v31 = vld [vmem:[#allocation3 + $0x28] sm:$0xf]  ;;  %v352_v32 = vld [vmem:[#allocation3 + $0x18] sm:$0xf]  ;;  %v7338_v42 = vld [vmem:[#allocation3 + $0x10] sm:$0xff] }
  0x72   : > { %v544_v36 = vld [vmem:[#allocation3 + $0x38] sm:$0xf]  ;;  %v354_v37 = vld [vmem:[#allocation3 + $0x28] sm:$0xf]  ;;  %v7345_v46 = vld [vmem:[#allocation3 + $0x20] sm:$0xff] }
  0x73   : > { %v7352_v50 = vld [vmem:[#allocation3 + $0x30] sm:$0xff]  ;;  %v538_v54 = vld [vmem:[#allocation3 + $0x8] sm:$0xf]  ;;  %v540_v57 = vld [vmem:[#allocation3 + $0x18] sm:$0xf] }
  0x74   : > { %998 = vrot.lane.b32.xlu1 %v6417_v17, %s9821_s17  ;;  %1279 = vrot.lane.b32.xlu0 %v6406_v3, %s7037_s12  ;;  %v634_v7 = vld [vmem:[#allocation3 + $0x8] sm:$0xf]  ;;  %v636_v15 = vld [vmem:[#allocation3 + $0x18] sm:$0xf] }
  0x75   : > { %v451_v16 = vld [vmem:[#allocation3 + $0x28] sm:$0xf] }
  0x78   : > { %1206 = vrot.lane.b32.xlu0 %v7269_v41, %s7038_s14  ;;  %815 = vrot.lane.b32.xlu1 %v6413_v19, %s9818_s20  ;;  %v356_v41 = vld [vmem:[#allocation3 + $0x38] sm:$0xf] }
  0x7c   : > { %1573 = vrot.lane.b32.xlu0 %v6416_v59, %s9781_s18  ;;  %1643 = vrot.lane.b32.xlu1 %v6417_v17, %s7041_s10 }
  0x80   : > { %1503 = vrot.lane.b32.xlu0 %v6413_v19, %s7042_s27  ;;  %v453_v19 = vld [vmem:[#allocation3 + $0x38] sm:$0xf] }
  0xd6   : > { %v1714_v2 = vpop.permute.xlu0 %1713  ;;  %v570_v20 = vpop.permute.xlu1 %569 }
  0xd7   : > { %v7314_v22 = vrot.slane %v1714_v2, 4  ;;  %v7320_v28 = vrot.slane %v570_v20, 4 }
  0xd9   : > { %9883 = vst [vmem:[#allocation14_spill] sm:$0xff] %v7314_v22  ;;  %v1724_v23 = vmul.bf16 %v7314_v22, %v1710_v21  ;;  %v1726_v29 = vmul.bf16 %v7314_v22, %v1712_v25  ;;  %v581_v33 = vmul.bf16 %v7320_v28, %v542_v31  ;;  %v583_v38 = vmul.bf16 %v7320_v28, %v544_v36 }
  0xda   : > { %v382_v24 = vpop.permute.xlu1 %381  ;;  %v1720_v47 = vmul.bf16 %v7314_v22, %v1706_v45  ;;  %v1722_v51 = vmul.bf16 %v7314_v22, %v1708_v49  ;;  %v7359_v53 = vsel %vm1254_vm1, %v7314_v22, %v1714_v2  ;;  %v577_v55 = vmul.bf16 %v7320_v28, %v538_v54  ;;  %v7368_v58 = vpop.permute.xlu0 %1351  ;;  %v447_v2 = vld [vmem:[#allocation3 + $0x8] sm:$0xf]  ;;  %v978_v45 = vld [vmem:[#allocation3 + $0x38] sm:$0xf] }
  0xdb   : > { %v7317_v27 = vrot.slane %v382_v24, 4  ;;  %1745 = vrot.lane.b32.xlu1 %v1724_v23, %s7038_s14  ;;  %9886 = vst [vmem:[#allocation17_spill] sm:$0xff] %v7359_v53  ;;  %v1719_v56 = vmul.bf16 %v7282_v4, %v7359_v53  ;;  %v579_v59 = vmul.bf16 %v7320_v28, %v540_v57  ;;  %v1721_v60 = vmul.bf16 %v7292_v10, %v7359_v53 }
  0xdc   : > { %v7375_v61 = vsel %vm572_vm2, %v7320_v28, %v570_v20  ;;  %v1723_v12 = vmul.bf16 %v7289_v9, %v7359_v53  ;;  %v1725_v3 = vmul.bf16 %v7294_v11, %v7359_v53  ;;  %v782_v53 = vld [vmem:[#allocation3 + $0x8] sm:$0xf] }
  0xdd   : > { %9884 = vst [vmem:[#allocation15_spill] sm:$0xff] %v7317_v27  ;;  %v389_v30 = vmul.bf16 %v7317_v27, %v350_v26  ;;  %v391_v34 = vmul.bf16 %v7317_v27, %v352_v32  ;;  %v393_v39 = vmul.bf16 %v7317_v27, %v354_v37  ;;  %v7334_v40 = vsel %vm384_vm0, %v7317_v27, %v382_v24  ;;  %v449_v24 = vld [vmem:[#allocation3 + $0x18] sm:$0xf] }
  0xde   : > { %9885 = vst [vmem:[#allocation16_spill] sm:$0xff] %v7334_v40  ;;  %v395_v43 = vmul.bf16 %v7317_v27, %v356_v41  ;;  %v390_v44 = vmul.bf16 %v7334_v40, %v7338_v42  ;;  %v392_v48 = vmul.bf16 %v7334_v40, %v7345_v46  ;;  %v394_v52 = vmul.bf16 %v7334_v40, %v7352_v50  ;;  %v661_v4 = vpop.permute.xlu0 %660  ;;  %v7387_v6 = vpop.permute.xlu1 %909 }
  0xdf   : > { %1749 = vrot.lane.b32.xlu1 %v1726_v29, %s7038_s14  ;;  %406 = vrot.lane.b32.xlu0 %v389_v30, %s7043_s16  ;;  %9887 = vst [vmem:[#allocation18_spill] sm:$0xff] %v7375_v61  ;;  %v576_v63 = vmul.bf16 %v7375_v61, %v7377_v62  ;;  %v388_v0 = vmul.bf16 %v7377_v62, %v7334_v40  ;;  %v7389_v8 = vrot.slane %v661_v4, 4  ;;  %v638_v29 = vld [vmem:[#allocation3 + $0x28] sm:$0xf] }
  0xe0   : > { %v578_v10 = vmul.bf16 %v7375_v61, %v7338_v42  ;;  %v580_v5 = vmul.bf16 %v7375_v61, %v7345_v46  ;;  %v582_v18 = vmul.bf16 %v7375_v61, %v7352_v50 }
  0xe1   : > { %v668_v13 = vmul.bf16 %v7389_v8, %v634_v7  ;;  %v670_v9 = vmul.bf16 %v7389_v8, %v636_v15  ;;  %v672_v30 = vmul.bf16 %v7389_v8, %v638_v29  ;;  %v974_v7 = vld [vmem:[#allocation3 + $0x18] sm:$0xf] }
  0xe2   : > { %v474_v14 = vpop.permute.xlu1 %473 }
  0xe3   : > { %602 = vrot.lane.b32.xlu1 %v581_v33, %s7033_s13  ;;  %410 = vrot.lane.b32.xlu0 %v391_v34, %s7043_s16  ;;  %v7402_v17 = vrot.slane %v474_v14, 4  ;;  %v640_v33 = vld [vmem:[#allocation3 + $0x38] sm:$0xf]  ;;  %v976_v34 = vld [vmem:[#allocation3 + $0x28] sm:$0xf] }
  0xe4   : > { %v674_v37 = vmul.bf16 %v7389_v8, %v640_v33  ;;  %v882_v33 = vld [vmem:[#allocation3 + $0x28] sm:$0xf] }
  0xe5   : > { %9888 = vst [vmem:[#allocation19_spill] sm:$0xff] %v7402_v17  ;;  %v485_v11 = vmul.bf16 %v7402_v17, %v451_v16  ;;  %v487_v20 = vmul.bf16 %v7402_v17, %v453_v19  ;;  %v481_v21 = vmul.bf16 %v7402_v17, %v447_v2  ;;  %v7418_v23 = vsel %vm9831_vm3, %v7402_v17, %v474_v14 }
  0xe6   : > { %9889 = vst [vmem:[#allocation20_spill] sm:$0xff] %v7418_v23  ;;  %v483_v25 = vmul.bf16 %v7402_v17, %v449_v24  ;;  %v480_v26 = vmul.bf16 %v7377_v62, %v7418_v23  ;;  %v482_v31 = vmul.bf16 %v7418_v23, %v7338_v42  ;;  %v999_v32 = vpop.permute.xlu1 %998  ;;  %v7503_v19 = vrot.slane %v7387_v6, 4 }
  0xe7   : > { %606 = vrot.lane.b32.xlu1 %v583_v38, %s7033_s13  ;;  %414 = vrot.lane.b32.xlu0 %v393_v39, %s7043_s16  ;;  %v7432_v36 = vrot.slane %v999_v32, 4  ;;  %v484_v38 = vmul.bf16 %v7418_v23, %v7345_v46  ;;  %v7439_v39 = vsel %vm663_vm4, %v7389_v8, %v661_v4 }
  0xe8   : > { %v673_v49 = vmul.bf16 %v7439_v39, %v7352_v50  ;;  %v667_v16 = vmul.bf16 %v7439_v39, %v7377_v62  ;;  %9894 = vst [vmem:[#allocation25_spill] sm:$0xff] %v7503_v19  ;;  %v7516_v24 = vsel %vm617_vm7, %v7503_v19, %v7387_v6 }
  0xe9   : > { %9890 = vst [vmem:[#allocation21_spill] sm:$0xff] %v7432_v36  ;;  %v1009_v41 = vmul.bf16 %v7432_v36, %v976_v34  ;;  %9895 = vst [vmem:[#allocation26_spill] sm:$0xff] %v7516_v24 }
  0xea   : > { %v7507_v2 = vpop.permute.xlu1 %815 }
  0xeb   : > { %418 = vrot.lane.b32.xlu0 %v395_v43, %s7043_s16  ;;  %408 = vrot.lane.b32.xlu1 %v390_v44, %s7043_s16  ;;  %v671_v43 = vmul.bf16 %v7439_v39, %v7345_v46  ;;  %v1424_v44 = vpop.permute.xlu0 %1423 }
  0xee   : > { %v7522_v29 = vpop.permute.xlu1 %1643 }
  0xef   : > { %1737 = vrot.lane.b32.xlu0 %v1720_v47, %s7038_s14  ;;  %412 = vrot.lane.b32.xlu1 %v392_v48, %s7043_s16  ;;  %v1420_v47 = vld [vmem:[#allocation3 + $0x28] sm:$0xf]  ;;  %v7448_v48 = vrot.slane %v1424_v44, 4  ;;  %v7488_v15 = vpop.permute.xlu0 %1279 }
  0xf1   : > { %9891 = vst [vmem:[#allocation22_spill] sm:$0xff] %v7448_v48  ;;  %v1435_v54 = vmul.bf16 %v7448_v48, %v1420_v47 }
  0xf3   : > { %1741 = vrot.lane.b32.xlu0 %v1722_v51, %s7038_s14  ;;  %416 = vrot.lane.b32.xlu1 %v394_v52, %s7043_s16  ;;  %v1011_v51 = vmul.bf16 %v7432_v36, %v978_v45  ;;  %v7455_v52 = vsel %vm521_vm5, %v7432_v36, %v999_v32  ;;  %v7528_v32 = vrot.slane %v7368_v58, 4 }
  0xf4   : > { %9892 = vst [vmem:[#allocation23_spill] sm:$0xff] %v7455_v52  ;;  %v1004_v14 = vmul.bf16 %v7455_v52, %v7377_v62 }
  0xf5   : > { %9896 = vst [vmem:[#allocation27_spill] sm:$0xff] %v7528_v32 }
  0xf7   : > { %594 = vrot.lane.b32.xlu0 %v577_v55, %s7033_s13  ;;  %1735 = vrot.lane.b32.xlu1 %v1719_v56, %s7038_s14  ;;  %v1008_v55 = vmul.bf16 %v7455_v52, %v7345_v46  ;;  %v1422_v56 = vld [vmem:[#allocation3 + $0x38] sm:$0xf] }
  0xf8   : > { %v1437_v57 = vmul.bf16 %v7448_v48, %v1422_v56 }
  0xfb   : > { %598 = vrot.lane.b32.xlu0 %v579_v59, %s7033_s13  ;;  %1739 = vrot.lane.b32.xlu1 %v1721_v60, %s7038_s14  ;;  %v1010_v59 = vmul.bf16 %v7455_v52, %v7352_v50  ;;  %v7469_v60 = vsel %vm1426_vm6, %v7448_v48, %v1424_v44 }
  0xfc   : > { %9893 = vst [vmem:[#allocation24_spill] sm:$0xff] %v7469_v60  ;;  %v1434_v4 = vmul.bf16 %v7469_v60, %v7345_v46 }
  0xff   : > { %592 = vrot.lane.b32.xlu1 %v576_v63, %s7033_s13  ;;  %404 = vrot.lane.b32.xlu0 %v388_v0, %s7043_s16  ;;  %v972_v63 = vld [vmem:[#allocation3 + $0x8] sm:$0xf] }
 0x100   : > { %v1005_v0 = vmul.bf16 %v7432_v36, %v972_v63 }
 0x103   : > { %596 = vrot.lane.b32.xlu1 %v578_v10, %s7033_s13  ;;  %1743 = vrot.lane.b32.xlu0 %v1723_v12, %s7038_s14  ;;  %v1007_v10 = vmul.bf16 %v7432_v36, %v974_v7  ;;  %v1436_v12 = vmul.bf16 %v7469_v60, %v7352_v50 }
 0x107   : > { %685 = vrot.lane.b32.xlu1 %v668_v13, %s9818_s20  ;;  %1747 = vrot.lane.b32.xlu0 %v1725_v3, %s7038_s14  ;;  %v1416_v13 = vld [vmem:[#allocation3 + $0x8] sm:$0xf] }
 0x108   : > { %v1431_v3 = vmul.bf16 %v7448_v48, %v1416_v13 }
 0x10b   : > { %689 = vrot.lane.b32.xlu1 %v670_v9, %s9818_s20  ;;  %600 = vrot.lane.b32.xlu0 %v580_v5, %s7033_s13  ;;  %v1006_v9 = vmul.bf16 %v7455_v52, %v7338_v42  ;;  %v7496_v5 = vpop.permute.xlu0 %1206 }
 0x10f   : > { %604 = vrot.lane.b32.xlu0 %v582_v18, %s7033_s13  ;;  %506 = vrot.lane.b32.xlu1 %v485_v11, %s9821_s17  ;;  %v669_v11 = vmul.bf16 %v7439_v39, %v7338_v42  ;;  %v1430_v18 = vmul.bf16 %v7469_v60, %v7377_v62 }
 0x113   : > { %510 = vrot.lane.b32.xlu1 %v487_v20, %s9821_s17  ;;  %498 = vrot.lane.b32.xlu0 %v481_v21, %s9821_s17  ;;  %v486_v20 = vmul.bf16 %v7418_v23, %v7352_v50  ;;  %v1432_v21 = vmul.bf16 %v7469_v60, %v7338_v42 }
 0x117   : > { %502 = vrot.lane.b32.xlu0 %v483_v25, %s9821_s17  ;;  %496 = vrot.lane.b32.xlu1 %v480_v26, %s9821_s17  ;;  %v1418_v25 = vld [vmem:[#allocation3 + $0x18] sm:$0xf]  ;;  %v7518_v26 = vpop.permute.xlu0 %1573 }
 0x11b   : > { %693 = vrot.lane.b32.xlu0 %v672_v30, %s9818_s20  ;;  %500 = vrot.lane.b32.xlu1 %v482_v31, %s9821_s17  ;;  %v1433_v30 = vmul.bf16 %v7448_v48, %v1418_v25  ;;  %v919_v31 = vmul.bf16 %v7516_v24, %v7345_v46  ;;  %v7532_v6 = vpop.permute.xlu0 %1503 }
 0x11c   : > { %9897 = vst [vmem:[#allocation28_spill] sm:$0xff] %v7532_v6 }
 0x11f   : > { %697 = vrot.lane.b32.xlu0 %v674_v37, %s9818_s20  ;;  %504 = vrot.lane.b32.xlu1 %v484_v38, %s9821_s17  ;;  %v920_v37 = vmul.bf16 %v7503_v19, %v882_v33  ;;  %v921_v38 = vmul.bf16 %v7516_v24, %v7352_v50 }
 0x123   : > { %691 = vrot.lane.b32.xlu1 %v671_v43, %s9818_s20  ;;  %1030 = vrot.lane.b32.xlu0 %v1009_v41, %s9829_s15  ;;  %v7542_v41 = vsel %vm1354_vm8, %v7528_v32, %v7368_v58  ;;  %v884_v43 = vld [vmem:[#allocation3 + $0x38] sm:$0xf] }
 0x124   : > { %9898 = vst [vmem:[#allocation29_spill] sm:$0xff] %v7542_v41  ;;  %v922_v47 = vmul.bf16 %v7503_v19, %v884_v43  ;;  %v1364_v56 = vmul.bf16 %v7542_v41, %v7352_v50 }
 0x127   : > { %695 = vrot.lane.b32.xlu1 %v673_v49, %s9818_s20  ;;  %1034 = vrot.lane.b32.xlu0 %v1011_v51, %s9829_s15  ;;  %v1362_v49 = vmul.bf16 %v7542_v41, %v7345_v46  ;;  %v1348_v51 = vld [vmem:[#allocation3 + $0x28] sm:$0xf] }
 0x12b   : > { %1456 = vrot.lane.b32.xlu0 %v1435_v54, %s7042_s27  ;;  %1028 = vrot.lane.b32.xlu1 %v1008_v55, %s9829_s15  ;;  %v1363_v55 = vmul.bf16 %v7528_v32, %v1348_v51 }
 0x12f   : > { %1460 = vrot.lane.b32.xlu0 %v1437_v57, %s7042_s27  ;;  %1032 = vrot.lane.b32.xlu1 %v1010_v59, %s9829_s15  ;;  %v1350_v57 = vld [vmem:[#allocation3 + $0x38] sm:$0xf] }
 0x133   : > { %1022 = vrot.lane.b32.xlu0 %v1005_v0, %s9829_s15  ;;  %1454 = vrot.lane.b32.xlu1 %v1434_v4, %s7042_s27  ;;  %v1365_v0 = vmul.bf16 %v7528_v32, %v1350_v57  ;;  %v878_v4 = vld [vmem:[#allocation3 + $0x8] sm:$0xf] }
 0x134   : > { %v916_v13 = vmul.bf16 %v7503_v19, %v878_v4  ;;  %v788_v4 = vld [vmem:[#allocation3 + $0x38] sm:$0xf] }
 0x137   : > { %1026 = vrot.lane.b32.xlu0 %v1007_v10, %s9829_s15  ;;  %1458 = vrot.lane.b32.xlu1 %v1436_v12, %s7042_s27  ;;  %v915_v12 = vmul.bf16 %v7516_v24, %v7377_v62 }
 0x13b   : > { %1448 = vrot.lane.b32.xlu0 %v1431_v3, %s7042_s27  ;;  %1020 = vrot.lane.b32.xlu1 %v1004_v14, %s9829_s15  ;;  %v880_v3 = vld [vmem:[#allocation3 + $0x18] sm:$0xf] }
 0x13f   : > { %683 = vrot.lane.b32.xlu0 %v667_v16, %s9818_s20  ;;  %1024 = vrot.lane.b32.xlu1 %v1006_v9, %s9829_s15  ;;  %v918_v9 = vmul.bf16 %v7503_v19, %v880_v3  ;;  %v1640_v19 = vld [vmem:[#allocation3 + $0x2c] sm:$0xf] }
 0x143   : > { %687 = vrot.lane.b32.xlu0 %v669_v11, %s9818_s20  ;;  %1446 = vrot.lane.b32.xlu1 %v1430_v18, %s7042_s27  ;;  %v1344_v11 = vld [vmem:[#allocation3 + $0x8] sm:$0xf] }
 0x144   : > { %v1359_v25 = vmul.bf16 %v7528_v32, %v1344_v11 }
 0x147   : > { %508 = vrot.lane.b32.xlu0 %v486_v20, %s9821_s17  ;;  %1450 = vrot.lane.b32.xlu1 %v1432_v21, %s7042_s27  ;;  %v1358_v21 = vmul.bf16 %v7542_v41, %v7377_v62 }
 0x14b   : > { %1452 = vrot.lane.b32.xlu0 %v1433_v30, %s7042_s27  ;;  %939 = vrot.lane.b32.xlu1 %v919_v31, %s9827_s11  ;;  %v7596_v30 = vrot.slane %v7507_v2, 4  ;;  %v1346_v31 = vld [vmem:[#allocation3 + $0x18] sm:$0xf] }
 0x14c   : > { %v1361_v43 = vmul.bf16 %v7528_v32, %v1346_v31 }
 0x14d   : > { %v7534_v34 = vpop.permute.xlu1 %1745  ;;  %9899 = vst [vmem:[#allocation30_spill] sm:$0xff] %v7596_v30 }
 0x14f   : > { %941 = vrot.lane.b32.xlu0 %v920_v37, %s9827_s11  ;;  %943 = vrot.lane.b32.xlu1 %v921_v38, %s9827_s11  ;;  %v1360_v38 = vmul.bf16 %v7542_v41, %v7338_v42 }
 0x151   : > { %v7546_v44 = vpop.permute.xlu0 %406  ;;  %v7548_v45 = vpop.permute.xlu1 %1749 }
 0x153   : > { %945 = vrot.lane.b32.xlu0 %v922_v47, %s9827_s11  ;;  %1382 = vrot.lane.b32.xlu1 %v1362_v49, %s9781_s18  ;;  %v7610_v47 = vsel %vm708_vm9, %v7596_v30, %v7507_v2  ;;  %v786_v49 = vld [vmem:[#allocation3 + $0x28] sm:$0xf] }
 0x154   : > { %9900 = vst [vmem:[#allocation31_spill] sm:$0xff] %v7610_v47  ;;  %v825_v57 = vmul.bf16 %v7610_v47, %v7345_v46  ;;  %v827_v3 = vmul.bf16 %v7610_v47, %v7352_v50 }
 0x155   : > { %v7555_v58 = vpop.permute.xlu0 %410  ;;  %v7557_v54 = vpop.permute.xlu1 %602 }
 0x157   : > { %1384 = vrot.lane.b32.xlu0 %v1363_v55, %s9781_s18  ;;  %1386 = vrot.lane.b32.xlu1 %v1364_v56, %s9781_s18  ;;  %v826_v56 = vmul.bf16 %v7596_v30, %v786_v49  ;;  %v1278_v49 = vld [vmem:[#allocation3 + $0x38] sm:$0xf] }
 0x159   : > { %v7564_v59 = vpop.permute.xlu0 %414  ;;  %v7566_v63 = vpop.permute.xlu1 %606 }
 0x15b   : > { %1388 = vrot.lane.b32.xlu0 %v1365_v0, %s9781_s18  ;;  %1092 = vrot.lane.b32.xlu1 %v7265_v35, %s7043_s16  ;;  %v917_v35 = vmul.bf16 %v7516_v24, %v7338_v42  ;;  %v7620_v0 = vrot.slane %v7488_v15, 4  ;;  %v613_v24 = vrot.slane %v7557_v54, 4 }
 0x15d   : > { %v7572_v7 = vpop.permute.xlu0 %418  ;;  %v7574_v10 = vpop.permute.xlu1 %408  ;;  %9901 = vst [vmem:[#allocation32_spill] sm:$0xff] %v7620_v0 }
 0x15f   : > { %931 = vrot.lane.b32.xlu0 %v915_v12, %s9827_s11  ;;  %933 = vrot.lane.b32.xlu1 %v916_v13, %s9827_s11  ;;  %v828_v13 = vmul.bf16 %v7596_v30, %v788_v4  ;;  %v1758_v4 = vrot.slane %v7548_v45, 4 }
 0x161   : > { %v7581_v14 = vpop.permute.xlu0 %1737  ;;  %v7583_v16 = vpop.permute.xlu1 %412 }
 0x163   : > { %935 = vrot.lane.b32.xlu0 %v917_v35, %s9827_s11  ;;  %937 = vrot.lane.b32.xlu1 %v918_v9, %s9827_s11  ;;  %v7634_v35 = vsel %vm1282_vm10, %v7620_v0, %v7488_v15  ;;  %v1276_v9 = vld [vmem:[#allocation3 + $0x28] sm:$0xf]  ;;  %v1756_v15 = vrot.slane %v7534_v34, 4 }
 0x164   : > { %9902 = vst [vmem:[#allocation33_spill] sm:$0xff] %v7634_v35  ;;  %v1290_v31 = vmul.bf16 %v7634_v35, %v7345_v46  ;;  %v1292_v1 = vmul.bf16 %v7634_v35, %v7352_v50 }
 0x165   : > { %v1742_v18 = vpop.permute.xlu0 %1741  ;;  %v7590_v20 = vpop.permute.xlu1 %416 }
 0x167   : > { %1374 = vrot.lane.b32.xlu0 %v1358_v21, %s9781_s18  ;;  %1376 = vrot.lane.b32.xlu1 %v1359_v25, %s9781_s18  ;;  %v1291_v25 = vmul.bf16 %v7620_v0, %v1276_v9  ;;  %v1293_v9 = vmul.bf16 %v7620_v0, %v1278_v49  ;;  %v822_v49 = vmul.bf16 %v7596_v30, %v782_v53 }
 0x169   : > { %v7600_v33 = vpop.permute.xlu0 %594  ;;  %v7602_v37 = vpop.permute.xlu1 %1735 }
 0x16a   : > { %v609_v23 = vrot.slane %v7600_v33, 4 }
 0x16b   : > { %1378 = vrot.lane.b32.xlu0 %v1360_v38, %s9781_s18  ;;  %1380 = vrot.lane.b32.xlu1 %v1361_v43, %s9781_s18  ;;  %s9823_s18 = smov 64  }
 0x16d   : > { %v7614_v51 = vpop.permute.xlu0 %598  ;;  %v1740_v55 = vpop.permute.xlu1 %1739 }
 0x16e   : > { %v1753_v38 = vrot.slane %v1740_v55, 4  ;;  %v611_v36 = vrot.slane %v7614_v51, 4 }
 0x16f   : > { %847 = vrot.lane.b32.xlu1 %v826_v56, %s9825_s8  ;;  %845 = vrot.lane.b32.xlu0 %v825_v57, %s9825_s8  ;;  %v1754_v56 = vrot.slane %v1742_v18, 4  ;;  %v1751_v57 = vrot.slane %v7602_v37, 4 }
 0x171   : > { %v7624_v2 = vpop.permute.xlu0 %404  ;;  %v7626_v12 = vpop.permute.xlu1 %592 }
 0x173   : > { %851 = vrot.lane.b32.xlu1 %v828_v13, %s9825_s8  ;;  %849 = vrot.lane.b32.xlu0 %v827_v3, %s9825_s8 }
 0x175   : > { %v1744_v11 = vpop.permute.xlu0 %1743  ;;  %v7638_v21 = vpop.permute.xlu1 %596 }
 0x176   : > { %v1755_v43 = vrot.slane %v1744_v11, 4 }
 0x177   : > { %1312 = vrot.lane.b32.xlu1 %v1291_v25, %s7041_s10  ;;  %1310 = vrot.lane.b32.xlu0 %v1290_v31, %s7041_s10  ;;  %v1752_v25 = vrot.slane %v7581_v14, 4  ;;  %v1761_v31 = vsel %vm428_vm11, %v1753_v38, %v1754_v56  ;;  %v821_v38 = vmul.bf16 %v7610_v47, %v7377_v62 }
 0x178   : > { %v1763_v18 = vsel %vm428_vm11, %v1755_v43, %v1756_v15  ;;  %v1762_v32 = vsel %vm9816_vm12, %v1740_v55, %v1761_v31 }
 0x179   : > { %v1748_v13 = vpop.permute.xlu0 %1747  ;;  %v7648_v3 = vpop.permute.xlu1 %685  ;;  %v1759_v45 = vsel %vm428_vm11, %v1751_v57, %v1752_v25  ;;  %v1764_v43 = vsel %vm9816_vm12, %v1744_v11, %v1763_v18  ;;  %v784_v57 = vld [vmem:[#allocation3 + $0x18] sm:$0xf] }
 0x17a   : > { %v1757_v34 = vrot.slane %v1748_v13, 4  ;;  %v1760_v53 = vsel %vm9816_vm12, %v7602_v37, %v1759_v45  ;;  %v824_v11 = vmul.bf16 %v7596_v30, %v784_v57  ;;  %v6807_v25 = vld [vmem:[#allocation7 + $0x38] ss:$12 sps:$4 sm:$0xff]   ;;  %v1286_v45 = vmul.bf16 %v7634_v35, %v7377_v62 }
 0x17b   : > { %1316 = vrot.lane.b32.xlu1 %v1293_v9, %s7041_s10  ;;  %1314 = vrot.lane.b32.xlu0 %v1292_v1, %s7041_s10  ;;  %v6460_v55 = vcombine.high %v1760_v53, %v1762_v32  ;;  %v6459_v37 = vcombine.low %v1760_v53, %v1762_v32 }
 0x17c   : > { %v1765_v41 = vsel %vm428_vm11, %v1757_v34, %v1758_v4 }
 0x17d   : > { %v7662_v60 = vpop.permute.xlu0 %600  ;;  %v7664_v14 = vpop.permute.xlu1 %689  ;;  %v1766_v1 = vsel %vm9816_vm12, %v1748_v13, %v1765_v41  ;;  %v823_v41 = vmul.bf16 %v7610_v47, %v7338_v42  ;;  %v1272_v13 = vld [vmem:[#allocation3 + $0x8] sm:$0xf] }
 0x17e   : > { %v6462_v15 = vcombine.high %v1764_v43, %v1766_v1  ;;  %v6461_v56 = vcombine.low %v1764_v43, %v1766_v1  ;;  %v1287_v18 = vmul.bf16 %v7620_v0, %v1272_v13  ;;  %v1288_v1 = vmul.bf16 %v7634_v35, %v7338_v42 }
 0x17f   : > { %839 = vrot.lane.b32.xlu1 %v822_v49, %s9825_s8  ;;  %837 = vrot.lane.b32.xlu0 %v821_v38, %s9825_s8  ;;  %v1274_v49 = vld [vmem:[#allocation3 + $0x18] sm:$0xf] }
 0x180   : > { %2102 = vmatprep.subr.bf16.mxu1 %v6462_v15  ;;  %v1289_v43 = vmul.bf16 %v7620_v0, %v1274_v49  ;;  %v9903_v15 = vmov 0  }
 0x181   : > { %v7674_v4 = vpop.permute.xlu0 %604  ;;  %2103 = vmatpush1.bf16.msra.mxu1 %v6461_v56  ;;  %v7676_v9 = vpop.permute.xlu1 %506  ;;  %v729_v56 = vld [vmem:[#allocation3 + $0x28] sm:$0xf] }
 0x182   : > { %2104 = vmatprep.subr.bf16.mxu1 %v6460_v55  ;;  %v7706_v55 = vrot.slane %v7496_v5, 4 }
 0x183   : > { %843 = vrot.lane.b32.xlu1 %v824_v11, %s9825_s8  ;;  %841 = vrot.lane.b32.xlu0 %v823_v41, %s9825_s8  ;;  %v731_v11 = vld [vmem:[#allocation3 + $0x38] sm:$0xf] }
 0x184   : > { %9904 = vst [vmem:[#allocation34_spill] sm:$0xff] %v7706_v55 }
 0x185   : > { %v7683_v31 = vpop.permute.xlu0 %498  ;;  %2105 = vmatpush1.bf16.msra.mxu1 %v6459_v37  ;;  %v7685_v34 = vpop.permute.xlu1 %510  ;;  %v7716_v37 = vsel %vm9816_vm12, %v7706_v55, %v7496_v5  ;;  %vm1399_vm12 = vcmask 56320  }
 0x186   : > { %9905 = vst [vmem:[#allocation35_spill] sm:$0xff] %v7716_v37  ;;  %v1219_v0 = vmul.bf16 %v7716_v37, %v7352_v50 }
 0x187   : > { %1304 = vrot.lane.b32.xlu1 %v1287_v18, %s7041_s10  ;;  %1302 = vrot.lane.b32.xlu0 %v1286_v45, %s7041_s10 }
 0x188   : > { %6463 = vmatmul.mubr.msk.bf16.vlgmr.msra.gmra.mxu1 %vm9817_vm13, %v6807_v25  ;;  %v1203_v25 = vld [vmem:[#allocation3 + $0x28] sm:$0xf] }
 0x189   : > { %v7693_v32 = vpop.permute.xlu0 %502  ;;  %v7695_v38 = vpop.permute.xlu1 %496  ;;  %2132 = vmatprep.mubr.bf16.mxu1 %v9903_v15  ;;  %v1218_v49 = vmul.bf16 %v7706_v55, %v1203_v25 }
 0x18b   : > { %1308 = vrot.lane.b32.xlu1 %v1289_v43, %s7041_s10  ;;  %1306 = vrot.lane.b32.xlu0 %v1288_v1, %s7041_s10  ;;  %v1217_v43 = vmul.bf16 %v7716_v37, %v7345_v46 }
 0x18d   : > { %v694_v57 = vpop.permute.xlu0 %693  ;;  %v7703_v53 = vpop.permute.xlu1 %500 }
 0x18e   : > { %v704_v5 = vrot.slane %v694_v57, 4 }
 0x18f   : > { %750 = vrot.lane.b32.xlu1 %v729_v56, %s9823_s18  ;;  %748 = vrot.lane.b32.xlu0 %v7345_v46, %s9823_s18  ;;  %v1205_v56 = vld [vmem:[#allocation3 + $0x38] sm:$0xf] }
 0x190   : > { %v1220_v48 = vmul.bf16 %v7706_v55, %v1205_v56 }
 0x191   : > { %v698_v41 = vpop.permute.xlu0 %697  ;;  %v7711_v13 = vpop.permute.xlu1 %504 }
 0x192   : > { %v706_v22 = vrot.slane %v698_v41, 4 }
 0x193   : > { %754 = vrot.lane.b32.xlu1 %v731_v11, %s9823_s18  ;;  %752 = vrot.lane.b32.xlu0 %v7352_v50, %s9823_s18 }
 0x195   : > { %v7721_v18 = vpop.permute.xlu0 %1030  ;;  %v692_v45 = vpop.permute.xlu1 %691 }
 0x196   : > { %v703_v1 = vrot.slane %v692_v45, 4 }
 0x197   : > { %1239 = vrot.lane.b32.xlu1 %v1218_v49, %s7028_s26  ;;  %1237 = vrot.lane.b32.xlu0 %v1217_v43, %s7028_s26  ;;  %v725_v49 = vld [vmem:[#allocation3 + $0x8] sm:$0xf] }
 0x198   : > { %v712_v25 = vsel %vm428_vm11, %v703_v1, %v704_v5  ;;  %v1213_v1 = vmul.bf16 %v7716_v37, %v7377_v62 }
 0x199   : > { %v7728_v35 = vpop.permute.xlu0 %1034  ;;  %v696_v11 = vpop.permute.xlu1 %695  ;;  %v713_v57 = vsel %vm708_vm9, %v692_v45, %v712_v25 }
 0x19a   : > { %v705_v15 = vrot.slane %v696_v11, 4 }
 0x19b   : > { %1241 = vrot.lane.b32.xlu0 %v1219_v0, %s7028_s26  ;;  %1243 = vrot.lane.b32.xlu1 %v1220_v48, %s7028_s26  ;;  %v727_v0 = vld [vmem:[#allocation3 + $0x18] sm:$0xf] }
 0x19c   : > { %v714_v46 = vsel %vm428_vm11, %v705_v15, %v706_v22  ;;  %v1199_v15 = vld [vmem:[#allocation3 + $0x8] sm:$0xf] }
 0x19d   : > { %v715_v43 = vsel %vm708_vm9, %v696_v11, %v714_v46  ;;  %v1457_v30 = vpop.permute.xlu0 %1456  ;;  %v7739_v47 = vpop.permute.xlu1 %1028  ;;  %v1214_v5 = vmul.bf16 %v7706_v55, %v1199_v15  ;;  %v7755_v11 = vrot.slane %v7522_v29, 4  ;;  %v1201_v46 = vld [vmem:[#allocation3 + $0x18] sm:$0xf] }
 0x19e   : > { %v6485_v50 = vcombine.low %v713_v57, %v715_v43  ;;  %v6486_v56 = vcombine.high %v713_v57, %v715_v43 }
 0x19f   : > { %740 = vrot.lane.b32.xlu0 %v7377_v62, %s9823_s18  ;;  %742 = vrot.lane.b32.xlu1 %v725_v49, %s9823_s18  ;;  %v1467_v49 = vrot.slane %v1457_v30, 4  ;;  %v1216_v62 = vmul.bf16 %v7706_v55, %v1201_v46  ;;  %v7772_v30 = vld [vmem:[#allocation3 + $0x24] sm:$0xff]  ;;  %v6808_v55 = vld [vmem:[#allocation7 + $0x50] ss:$12 sps:$4 sm:$0xff]  }
 0x1a0   : > { %2359 = vmatprep.subr.bf16.mxu1 %v6486_v56  ;;  %v7767_v56 = vsel %vm9820_vm14, %v7755_v11, %v7522_v29  ;;  %6464 = vmatmul.mubr.msk.bf16.gmra.mxu1 %vm9817_vm13, %v6808_v55  ;;  %v2669_v55 = vmul.bf16 %v7772_v30, %v7439_v39  ;;  %vm430_vm13 = vcmask 596992  }
 0x1a1   : > { %v1461_v48 = vpop.permute.xlu0 %1460  ;;  %2360 = vmatpush1.bf16.msra.mxu1 %v6485_v50  ;;  %v7744_v22 = vpop.permute.xlu1 %1032  ;;  %v1215_v50 = vmul.bf16 %v7716_v37, %v7338_v42  ;;  %v1653_v29 = vmul.bf16 %v7767_v56, %v7772_v30  ;;  %v1642_v37 = vld [vmem:[#allocation3 + $0x3c] sm:$0xf] }
 0x1a3   : > { %744 = vrot.lane.b32.xlu0 %v7338_v42, %s9823_s18  ;;  %746 = vrot.lane.b32.xlu1 %v727_v0, %s9823_s18  ;;  %v1469_v0 = vrot.slane %v1461_v48, 4  ;;  %v1654_v48 = vmul.bf16 %v7755_v11, %v1640_v19 }
 0x1a5   : > { %v7749_v41 = vpop.permute.xlu0 %1022  ;;  %v1455_v45 = vpop.permute.xlu1 %1454 }
 0x1a6   : > { %v1466_v25 = vrot.slane %v1455_v45, 4 }
 0x1a7   : > { %1229 = vrot.lane.b32.xlu0 %v1213_v1, %s7028_s26  ;;  %1231 = vrot.lane.b32.xlu1 %v1214_v5, %s7028_s26 }
 0x1a8   : > { %v1475_v1 = vsel %vm428_vm11, %v1466_v25, %v1467_v49 }
 0x1a9   : > { %v7759_v57 = vpop.permute.xlu0 %1026  ;;  %v1459_v43 = vpop.permute.xlu1 %1458  ;;  %v1476_v25 = vsel %vm1471_vm15, %v1455_v45, %v1475_v1  ;;  %v614_v1 = vrot.slane %v7674_v4, 4 }
 0x1aa   : > { %v1468_v15 = vrot.slane %v1459_v43, 4 }
 0x1ab   : > { %1233 = vrot.lane.b32.xlu0 %v1215_v50, %s7028_s26  ;;  %1235 = vrot.lane.b32.xlu1 %v1216_v62, %s7028_s26 }
 0x1ac   : > { %v1477_v42 = vsel %vm428_vm11, %v1468_v15, %v1469_v0  ;;  %v7786_v0 = vld [vmem:[#allocation3 + $0x34] sm:$0xff] }
 0x1ad   : > { %v7775_v5 = vpop.permute.xlu0 %1448  ;;  %v7777_v46 = vpop.permute.xlu1 %1020  ;;  %v1478_v49 = vsel %vm1471_vm15, %v1459_v43, %v1477_v42  ;;  %v1655_v45 = vmul.bf16 %v7767_v56, %v7786_v0  ;;  %v1656_v43 = vmul.bf16 %v7755_v11, %v1642_v37  ;;  %v612_v37 = vrot.slane %v7662_v60, 4 }
 0x1ae   : > { %v6442_v50 = vcombine.high %v1476_v25, %v1478_v49  ;;  %v6441_v62 = vcombine.low %v1476_v25, %v1478_v49  ;;  %v615_v25 = vrot.slane %v7566_v63, 4  ;;  %v610_v49 = vrot.slane %v7638_v21, 4 }
 0x1af   : > { %1673 = vrot.lane.b32.xlu0 %v1653_v29, %s7037_s12  ;;  %1675 = vrot.lane.b32.xlu1 %v1654_v48, %s7037_s12  ;;  %v2662_v29 = vld [vmem:[#allocation3 + $0x2c] sm:$0xf]  ;;  %v2664_v48 = vld [vmem:[#allocation3 + $0x3c] sm:$0xf]  ;;  %v702_v63 = vrot.slane %v7664_v14, 4  ;;  %v2671_v54 = vmul.bf16 %v7786_v0, %v7439_v39 }
 0x1b0   : > { %2037 = vmatprep.subr.bf16.mxu0 %v6442_v50  ;;  %v700_v50 = vrot.slane %v7648_v3, 4  ;;  %v2670_v27 = vmul.bf16 %v2662_v29, %v7389_v8  ;;  %v623_v40 = vsel %vm428_vm11, %v614_v1, %v615_v25  ;;  %v2672_v51 = vmul.bf16 %v2664_v48, %v7389_v8  ;;  %v7818_v29 = vld [vmem:[#allocation3 + $0x4] sm:$0xff]  ;;  %v1636_v25 = vld [vmem:[#allocation3 + $0xc] sm:$0xf] }
 0x1b1   : > { %v684_v15 = vpop.permute.xlu0 %683  ;;  %2038 = vmatpush1.bf16.msra.mxu0 %v6441_v62  ;;  %v7789_v19 = vpop.permute.xlu1 %1024  ;;  %v6811_v62 = vld [vmem:[#allocation7 + $0x4] ss:$12 sps:$4 sm:$0xff]   ;;  %v619_v14 = vsel %vm428_vm11, %v610_v49, %v611_v36  ;;  %v621_v1 = vsel %vm428_vm11, %v612_v37, %v613_v24  ;;  %v1649_v33 = vmul.bf16 %v7767_v56, %v7818_v29 }
 0x1b2   : > { %v699_v42 = vrot.slane %v684_v15, 4  ;;  %2391 = vmatprep.mubr.bf16.mxu1 %v6811_v62  ;;  %v620_v37 = vsel %vm617_vm7, %v7638_v21, %v619_v14  ;;  %v1638_v21 = vld [vmem:[#allocation3 + $0x1c] sm:$0xf] }
 0x1b3   : > { %1677 = vrot.lane.b32.xlu0 %v1655_v45, %s7037_s12  ;;  %1679 = vrot.lane.b32.xlu1 %v1656_v43, %s7037_s12  ;;  %v608_v45 = vrot.slane %v7626_v12, 4 }
 0x1b4   : > { %v707_v3 = vsel %vm428_vm11, %v699_v42, %v700_v50 }
 0x1b5   : > { %v688_v43 = vpop.permute.xlu0 %687  ;;  %v7806_v52 = vpop.permute.xlu1 %1446  ;;  %v709_v50 = vsel %vm708_vm9, %v684_v15, %v707_v3  ;;  %v516_v15 = vrot.slane %v7711_v13, 4  ;;  %v517_v3 = vrot.slane %v7676_v9, 4  ;;  %v1652_v9 = vmul.bf16 %v7755_v11, %v1638_v21 }
 0x1b6   : > { %v701_v17 = vrot.slane %v688_v43, 4  ;;  %v1462_v24 = vrot.slane %v7806_v52, 4 }
 0x1b7   : > { %2689 = vrot.lane.b32.xlu0 %v2669_v55, %s9818_s20  ;;  %2691 = vrot.lane.b32.xlu1 %v2670_v27, %s9818_s20  ;;  %v616_v55 = vsel %vm428_vm11, %v608_v45, %v609_v23  ;;  %v624_v27 = vsel %vm617_vm7, %v7674_v4, %v623_v40  ;;  %v622_v23 = vsel %vm617_vm7, %v7662_v60, %v621_v1  ;;  %v519_v4 = vrot.slane %v7685_v34, 4 }
 0x1b8   : > { %v710_v42 = vsel %vm428_vm11, %v701_v17, %v702_v63  ;;  %v1650_v40 = vmul.bf16 %v7755_v11, %v1636_v25  ;;  %v1463_v45 = vrot.slane %v7775_v5, 4  ;;  %v7841_v63 = vld [vmem:[#allocation3 + $0x14] sm:$0xff]  ;;  %v618_v60 = vsel %vm617_vm7, %v7626_v12, %v616_v55 }
 0x1b9   : > { %v711_v48 = vsel %vm708_vm9, %v688_v43, %v710_v42  ;;  %v509_v62 = vpop.permute.xlu0 %508  ;;  %v1451_v6 = vpop.permute.xlu1 %1450  ;;  %v6482_v43 = vcombine.high %v622_v23, %v624_v27  ;;  %v1651_v34 = vmul.bf16 %v7767_v56, %v7841_v63  ;;  %v6480_v12 = vcombine.high %v618_v60, %v620_v37 }
 0x1ba   : > { %v6483_v36 = vcombine.low %v709_v50, %v711_v48  ;;  %v518_v49 = vrot.slane %v509_v62, 4  ;;  %v6484_v17 = vcombine.high %v709_v50, %v711_v48  ;;  %v1470_v5 = vsel %vm428_vm11, %v1462_v24, %v1463_v45 }
 0x1bb   : > { %2693 = vrot.lane.b32.xlu0 %v2671_v54, %s9818_s20  ;;  %2695 = vrot.lane.b32.xlu1 %v2672_v51, %s9818_s20  ;;  %v514_v54 = vrot.slane %v7703_v53, 4  ;;  %v1464_v42 = vrot.slane %v1451_v6, 4  ;;  %v6481_v50 = vcombine.low %v622_v23, %v624_v27  ;;  %v515_v55 = vrot.slane %v7693_v32, 4 }
 0x1bc   : > { %2361 = vmatprep.subr.bf16.mxu1 %v6484_v17  ;;  %v527_v1 = vsel %vm428_vm11, %v518_v49, %v519_v4  ;;  %v512_v48 = vrot.slane %v7695_v38, 4  ;;  %v426_v49 = vrot.slane %v7590_v20, 4  ;;  %v1472_v27 = vsel %vm1471_vm15, %v7806_v52, %v1470_v5 }
 0x1bd   : > { %v1453_v51 = vpop.permute.xlu0 %1452  ;;  %2362 = vmatpush1.bf16.msra.mxu1 %v6483_v36  ;;  %v7847_v14 = vpop.permute.xlu1 %939  ;;  %v525_v36 = vsel %vm428_vm11, %v516_v15, %v517_v3  ;;  %v523_v4 = vsel %vm428_vm11, %v514_v54, %v515_v55  ;;  %v7872_v52 = vrot.slane %v7518_v26, 4  ;;  %v425_v5 = vrot.slane %v7564_v59, 4 }
 0x1be   : > { %v1465_v25 = vrot.slane %v1453_v51, 4  ;;  %2363 = vmatprep.subr.bf16.mxu1 %v6482_v43  ;;  %v2658_v43 = vld [vmem:[#allocation3 + $0xc] sm:$0xf]  ;;  %v526_v21 = vsel %vm521_vm5, %v7711_v13, %v525_v36  ;;  %v420_v51 = vrot.slane %v7624_v2, 4  ;;  %v423_v59 = vrot.slane %v7555_v58, 4 }
 0x1bf   : > { %1665 = vrot.lane.b32.xlu0 %v1649_v33, %s7037_s12  ;;  %1667 = vrot.lane.b32.xlu1 %v1650_v40, %s7037_s12  ;;  %v528_v33 = vsel %vm521_vm5, %v509_v62, %v527_v1  ;;  %v513_v40 = vrot.slane %v7683_v31, 4  ;;  %v6479_v62 = vcombine.low %v618_v60, %v620_v37  ;;  %v424_v31 = vrot.slane %v7583_v16, 4 }
 0x1c0   : > { %v1473_v24 = vsel %vm428_vm11, %v1464_v42, %v1465_v25  ;;  %v6478_v54 = vcombine.high %v526_v21, %v528_v33  ;;  %v524_v37 = vsel %vm521_vm5, %v7703_v53, %v523_v4  ;;  %v422_v1 = vrot.slane %v7574_v10, 4  ;;  %v2660_v53 = vld [vmem:[#allocation3 + $0x1c] sm:$0xf] }
 0x1c1   : > { %v7864_v17 = vpop.permute.xlu0 %941  ;;  %2364 = vmatpush1.bf16.msra.mxu1 %v6481_v50  ;;  %v7866_v23 = vpop.permute.xlu1 %943  ;;  %v1474_v32 = vsel %vm1471_vm15, %v1451_v6, %v1473_v24  ;;  %v427_v6 = vrot.slane %v7572_v7, 4  ;;  %v520_v3 = vsel %vm428_vm11, %v512_v48, %v513_v40  ;;  %v2665_v7 = vmul.bf16 %v7818_v29, %v7439_v39 }
 0x1c2   : > { %2365 = vmatprep.subr.bf16.mxu1 %v6480_v12  ;;  %v6440_v15 = vcombine.high %v1472_v27, %v1474_v32  ;;  %v6439_v45 = vcombine.low %v1472_v27, %v1474_v32  ;;  %v7897_v25 = vsel %vm1399_vm12, %v7872_v52, %v7518_v26  ;;  %v421_v50 = vrot.slane %v7546_v44, 4  ;;  %v1570_v26 = vld [vmem:[#allocation3 + $0x2c] sm:$0xf] }
 0x1c3   : > { %1669 = vrot.lane.b32.xlu0 %v1651_v34, %s7037_s12  ;;  %1671 = vrot.lane.b32.xlu1 %v1652_v9, %s7037_s12  ;;  %v2666_v34 = vmul.bf16 %v2658_v43, %v7389_v8  ;;  %v436_v42 = vsel %vm428_vm11, %v426_v49, %v427_v6  ;;  %v522_v12 = vsel %vm521_vm5, %v7695_v38, %v520_v3  ;;  %v1042_v38 = vrot.slane %v7744_v22, 4 }
 0x1c4   : > { %2039 = vmatprep.subr.bf16.mxu0 %v6440_v15  ;;  %v6477_v9 = vcombine.low %v526_v21, %v528_v33  ;;  %v434_v55 = vsel %vm428_vm11, %v424_v31, %v425_v5  ;;  %v6476_v48 = vcombine.high %v522_v12, %v524_v37  ;;  %v2667_v36 = vmul.bf16 %v7841_v63, %v7439_v39  ;;  %v1572_v31 = vld [vmem:[#allocation3 + $0x3c] sm:$0xf] }
 0x1c5   : > { %v7884_v60 = vpop.permute.xlu0 %945  ;;  %2040 = vmatpush1.bf16.msra.mxu0 %v6439_v45  ;;  %2366 = vmatpush1.bf16.msra.mxu1 %v6479_v62  ;;  %v7886_v13 = vpop.permute.xlu1 %1382  ;;  %v437_v44 = vsel %vm430_vm13, %v7590_v20, %v436_v42  ;;  %v429_v24 = vsel %vm428_vm11, %v420_v51, %v421_v50  ;;  %v2668_v33 = vmul.bf16 %v2660_v53, %v7389_v8  ;;  %v1043_v15 = vrot.slane %v7728_v35, 4 }
 0x1c6   : > { %2367 = vmatprep.subr.bf16.mxu1 %v6478_v54  ;;  %v432_v58 = vsel %vm428_vm11, %v422_v1, %v423_v59  ;;  %v1583_v40 = vmul.bf16 %v7772_v30, %v7897_v25  ;;  %v435_v4 = vsel %vm430_vm13, %v7583_v16, %v434_v55  ;;  %v6475_v20 = vcombine.low %v522_v12, %v524_v37 }
 0x1c7   : > { %2681 = vrot.lane.b32.xlu0 %v2665_v7, %s9818_s20  ;;  %2683 = vrot.lane.b32.xlu1 %v2666_v34, %s9818_s20  ;;  %v1584_v45 = vmul.bf16 %v7872_v52, %v1570_v26  ;;  %v431_v43 = vsel %vm430_vm13, %v7624_v2, %v429_v24  ;;  %v1040_v62 = vrot.slane %v7739_v47, 4  ;;  %v1394_v21 = vrot.slane %v7886_v13, 4 }
 0x1c8   : > { %v6474_v6 = vcombine.high %v435_v4, %v437_v44  ;;  %v433_v16 = vsel %vm430_vm13, %v7574_v10, %v432_v58  ;;  %v1041_v35 = vrot.slane %v7721_v18, 4  ;;  %v1050_v3 = vsel %vm428_vm11, %v1042_v38, %v1043_v15 }
 0x1c9   : > { %v1385_v49 = vpop.permute.xlu0 %1384  ;;  %2368 = vmatpush1.bf16.msra.mxu1 %v6477_v9  ;;  %v1387_v27 = vpop.permute.xlu1 %1386  ;;  %v1585_v2 = vmul.bf16 %v7786_v0, %v7897_v25  ;;  %v1038_v37 = vrot.slane %v7789_v19, 4  ;;  %v6473_v1 = vcombine.low %v435_v4, %v437_v44  ;;  %v6472_v10 = vcombine.high %v431_v43, %v433_v16 }
 0x1ca   : > { %v1395_v32 = vrot.slane %v1385_v49, 4  ;;  %2369 = vmatprep.subr.bf16.mxu1 %v6476_v48  ;;  %v1396_v34 = vrot.slane %v1387_v27, 4  ;;  %v1586_v18 = vmul.bf16 %v7872_v52, %v1572_v31  ;;  %v1048_v42 = vsel %vm428_vm11, %v1040_v62, %v1041_v35  ;;  %v2598_v49 = vld [vmem:[#allocation3 + $0x2c] sm:$0xf] }
 0x1cb   : > { %2685 = vrot.lane.b32.xlu0 %v2667_v36, %s9818_s20  ;;  %2687 = vrot.lane.b32.xlu1 %v2668_v33, %s9818_s20  ;;  %v1039_v53 = vrot.slane %v7759_v57, 4  ;;  %v1036_v50 = vrot.slane %v7777_v46, 4  ;;  %v1051_v9 = vsel %vm9831_vm3, %v7744_v22, %v1050_v3  ;;  %v1037_v59 = vrot.slane %v7749_v41, 4  ;;  %s9907_s20 = smov 127  }
 0x1cc   : > { %v1403_v7 = vsel %vm428_vm11, %v1394_v21, %v1395_v32  ;;  %v954_v44 = vrot.slane %v7884_v60, 4  ;;  %v6471_v22 = vcombine.low %v431_v43, %v433_v16  ;;  %v1049_v41 = vsel %vm9831_vm3, %v7739_v47, %v1048_v42  ;;  %v2600_v43 = vld [vmem:[#allocation3 + $0x3c] sm:$0xf] }
 0x1cd   : > { %v1389_v54 = vpop.permute.xlu0 %1388  ;;  %2370 = vmatpush1.bf16.msra.mxu1 %v6475_v20  ;;  %v7930_v51 = vpop.permute.xlu1 %1092  ;;  %v1404_v36 = vsel %vm1399_vm12, %v7886_v13, %v1403_v7  ;;  %v1046_v57 = vsel %vm428_vm11, %v1038_v37, %v1039_v53  ;;  %v1044_v13 = vsel %vm428_vm11, %v1036_v50, %v1037_v59  ;;  %v953_v33 = vrot.slane %v7866_v23, 4 }
 0x1ce   : > { %v1397_v5 = vrot.slane %v1389_v54, 4  ;;  %2371 = vmatprep.subr.bf16.mxu1 %v6474_v6  ;;  %v6502_v60 = vcombine.high %v1049_v41, %v1051_v9  ;;  %v1047_v58 = vsel %vm9831_vm3, %v7789_v19, %v1046_v57  ;;  %v2605_v47 = vmul.bf16 %v7772_v30, %v7375_v61 }
 0x1cf   : > { %1603 = vrot.lane.b32.xlu0 %v1583_v40, %s7031_s29  ;;  %1605 = vrot.lane.b32.xlu1 %v1584_v45, %s7031_s29  ;;  %v2606_v4 = vmul.bf16 %v2598_v49, %v7320_v28  ;;  %v951_v20 = vrot.slane %v7847_v14, 4  ;;  %v6501_v62 = vcombine.low %v1049_v41, %v1051_v9  ;;  %v1045_v19 = vsel %vm9831_vm3, %v7777_v46, %v1044_v13 }
 0x1d0   : > { %v1405_v12 = vsel %vm428_vm11, %v1396_v34, %v1397_v5  ;;  %v6500_v16 = vcombine.high %v1045_v19, %v1047_v58  ;;  %v2607_v54 = vmul.bf16 %v7786_v0, %v7375_v61  ;;  %v1566_v5 = vld [vmem:[#allocation3 + $0xc] sm:$0xf]  ;;  %v1579_v50 = vmul.bf16 %v7818_v29, %v7897_v25 }
 0x1d1   : > { %v7946_v55 = vpop.permute.xlu0 %931  ;;  %2372 = vmatpush1.bf16.msra.mxu1 %v6473_v1  ;;  %v934_v48 = vpop.permute.xlu1 %933  ;;  %v1406_v26 = vsel %vm1399_vm12, %v1387_v27, %v1405_v12  ;;  %v952_v27 = vrot.slane %v7864_v17, 4  ;;  %v961_v17 = vsel %vm428_vm11, %v953_v33, %v954_v44  ;;  %v6499_v1 = vcombine.low %v1045_v19, %v1047_v58 }
 0x1d2   : > { %2373 = vmatprep.subr.bf16.mxu1 %v6472_v10  ;;  %v6438_v24 = vcombine.high %v1404_v36, %v1406_v26  ;;  %v6437_v38 = vcombine.low %v1404_v36, %v1406_v26  ;;  %v947_v6 = vrot.slane %v7946_v55, 4  ;;  %v948_v31 = vrot.slane %v934_v48, 4  ;;  %v1568_v26 = vld [vmem:[#allocation3 + $0x1c] sm:$0xf] }
 0x1d3   : > { %1607 = vrot.lane.b32.xlu0 %v1585_v2, %s7031_s29  ;;  %1609 = vrot.lane.b32.xlu1 %v1586_v18, %s7031_s29  ;;  %v959_v21 = vsel %vm428_vm11, %v951_v20, %v952_v27  ;;  %v2608_v2 = vmul.bf16 %v2600_v43, %v7320_v28  ;;  %v962_v46 = vsel %vm572_vm2, %v7866_v23, %v961_v17 }
 0x1d4   : > { %2041 = vmatprep.subr.bf16.mxu0 %v6438_v24  ;;  %v960_v10 = vsel %vm572_vm2, %v7847_v14, %v959_v21  ;;  %v955_v18 = vsel %vm428_vm11, %v947_v6, %v948_v31  ;;  %v1580_v12 = vmul.bf16 %v7872_v52, %v1566_v5  ;;  %v1582_v41 = vmul.bf16 %v7872_v52, %v1568_v26  ;;  %v2596_v21 = vld [vmem:[#allocation3 + $0x1c] sm:$0xf] }
 0x1d5   : > { %v936_v32 = vpop.permute.xlu0 %935  ;;  %2042 = vmatpush1.bf16.msra.mxu0 %v6437_v38  ;;  %2374 = vmatpush1.bf16.msra.mxu1 %v6471_v22  ;;  %v938_v40 = vpop.permute.xlu1 %937  ;;  %v6498_v42 = vcombine.high %v960_v10, %v962_v46  ;;  %v6497_v14 = vcombine.low %v960_v10, %v962_v46  ;;  %v956_v57 = vsel %vm572_vm2, %v7946_v55, %v955_v18 }
 0x1d6   : > { %v949_v15 = vrot.slane %v936_v32, 4  ;;  %v950_v45 = vrot.slane %v938_v40, 4  ;;  %2375 = vmatprep.subr.bf16.mxu1 %v6502_v60  ;;  %v1581_v22 = vmul.bf16 %v7841_v63, %v7897_v25 }
 0x1d7   : > { %2625 = vrot.lane.b32.xlu0 %v2605_v47, %s7033_s13  ;;  %2627 = vrot.lane.b32.xlu1 %v2606_v4, %s7033_s13  ;;  %v9906_v47 = vld [vmem:[#allocation28_spill] sm:$0xff] }
 0x1d8   : > { %v957_v37 = vsel %vm428_vm11, %v949_v15, %v950_v45  ;;  %v8002_v4 = vrot.slane %v9906_v47, 4  ;;  %v2601_v15 = vmul.bf16 %v7818_v29, %v7375_v61 }
 0x1d9   : > { %v1375_v35 = vpop.permute.xlu0 %1374  ;;  %2376 = vmatpush2.bf16.msra.mxu1 %v6501_v62  ;;  %v1377_v3 = vpop.permute.xlu1 %1376  ;;  %v958_v9 = vsel %vm572_vm2, %v936_v32, %v957_v37  ;;  %v2594_v32 = vld [vmem:[#allocation3 + $0xc] sm:$0xf] }
 0x1da   : > { %v1390_v7 = vrot.slane %v1375_v35, 4  ;;  %v1391_v34 = vrot.slane %v1377_v3, 4  ;;  %2377 = vmatprep.subr.bf16.mxu1 %v6500_v16  ;;  %v6496_v24 = vcombine.high %v956_v57, %v958_v9  ;;  %v6495_v40 = vcombine.low %v956_v57, %v958_v9  ;;  %v1502_v9 = vld [vmem:[#allocation3 + $0x3c] sm:$0xf] }
 0x1db   : > { %2629 = vrot.lane.b32.xlu0 %v2607_v54, %s7033_s13  ;;  %2631 = vrot.lane.b32.xlu1 %v2608_v2, %s7033_s13  ;;  %v2602_v45 = vmul.bf16 %v2594_v32, %v7320_v28  ;;  %v8013_v6 = vsel %vm1471_vm15, %v8002_v4, %v9906_v47  ;;  %v2603_v3 = vmul.bf16 %v7841_v63, %v7375_v61 }
 0x1dc   : > { %v1398_v59 = vsel %vm428_vm11, %v1390_v7, %v1391_v34  ;;  %v2604_v54 = vmul.bf16 %v2596_v21, %v7320_v28  ;;  %v1515_v26 = vmul.bf16 %v7786_v0, %v8013_v6 }
 0x1dd   : > { %v1379_v53 = vpop.permute.xlu0 %1378  ;;  %2378 = vmatpush2.bf16.msra.mxu1 %v6499_v1  ;;  %v1381_v23 = vpop.permute.xlu1 %1380  ;;  %v1400_v13 = vsel %vm1399_vm12, %v1375_v35, %v1398_v59  ;;  %v1500_v1 = vld [vmem:[#allocation3 + $0x2c] sm:$0xf] }
 0x1de   : > { %v1392_v48 = vrot.slane %v1379_v53, 4  ;;  %v1393_v36 = vrot.slane %v1381_v23, 4  ;;  %2379 = vmatprep.subr.bf16.mxu1 %v6498_v42  ;;  %v1513_v42 = vmul.bf16 %v7772_v30, %v8013_v6 }
 0x1df   : > { %1595 = vrot.lane.b32.xlu0 %v1579_v50, %s7031_s29  ;;  %1597 = vrot.lane.b32.xlu1 %v1580_v12, %s7031_s29 }
 0x1e0   : > { %v1401_v44 = vsel %vm428_vm11, %v1392_v48, %v1393_v36 }
 0x1e1   : > { %v846_v38 = vpop.permute.xlu0 %845  ;;  %2380 = vmatpush2.bf16.msra.mxu1 %v6497_v14  ;;  %v848_v49 = vpop.permute.xlu1 %847  ;;  %v1402_v27 = vsel %vm1399_vm12, %v1379_v53, %v1401_v44  ;;  %v1514_v53 = vmul.bf16 %v8002_v4, %v1500_v1  ;;  %v1516_v14 = vmul.bf16 %v8002_v4, %v1502_v9 }
 0x1e2   : > { %v857_v33 = vrot.slane %v846_v38, 4  ;;  %v858_v60 = vrot.slane %v848_v49, 4  ;;  %2381 = vmatprep.subr.bf16.mxu1 %v6496_v24  ;;  %v6436_v58 = vcombine.high %v1400_v13, %v1402_v27  ;;  %v6435_v55 = vcombine.low %v1400_v13, %v1402_v27 }
 0x1e3   : > { %1599 = vrot.lane.b32.xlu0 %v1581_v22, %s7031_s29  ;;  %1601 = vrot.lane.b32.xlu1 %v1582_v41, %s7031_s29  ;;  %v2534_v41 = vld [vmem:[#allocation3 + $0x2c] sm:$0xf] }
 0x1e4   : > { %2043 = vmatprep.subr.bf16.mxu0 %v6436_v58  ;;  %v865_v43 = vsel %vm428_vm11, %v857_v33, %v858_v60  ;;  %v9908_v33 = vld [vmem:[#allocation20_spill] sm:$0xff]  ;;  %v9909_v58 = vld [vmem:[#allocation19_spill] sm:$0xff] }
 0x1e5   : > { %v850_v20 = vpop.permute.xlu0 %849  ;;  %2044 = vmatpush1.bf16.msra.mxu0 %v6435_v55  ;;  %2382 = vmatpush2.bf16.msra.mxu1 %v6495_v40  ;;  %v852_v17 = vpop.permute.xlu1 %851  ;;  %v866_v2 = vsel %vm663_vm4, %v846_v38, %v865_v43  ;;  %v2541_v60 = vmul.bf16 %v7772_v30, %v9908_v33  ;;  %v2542_v55 = vmul.bf16 %v2534_v41, %v9909_v58 }
 0x1e6   : > { %v859_v62 = vrot.slane %v850_v20, 4  ;;  %v860_v19 = vrot.slane %v852_v17, 4  ;;  %v2543_v43 = vmul.bf16 %v7786_v0, %v9908_v33 }
 0x1e7   : > { %2617 = vrot.lane.b32.xlu0 %v2601_v15, %s7033_s13  ;;  %2619 = vrot.lane.b32.xlu1 %v2602_v45, %s7033_s13 }
 0x1e8   : > { %v867_v31 = vsel %vm428_vm11, %v859_v62, %v860_v19 }
 0x1e9   : > { %v1311_v16 = vpop.permute.xlu0 %1310  ;;  %v1313_v35 = vpop.permute.xlu1 %1312  ;;  %v868_v46 = vsel %vm663_vm4, %v850_v20, %v867_v31  ;;  %v2536_v20 = vld [vmem:[#allocation3 + $0x3c] sm:$0xf] }
 0x1ea   : > { %v1322_v37 = vrot.slane %v1311_v16, 4  ;;  %v1323_v7 = vrot.slane %v1313_v35, 4  ;;  %v6493_v34 = vcombine.low %v866_v2, %v868_v46  ;;  %v6494_v5 = vcombine.high %v866_v2, %v868_v46 }
 0x1eb   : > { %2621 = vrot.lane.b32.xlu0 %v2603_v3, %s7033_s13  ;;  %2623 = vrot.lane.b32.xlu1 %v2604_v54, %s7033_s13  ;;  %v2544_v62 = vmul.bf16 %v2536_v20, %v9909_v58  ;;  %v1496_v54 = vld [vmem:[#allocation3 + $0xc] sm:$0xf] }
 0x1ec   : > { %2383 = vmatprep.subr.bf16.mxu1 %v6494_v5  ;;  %v1331_v23 = vsel %vm428_vm11, %v1322_v37, %v1323_v7  ;;  %v1509_v37 = vmul.bf16 %v7818_v29, %v8013_v6  ;;  %v1510_v7 = vmul.bf16 %v8002_v4, %v1496_v54 }
 0x1ed   : > { %v1315_v10 = vpop.permute.xlu0 %1314  ;;  %2384 = vmatpush2.bf16.msra.mxu1 %v6493_v34  ;;  %v1317_v18 = vpop.permute.xlu1 %1316  ;;  %v1332_v57 = vsel %vm9820_vm14, %v1311_v16, %v1331_v23  ;;  %v1511_v23 = vmul.bf16 %v7841_v63, %v8013_v6 }
 0x1ee   : > { %v1324_v50 = vrot.slane %v1315_v10, 4  ;;  %v1325_v12 = vrot.slane %v1317_v18, 4 }
 0x1ef   : > { %1533 = vrot.lane.b32.xlu0 %v1513_v42, %s9907_s20  ;;  %1535 = vrot.lane.b32.xlu1 %v1514_v53, %s9907_s20 }
 0x1f0   : > { %v1333_v59 = vsel %vm428_vm11, %v1324_v50, %v1325_v12 }
 0x1f1   : > { %v838_v48 = vpop.permute.xlu0 %837  ;;  %v840_v36 = vpop.permute.xlu1 %839  ;;  %v1334_v44 = vsel %vm9820_vm14, %v1315_v10, %v1333_v59  ;;  %v1498_v10 = vld [vmem:[#allocation3 + $0x1c] sm:$0xf] }
 0x1f2   : > { %v853_v24 = vrot.slane %v838_v48, 4  ;;  %v854_v38 = vrot.slane %v840_v36, 4  ;;  %v6434_v49 = vcombine.high %v1332_v57, %v1334_v44  ;;  %v6433_v22 = vcombine.low %v1332_v57, %v1334_v44 }
 0x1f3   : > { %1537 = vrot.lane.b32.xlu0 %v1515_v26, %s9907_s20  ;;  %1539 = vrot.lane.b32.xlu1 %v1516_v14, %s9907_s20  ;;  %v1512_v50 = vmul.bf16 %v8002_v4, %v1498_v10  ;;  %v2530_v14 = vld [vmem:[#allocation3 + $0xc] sm:$0xf] }
 0x1f4   : > { %2045 = vmatprep.subr.bf16.mxu0 %v6434_v49  ;;  %v861_v32 = vsel %vm428_vm11, %v853_v24, %v854_v38  ;;  %v2537_v24 = vmul.bf16 %v7818_v29, %v9908_v33  ;;  %v2538_v38 = vmul.bf16 %v2530_v14, %v9909_v58 }
 0x1f5   : > { %v842_v13 = vpop.permute.xlu0 %841  ;;  %2046 = vmatpush1.bf16.msra.mxu0 %v6433_v22  ;;  %v844_v27 = vpop.permute.xlu1 %843  ;;  %v862_v19 = vsel %vm663_vm4, %v838_v48, %v861_v32 }
 0x1f6   : > { %v855_v40 = vrot.slane %v842_v13, 4  ;;  %v856_v47 = vrot.slane %v844_v27, 4 }
 0x1f7   : > { %2561 = vrot.lane.b32.xlu0 %v2541_v60, %s9821_s17  ;;  %2563 = vrot.lane.b32.xlu1 %v2542_v55, %s9821_s17  ;;  %v6818_v60 = vld [vmem:[#allocation7 + $0x34] ss:$12 sps:$4 sm:$0xff]  }
 0x1f8   : > { %v863_v17 = vsel %vm428_vm11, %v855_v40, %v856_v47  ;;  %v2539_v40 = vmul.bf16 %v7841_v63, %v9908_v33  ;;  %2069 = vmatprep.mubr.bf16.mxu0 %v6818_v60 }
 0x1f9   : > { %v1303_v15 = vpop.permute.xlu0 %1302  ;;  %v1305_v45 = vpop.permute.xlu1 %1304  ;;  %v864_v21 = vsel %vm663_vm4, %v842_v13, %v863_v17  ;;  %v2532_v13 = vld [vmem:[#allocation3 + $0x1c] sm:$0xf] }
 0x1fa   : > { %v1318_v31 = vrot.slane %v1303_v15, 4  ;;  %v1319_v16 = vrot.slane %v1305_v45, 4  ;;  %v6491_v35 = vcombine.low %v862_v19, %v864_v21  ;;  %v6492_v3 = vcombine.high %v862_v19, %v864_v21  ;;  %v2470_v19 = vld [vmem:[#allocation3 + $0x2c] sm:$0xf] }
 0x1fb   : > { %2565 = vrot.lane.b32.xlu0 %v2543_v43, %s9821_s17  ;;  %2567 = vrot.lane.b32.xlu1 %v2544_v62, %s9821_s17  ;;  %v2540_v47 = vmul.bf16 %v2532_v13, %v9909_v58 }
 0x1fc   : > { %2385 = vmatprep.subr.bf16.mxu1 %v6492_v3  ;;  %v1326_v34 = vsel %vm428_vm11, %v1318_v31, %v1319_v16  ;;  %v9910_v16 = vld [vmem:[#allocation16_spill] sm:$0xff]  ;;  %v9911_v3 = vld [vmem:[#allocation15_spill] sm:$0xff] }
 0x1fd   : > { %v1307_v2 = vpop.permute.xlu0 %1306  ;;  %2386 = vmatpush2.bf16.msra.mxu1 %v6491_v35  ;;  %v1309_v46 = vpop.permute.xlu1 %1308  ;;  %v1328_v12 = vsel %vm9820_vm14, %v1303_v15, %v1326_v34  ;;  %v2477_v35 = vmul.bf16 %v7772_v30, %v9910_v16  ;;  %v2478_v54 = vmul.bf16 %v2470_v19, %v9911_v3  ;;  %v2479_v10 = vmul.bf16 %v7786_v0, %v9910_v16 }
 0x1fe   : > { %v1320_v5 = vrot.slane %v1307_v2, 4  ;;  %v1321_v1 = vrot.slane %v1309_v46, 4  ;;  %v2475_v13 = vmul.bf16 %v7841_v63, %v9910_v16 }
 0x1ff   : > { %1525 = vrot.lane.b32.xlu0 %v1509_v37, %s9907_s20  ;;  %1527 = vrot.lane.b32.xlu1 %v1510_v7, %s9907_s20  ;;  %v2472_v7 = vld [vmem:[#allocation3 + $0x3c] sm:$0xf] }
 0x200   : > { %v1329_v18 = vsel %vm428_vm11, %v1320_v5, %v1321_v1 }
 0x201   : > { %v749_v42 = vpop.permute.xlu0 %748  ;;  %v751_v53 = vpop.permute.xlu1 %750  ;;  %v1330_v9 = vsel %vm9820_vm14, %v1307_v2, %v1329_v18  ;;  %vm9832_vm14 = vcmask 523264   ;;  %v2480_v18 = vmul.bf16 %v2472_v7, %v9911_v3 }
 0x202   : > { %v760_v59 = vrot.slane %v749_v42, 4  ;;  %v761_v48 = vrot.slane %v751_v53, 4  ;;  %v6432_v36 = vcombine.high %v1328_v12, %v1330_v9  ;;  %v6431_v26 = vcombine.low %v1328_v12, %v1330_v9 }
 0x203   : > { %1529 = vrot.lane.b32.xlu0 %v1511_v23, %s9907_s20  ;;  %1531 = vrot.lane.b32.xlu1 %v1512_v50, %s9907_s20 }
 0x204   : > { %2047 = vmatprep.subr.bf16.mxu0 %v6432_v36  ;;  %v769_v49 = vsel %vm428_vm11, %v760_v59, %v761_v48  ;;  %v2466_v59 = vld [vmem:[#allocation3 + $0xc] sm:$0xf] }
 0x205   : > { %v753_v57 = vpop.permute.xlu0 %752  ;;  %2048 = vmatpush1.bf16.msra.mxu0 %v6431_v26  ;;  %v755_v44 = vpop.permute.xlu1 %754  ;;  %v770_v20 = vsel %vm9832_vm14, %v749_v42, %v769_v49  ;;  %v2473_v26 = vmul.bf16 %v7818_v29, %v9910_v16  ;;  %v2474_v14 = vmul.bf16 %v2466_v59, %v9911_v3 }
 0x206   : > { %v762_v22 = vrot.slane %v753_v57, 4  ;;  %v763_v41 = vrot.slane %v755_v44, 4 }
 0x207   : > { %2553 = vrot.lane.b32.xlu0 %v2537_v24, %s9821_s17  ;;  %2555 = vrot.lane.b32.xlu1 %v2538_v38, %s9821_s17  ;;  %v2468_v38 = vld [vmem:[#allocation3 + $0x1c] sm:$0xf] }
 0x208   : > { %v771_v27 = vsel %vm428_vm11, %v762_v22, %v763_v41 }
 0x209   : > { %v1238_v55 = vpop.permute.xlu0 %1237  ;;  %v1240_v32 = vpop.permute.xlu1 %1239  ;;  %v772_v17 = vsel %vm9832_vm14, %v753_v57, %v771_v27  ;;  %v2476_v27 = vmul.bf16 %v2468_v38, %v9911_v3 }
 0x20a   : > { %v1249_v15 = vrot.slane %v1238_v55, 4  ;;  %v1250_v45 = vrot.slane %v1240_v32, 4  ;;  %v6489_v43 = vcombine.low %v770_v20, %v772_v17  ;;  %v6490_v62 = vcombine.high %v770_v20, %v772_v17  ;;  %v2910_v17 = vld [vmem:[#allocation3 + $0x2c] sm:$0xf] }
 0x20b   : > { %2557 = vrot.lane.b32.xlu0 %v2539_v40, %s9821_s17  ;;  %2559 = vrot.lane.b32.xlu1 %v2540_v47, %s9821_s17  ;;  %s9916_s17 = smov 55  }
 0x20c   : > { %2387 = vmatprep.subr.bf16.mxu1 %v6490_v62  ;;  %v1258_v2 = vsel %vm428_vm11, %v1249_v15, %v1250_v45  ;;  %v6809_v15 = vld [vmem:[#allocation7] ss:$12 sps:$4 sm:$0xff]  }
 0x20d   : > { %v1242_v21 = vpop.permute.xlu0 %1241  ;;  %2388 = vmatpush2.bf16.msra.mxu1 %v6489_v43  ;;  %v1244_v31 = vpop.permute.xlu1 %1243  ;;  %v1259_v42 = vsel %vm1254_vm1, %v1238_v55, %v1258_v2  ;;  %v9912_v62 = vld [vmem:[#allocation23_spill] sm:$0xff] }
 0x20e   : > { %v1251_v46 = vrot.slane %v1242_v21, 4  ;;  %v1252_v37 = vrot.slane %v1244_v31, 4  ;;  %v2917_v19 = vmul.bf16 %v7772_v30, %v9912_v62  ;;  %v2913_v59 = vmul.bf16 %v7818_v29, %v9912_v62 }
 0x20f   : > { %2497 = vrot.lane.b32.xlu0 %v2477_v35, %s7043_s16  ;;  %2499 = vrot.lane.b32.xlu1 %v2478_v54, %s7043_s16 }
 0x210   : > { %v1260_v34 = vsel %vm428_vm11, %v1251_v46, %v1252_v37  ;;  %v2912_v46 = vld [vmem:[#allocation3 + $0x3c] sm:$0xf] }
 0x211   : > { %v741_v5 = vpop.permute.xlu0 %740  ;;  %v743_v1 = vpop.permute.xlu1 %742  ;;  %v1261_v53 = vsel %vm1254_vm1, %v1242_v21, %v1260_v34  ;;  %v9913_v21 = vld [vmem:[#allocation21_spill] sm:$0xff] }
 0x212   : > { %v756_v23 = vrot.slane %v741_v5, 4  ;;  %v757_v50 = vrot.slane %v743_v1, 4  ;;  %v6430_v12 = vcombine.high %v1259_v42, %v1261_v53  ;;  %v6429_v9 = vcombine.low %v1259_v42, %v1261_v53 }
 0x213   : > { %2501 = vrot.lane.b32.xlu0 %v2479_v10, %s7043_s16  ;;  %2503 = vrot.lane.b32.xlu1 %v2480_v18, %s7043_s16  ;;  %v2918_v31 = vmul.bf16 %v2910_v17, %v9913_v21  ;;  %v2920_v30 = vmul.bf16 %v2912_v46, %v9913_v21 }
 0x214   : > { %2049 = vmatprep.subr.bf16.mxu0 %v6430_v12  ;;  %v764_v57 = vsel %vm428_vm11, %v756_v23, %v757_v50  ;;  %v2906_v50 = vld [vmem:[#allocation3 + $0xc] sm:$0xf]  ;;  %v8122_v12 = vrot.slane %v7930_v51, 4 }
 0x215   : > { %v745_v48 = vpop.permute.xlu0 %744  ;;  %2050 = vmatpush1.bf16.msra.mxu0 %v6429_v9  ;;  %v747_v36 = vpop.permute.xlu1 %746  ;;  %v766_v60 = vsel %vm9832_vm14, %v741_v5, %v764_v57  ;;  %v2919_v5 = vmul.bf16 %v7786_v0, %v9912_v62  ;;  %v2908_v57 = vld [vmem:[#allocation3 + $0x1c] sm:$0xf] }
 0x216   : > { %v758_v44 = vrot.slane %v745_v48, 4  ;;  %v759_v24 = vrot.slane %v747_v36, 4  ;;  %9914 = vst [vmem:[#allocation28_spill] sm:$0xff] %v8122_v12  ;;  %v8136_v29 = vsel %vm430_vm13, %v8122_v12, %v7930_v51 }
 0x217   : > { %2489 = vrot.lane.b32.xlu0 %v2473_v26, %s7043_s16  ;;  %2491 = vrot.lane.b32.xlu1 %v2474_v14, %s7043_s16  ;;  %9915 = vst [vmem:[#allocation15_spill] sm:$0xff] %v8136_v29 }
 0x218   : > { %v767_v49 = vsel %vm428_vm11, %v758_v44, %v759_v24  ;;  %v2915_v24 = vmul.bf16 %v7841_v63, %v9912_v62  ;;  %v6822_v63 = vld [vmem:[#allocation7 + $0x1c] ss:$12 sps:$4 sm:$0xff]  }
 0x219   : > { %v1230_v22 = vpop.permute.xlu0 %1229  ;;  %v1232_v41 = vpop.permute.xlu1 %1231  ;;  %v768_v55 = vsel %vm9832_vm14, %v745_v48, %v767_v49  ;;  %v2914_v48 = vmul.bf16 %v2906_v50, %v9913_v21 }
 0x21a   : > { %v1245_v32 = vrot.slane %v1230_v22, 4  ;;  %v1246_v40 = vrot.slane %v1232_v41, 4  ;;  %v6487_v47 = vcombine.low %v766_v60, %v768_v55  ;;  %v6488_v20 = vcombine.high %v766_v60, %v768_v55 }
 0x21b   : > { %2493 = vrot.lane.b32.xlu0 %v2475_v13, %s7043_s16  ;;  %2495 = vrot.lane.b32.xlu1 %v2476_v27, %s7043_s16 }
 0x21c   : > { %2389 = vmatprep.subr.bf16.mxu1 %v6488_v20  ;;  %v1253_v35 = vsel %vm428_vm11, %v1245_v32, %v1246_v40  ;;  %v1064_v40 = vld [vmem:[#allocation3 + $0x20] sm:$0xff] }
 0x21d   : > { %v1234_v45 = vpop.permute.xlu0 %1233  ;;  %2390 = vmatpush2.bf16.msra.mxu1 %v6487_v47  ;;  %v1236_v43 = vpop.permute.xlu1 %1235  ;;  %v1255_v1 = vsel %vm1254_vm1, %v1230_v22, %v1253_v35  ;;  %v2916_v22 = vmul.bf16 %v2908_v57, %v9913_v21  ;;  %v1065_v47 = vld [vmem:[#allocation3 + $0x28] sm:$0xf]  ;;  %v1102_v17 = vmul.bf16 %v8136_v29, %v1064_v40  ;;  %v1066_v35 = vld [vmem:[#allocation3 + $0x30] sm:$0xff] }
 0x21e   : > { %v1247_v54 = vrot.slane %v1234_v45, 4  ;;  %v1248_v2 = vrot.slane %v1236_v43, 4 }
 0x21f   : > { %2937 = vrot.lane.b32.xlu0 %v2917_v19, %s9829_s15  ;;  %2939 = vrot.lane.b32.xlu1 %v2918_v31, %s9829_s15 }
 0x220   : > { %v1256_v37 = vsel %vm428_vm11, %v1247_v54, %v1248_v2  ;;  %2392 = vmatmul.mubr.bf16.vlgmr.msra.gmra.mxu1 %v6809_v15  ;;  %v1103_v15 = vmul.bf16 %v8122_v12, %v1065_v47  ;;  %v6824_v54 = vld [vmem:[#allocation7 + $0x18] ss:$12 sps:$4 sm:$0xff]  }
 0x221   : > { %v1674_v7 = vpop.permute.xlu0 %1673  ;;  %v1676_v34 = vpop.permute.xlu1 %1675  ;;  %v1257_v10 = vsel %vm1254_vm1, %v1234_v45, %v1256_v37  ;;  %v1067_v45 = vld [vmem:[#allocation3 + $0x38] sm:$0xf]  ;;  %2401 = vmatprep.mubr.bf16.mxu1 %v6822_v63  ;;  %v1060_v63 = vld [vmem:[#allocation3] sm:$0xff] }
 0x222   : > { %v1685_v18 = vrot.slane %v1674_v7, 4  ;;  %v1686_v42 = vrot.slane %v1676_v34, 4  ;;  %v6428_v53 = vcombine.high %v1255_v1, %v1257_v10  ;;  %v6427_v23 = vcombine.low %v1255_v1, %v1257_v10 }
 0x223   : > { %2941 = vrot.lane.b32.xlu0 %v2919_v5, %s9829_s15  ;;  %2943 = vrot.lane.b32.xlu1 %v2920_v30, %s9829_s15  ;;  %v1105_v34 = vmul.bf16 %v8122_v12, %v1067_v45 }
 0x224   : > { %2051 = vmatprep.subr.bf16.mxu0 %v6428_v53  ;;  %v1693_v36 = vsel %vm428_vm11, %v1685_v18, %v1686_v42  ;;  %v8153_v53 = vld [vmem:[#allocation3 + $0x24] sm:$0xff] }
 0x225   : > { %v1678_v0 = vpop.permute.xlu0 %1677  ;;  %2052 = vmatpush1.bf16.msra.mxu0 %v6427_v23  ;;  %v1680_v9 = vpop.permute.xlu1 %1679  ;;  %v1694_v41 = vsel %vm1282_vm10, %v1674_v7, %v1693_v36  ;;  %v1104_v7 = vmul.bf16 %v8136_v29, %v1066_v35  ;;  %v2846_v23 = vld [vmem:[#allocation3 + $0x2c] sm:$0xf]  ;;  %v1062_v35 = vld [vmem:[#allocation3 + $0x10] sm:$0xff] }
 0x226   : > { %v1687_v26 = vrot.slane %v1678_v0, 4  ;;  %v1688_v14 = vrot.slane %v1680_v9, 4  ;;  %v9917_v9 = vld [vmem:[#allocation26_spill] sm:$0xff] }
 0x227   : > { %2929 = vrot.lane.b32.xlu0 %v2913_v59, %s9829_s15  ;;  %2931 = vrot.lane.b32.xlu1 %v2914_v48, %s9829_s15  ;;  %v2853_v59 = vmul.bf16 %v8153_v53, %v9917_v9  ;;  %v9918_v48 = vld [vmem:[#allocation25_spill] sm:$0xff] }
 0x228   : > { %v1695_v44 = vsel %vm428_vm11, %v1687_v26, %v1688_v14  ;;  %2402 = vmatmul.mubr.bf16.gmra.mxu1 %v6824_v54  ;;  %v2854_v36 = vmul.bf16 %v2846_v23, %v9918_v48  ;;  %v1063_v54 = vld [vmem:[#allocation3 + $0x18] sm:$0xf]  ;;  %v2842_v23 = vld [vmem:[#allocation3 + $0xc] sm:$0xf] }
 0x229   : > { %v2690_v38 = vpop.permute.xlu0 %2689  ;;  %v2692_v49 = vpop.permute.xlu1 %2691  ;;  %v1696_v13 = vsel %vm1282_vm10, %v1678_v0, %v1695_v44  ;;  %v2848_v44 = vld [vmem:[#allocation3 + $0x3c] sm:$0xf] }
 0x22a   : > { %v2701_v27 = vrot.slane %v2690_v38, 4  ;;  %v2702_v60 = vrot.slane %v2692_v49, 4  ;;  %v6458_v55 = vcombine.high %v1694_v41, %v1696_v13  ;;  %v6457_v32 = vcombine.low %v1694_v41, %v1696_v13 }
 0x22b   : > { %2933 = vrot.lane.b32.xlu0 %v2915_v24, %s9829_s15  ;;  %2935 = vrot.lane.b32.xlu1 %v2916_v22, %s9829_s15  ;;  %v6863_v22 = vld [vmem:[#allocation3 + $0x34] sm:$0xff]  ;;  %v2856_v13 = vmul.bf16 %v2848_v44, %v9918_v48  ;;  %s9929_s15 = smov 7  }
 0x22c   : > { %2053 = vmatprep.subr.bf16.mxu0 %v6458_v55  ;;  %v2709_v43 = vsel %vm428_vm11, %v2701_v27, %v2702_v60  ;;  %v2855_v41 = vmul.bf16 %v6863_v22, %v9917_v9 }
 0x22d   : > { %v2694_v51 = vpop.permute.xlu0 %2693  ;;  %2054 = vmatpush2.bf16.msra.mxu0 %v6457_v32  ;;  %v2696_v20 = vpop.permute.xlu1 %2695  ;;  %v2710_v5 = vsel %vm708_vm9, %v2690_v38, %v2709_v43 }
 0x22e   : > { %v2703_v19 = vrot.slane %v2694_v51, 4  ;;  %v2704_v31 = vrot.slane %v2696_v20, 4 }
 0x22f   : > { %1122 = vrot.lane.b32.xlu0 %v1102_v17, %s9916_s17  ;;  %1124 = vrot.lane.b32.xlu1 %v1103_v15, %s9916_s17  ;;  %v1098_v15 = vmul.bf16 %v8136_v29, %v1060_v63 }
 0x230   : > { %v2711_v2 = vsel %vm428_vm11, %v2703_v19, %v2704_v31 }
 0x231   : > { %v1666_v46 = vpop.permute.xlu0 %1665  ;;  %v1668_v37 = vpop.permute.xlu1 %1667  ;;  %v2712_v30 = vsel %vm708_vm9, %v2694_v51, %v2711_v2  ;;  %v1061_v51 = vld [vmem:[#allocation3 + $0x8] sm:$0xf] }
 0x232   : > { %v1681_v1 = vrot.slane %v1666_v46, 4  ;;  %v1682_v10 = vrot.slane %v1668_v37, 4  ;;  %v6529_v18 = vcombine.low %v2710_v5, %v2712_v30  ;;  %v6530_v42 = vcombine.high %v2710_v5, %v2712_v30 }
 0x233   : > { %1126 = vrot.lane.b32.xlu0 %v1104_v7, %s9916_s17  ;;  %1128 = vrot.lane.b32.xlu1 %v1105_v34, %s9916_s17  ;;  %v1099_v45 = vmul.bf16 %v8122_v12, %v1061_v51  ;;  %v1100_v7 = vmul.bf16 %v8136_v29, %v1062_v35  ;;  %v1101_v34 = vmul.bf16 %v8122_v12, %v1063_v54  ;;  %v2782_v51 = vld [vmem:[#allocation3 + $0x2c] sm:$0xf] }
 0x234   : > { %3294 = vmatprep.subr.bf16.mxu1 %v6530_v42  ;;  %v1689_v26 = vsel %vm428_vm11, %v1681_v1, %v1682_v10 }
 0x235   : > { %v1670_v50 = vpop.permute.xlu0 %1669  ;;  %3295 = vmatpush1.bf16.msra.mxu1 %v6529_v18  ;;  %v1672_v0 = vpop.permute.xlu1 %1671  ;;  %v1690_v27 = vsel %vm1282_vm10, %v1666_v46, %v1689_v26  ;;  %v2850_v26 = vmul.bf16 %v2842_v23, %v9918_v48 }
 0x236   : > { %v1683_v14 = vrot.slane %v1670_v50, 4  ;;  %v1684_v57 = vrot.slane %v1672_v0, 4 }
 0x237   : > { %2873 = vrot.lane.b32.xlu0 %v2853_v59, %s9827_s11  ;;  %2875 = vrot.lane.b32.xlu1 %v2854_v36, %s9827_s11  ;;  %v6864_v59 = vld [vmem:[#allocation3 + $0x4] sm:$0xff] }
 0x238   : > { %v1691_v24 = vsel %vm428_vm11, %v1683_v14, %v1684_v57  ;;  %v2849_v36 = vmul.bf16 %v6864_v59, %v9917_v9  ;;  %v2778_v59 = vld [vmem:[#allocation3 + $0xc] sm:$0xf] }
 0x239   : > { %v2682_v38 = vpop.permute.xlu0 %2681  ;;  %v2684_v49 = vpop.permute.xlu1 %2683  ;;  %v1692_v60 = vsel %vm1282_vm10, %v1670_v50, %v1691_v24  ;;  %v2844_v24 = vld [vmem:[#allocation3 + $0x1c] sm:$0xf] }
 0x23a   : > { %v2697_v55 = vrot.slane %v2682_v38, 4  ;;  %v2698_v32 = vrot.slane %v2684_v49, 4  ;;  %v6456_v40 = vcombine.high %v1690_v27, %v1692_v60  ;;  %v6455_v47 = vcombine.low %v1690_v27, %v1692_v60 }
 0x23b   : > { %2877 = vrot.lane.b32.xlu0 %v2855_v41, %s9827_s11  ;;  %2879 = vrot.lane.b32.xlu1 %v2856_v13, %s9827_s11  ;;  %v6865_v41 = vld [vmem:[#allocation3 + $0x14] sm:$0xff]  ;;  %v2852_v27 = vmul.bf16 %v2844_v24, %v9918_v48 }
 0x23c   : > { %2055 = vmatprep.subr.bf16.mxu0 %v6456_v40  ;;  %v2705_v43 = vsel %vm428_vm11, %v2697_v55, %v2698_v32  ;;  %v2851_v13 = vmul.bf16 %v6865_v41, %v9917_v9 }
 0x23d   : > { %v2686_v20 = vpop.permute.xlu0 %2685  ;;  %2056 = vmatpush2.bf16.msra.mxu0 %v6455_v47  ;;  %v2688_v17 = vpop.permute.xlu1 %2687  ;;  %v2706_v5 = vsel %vm708_vm9, %v2682_v38, %v2705_v43  ;;  %v9920_v43 = vld [vmem:[#allocation30_spill] sm:$0xff] }
 0x23e   : > { %v2699_v19 = vrot.slane %v2686_v20, 4  ;;  %v2700_v31 = vrot.slane %v2688_v17, 4 }
 0x23f   : > { %1114 = vrot.lane.b32.xlu0 %v1098_v15, %s9916_s17  ;;  %1116 = vrot.lane.b32.xlu1 %v1099_v45, %s9916_s17  ;;  %v9919_v15 = vld [vmem:[#allocation31_spill] sm:$0xff] }
 0x240   : > { %v2707_v2 = vsel %vm428_vm11, %v2699_v19, %v2700_v31  ;;  %v2789_v45 = vmul.bf16 %v8153_v53, %v9919_v15  ;;  %v2790_v19 = vmul.bf16 %v2782_v51, %v9920_v43 }
 0x241   : > { %v1604_v46 = vpop.permute.xlu0 %1603  ;;  %v1606_v37 = vpop.permute.xlu1 %1605  ;;  %v2708_v30 = vsel %vm708_vm9, %v2686_v20, %v2707_v2  ;;  %v8198_v2 = vld [vmem:[#allocation3 + $0x34] sm:$0xff] }
 0x242   : > { %v1615_v1 = vrot.slane %v1604_v46, 4  ;;  %v1616_v10 = vrot.slane %v1606_v37, 4  ;;  %v6527_v18 = vcombine.low %v2706_v5, %v2708_v30  ;;  %v6528_v42 = vcombine.high %v2706_v5, %v2708_v30 }
 0x243   : > { %1118 = vrot.lane.b32.xlu0 %v1100_v7, %s9916_s17  ;;  %1120 = vrot.lane.b32.xlu1 %v1101_v34, %s9916_s17  ;;  %v2791_v5 = vmul.bf16 %v8198_v2, %v9919_v15 }
 0x244   : > { %3296 = vmatprep.subr.bf16.mxu1 %v6528_v42  ;;  %v1623_v14 = vsel %vm428_vm11, %v1615_v1, %v1616_v10 }
 0x245   : > { %v1608_v50 = vpop.permute.xlu0 %1607  ;;  %3297 = vmatpush1.bf16.msra.mxu1 %v6527_v18  ;;  %v1610_v0 = vpop.permute.xlu1 %1609  ;;  %v1624_v60 = vsel %vm1354_vm8, %v1604_v46, %v1623_v14  ;;  %v2784_v46 = vld [vmem:[#allocation3 + $0x3c] sm:$0xf] }
 0x246   : > { %v1617_v57 = vrot.slane %v1608_v50, 4  ;;  %v1618_v44 = vrot.slane %v1610_v0, 4  ;;  %v2792_v30 = vmul.bf16 %v2784_v46, %v9920_v43  ;;  %v8208_v0 = vld [vmem:[#allocation3 + $0x4] sm:$0xff] }
 0x247   : > { %2865 = vrot.lane.b32.xlu0 %v2849_v36, %s9827_s11  ;;  %2867 = vrot.lane.b32.xlu1 %v2850_v26, %s9827_s11  ;;  %v2785_v14 = vmul.bf16 %v8208_v0, %v9919_v15 }
 0x248   : > { %v1625_v38 = vsel %vm428_vm11, %v1617_v57, %v1618_v44  ;;  %v2786_v57 = vmul.bf16 %v2778_v59, %v9920_v43 }
 0x249   : > { %v2626_v49 = vpop.permute.xlu0 %2625  ;;  %v2628_v22 = vpop.permute.xlu1 %2627  ;;  %v1626_v55 = vsel %vm1354_vm8, %v1608_v50, %v1625_v38 }
 0x24a   : > { %v2637_v32 = vrot.slane %v2626_v49, 4  ;;  %v2638_v40 = vrot.slane %v2628_v22, 4  ;;  %v6454_v47 = vcombine.high %v1624_v60, %v1626_v55  ;;  %v6453_v63 = vcombine.low %v1624_v60, %v1626_v55  ;;  %v2780_v22 = vld [vmem:[#allocation3 + $0x1c] sm:$0xf] }
 0x24b   : > { %2869 = vrot.lane.b32.xlu0 %v2851_v13, %s9827_s11  ;;  %2871 = vrot.lane.b32.xlu1 %v2852_v27, %s9827_s11  ;;  %v2788_v55 = vmul.bf16 %v2780_v22, %v9920_v43  ;;  %s9934_s11 = smov 65  }
 0x24c   : > { %2057 = vmatprep.subr.bf16.mxu0 %v6454_v47  ;;  %v2645_v31 = vsel %vm428_vm11, %v2637_v32, %v2638_v40 }
 0x24d   : > { %v2630_v20 = vpop.permute.xlu0 %2629  ;;  %2058 = vmatpush2.bf16.msra.mxu0 %v6453_v63  ;;  %v2632_v17 = vpop.permute.xlu1 %2631  ;;  %v2646_v1 = vsel %vm617_vm7, %v2626_v49, %v2645_v31  ;;  %v8216_v49 = vld [vmem:[#allocation3 + $0x14] sm:$0xff] }
 0x24e   : > { %v2639_v35 = vrot.slane %v2630_v20, 4  ;;  %v2640_v54 = vrot.slane %v2632_v17, 4  ;;  %v2787_v60 = vmul.bf16 %v8216_v49, %v9919_v15  ;;  %v2726_v17 = vld [vmem:[#allocation3 + $0x2c] sm:$0xf] }
 0x24f   : > { %2809 = vrot.lane.b32.xlu0 %v2789_v45, %s9825_s8  ;;  %2811 = vrot.lane.b32.xlu1 %v2790_v19, %s9825_s8 }
 0x250   : > { %v2647_v37 = vsel %vm428_vm11, %v2639_v35, %v2640_v54 }
 0x251   : > { %v1596_v7 = vpop.permute.xlu0 %1595  ;;  %v1598_v34 = vpop.permute.xlu1 %1597  ;;  %v2648_v10 = vsel %vm617_vm7, %v2630_v20, %v2647_v37  ;;  %v2728_v37 = vld [vmem:[#allocation3 + $0x3c] sm:$0xf] }
 0x252   : > { %v1611_v18 = vrot.slane %v1596_v7, 4  ;;  %v1612_v42 = vrot.slane %v1598_v34, 4  ;;  %v6525_v23 = vcombine.low %v2646_v1, %v2648_v10  ;;  %v6526_v50 = vcombine.high %v2646_v1, %v2648_v10 }
 0x253   : > { %2813 = vrot.lane.b32.xlu0 %v2791_v5, %s9825_s8  ;;  %2815 = vrot.lane.b32.xlu1 %v2792_v30, %s9825_s8 }
 0x254   : > { %3298 = vmatprep.subr.bf16.mxu1 %v6526_v50  ;;  %v1619_v44 = vsel %vm428_vm11, %v1611_v18, %v1612_v42 }
 0x255   : > { %v1600_v36 = vpop.permute.xlu0 %1599  ;;  %3299 = vmatpush1.bf16.msra.mxu1 %v6525_v23  ;;  %v1602_v26 = vpop.permute.xlu1 %1601  ;;  %v1620_v32 = vsel %vm1354_vm8, %v1596_v7, %v1619_v44  ;;  %v2974_v23 = vld [vmem:[#allocation3 + $0x2c] sm:$0xf] }
 0x256   : > { %v1613_v24 = vrot.slane %v1600_v36, 4  ;;  %v1614_v38 = vrot.slane %v1602_v26, 4  ;;  %v2982_v26 = vmul.bf16 %v2974_v23, %v8122_v12 }
 0x257   : > { %2801 = vrot.lane.b32.xlu0 %v2785_v14, %s9825_s8  ;;  %2803 = vrot.lane.b32.xlu1 %v2786_v57, %s9825_s8 }
 0x258   : > { %v1621_v41 = vsel %vm428_vm11, %v1613_v24, %v1614_v38  ;;  %v2976_v24 = vld [vmem:[#allocation3 + $0x3c] sm:$0xf] }
 0x259   : > { %v2618_v13 = vpop.permute.xlu0 %2617  ;;  %v2620_v27 = vpop.permute.xlu1 %2619  ;;  %v1622_v40 = vsel %vm1354_vm8, %v1600_v36, %v1621_v41  ;;  %v2981_v36 = vmul.bf16 %v8153_v53, %v8136_v29 }
 0x25a   : > { %v2633_v47 = vrot.slane %v2618_v13, 4  ;;  %v2634_v63 = vrot.slane %v2620_v27, 4  ;;  %v6452_v51 = vcombine.high %v1620_v32, %v1622_v40  ;;  %v6451_v20 = vcombine.low %v1620_v32, %v1622_v40 }
 0x25b   : > { %2805 = vrot.lane.b32.xlu0 %v2787_v60, %s9825_s8  ;;  %2807 = vrot.lane.b32.xlu1 %v2788_v55, %s9825_s8  ;;  %v2984_v27 = vmul.bf16 %v2976_v24, %v8122_v12 }
 0x25c   : > { %2059 = vmatprep.subr.bf16.mxu0 %v6452_v51  ;;  %v2641_v31 = vsel %vm428_vm11, %v2633_v47, %v2634_v63  ;;  %v2722_v51 = vld [vmem:[#allocation3 + $0xc] sm:$0xf] }
 0x25d   : > { %v2622_v45 = vpop.permute.xlu0 %2621  ;;  %2060 = vmatpush2.bf16.msra.mxu0 %v6451_v20  ;;  %v2624_v19 = vpop.permute.xlu1 %2623  ;;  %v2642_v5 = vsel %vm617_vm7, %v2618_v13, %v2641_v31  ;;  %v2983_v13 = vmul.bf16 %v8198_v2, %v8136_v29 }
 0x25e   : > { %v2635_v35 = vrot.slane %v2622_v45, 4  ;;  %v2636_v54 = vrot.slane %v2624_v19, 4 }
 0x25f   : > { %2745 = vrot.lane.b32.xlu0 %v8153_v53, %s9823_s18  ;;  %2747 = vrot.lane.b32.xlu1 %v2726_v17, %s9823_s18 }
 0x260   : > { %v2643_v46 = vsel %vm428_vm11, %v2635_v35, %v2636_v54  ;;  %v2724_v54 = vld [vmem:[#allocation3 + $0x1c] sm:$0xf] }
 0x261   : > { %v1534_v7 = vpop.permute.xlu0 %1533  ;;  %v1536_v34 = vpop.permute.xlu1 %1535  ;;  %v2644_v30 = vsel %vm617_vm7, %v2622_v45, %v2643_v46  ;;  %v6829_v46 = vld [vmem:[#allocation7 + $0x64] ss:$12 sps:$4 sm:$0xff]  }
 0x262   : > { %v1545_v1 = vrot.slane %v1534_v7, 4  ;;  %v1546_v10 = vrot.slane %v1536_v34, 4  ;;  %v6523_v18 = vcombine.low %v2642_v5, %v2644_v30  ;;  %v6524_v42 = vcombine.high %v2642_v5, %v2644_v30  ;;  %3326 = vmatprep.mubr.bf16.mxu1 %v6829_v46 }
 0x263   : > { %2749 = vrot.lane.b32.xlu0 %v8198_v2, %s9823_s18  ;;  %2751 = vrot.lane.b32.xlu1 %v2728_v37, %s9823_s18 }
 0x264   : > { %3300 = vmatprep.subr.bf16.mxu1 %v6524_v42  ;;  %v1553_v14 = vsel %vm428_vm11, %v1545_v1, %v1546_v10  ;;  %v2970_v42 = vld [vmem:[#allocation3 + $0xc] sm:$0xf] }
 0x265   : > { %v1538_v50 = vpop.permute.xlu0 %1537  ;;  %3301 = vmatpush1.bf16.msra.mxu1 %v6523_v18  ;;  %v1540_v59 = vpop.permute.xlu1 %1539  ;;  %v1554_v60 = vsel %vm1426_vm6, %v1534_v7, %v1553_v14 }
 0x266   : > { %v1547_v57 = vrot.slane %v1538_v50, 4  ;;  %v1548_v44 = vrot.slane %v1540_v59, 4  ;;  %v2977_v59 = vmul.bf16 %v8208_v0, %v8136_v29 }
 0x267   : > { %3001 = vrot.lane.b32.xlu0 %v2981_v36, %s9916_s17  ;;  %3003 = vrot.lane.b32.xlu1 %v2982_v26, %s9916_s17  ;;  %v2978_v36 = vmul.bf16 %v2970_v42, %v8122_v12  ;;  %v4485_v42 = vld [vmem:[#allocation3 + $0x2c] sm:$0xf] }
 0x268   : > { %v1555_v38 = vsel %vm428_vm11, %v1547_v57, %v1548_v44  ;;  %v2972_v44 = vld [vmem:[#allocation3 + $0x1c] sm:$0xf] }
 0x269   : > { %v2562_v22 = vpop.permute.xlu0 %2561  ;;  %v2564_v41 = vpop.permute.xlu1 %2563  ;;  %v1556_v55 = vsel %vm1426_vm6, %v1538_v50, %v1555_v38  ;;  %v2979_v38 = vmul.bf16 %v8216_v49, %v8136_v29 }
 0x26a   : > { %v2573_v32 = vrot.slane %v2562_v22, 4  ;;  %v2574_v40 = vrot.slane %v2564_v41, 4  ;;  %v6450_v47 = vcombine.high %v1554_v60, %v1556_v55  ;;  %v6449_v63 = vcombine.low %v1554_v60, %v1556_v55 }
 0x26b   : > { %3005 = vrot.lane.b32.xlu0 %v2983_v13, %s9916_s17  ;;  %3007 = vrot.lane.b32.xlu1 %v2984_v27, %s9916_s17  ;;  %v2980_v13 = vmul.bf16 %v2972_v44, %v8122_v12  ;;  %v6446_v55 = vcombine.high %v8153_v53, %v8198_v2 }
 0x26c   : > { %2061 = vmatprep.subr.bf16.mxu0 %v6450_v47  ;;  %v2581_v45 = vsel %vm428_vm11, %v2573_v32, %v2574_v40 }
 0x26d   : > { %v2566_v20 = vpop.permute.xlu0 %2565  ;;  %2062 = vmatpush2.bf16.msra.mxu0 %v6449_v63  ;;  %v2568_v17 = vpop.permute.xlu1 %2567  ;;  %v2582_v34 = vsel %vm521_vm5, %v2562_v22, %v2581_v45  ;;  %v6445_v45 = vcombine.low %v8153_v53, %v8198_v2 }
 0x26e   : > { %v2575_v19 = vrot.slane %v2566_v20, 4  ;;  %v2576_v31 = vrot.slane %v2568_v17, 4 }
 0x26f   : > { %2737 = vrot.lane.b32.xlu0 %v8208_v0, %s9823_s18  ;;  %2739 = vrot.lane.b32.xlu1 %v2722_v51, %s9823_s18  ;;  %v3410_v51 = vld [vmem:[%s9758_s3 + $0x10] sm:$0xff] }
 0x270   : > { %v2583_v35 = vsel %vm428_vm11, %v2575_v19, %v2576_v31 }
 0x271   : > { %v1526_v37 = vpop.permute.xlu0 %1525  ;;  %v1528_v7 = vpop.permute.xlu1 %1527  ;;  %v2584_v5 = vsel %vm521_vm5, %v2566_v20, %v2583_v35 }
 0x272   : > { %v1541_v30 = vrot.slane %v1526_v37, 4  ;;  %v1542_v1 = vrot.slane %v1528_v7, 4  ;;  %v6521_v10 = vcombine.low %v2582_v34, %v2584_v5  ;;  %v6522_v18 = vcombine.high %v2582_v34, %v2584_v5 }
 0x273   : > { %2741 = vrot.lane.b32.xlu0 %v8216_v49, %s9823_s18  ;;  %2743 = vrot.lane.b32.xlu1 %v2724_v54, %s9823_s18  ;;  %v6444_v54 = vcombine.high %v8208_v0, %v8216_v49  ;;  %v6443_v5 = vcombine.low %v8208_v0, %v8216_v49  ;;  %v4487_v49 = vld [vmem:[#allocation3 + $0x3c] sm:$0xf]  ;;  %s9947_s18 = smov 72  }
 0x274   : > { %3302 = vmatprep.subr.bf16.mxu1 %v6522_v18  ;;  %v1549_v26 = vsel %vm428_vm11, %v1541_v30, %v1542_v1 }
 0x275   : > { %v1530_v23 = vpop.permute.xlu0 %1529  ;;  %3303 = vmatpush1.bf16.msra.mxu1 %v6521_v10  ;;  %v1532_v50 = vpop.permute.xlu1 %1531  ;;  %v1550_v27 = vsel %vm1426_vm6, %v1526_v37, %v1549_v26  ;;  %v3409_v37 = vld [vmem:[%s9758_s3 + $0x8] sm:$0xff] }
 0x276   : > { %v1543_v14 = vrot.slane %v1530_v23, 4  ;;  %v1544_v57 = vrot.slane %v1532_v50, 4  ;;  %v6819_v26 = vld [vmem:[#allocation7 + $0x4c] ss:$12 sps:$4 sm:$0xff]  }
 0x277   : > { %2993 = vrot.lane.b32.xlu0 %v2977_v59, %s9916_s17  ;;  %2995 = vrot.lane.b32.xlu1 %v2978_v36, %s9916_s17  ;;  %v4493_v36 = vmul.bf16 %v4485_v42, %v7755_v11 }
 0x278   : > { %v1551_v24 = vsel %vm428_vm11, %v1543_v14, %v1544_v57 }
 0x279   : > { %v2554_v22 = vpop.permute.xlu0 %2553  ;;  %v2556_v41 = vpop.permute.xlu1 %2555  ;;  %v1552_v60 = vsel %vm1426_vm6, %v1530_v23, %v1551_v24  ;;  %v6816_v23 = vld [vmem:[#allocation7 + $0x30] ss:$12 sps:$4 sm:$0xff]  }
 0x27a   : > { %v2569_v32 = vrot.slane %v2554_v22, 4  ;;  %v2570_v40 = vrot.slane %v2556_v41, 4  ;;  %v6448_v47 = vcombine.high %v1550_v27, %v1552_v60  ;;  %v6447_v63 = vcombine.low %v1550_v27, %v1552_v60 }
 0x27b   : > { %2997 = vrot.lane.b32.xlu0 %v2979_v38, %s9916_s17  ;;  %2999 = vrot.lane.b32.xlu1 %v2980_v13, %s9916_s17 }
 0x27c   : > { %2063 = vmatprep.subr.bf16.mxu0 %v6448_v47  ;;  %v2577_v19 = vsel %vm428_vm11, %v2569_v32, %v2570_v40  ;;  %v4481_v40 = vld [vmem:[#allocation3 + $0xc] sm:$0xf]  ;;  %v6821_v47 = vld [vmem:[#allocation7 + $0x48] ss:$12 sps:$4 sm:$0xff]  }
 0x27d   : > { %v2558_v20 = vpop.permute.xlu0 %2557  ;;  %2064 = vmatpush2.bf16.msra.mxu0 %v6447_v63  ;;  %v2560_v17 = vpop.permute.xlu1 %2559  ;;  %v2578_v53 = vsel %vm521_vm5, %v2554_v22, %v2577_v19  ;;  %v4495_v22 = vmul.bf16 %v4487_v49, %v7755_v11 }
 0x27e   : > { %v2571_v31 = vrot.slane %v2558_v20, 4  ;;  %v2572_v35 = vrot.slane %v2560_v17, 4  ;;  %2065 = vmatprep.subr.bf16.mxu0 %v6446_v55 }
 0x27f   : > { %3424 = vperm.xlu0 %6795, %v3410_v51  }
 0x280   : > { %v2579_v46 = vsel %vm428_vm11, %v2571_v31, %v2572_v35  ;;  %v4483_v31 = vld [vmem:[#allocation3 + $0x1c] sm:$0xf] }
 0x281   : > { %v2498_v7 = vpop.permute.xlu0 %2497  ;;  %2066 = vmatpush2.bf16.msra.mxu0 %v6445_v45  ;;  %v2500_v34 = vpop.permute.xlu1 %2499  ;;  %v2580_v2 = vsel %vm521_vm5, %v2558_v20, %v2579_v46  ;;  %v4489_v20 = vmul.bf16 %v4481_v40, %v7755_v11 }
 0x282   : > { %v2509_v30 = vrot.slane %v2498_v7, 4  ;;  %v2510_v1 = vrot.slane %v2500_v34, 4  ;;  %2067 = vmatprep.subr.bf16.mxu0 %v6444_v54  ;;  %v6519_v10 = vcombine.low %v2578_v53, %v2580_v2  ;;  %v6520_v18 = vcombine.high %v2578_v53, %v2580_v2 }
 0x283   : > { %3419 = vperm.xlu0 %6795, %v3409_v37   ;;  %v4491_v37 = vmul.bf16 %v4483_v31, %v7755_v11  ;;  %v9921_v53 = vmov 0  }
 0x284   : > { %3304 = vmatprep.subr.bf16.mxu1 %v6520_v18  ;;  %v2517_v14 = vsel %vm428_vm11, %v2509_v30, %v2510_v1 }
 0x285   : > { %v2502_v50 = vpop.permute.xlu0 %2501  ;;  %2068 = vmatpush2.bf16.msra.mxu0 %v6443_v5  ;;  %3305 = vmatpush1.bf16.msra.mxu1 %v6519_v10  ;;  %v2504_v59 = vpop.permute.xlu1 %2503  ;;  %v2518_v41 = vsel %vm430_vm13, %v2498_v7, %v2517_v14  ;;  %v4421_v10 = vld [vmem:[#allocation3 + $0x2c] sm:$0xf] }
 0x286   : > { %v2511_v57 = vrot.slane %v2502_v50, 4  ;;  %v2512_v0 = vrot.slane %v2504_v59, 4 }
 0x287   : > { %4514 = vrot.lane.b32.xlu0 %v4493_v36, %s7037_s12  ;;  %v4423_v36 = vld [vmem:[#allocation3 + $0x3c] sm:$0xf] }
 0x288   : > { %v2519_v44 = vsel %vm428_vm11, %v2511_v57, %v2512_v0  ;;  %2070 = vmatmul.mubr.bf16.vlgmr.msra.gmra.mxu0 %v6816_v23  ;;  %v4429_v23 = vmul.bf16 %v4421_v10, %v7872_v52  ;;  %v4431_v0 = vmul.bf16 %v4423_v36, %v7872_v52  ;;  %v4359_v10 = vld [vmem:[#allocation3 + $0x3c] sm:$0xf] }
 0x289   : > { %v2490_v24 = vpop.permute.xlu0 %2489  ;;  %v2492_v38 = vpop.permute.xlu1 %2491  ;;  %v2520_v13 = vsel %vm430_vm13, %v2502_v50, %v2519_v44  ;;  %2079 = vmatprep.mubr.bf16.mxu0 %v6819_v26 }
 0x28a   : > { %v2505_v27 = vrot.slane %v2490_v24, 4  ;;  %v2506_v60 = vrot.slane %v2492_v38, 4  ;;  %v6517_v55 = vcombine.low %v2518_v41, %v2520_v13  ;;  %v6518_v32 = vcombine.high %v2518_v41, %v2520_v13  ;;  %v4417_v13 = vld [vmem:[#allocation3 + $0xc] sm:$0xf] }
 0x28b   : > { %4518 = vrot.lane.b32.xlu0 %v4495_v22, %s7037_s12 }
 0x28c   : > { %3306 = vmatprep.subr.bf16.mxu1 %v6518_v32  ;;  %v2513_v17 = vsel %vm428_vm11, %v2505_v27, %v2506_v60 }
 0x28d   : > { %v2494_v63 = vpop.permute.xlu0 %2493  ;;  %3307 = vmatpush1.bf16.msra.mxu1 %v6517_v55  ;;  %v2496_v51 = vpop.permute.xlu1 %2495  ;;  %v2514_v7 = vsel %vm430_vm13, %v2490_v24, %v2513_v17  ;;  %v4425_v55 = vmul.bf16 %v4417_v13, %v7872_v52  ;;  %v4355_v13 = vld [vmem:[#allocation3 + $0x1c] sm:$0xf] }
 0x28e   : > { %v2507_v45 = vrot.slane %v2494_v63, 4  ;;  %v2508_v19 = vrot.slane %v2496_v51, 4 }
 0x28f   : > { %4506 = vrot.lane.b32.xlu0 %v4489_v20, %s7037_s12 }
 0x290   : > { %v2515_v35 = vsel %vm428_vm11, %v2507_v45, %v2508_v19  ;;  %2080 = vmatmul.mubr.bf16.gmra.mxu0 %v6821_v47 }
 0x291   : > { %v2938_v54 = vpop.permute.xlu0 %2937  ;;  %v2940_v46 = vpop.permute.xlu1 %2939  ;;  %v2516_v34 = vsel %vm430_vm13, %v2494_v63, %v2515_v35  ;;  %2444 = vmatprep.mubr.bf16.mxu0 %v9921_v53  ;;  %v4419_v63 = vld [vmem:[#allocation3 + $0x1c] sm:$0xf] }
 0x292   : > { %v2949_v2 = vrot.slane %v2938_v54, 4  ;;  %v2950_v5 = vrot.slane %v2940_v46, 4  ;;  %v6515_v30 = vcombine.low %v2514_v7, %v2516_v34  ;;  %v6516_v1 = vcombine.high %v2514_v7, %v2516_v34  ;;  %v4357_v7 = vld [vmem:[#allocation3 + $0x2c] sm:$0xf] }
 0x293   : > { %4510 = vrot.lane.b32.xlu0 %v4491_v37, %s7037_s12  ;;  %v4427_v45 = vmul.bf16 %v4419_v63, %v7872_v52 }
 0x294   : > { %3308 = vmatprep.subr.bf16.mxu1 %v6516_v1  ;;  %v2957_v11 = vsel %vm428_vm11, %v2949_v2, %v2950_v5  ;;  %v4365_v5 = vmul.bf16 %v4357_v7, %v8002_v4  ;;  %v4551_v7 = vld [vmem:[#allocation3 + $0x3c] sm:$0xf] }
 0x295   : > { %v2942_v18 = vpop.permute.xlu0 %2941  ;;  %3309 = vmatpush1.bf16.msra.mxu1 %v6515_v30  ;;  %v2944_v42 = vpop.permute.xlu1 %2943  ;;  %v2958_v49 = vsel %vm9831_vm3, %v2938_v54, %v2957_v11  ;;  %v4367_v11 = vmul.bf16 %v4359_v10, %v8002_v4 }
 0x296   : > { %v2951_v50 = vrot.slane %v2942_v18, 4  ;;  %v2952_v59 = vrot.slane %v2944_v42, 4 }
 0x297   : > { %4450 = vrot.lane.b32.xlu0 %v4429_v23, %s7031_s29 }
 0x298   : > { %v2959_v26 = vsel %vm428_vm11, %v2951_v50, %v2952_v59 }
 0x299   : > { %v2930_v14 = vpop.permute.xlu0 %2929  ;;  %v2932_v57 = vpop.permute.xlu1 %2931  ;;  %v2960_v44 = vsel %vm9831_vm3, %v2942_v18, %v2959_v26 }
 0x29a   : > { %v2945_v24 = vrot.slane %v2930_v14, 4  ;;  %v2946_v38 = vrot.slane %v2932_v57, 4  ;;  %v6545_v22 = vcombine.low %v2958_v49, %v2960_v44  ;;  %v6546_v41 = vcombine.high %v2958_v49, %v2960_v44 }
 0x29b   : > { %4454 = vrot.lane.b32.xlu0 %v4431_v0, %s7031_s29  ;;  %v4353_v0 = vld [vmem:[#allocation3 + $0xc] sm:$0xf] }
 0x29c   : > { %3310 = vmatprep.subr.bf16.mxu1 %v6546_v41  ;;  %v2953_v32 = vsel %vm428_vm11, %v2945_v24, %v2946_v38  ;;  %v4361_v24 = vmul.bf16 %v4353_v0, %v8002_v4 }
 0x29d   : > { %v2934_v27 = vpop.permute.xlu0 %2933  ;;  %3311 = vmatpush2.bf16.msra.mxu1 %v6545_v22  ;;  %v2936_v60 = vpop.permute.xlu1 %2935  ;;  %v2954_v19 = vsel %vm9831_vm3, %v2930_v14, %v2953_v32  ;;  %v4363_v32 = vmul.bf16 %v4355_v13, %v8002_v4 }
 0x29e   : > { %v2947_v40 = vrot.slane %v2934_v27, 4  ;;  %v2948_v47 = vrot.slane %v2936_v60, 4 }
 0x29f   : > { %4442 = vrot.lane.b32.xlu0 %v4425_v55, %s7031_s29 }
 0x2a0   : > { %v2955_v51 = vsel %vm428_vm11, %v2947_v40, %v2948_v47 }
 0x2a1   : > { %v1123_v20 = vpop.permute.xlu0 %1122  ;;  %v1125_v17 = vpop.permute.xlu1 %1124  ;;  %v2956_v31 = vsel %vm9831_vm3, %v2934_v27, %v2955_v51  ;;  %vm9923_vm3 = vcmask 261120  }
 0x2a2   : > { %v1134_v35 = vrot.slane %v1123_v20, 4  ;;  %v1135_v54 = vrot.slane %v1125_v17, 4  ;;  %v6543_v46 = vcombine.low %v2954_v19, %v2956_v31  ;;  %v6544_v37 = vcombine.high %v2954_v19, %v2956_v31 }
 0x2a3   : > { %4446 = vrot.lane.b32.xlu0 %v4427_v45, %s7031_s29  ;;  %v4549_v45 = vld [vmem:[#allocation3 + $0x2c] sm:$0xf] }
 0x2a4   : > { %3312 = vmatprep.subr.bf16.mxu1 %v6544_v37  ;;  %v1142_v30 = vsel %vm428_vm11, %v1134_v35, %v1135_v54  ;;  %v9922_v35 = vld [vmem:[#allocation14_spill] sm:$0xff] }
 0x2a5   : > { %v1127_v34 = vpop.permute.xlu0 %1126  ;;  %3313 = vmatpush2.bf16.msra.mxu1 %v6543_v46  ;;  %v1129_v2 = vpop.permute.xlu1 %1128  ;;  %v1143_v50 = vsel %vm384_vm0, %v1123_v20, %v1142_v30  ;;  %v4557_v54 = vmul.bf16 %v4549_v45, %v9922_v35  ;;  %v4559_v30 = vmul.bf16 %v4551_v7, %v9922_v35 }
 0x2a6   : > { %v1136_v52 = vrot.slane %v1127_v34, 4  ;;  %v1137_v1 = vrot.slane %v1129_v2, 4 }
 0x2a7   : > { %4386 = vrot.lane.b32.xlu0 %v4365_v5, %s9907_s20 }
 0x2a8   : > { %v1144_v18 = vsel %vm428_vm11, %v1136_v52, %v1137_v1 }
 0x2a9   : > { %v2874_v42 = vpop.permute.xlu0 %2873  ;;  %v2876_v23 = vpop.permute.xlu1 %2875  ;;  %v1145_v59 = vsel %vm384_vm0, %v1127_v34, %v1144_v18 }
 0x2aa   : > { %v2885_v36 = vrot.slane %v2874_v42, 4  ;;  %v2886_v26 = vrot.slane %v2876_v23, 4  ;;  %v6505_v14 = vcombine.low %v1143_v50, %v1145_v59  ;;  %v6506_v57 = vcombine.high %v1143_v50, %v1145_v59  ;;  %v3411_v50 = vld [vmem:[%s9758_s3 + $0x18] sm:$0xff]  ;;  %v6825_v59 = vld [vmem:[#allocation7 + $0x8] ss:$12 sps:$4 sm:$0xff]  }
 0x2ab   : > { %4390 = vrot.lane.b32.xlu0 %v4367_v11, %s9907_s20  ;;  %v4545_v11 = vld [vmem:[#allocation3 + $0xc] sm:$0xf]  ;;  %3429 = vperm.xlu1 %6796, %v3411_v50  }
 0x2ac   : > { %2424 = vmatprep.subr.bf16.mxu0 %v6506_v57  ;;  %v2893_v38 = vsel %vm428_vm11, %v2885_v36, %v2886_v26 }
 0x2ad   : > { %v2878_v49 = vpop.permute.xlu0 %2877  ;;  %2425 = vmatpush1.bf16.msra.mxu0 %v6505_v14  ;;  %v2880_v44 = vpop.permute.xlu1 %2879  ;;  %v2894_v40 = vsel %vm572_vm2, %v2874_v42, %v2893_v38  ;;  %v4553_v14 = vmul.bf16 %v4545_v11, %v9922_v35 }
 0x2ae   : > { %v2887_v22 = vrot.slane %v2878_v49, 4  ;;  %v2888_v41 = vrot.slane %v2880_v44, 4  ;;  %v4547_v44 = vld [vmem:[#allocation3 + $0x1c] sm:$0xf] }
 0x2af   : > { %4378 = vrot.lane.b32.xlu0 %v4361_v24, %s9907_s20  ;;  %v3408_v24 = vld [vmem:[%s9758_s3] sm:$0xff]  ;;  %v4555_v13 = vmul.bf16 %v4547_v44, %v9922_v35 }
 0x2b0   : > { %v2895_v27 = vsel %vm428_vm11, %v2887_v22, %v2888_v41  ;;  %3414 = vperm.xlu1 %6796, %v3408_v24  }
 0x2b1   : > { %v1115_v60 = vpop.permute.xlu0 %1114  ;;  %v1117_v55 = vpop.permute.xlu1 %1116  ;;  %v2896_v47 = vsel %vm572_vm2, %v2878_v49, %v2895_v27 }
 0x2b2   : > { %v1130_v63 = vrot.slane %v1115_v60, 4  ;;  %v1131_v51 = vrot.slane %v1117_v55, 4  ;;  %v6541_v20 = vcombine.low %v2894_v40, %v2896_v47  ;;  %v6542_v17 = vcombine.high %v2894_v40, %v2896_v47 }
 0x2b3   : > { %4382 = vrot.lane.b32.xlu0 %v4363_v32, %s9907_s20 }
 0x2b4   : > { %3314 = vmatprep.subr.bf16.mxu1 %v6542_v17  ;;  %v1138_v46 = vsel %vm428_vm11, %v1130_v63, %v1131_v51  ;;  %v6826_v63 = vld [vmem:[#allocation7 + $0x20] ss:$12 sps:$4 sm:$0xff]  }
 0x2b5   : > { %v1119_v19 = vpop.permute.xlu0 %1118  ;;  %3315 = vmatpush2.bf16.msra.mxu1 %v6541_v20  ;;  %v1121_v31 = vpop.permute.xlu1 %1120  ;;  %v1139_v52 = vsel %vm384_vm0, %v1115_v60, %v1138_v46 }
 0x2b6   : > { %v1132_v4 = vrot.slane %v1119_v19, 4  ;;  %v1133_v37 = vrot.slane %v1121_v31, 4 }
 0x2b7   : > { %4578 = vrot.lane.b32.xlu0 %v4557_v54, %s7038_s14 }
 0x2b8   : > { %v1140_v34 = vsel %vm428_vm11, %v1132_v4, %v1133_v37 }
 0x2b9   : > { %v2866_v2 = vpop.permute.xlu0 %2865  ;;  %v2868_v5 = vpop.permute.xlu1 %2867  ;;  %v1141_v1 = vsel %vm384_vm0, %v1119_v19, %v1140_v34 }
 0x2ba   : > { %v2881_v10 = vrot.slane %v2866_v2, 4  ;;  %v2882_v18 = vrot.slane %v2868_v5, 4  ;;  %v6503_v42 = vcombine.low %v1139_v52, %v1141_v1  ;;  %v6504_v23 = vcombine.high %v1139_v52, %v1141_v1 }
 0x2bb   : > { %4582 = vrot.lane.b32.xlu0 %v4559_v30, %s7038_s14 }
 0x2bc   : > { %2426 = vmatprep.subr.bf16.mxu0 %v6504_v23  ;;  %v2889_v57 = vsel %vm428_vm11, %v2881_v10, %v2882_v18 }
 0x2bd   : > { %v2870_v36 = vpop.permute.xlu0 %2869  ;;  %2427 = vmatpush1.bf16.msra.mxu0 %v6503_v42  ;;  %v2872_v26 = vpop.permute.xlu1 %2871  ;;  %v2890_v27 = vsel %vm572_vm2, %v2866_v2, %v2889_v57 }
 0x2be   : > { %v2883_v0 = vrot.slane %v2870_v36, 4  ;;  %v2884_v49 = vrot.slane %v2872_v26, 4 }
 0x2bf   : > { %4570 = vrot.lane.b32.xlu0 %v4553_v14, %s7038_s14 }
 0x2c0   : > { %v2891_v38 = vsel %vm428_vm11, %v2883_v0, %v2884_v49  ;;  %6507 = vmatmul.mubr.msk.bf16.vlgmr.msra.gmra.mxu0 %vm9923_vm3, %v6825_v59 }
 0x2c1   : > { %v2810_v22 = vpop.permute.xlu0 %2809  ;;  %v2812_v41 = vpop.permute.xlu1 %2811  ;;  %v2892_v60 = vsel %vm572_vm2, %v2870_v36, %v2891_v38  ;;  %2454 = vmatprep.mubr.bf16.mxu0 %v9921_v53 }
 0x2c2   : > { %v2821_v55 = vrot.slane %v2810_v22, 4  ;;  %v2822_v32 = vrot.slane %v2812_v41, 4  ;;  %v6539_v40 = vcombine.low %v2890_v27, %v2892_v60  ;;  %v6540_v47 = vcombine.high %v2890_v27, %v2892_v60 }
 0x2c3   : > { %4574 = vrot.lane.b32.xlu0 %v4555_v13, %s7038_s14 }
 0x2c4   : > { %3316 = vmatprep.subr.bf16.mxu1 %v6540_v47  ;;  %v2829_v17 = vsel %vm428_vm11, %v2821_v55, %v2822_v32 }
 0x2c5   : > { %v2814_v51 = vpop.permute.xlu0 %2813  ;;  %3317 = vmatpush2.bf16.msra.mxu1 %v6539_v40  ;;  %v2816_v20 = vpop.permute.xlu1 %2815  ;;  %v2830_v46 = vsel %vm663_vm4, %v2810_v22, %v2829_v17 }
 0x2c6   : > { %v2823_v45 = vrot.slane %v2814_v51, 4  ;;  %v2824_v19 = vrot.slane %v2816_v20, 4 }
 0x2c8   : > { %v2831_v31 = vsel %vm428_vm11, %v2823_v45, %v2824_v19  ;;  %6508 = vmatmul.mubr.msk.bf16.gmra.mxu0 %vm9923_vm3, %v6826_v63 }
 0x2c9   : > { %v2802_v35 = vpop.permute.xlu0 %2801  ;;  %v2804_v54 = vpop.permute.xlu1 %2803  ;;  %v2832_v4 = vsel %vm663_vm4, %v2814_v51, %v2831_v31  ;;  %3379 = vmatprep.mubr.bf16.mxu0 %v9921_v53 }
 0x2ca   : > { %v2817_v37 = vrot.slane %v2802_v35, 4  ;;  %v2818_v7 = vrot.slane %v2804_v54, 4  ;;  %v6537_v34 = vcombine.low %v2830_v46, %v2832_v4  ;;  %v6538_v2 = vcombine.high %v2830_v46, %v2832_v4 }
 0x2cc   : > { %3318 = vmatprep.subr.bf16.mxu1 %v6538_v2  ;;  %v2825_v52 = vsel %vm428_vm11, %v2817_v37, %v2818_v7 }
 0x2cd   : > { %v2806_v5 = vpop.permute.xlu0 %2805  ;;  %3319 = vmatpush2.bf16.msra.mxu1 %v6537_v34  ;;  %v2808_v30 = vpop.permute.xlu1 %2807  ;;  %v2826_v11 = vsel %vm663_vm4, %v2802_v35, %v2825_v52 }
 0x2ce   : > { %v2819_v1 = vrot.slane %v2806_v5, 4  ;;  %v2820_v10 = vrot.slane %v2808_v30, 4 }
 0x2d0   : > { %v2827_v18 = vsel %vm428_vm11, %v2819_v1, %v2820_v10 }
 0x2d1   : > { %v2746_v42 = vpop.permute.xlu0 %2745  ;;  %v2748_v23 = vpop.permute.xlu1 %2747  ;;  %v2828_v50 = vsel %vm663_vm4, %v2806_v5, %v2827_v18 }
 0x2d2   : > { %v2757_v59 = vrot.slane %v2746_v42, 4  ;;  %v2758_v36 = vrot.slane %v2748_v23, 4  ;;  %v6535_v26 = vcombine.low %v2826_v11, %v2828_v50  ;;  %v6536_v14 = vcombine.high %v2826_v11, %v2828_v50 }
 0x2d4   : > { %3320 = vmatprep.subr.bf16.mxu1 %v6536_v14  ;;  %v2765_v49 = vsel %vm428_vm11, %v2757_v59, %v2758_v36 }
 0x2d5   : > { %v2750_v57 = vpop.permute.xlu0 %2749  ;;  %3321 = vmatpush2.bf16.msra.mxu1 %v6535_v26  ;;  %v2752_v0 = vpop.permute.xlu1 %2751  ;;  %v2766_v13 = vsel %vm9832_vm14, %v2746_v42, %v2765_v49  ;;  %v6827_v26 = vld [vmem:[#allocation7 + $0x60] ss:$12 sps:$4 sm:$0xff]  }
 0x2d6   : > { %v2759_v44 = vrot.slane %v2750_v57, 4  ;;  %v2760_v24 = vrot.slane %v2752_v0, 4  ;;  %v6831_v0 = vld [vmem:[#allocation7 + $0x7c] ss:$12 sps:$4 sm:$0xff]  }
 0x2d8   : > { %v2767_v38 = vsel %vm428_vm11, %v2759_v44, %v2760_v24 }
 0x2d9   : > { %v3002_v22 = vpop.permute.xlu0 %3001  ;;  %v3004_v41 = vpop.permute.xlu1 %3003  ;;  %v2768_v27 = vsel %vm9832_vm14, %v2750_v57, %v2767_v38 }
 0x2da   : > { %v3013_v60 = vrot.slane %v3002_v22, 4  ;;  %v3014_v55 = vrot.slane %v3004_v41, 4  ;;  %v6533_v32 = vcombine.low %v2766_v13, %v2768_v27  ;;  %v6534_v40 = vcombine.high %v2766_v13, %v2768_v27 }
 0x2dc   : > { %3322 = vmatprep.subr.bf16.mxu1 %v6534_v40  ;;  %v3021_v51 = vsel %vm428_vm11, %v3013_v60, %v3014_v55  ;;  %v6830_v60 = vld [vmem:[#allocation7 + $0x68] ss:$12 sps:$4 sm:$0xff]   ;;  %v6833_v55 = vld [vmem:[#allocation7 + $0x78] ss:$12 sps:$4 sm:$0xff]   ;;  %v2124_v40 = vpop.f32.mrf.mxu1 }
 0x2dd   : > { %v3006_v47 = vpop.permute.xlu0 %3005  ;;  %3323 = vmatpush2.bf16.msra.mxu1 %v6533_v32  ;;  %v3008_v63 = vpop.permute.xlu1 %3007  ;;  %v3022_v35 = vsel %vm384_vm0, %v3002_v22, %v3021_v51  ;;  %v6834_v32 = vld [vmem:[#allocation7 + $0x80] ss:$12 sps:$4 sm:$0xff]  }
 0x2de   : > { %v3015_v20 = vrot.slane %v3006_v47, 4  ;;  %v3016_v17 = vrot.slane %v3008_v63, 4 }
 0x2e0   : > { %v3023_v45 = vsel %vm428_vm11, %v3015_v20, %v3016_v17 }
 0x2e1   : > { %v2738_v19 = vpop.permute.xlu0 %2737  ;;  %v2740_v31 = vpop.permute.xlu1 %2739  ;;  %v3024_v54 = vsel %vm384_vm0, %v3006_v47, %v3023_v45 }
 0x2e2   : > { %v2753_v46 = vrot.slane %v2738_v19, 4  ;;  %v2754_v4 = vrot.slane %v2740_v31, 4  ;;  %v6549_v37 = vcombine.low %v3022_v35, %v3024_v54  ;;  %v6550_v7 = vcombine.high %v3022_v35, %v3024_v54  ;;  %v2126_v47 = vpop.f32.mrf.mxu1 }
 0x2e4   : > { %3359 = vmatprep.subr.bf16.mxu0 %v6550_v7  ;;  %v2761_v5 = vsel %vm428_vm11, %v2753_v46, %v2754_v4  ;;  %v2128_v63 = vpop.f32.mrf.mxu1 }
 0x2e5   : > { %v2742_v34 = vpop.permute.xlu0 %2741  ;;  %3360 = vmatpush1.bf16.msra.mxu0 %v6549_v37  ;;  %v2744_v2 = vpop.permute.xlu1 %2743  ;;  %v2762_v42 = vsel %vm9832_vm14, %v2738_v19, %v2761_v5 }
 0x2e6   : > { %v2755_v30 = vrot.slane %v2742_v34, 4  ;;  %v2756_v52 = vrot.slane %v2744_v2, 4  ;;  %v2130_v20 = vpop.f32.mrf.mxu1 }
 0x2e8   : > { %v2763_v1 = vsel %vm428_vm11, %v2755_v30, %v2756_v52  ;;  %v2134_v45 = vpop.f32.mrf.mxu1 }
 0x2e9   : > { %v2994_v10 = vpop.permute.xlu0 %2993  ;;  %v2996_v18 = vpop.permute.xlu1 %2995  ;;  %v2764_v23 = vsel %vm9832_vm14, %v2742_v34, %v2763_v1  ;;  %vm9924_vm14 = vmmov %vm9923_vm3 }
 0x2ea   : > { %v3009_v11 = vrot.slane %v2994_v10, 4  ;;  %v3010_v50 = vrot.slane %v2996_v18, 4  ;;  %v6531_v59 = vcombine.low %v2762_v42, %v2764_v23  ;;  %v6532_v36 = vcombine.high %v2762_v42, %v2764_v23  ;;  %v2136_v31 = vpop.f32.mrf.mxu1 }
 0x2ec   : > { %3324 = vmatprep.subr.bf16.mxu1 %v6532_v36  ;;  %v3017_v49 = vsel %vm428_vm11, %v3009_v11, %v3010_v50  ;;  %v2138_v54 = vpop.f32.mrf.mxu1 }
 0x2ed   : > { %v2998_v14 = vpop.permute.xlu0 %2997  ;;  %3325 = vmatpush2.bf16.msra.mxu1 %v6531_v59  ;;  %v3000_v57 = vpop.permute.xlu1 %2999  ;;  %v3018_v22 = vsel %vm384_vm0, %v2994_v10, %v3017_v49 }
 0x2ee   : > { %v3011_v44 = vrot.slane %v2998_v14, 4  ;;  %v3012_v24 = vrot.slane %v3000_v57, 4  ;;  %v2140_v4 = vpop.f32.mrf.mxu1 }
 0x2f0   : > { %v3019_v38 = vsel %vm428_vm11, %v3011_v44, %v3012_v24  ;;  %3327 = vmatmul.mubr.bf16.vlgmr.msra.gmra.mxu1 %v6827_v26  ;;  %v2393_v7 = vpop.f32.mrf.mxu1 }
 0x2f1   : > { %v3020_v41 = vsel %vm384_vm0, %v2998_v14, %v3019_v38  ;;  %3336 = vmatprep.mubr.bf16.mxu1 %v6831_v0 }
 0x2f2   : > { %v6547_v13 = vcombine.low %v3018_v22, %v3020_v41  ;;  %v6548_v27 = vcombine.high %v3018_v22, %v3020_v41  ;;  %v2395_v2 = vpop.f32.mrf.mxu1 }
 0x2f4   : > { %3361 = vmatprep.subr.bf16.mxu0 %v6548_v27  ;;  %v2397_v52 = vpop.f32.mrf.mxu1 }
 0x2f5   : > { %3362 = vmatpush1.bf16.msra.mxu0 %v6547_v13 }
 0x2f6   : > { %v2399_v10 = vpop.f32.mrf.mxu1 }
 0x2f8   : > { %6551 = vmatmul.mubr.msk.bf16.vlgmr.msra.gmra.mxu0 %vm9923_vm3, %v6830_v60  ;;  %3337 = vmatmul.mubr.bf16.gmra.mxu1 %v6833_v55  ;;  %v2403_v18 = vpop.f32.mrf.mxu1 }
 0x2f9   : > { %3389 = vmatprep.mubr.bf16.mxu0 %v9921_v53  ;;  %4954 = vmatprep.mubr.bf16.mxu1 %v9921_v53 }
 0x2fa   : > { %v2405_v23 = vpop.f32.mrf.mxu1  ;;  %v3425_v15 = vpop.permute.xlu0 %3424 }
 0x2fc   : > { %v2407_v50 = vpop.f32.mrf.mxu1 }
 0x2fe   : > { %v2409_v36 = vpop.f32.mrf.mxu1 }
 0x300   : > { %6552 = vmatmul.mubr.msk.bf16.gmra.mxu0 %vm9924_vm14, %v6834_v32  ;;  %vm9997_vm14 = vcmask 64512  }
 0x326   : > { %v8397_v38 = vpop.permute.xlu1 %3429 }
 0x348   : > { %v2071_v51 = vpop.f32.mrf.mxu0 }
 0x349   : > { %v2125_v49 = vadd.f32 %v2124_v40, %v2071_v51 }
 0x34a   : > { %v2073_v17 = vpop.f32.mrf.mxu0 }
 0x34b   : > { %v2127_v24 = vadd.f32 %v2126_v47, %v2073_v17  ;;  %v2394_v13 = vadd.f32 %v2393_v7, %v2125_v49  ;;  %v3415_v47 = vpop.permute.xlu1 %3414 }
 0x34c   : > { %v2075_v19 = vpop.f32.mrf.mxu0 }
 0x34d   : > { %v2129_v27 = vadd.f32 %v2128_v63, %v2075_v19  ;;  %v2396_v53 = vadd.f32 %v2395_v2, %v2127_v24 }
 0x34e   : > { %v2077_v35 = vpop.f32.mrf.mxu0 }
 0x34f   : > { %v2131_v60 = vadd.f32 %v2130_v20, %v2077_v35  ;;  %v2398_v33 = vadd.f32 %v2397_v52, %v2129_v27 }
 0x350   : > { %v2081_v46 = vpop.f32.mrf.mxu0 }
 0x351   : > { %v2135_v43 = vadd.f32 %v2134_v45, %v2081_v46  ;;  %v2400_v17 = vadd.f32 %v2399_v10, %v2131_v60 }
 0x352   : > { %v2083_v37 = vpop.f32.mrf.mxu0 }
 0x353   : > { %v2137_v19 = vadd.f32 %v2136_v31, %v2083_v37  ;;  %v2404_v35 = vadd.f32 %v2403_v18, %v2135_v43 }
 0x354   : > { %v2085_v34 = vpop.f32.mrf.mxu0 }
 0x355   : > { %v2139_v49 = vadd.f32 %v2138_v54, %v2085_v34 }
 0x356   : > { %v2087_v5 = vpop.f32.mrf.mxu0 }
 0x357   : > { %v2408_v31 = vadd.f32 %v2407_v50, %v2139_v49  ;;  %v9926_v49 = vld [vmem:[#allocation24_spill] sm:$0xff] }
 0x380   : > { %v2446_v30 = vpop.f32.mrf.mxu0 }
 0x381   : > { %v2447_v9 = vadd.f32 %v2446_v30, %v2394_v13  ;;  %v3420_v30 = vpop.permute.xlu0 %3419 }
 0x382   : > { %v2448_v1 = vpop.f32.mrf.mxu0 }
 0x383   : > { %v2449_v21 = vadd.f32 %v2448_v1, %v2396_v53  ;;  %v2141_v53 = vadd.f32 %v2140_v4, %v2087_v5 }
 0x384   : > { %v2450_v42 = vpop.f32.mrf.mxu0 }
 0x385   : > { %v2451_v61 = vadd.f32 %v2450_v42, %v2398_v33  ;;  %v2406_v42 = vadd.f32 %v2405_v23, %v2137_v19  ;;  %v2410_v34 = vadd.f32 %v2409_v36, %v2141_v53 }
 0x386   : > { %v2452_v11 = vpop.f32.mrf.mxu0 }
 0x388   : > { %v2456_v59 = vpop.f32.mrf.mxu0 }
 0x38a   : > { %v2458_v26 = vpop.f32.mrf.mxu0 }
 0x38b   : > { %v2459_v18 = vadd.f32 %v2458_v26, %v2406_v42 }
 0x38c   : > { %v2460_v57 = vpop.f32.mrf.mxu0 }
 0x38d   : > { %v2461_v5 = vadd.f32 %v2460_v57, %v2408_v31 }
 0x38e   : > { %v2462_v22 = vpop.f32.mrf.mxu0 }
 0x38f   : > { %v2463_v27 = vadd.f32 %v2462_v22, %v2410_v34  ;;  %v8443_v34 = vpop.permute.xlu0 %4514 }
 0x3b0   : > { %v3328_v14 = vpop.f32.mrf.mxu1 }
 0x3b2   : > { %v3330_v0 = vpop.f32.mrf.mxu1 }
 0x3b4   : > { %v3332_v44 = vpop.f32.mrf.mxu1 }
 0x3b6   : > { %v3334_v41 = vpop.f32.mrf.mxu1 }
 0x3b8   : > { %v3381_v55 = vpop.f32.mrf.mxu0  ;;  %v3338_v32 = vpop.f32.mrf.mxu1 }
 0x3b9   : > { %v3382_v62 = vadd.f32 %v3381_v55, %v3328_v14  ;;  %v2453_v14 = vadd.f32 %v2452_v11, %v2400_v17 }
 0x3ba   : > { %v3383_v48 = vpop.f32.mrf.mxu0  ;;  %v3340_v58 = vpop.f32.mrf.mxu1 }
 0x3bb   : > { %v3400_v40 = vadd.f32 %v3382_v62, %v2447_v9  ;;  %v3384_v51 = vadd.f32 %v3383_v48, %v3330_v0  ;;  %v2457_v62 = vadd.f32 %v2456_v59, %v2404_v35 }
 0x3bc   : > { %v3385_v29 = vpop.f32.mrf.mxu0  ;;  %v3342_v1 = vpop.f32.mrf.mxu1 }
 0x3bd   : > { %v3401_v7 = vadd.f32 %v3384_v51, %v2449_v21  ;;  %v3432_v63 = vadd.f32 %v3415_v47, %v3400_v40  ;;  %v3386_v20 = vadd.f32 %v3385_v29, %v3332_v44 }
 0x3be   : > { %v3387_v2 = vpop.f32.mrf.mxu0  ;;  %v3344_v4 = vpop.f32.mrf.mxu1 }
 0x3bf   : > { %v3433_v45 = vadd.f32 %v3415_v47, %v3401_v7  ;;  %v3402_v46 = vadd.f32 %v3386_v20, %v2451_v61  ;;  %v3388_v52 = vadd.f32 %v3387_v2, %v3334_v41  ;;  %v3440_v9 = vmax.f32 %v3432_v63, 0.0 }
 0x3c0   : > { %v3391_v48 = vpop.f32.mrf.mxu0 }
 0x3c1   : > { %v3441_v10 = vmax.f32 %v3433_v45, 0.0  ;;  %v3434_v0 = vadd.f32 %v3420_v30, %v3402_v46  ;;  %v3403_v33 = vadd.f32 %v3388_v52, %v2453_v14  ;;  %v3392_v21 = vadd.f32 %v3391_v48, %v3338_v32  ;;  %v9927_v14 = vld [vmem:[#allocation27_spill] sm:$0xff]  ;;  %v9928_v46 = vld [vmem:[#allocation29_spill] sm:$0xff] }
 0x3c2   : > { %v3393_v29 = vpop.f32.mrf.mxu0  ;;  %v9931_v48 = vld [vmem:[#allocation33_spill] sm:$0xff] }
 0x3c3   : > { %v8399_v43 = vpack.c.bf16 %v3441_v10, %v3440_v9  ;;  %v3435_v54 = vadd.f32 %v3420_v30, %v3403_v33  ;;  %v3404_v37 = vadd.f32 %v3392_v21, %v2457_v62  ;;  %v3394_v61 = vadd.f32 %v3393_v29, %v3340_v58  ;;  %v9930_v62 = vld [vmem:[#allocation32_spill] sm:$0xff]  ;;  %v9933_v21 = vld [vmem:[#allocation35_spill] sm:$0xff] }
 0x3c4   : > { %v3395_v11 = vpop.f32.mrf.mxu0  ;;  %v3442_v59 = vmax.f32 %v3434_v0, 0.0  ;;  %v9932_v0 = vld [vmem:[#allocation34_spill] sm:$0xff] }
 0x3c5   : > { %3472 = vst [vmem:[#allocation3 + $0x4] sm:$0xff] %v8399_v43  ;;  %v3443_v44 = vmax.f32 %v3435_v54, 0.0  ;;  %v3396_v24 = vadd.f32 %v3395_v11, %v3342_v1  ;;  %v3436_v41 = vadd.f32 %v3425_v15, %v3404_v37  ;;  %v3405_v13 = vadd.f32 %v3394_v61, %v2459_v18 }
 0x3c6   : > { %v3397_v23 = vpop.f32.mrf.mxu0  ;;  %v4488_v54 = vmul.bf16 %v8399_v43, %v7767_v56  ;;  %v4424_v61 = vmul.bf16 %v8399_v43, %v7897_v25 }
 0x3c7   : > { %v8402_v50 = vpack.c.bf16 %v3443_v44, %v3442_v59  ;;  %v3406_v60 = vadd.f32 %v3396_v24, %v2461_v5  ;;  %v3398_v55 = vadd.f32 %v3397_v23, %v3344_v4  ;;  %v3437_v32 = vadd.f32 %v3425_v15, %v3405_v13  ;;  %v8452_v4 = vpop.permute.xlu0 %4518 }
 0x3c8   : > { %v3444_v26 = vmax.f32 %v3436_v41, 0.0  ;;  %v4360_v59 = vmul.bf16 %v8399_v43, %v8013_v6 }
 0x3c9   : > { %3473 = vst [vmem:[#allocation3 + $0x14] sm:$0xff] %v8402_v50  ;;  %v3438_v58 = vadd.f32 %v8397_v38, %v3406_v60  ;;  %v3407_v36 = vadd.f32 %v3398_v55, %v2463_v27  ;;  %v3445_v57 = vmax.f32 %v3437_v32, 0.0  ;;  %v9935_v32 = vld [vmem:[#allocation17_spill] sm:$0xff]  ;;  %v5490_v27 = vld [vmem:[#allocation3 + $0xc] sm:$0xf] }
 0x3ca   : > { %v5492_v60 = vld [vmem:[#allocation3 + $0x1c] sm:$0xf] }
 0x3cb   : > { %v3439_v40 = vadd.f32 %v8397_v38, %v3407_v36  ;;  %v8407_v51 = vpack.c.bf16 %v3445_v57, %v3444_v26  ;;  %v3446_v22 = vmax.f32 %v3438_v58, 0.0  ;;  %v9925_v38 = vld [vmem:[#allocation22_spill] sm:$0xff]  ;;  %v4552_v58 = vmul.bf16 %v8399_v43, %v9935_v32 }
 0x3cc   : > { %v3477_v47 = vld [vmem:[#allocation3 + $0x8] sm:$0xf]  ;;  %v8409_v17 = vld [vmem:[#allocation3] sm:$0xff] }
 0x3cd   : > { %v3447_v7 = vmax.f32 %v3439_v40, 0.0  ;;  %v3485_v63 = vmul.bf16 %v3477_v47, %v9911_v3  ;;  %v3484_v15 = vmul.bf16 %v8409_v17, %v9910_v16  ;;  %3474 = vst [vmem:[#allocation3 + $0x24] sm:$0xff] %v8407_v51  ;;  %v4281_v20 = vld [vmem:[#allocation3 + $0x8] sm:$0xf]  ;;  %v4288_v2 = vmul.bf16 %v8409_v17, %v9926_v49  ;;  %v8478_v40 = vpop.permute.xlu0 %4506 }
 0x3ce   : > { %v4289_v35 = vmul.bf16 %v4281_v20, %v9925_v38  ;;  %v4217_v30 = vld [vmem:[#allocation3 + $0x8] sm:$0xf]  ;;  %v4224_v52 = vmul.bf16 %v8409_v17, %v9928_v46  ;;  %v4160_v1 = vmul.bf16 %v8409_v17, %v9931_v48  ;;  %v4096_v42 = vmul.bf16 %v8409_v17, %v9933_v21 }
 0x3cf   : > { %v8415_v19 = vpack.c.bf16 %v3447_v7, %v3446_v22  ;;  %3502 = vrot.lane.b32.xlu0 %v3485_v63, %s7043_s16  ;;  %3500 = vrot.lane.b32.xlu1 %v3484_v15, %s7043_s16  ;;  %v4225_v45 = vmul.bf16 %v4217_v30, %v9927_v14  ;;  %v4153_v53 = vld [vmem:[#allocation3 + $0x8] sm:$0xf]  ;;  %v3676_v22 = vmul.bf16 %v8409_v17, %v7439_v39 }
 0x3d0   : > { %v4161_v9 = vmul.bf16 %v4153_v53, %v9930_v62  ;;  %v4089_v10 = vld [vmem:[#allocation3 + $0x8] sm:$0xf]  ;;  %v3479_v37 = vld [vmem:[#allocation3 + $0x18] sm:$0xf]  ;;  %v8485_v43 = vld [vmem:[#allocation3 + $0x10] sm:$0xff] }
 0x3d1   : > { %3475 = vst [vmem:[#allocation3 + $0x34] sm:$0xff] %v8415_v19  ;;  %v4097_v33 = vmul.bf16 %v4089_v10, %v9932_v0  ;;  %v3669_v29 = vld [vmem:[#allocation3 + $0x8] sm:$0xf]  ;;  %v3487_v18 = vmul.bf16 %v3479_v37, %v9911_v3  ;;  %v4283_v11 = vld [vmem:[#allocation3 + $0x18] sm:$0xf]  ;;  %v8489_v63 = vpop.permute.xlu0 %4510  ;;  %v3486_v20 = vmul.bf16 %v8485_v43, %v9910_v16  ;;  %v4290_v30 = vmul.bf16 %v8485_v43, %v9926_v49 }
 0x3d2   : > { %v3677_v31 = vmul.bf16 %v3669_v29, %v7389_v8  ;;  %v4291_v5 = vmul.bf16 %v4283_v11, %v9925_v38  ;;  %v4219_v24 = vld [vmem:[#allocation3 + $0x18] sm:$0xf]  ;;  %v8465_v23 = vld [vmem:[#allocation3 + $0x4] sm:$0xff]  ;;  %v4490_v11 = vmul.bf16 %v8402_v50, %v7767_v56 }
 0x3d3   : > { %4306 = vrot.lane.b32.xlu0 %v4289_v35, %s7042_s27  ;;  %4304 = vrot.lane.b32.xlu1 %v4288_v2, %s7042_s27  ;;  %v8459_v41 = vld [vmem:[#allocation3 + $0x14] sm:$0xff]  ;;  %v4227_v55 = vmul.bf16 %v4219_v24, %v9927_v14  ;;  %v3541_v36 = vld [vmem:[#allocation3 + $0x8] sm:$0xf] }
 0x3d4   : > { %v8463_v13 = vld [vmem:[#allocation3 + $0x24] sm:$0xff]  ;;  %v4155_v57 = vld [vmem:[#allocation3 + $0x18] sm:$0xf] }
 0x3d5   : > { %v4163_v47 = vmul.bf16 %v4155_v57, %v9930_v62  ;;  %v4091_v7 = vld [vmem:[#allocation3 + $0x18] sm:$0xf]  ;;  %v4221_v29 = vld [vmem:[#allocation3 + $0x28] sm:$0xf] }
 0x3d6   : > { %v4099_v15 = vmul.bf16 %v4091_v7, %v9932_v0  ;;  %v3671_v35 = vld [vmem:[#allocation3 + $0x18] sm:$0xf]  ;;  %v4157_v37 = vld [vmem:[#allocation3 + $0x28] sm:$0xf] }
 0x3d7   : > { %4242 = vrot.lane.b32.xlu0 %v4225_v45, %s9929_s15  ;;  %4240 = vrot.lane.b32.xlu1 %v4224_v52, %s9929_s15  ;;  %v3679_v2 = vmul.bf16 %v3671_v35, %v7389_v8  ;;  %v3481_v45 = vld [vmem:[#allocation3 + $0x28] sm:$0xf]  ;;  %v8499_v52 = vpop.permute.xlu0 %4450  ;;  %v3543_v26 = vld [vmem:[#allocation3 + $0x18] sm:$0xf] }
 0x3d8   : > { %v8457_v44 = vld [vmem:[#allocation3 + $0x34] sm:$0xff]  ;;  %v3489_v53 = vmul.bf16 %v3481_v45, %v9911_v3  ;;  %v3678_v45 = vmul.bf16 %v8485_v43, %v7439_v39 }
 0x3d9   : > { %v4287_v35 = vld [vmem:[#allocation3 + $0x38] sm:$0xf] }
 0x3db   : > { %4178 = vrot.lane.b32.xlu0 %v4161_v9, %s7041_s10  ;;  %4176 = vrot.lane.b32.xlu1 %v4160_v1, %s7041_s10  ;;  %v4226_v9 = vmul.bf16 %v8485_v43, %v9928_v46  ;;  %v4285_v1 = vld [vmem:[#allocation3 + $0x28] sm:$0xf]  ;;  %v8508_v10 = vpop.permute.xlu0 %4454 }
 0x3df   : > { %4114 = vrot.lane.b32.xlu0 %v4097_v33, %s7028_s26  ;;  %4112 = vrot.lane.b32.xlu1 %v4096_v42, %s7028_s26  ;;  %v4293_v33 = vmul.bf16 %v4285_v1, %v9925_v38  ;;  %v4162_v42 = vmul.bf16 %v8485_v43, %v9931_v48 }
 0x3e3   : > { %3694 = vrot.lane.b32.xlu0 %v3677_v31, %s9934_s11  ;;  %4504 = vrot.lane.b32.xlu1 %v4488_v54, %s7037_s12  ;;  %v4229_v31 = vmul.bf16 %v4221_v29, %v9927_v14  ;;  %v4098_v54 = vmul.bf16 %v8485_v43, %v9933_v21 }
 0x3e7   : > { %3506 = vrot.lane.b32.xlu0 %v3487_v18, %s7043_s16  ;;  %4440 = vrot.lane.b32.xlu1 %v4424_v61, %s7031_s29  ;;  %v8518_v18 = vpop.permute.xlu0 %4442  ;;  %v4165_v61 = vmul.bf16 %v4157_v37, %v9930_v62 }
 0x3eb   : > { %4310 = vrot.lane.b32.xlu0 %v4291_v5, %s7042_s27  ;;  %4376 = vrot.lane.b32.xlu1 %v4360_v59, %s9907_s20  ;;  %v4093_v5 = vld [vmem:[#allocation3 + $0x28] sm:$0xf]  ;;  %v8527_v59 = vpop.permute.xlu0 %4446 }
 0x3ec   : > { %9936 = vst [vmem:[#allocation14_spill] sm:$0xff] %v8527_v59  ;;  %v4101_v24 = vmul.bf16 %v4093_v5, %v9932_v0  ;;  %v3611_v5 = vld [vmem:[#allocation3 + $0x38] sm:$0xf] }
 0x3ef   : > { %4246 = vrot.lane.b32.xlu0 %v4227_v55, %s9929_s15  ;;  %4568 = vrot.lane.b32.xlu1 %v4552_v58, %s7038_s14  ;;  %v4426_v55 = vmul.bf16 %v8402_v50, %v7897_v25  ;;  %v3673_v58 = vld [vmem:[#allocation3 + $0x28] sm:$0xf]  ;;  %v8537_v7 = vpop.permute.xlu0 %4386 }
 0x3f0   : > { %v3681_v57 = vmul.bf16 %v3673_v58, %v7389_v8  ;;  %9937 = vst [vmem:[#allocation22_spill] sm:$0xff] %v8537_v7  ;;  %v3985_v58 = vld [vmem:[#allocation3 + $0x28] sm:$0xf]  ;;  %v5366_v7 = vld [vmem:[#allocation3 + $0x2c] sm:$0xf] }
 0x3f3   : > { %4182 = vrot.lane.b32.xlu0 %v4163_v47, %s7041_s10  ;;  %3692 = vrot.lane.b32.xlu1 %v3676_v22, %s9934_s11  ;;  %v4362_v47 = vmul.bf16 %v8402_v50, %v8013_v6  ;;  %v3609_v22 = vld [vmem:[#allocation3 + $0x28] sm:$0xf] }
 0x3f7   : > { %4118 = vrot.lane.b32.xlu0 %v4099_v15, %s7028_s26  ;;  %3504 = vrot.lane.b32.xlu1 %v3486_v20, %s7043_s16  ;;  %v3617_v15 = vmul.bf16 %v3609_v22, %v7320_v28  ;;  %v4554_v20 = vmul.bf16 %v8402_v50, %v9935_v32  ;;  %v4492_v22 = vmul.bf16 %v8407_v51, %v7767_v56 }
 0x3fb   : > { %3698 = vrot.lane.b32.xlu0 %v3679_v2, %s9934_s11  ;;  %4308 = vrot.lane.b32.xlu1 %v4290_v30, %s7042_s27  ;;  %v8546_v2 = vpop.permute.xlu0 %4390  ;;  %v4295_v30 = vmul.bf16 %v4287_v35, %v9925_v38  ;;  %v4428_v35 = vmul.bf16 %v8407_v51, %v7897_v25 }
 0x3fc   : > { %9938 = vst [vmem:[#allocation24_spill] sm:$0xff] %v8546_v2  ;;  %v3923_v2 = vld [vmem:[#allocation3 + $0x38] sm:$0xf] }
 0x3ff   : > { %3510 = vrot.lane.b32.xlu0 %v3489_v53, %s7043_s16  ;;  %4244 = vrot.lane.b32.xlu1 %v4226_v9, %s9929_s15  ;;  %v4223_v53 = vld [vmem:[#allocation3 + $0x38] sm:$0xf]  ;;  %v8551_v9 = vld [vmem:[#allocation3 + $0x20] sm:$0xff] }
 0x400   : > { %v4231_v50 = vmul.bf16 %v4223_v53, %v9927_v14  ;;  %v3488_v1 = vmul.bf16 %v8551_v9, %v9910_v16  ;;  %v4292_v29 = vmul.bf16 %v8551_v9, %v9926_v49  ;;  %v4228_v37 = vmul.bf16 %v8551_v9, %v9928_v46 }
 0x403   : > { %4314 = vrot.lane.b32.xlu0 %v4293_v33, %s7042_s27  ;;  %4180 = vrot.lane.b32.xlu1 %v4162_v42, %s7041_s10  ;;  %v4159_v33 = vld [vmem:[#allocation3 + $0x38] sm:$0xf]  ;;  %v8558_v42 = vpop.permute.xlu0 %4378 }
 0x404   : > { %9939 = vst [vmem:[#allocation27_spill] sm:$0xff] %v8558_v42  ;;  %v4167_v38 = vmul.bf16 %v4159_v33, %v9930_v62  ;;  %v3921_v42 = vld [vmem:[#allocation3 + $0x28] sm:$0xf] }
 0x407   : > { %4250 = vrot.lane.b32.xlu0 %v4229_v31, %s9929_s15  ;;  %4116 = vrot.lane.b32.xlu1 %v4098_v54, %s7028_s26  ;;  %v4095_v31 = vld [vmem:[#allocation3 + $0x38] sm:$0xf]  ;;  %v8567_v14 = vpop.permute.xlu0 %4382 }
 0x408   : > { %9940 = vst [vmem:[#allocation29_spill] sm:$0xff] %v8567_v14  ;;  %v4103_v54 = vmul.bf16 %v4095_v31, %v9932_v0  ;;  %v3619_v0 = vmul.bf16 %v3611_v5, %v7320_v28  ;;  %v3981_v31 = vld [vmem:[#allocation3 + $0x8] sm:$0xf] }
 0x40b   : > { %4186 = vrot.lane.b32.xlu0 %v4165_v61, %s7041_s10  ;;  %4508 = vrot.lane.b32.xlu1 %v4490_v11, %s7037_s12  ;;  %v3675_v61 = vld [vmem:[#allocation3 + $0x38] sm:$0xf]  ;;  %v4164_v11 = vmul.bf16 %v8551_v9, %v9931_v48 }
 0x40c   : > { %v3683_v62 = vmul.bf16 %v3675_v61, %v7389_v8  ;;  %v3989_v61 = vmul.bf16 %v3981_v31, %v8122_v12 }
 0x40f   : > { %4122 = vrot.lane.b32.xlu0 %v4101_v24, %s7028_s26  ;;  %4444 = vrot.lane.b32.xlu1 %v4426_v55, %s7031_s29  ;;  %v8577_v24 = vpop.permute.xlu0 %4578  ;;  %v4100_v55 = vmul.bf16 %v8551_v9, %v9933_v21 }
 0x413   : > { %3702 = vrot.lane.b32.xlu0 %v3681_v57, %s9934_s11  ;;  %4380 = vrot.lane.b32.xlu1 %v4362_v47, %s9907_s20  ;;  %v8586_v57 = vpop.permute.xlu0 %4582  ;;  %v3993_v47 = vmul.bf16 %v3985_v58, %v8122_v12  ;;  %v9944_v58 = vld [vmem:[#allocation18_spill] sm:$0xff] }
 0x414   : > { %v3614_v14 = vmul.bf16 %v8485_v43, %v9944_v58 }
 0x417   : > { %3638 = vrot.lane.b32.xlu0 %v3617_v15, %s7033_s13  ;;  %4572 = vrot.lane.b32.xlu1 %v4554_v20, %s7038_s14  ;;  %v3987_v15 = vld [vmem:[#allocation3 + $0x38] sm:$0xf] }
 0x418   : > { %v3995_v20 = vmul.bf16 %v3987_v15, %v8122_v12 }
 0x41b   : > { %4318 = vrot.lane.b32.xlu0 %v4295_v30, %s7042_s27  ;;  %3696 = vrot.lane.b32.xlu1 %v3678_v45, %s9934_s11  ;;  %v3605_v30 = vld [vmem:[#allocation3 + $0x8] sm:$0xf]  ;;  %v8596_v45 = vpop.permute.xlu0 %4570 }
 0x41c   : > { %v3613_v53 = vmul.bf16 %v3605_v30, %v7320_v28 }
 0x41f   : > { %4254 = vrot.lane.b32.xlu0 %v4231_v50, %s9929_s15  ;;  %3508 = vrot.lane.b32.xlu1 %v3488_v1, %s7043_s16  ;;  %v4364_v50 = vmul.bf16 %v8407_v51, %v8013_v6  ;;  %v3607_v1 = vld [vmem:[#allocation3 + $0x18] sm:$0xf]  ;;  %v8605_v33 = vpop.permute.xlu0 %4574 }
 0x420   : > { %9941 = vst [vmem:[#allocation32_spill] sm:$0xff] %v8605_v33 }
 0x423   : > { %4190 = vrot.lane.b32.xlu0 %v4167_v38, %s7041_s10  ;;  %4312 = vrot.lane.b32.xlu1 %v4292_v29, %s7042_s27  ;;  %v3615_v38 = vmul.bf16 %v3607_v1, %v7320_v28  ;;  %v4556_v29 = vmul.bf16 %v8407_v51, %v9935_v32  ;;  %v3547_v1 = vld [vmem:[#allocation3 + $0x38] sm:$0xf] }
 0x427   : > { %4126 = vrot.lane.b32.xlu0 %v4103_v54, %s7028_s26  ;;  %4248 = vrot.lane.b32.xlu1 %v4228_v37, %s9929_s15 }
 0x42b   : > { %3706 = vrot.lane.b32.xlu0 %v3683_v62, %s9934_s11  ;;  %4184 = vrot.lane.b32.xlu1 %v4164_v11, %s7041_s10  ;;  %v3680_v62 = vmul.bf16 %v8551_v9, %v7439_v39  ;;  %v3983_v11 = vld [vmem:[#allocation3 + $0x18] sm:$0xf] }
 0x42f   : > { %3642 = vrot.lane.b32.xlu0 %v3619_v0, %s7033_s13  ;;  %4120 = vrot.lane.b32.xlu1 %v4100_v55, %s7028_s26  ;;  %v3991_v55 = vmul.bf16 %v3983_v11, %v8122_v12  ;;  %v5494_v11 = vld [vmem:[#allocation3 + $0x2c] sm:$0xf] }
 0x433   : > { %4014 = vrot.lane.b32.xlu0 %v3993_v47, %s9916_s17  ;;  %4512 = vrot.lane.b32.xlu1 %v4492_v22, %s7037_s12  ;;  %v3616_v47 = vmul.bf16 %v8551_v9, %v9944_v58  ;;  %v3545_v22 = vld [vmem:[#allocation3 + $0x28] sm:$0xf] }
 0x437   : > { %4018 = vrot.lane.b32.xlu0 %v3995_v20, %s9916_s17  ;;  %4448 = vrot.lane.b32.xlu1 %v4428_v35, %s7031_s29  ;;  %v9945_v35 = vld [vmem:[#allocation19_spill] sm:$0xff] }
 0x438   : > { %v3553_v30 = vmul.bf16 %v3545_v22, %v9945_v35  ;;  %v5502_v22 = vmul.bf16 %v5494_v11, %v7389_v8 }
 0x43b   : > { %3630 = vrot.lane.b32.xlu0 %v3613_v53, %s7033_s13  ;;  %4384 = vrot.lane.b32.xlu1 %v4364_v50, %s9907_s20  ;;  %v9946_v53 = vld [vmem:[#allocation15_spill] sm:$0xff] }
 0x43c   : > { %v3992_v50 = vmul.bf16 %v8551_v9, %v9946_v53 }
 0x43f   : > { %3634 = vrot.lane.b32.xlu0 %v3615_v38, %s7033_s13  ;;  %4576 = vrot.lane.b32.xlu1 %v4556_v29, %s7038_s14  ;;  %v8637_v38 = vld [vmem:[#allocation3 + $0x30] sm:$0xff] }
 0x441   : > { %v8612_v54 = vpop.permute.xlu0 %3502  ;;  %v8614_v37 = vpop.permute.xlu1 %3500 }
 0x442   : > { %9942 = vst [vmem:[#allocation33_spill] sm:$0xff] %v8612_v54  ;;  %9943 = vst [vmem:[#allocation34_spill] sm:$0xff] %v8614_v37  ;;  %v3483_v37 = vld [vmem:[#allocation3 + $0x38] sm:$0xf]  ;;  %v5430_v54 = vld [vmem:[#allocation3 + $0x2c] sm:$0xf] }
 0x443   : > { %4006 = vrot.lane.b32.xlu0 %v3989_v61, %s9916_s17  ;;  %3700 = vrot.lane.b32.xlu1 %v3680_v62, %s9934_s11  ;;  %v3555_v61 = vmul.bf16 %v3547_v1, %v9945_v35  ;;  %v4294_v62 = vmul.bf16 %v8637_v38, %v9926_v49 }
 0x445   : > { %v8621_v5 = vpop.permute.xlu0 %4306  ;;  %v8623_v0 = vpop.permute.xlu1 %4304 }
 0x446   : > { %v4320_v33 = vrot.slane %v8623_v0, 4 }
 0x447   : > { %4010 = vrot.lane.b32.xlu0 %v3991_v55, %s9916_s17  ;;  %3636 = vrot.lane.b32.xlu1 %v3616_v47, %s7033_s13 }
 0x449   : > { %v8630_v15 = vpop.permute.xlu0 %4242  ;;  %v8632_v20 = vpop.permute.xlu1 %4240 }
 0x44b   : > { %3574 = vrot.lane.b32.xlu0 %v3553_v30, %s9947_s18  ;;  %4012 = vrot.lane.b32.xlu1 %v3992_v50, %s9916_s17  ;;  %v4230_v30 = vmul.bf16 %v8637_v38, %v9928_v46  ;;  %v5496_v50 = vld [vmem:[#allocation3 + $0x3c] sm:$0xf] }
 0x44d   : > { %v8641_v29 = vpop.permute.xlu0 %4178  ;;  %v8643_v31 = vpop.permute.xlu1 %4176 }
 0x44f   : > { %3578 = vrot.lane.b32.xlu0 %v3555_v61, %s9947_s18  ;;  %4316 = vrot.lane.b32.xlu1 %v4294_v62, %s7042_s27  ;;  %v5504_v61 = vmul.bf16 %v5496_v50, %v7389_v8  ;;  %v4166_v62 = vmul.bf16 %v8637_v38, %v9931_v48  ;;  %s9993_s27 = smov 63  }
 0x451   : > { %v8650_v55 = vpop.permute.xlu0 %4114  ;;  %v8652_v47 = vpop.permute.xlu1 %4112 }
 0x453   : > { %5523 = vrot.lane.b32.xlu0 %v5502_v22, %s9934_s11  ;;  %4252 = vrot.lane.b32.xlu1 %v4230_v30, %s9929_s15  ;;  %v3549_v22 = vmul.bf16 %v3541_v36, %v9945_v35  ;;  %v4102_v30 = vmul.bf16 %v8637_v38, %v9933_v21 }
 0x455   : > { %v8659_v49 = vpop.permute.xlu0 %3694  ;;  %v8661_v1 = vpop.permute.xlu1 %4504 }
 0x456   : > { %9948 = vst [vmem:[#allocation35_spill] sm:$0xff] %v8659_v49  ;;  %9949 = vst [vmem:[#allocation17_spill] sm:$0xff] %v8661_v1 }
 0x457   : > { %5527 = vrot.lane.b32.xlu0 %v5504_v61, %s9934_s11  ;;  %4188 = vrot.lane.b32.xlu1 %v4166_v62, %s7041_s10  ;;  %v3551_v61 = vmul.bf16 %v3543_v26, %v9945_v35  ;;  %v4494_v62 = vmul.bf16 %v8415_v19, %v7767_v56  ;;  %s9961_s10 = smov 56  }
 0x459   : > { %v8668_v46 = vpop.permute.xlu0 %3506  ;;  %v8670_v11 = vpop.permute.xlu1 %4440 }
 0x45a   : > { %9950 = vst [vmem:[#allocation18_spill] sm:$0xff] %v8668_v46  ;;  %9951 = vst [vmem:[#allocation19_spill] sm:$0xff] %v8670_v11  ;;  %v5426_v46 = vld [vmem:[#allocation3 + $0xc] sm:$0xf] }
 0x45b   : > { %3566 = vrot.lane.b32.xlu0 %v3549_v22, %s9947_s18  ;;  %4124 = vrot.lane.b32.xlu1 %v4102_v30, %s7028_s26  ;;  %v5498_v22 = vmul.bf16 %v5490_v27, %v7389_v8  ;;  %v4430_v30 = vmul.bf16 %v8415_v19, %v7897_v25  ;;  %s9974_s26 = smov 57  }
 0x45d   : > { %v8677_v48 = vpop.permute.xlu0 %4310  ;;  %v8679_v50 = vpop.permute.xlu1 %4376 }
 0x45e   : > { %9952 = vst [vmem:[#allocation36_spill] sm:$0xff] %v8679_v50 }
 0x45f   : > { %3570 = vrot.lane.b32.xlu0 %v3551_v61, %s9947_s18  ;;  %4516 = vrot.lane.b32.xlu1 %v4494_v62, %s7037_s12  ;;  %v5500_v61 = vmul.bf16 %v5492_v60, %v7389_v8  ;;  %v4366_v62 = vmul.bf16 %v8415_v19, %v8013_v6  ;;  %v5438_v60 = vmul.bf16 %v5430_v54, %v7320_v28  ;;  %s7045_s12 = smov [#allocation10]  }
 0x461   : > { %v8686_v21 = vpop.permute.xlu0 %4246  ;;  %v8688_v36 = vpop.permute.xlu1 %4568 }
 0x462   : > { %9953 = vst [vmem:[#allocation37_spill] sm:$0xff] %v8688_v36 }
 0x463   : > { %5515 = vrot.lane.b32.xlu0 %v5498_v22, %s9934_s11  ;;  %4452 = vrot.lane.b32.xlu1 %v4430_v30, %s7031_s29  ;;  %v3491_v22 = vmul.bf16 %v3483_v37, %v9911_v3  ;;  %v4558_v30 = vmul.bf16 %v8415_v19, %v9935_v32  ;;  %s10029_s29 = smov 64  }
 0x465   : > { %v8695_v56 = vpop.permute.xlu0 %4182  ;;  %v8697_v26 = vpop.permute.xlu1 %3692 }
 0x466   : > { %9954 = vst [vmem:[#allocation38_spill] sm:$0xff] %v8697_v26  ;;  %v3917_v26 = vld [vmem:[#allocation3 + $0x8] sm:$0xf] }
 0x467   : > { %5519 = vrot.lane.b32.xlu0 %v5500_v61, %s9934_s11  ;;  %4388 = vrot.lane.b32.xlu1 %v4366_v62, %s9907_s20  ;;  %v3682_v61 = vmul.bf16 %v8637_v38, %v7439_v39  ;;  %v5432_v62 = vld [vmem:[#allocation3 + $0x3c] sm:$0xf] }
 0x469   : > { %v8704_v25 = vpop.permute.xlu0 %4118  ;;  %v8706_v27 = vpop.permute.xlu1 %3504 }
 0x46a   : > { %9955 = vst [vmem:[#allocation39_spill] sm:$0xff] %v8704_v25  ;;  %9956 = vst [vmem:[#allocation40_spill] sm:$0xff] %v8706_v27 }
 0x46b   : > { %3514 = vrot.lane.b32.xlu0 %v3491_v22, %s7043_s16  ;;  %4580 = vrot.lane.b32.xlu1 %v4558_v30, %s7038_s14  ;;  %v5440_v22 = vmul.bf16 %v5432_v62, %v7320_v28  ;;  %v3618_v30 = vmul.bf16 %v8637_v38, %v9944_v58  ;;  %s6954_s14 = sshll.u32 %s7045_s12, 4  ;;  %s6955_s14 = int_to_ptr.vmem [resolvable:$false] %s6954_s14 }
 0x46c   : > { %s6956_s20 = scalar_lea.vmem %s6955_s14, 2048 }
 0x46d   : > { %v8713_v8 = vpop.permute.xlu0 %3698  ;;  %v8715_v6 = vpop.permute.xlu1 %4308 }
 0x46e   : > { %9957 = vst [vmem:[#allocation41_spill] sm:$0xff] %v8713_v8 }
 0x46f   : > { %5459 = vrot.lane.b32.xlu0 %v5438_v60, %s7033_s13  ;;  %3704 = vrot.lane.b32.xlu1 %v3682_v61, %s9934_s11  ;;  %v5434_v60 = vmul.bf16 %v5426_v46, %v7320_v28  ;;  %v3994_v61 = vmul.bf16 %v8637_v38, %v9946_v53 }
 0x471   : > { %v8722_v32 = vpop.permute.xlu0 %3510  ;;  %v8724_v37 = vpop.permute.xlu1 %4244 }
 0x472   : > { %9958 = vst [vmem:[#allocation42_spill] sm:$0xff] %v8722_v32  ;;  %v5428_v32 = vld [vmem:[#allocation3 + $0x1c] sm:$0xf] }
 0x473   : > { %5463 = vrot.lane.b32.xlu0 %v5440_v22, %s7033_s13  ;;  %3640 = vrot.lane.b32.xlu1 %v3618_v30, %s7033_s13  ;;  %v5436_v22 = vmul.bf16 %v5428_v32, %v7320_v28  ;;  %v3612_v30 = vmul.bf16 %v8409_v17, %v9944_v58 }
 0x475   : > { %v8731_v54 = vpop.permute.xlu0 %4314  ;;  %v8733_v27 = vpop.permute.xlu1 %4180 }
 0x477   : > { %5451 = vrot.lane.b32.xlu0 %v5434_v60, %s7033_s13  ;;  %4016 = vrot.lane.b32.xlu1 %v3994_v61, %s9916_s17  ;;  %v9960_v60 = vld [vmem:[#allocation21_spill] sm:$0xff] }
 0x478   : > { %v3929_v61 = vmul.bf16 %v3921_v42, %v9960_v60 }
 0x479   : > { %v8740_v62 = vpop.permute.xlu0 %4250  ;;  %v8742_v12 = vpop.permute.xlu1 %4116 }
 0x47b   : > { %5455 = vrot.lane.b32.xlu0 %v5436_v22, %s7033_s13  ;;  %3628 = vrot.lane.b32.xlu1 %v3612_v30, %s7033_s13  ;;  %v3931_v22 = vmul.bf16 %v3923_v2, %v9960_v60  ;;  %v3988_v30 = vmul.bf16 %v8409_v17, %v9946_v53 }
 0x47d   : > { %v8749_v46 = vpop.permute.xlu0 %4186  ;;  %v8751_v50 = vpop.permute.xlu1 %4508 }
 0x47e   : > { %9959 = vst [vmem:[#allocation43_spill] sm:$0xff] %v8751_v50  ;;  %v3857_v50 = vld [vmem:[#allocation3 + $0x28] sm:$0xf] }
 0x47f   : > { %3950 = vrot.lane.b32.xlu0 %v3929_v61, %s9961_s10  ;;  %3632 = vrot.lane.b32.xlu1 %v3614_v14, %s7033_s13  ;;  %v5374_v14 = vmul.bf16 %v5366_v7, %v9945_v35  ;;  %v3990_v61 = vmul.bf16 %v8485_v43, %v9946_v53 }
 0x481   : > { %v8758_v28 = vpop.permute.xlu0 %4122  ;;  %v8760_v32 = vpop.permute.xlu1 %4444 }
 0x482   : > { %9962 = vst [vmem:[#allocation21_spill] sm:$0xff] %v8758_v28  ;;  %9963 = vst [vmem:[#allocation44_spill] sm:$0xff] %v8760_v32  ;;  %v5368_v32 = vld [vmem:[#allocation3 + $0x3c] sm:$0xf]  ;;  %v4325_v28 = vrot.slane %v8731_v54, 4 }
 0x483   : > { %3954 = vrot.lane.b32.xlu0 %v3931_v22, %s9961_s10  ;;  %4004 = vrot.lane.b32.xlu1 %v3988_v30, %s9916_s17  ;;  %v5376_v22 = vmul.bf16 %v5368_v32, %v9945_v35  ;;  %v9968_v30 = vld [vmem:[#allocation20_spill] sm:$0xff]  ;;  %v3919_v32 = vld [vmem:[#allocation3 + $0x18] sm:$0xf] }
 0x484   : > { %v3554_v53 = vmul.bf16 %v8637_v38, %v9968_v30  ;;  %v3550_v49 = vmul.bf16 %v8485_v43, %v9968_v30 }
 0x485   : > { %v8767_v42 = vpop.permute.xlu0 %3702  ;;  %v8769_v59 = vpop.permute.xlu1 %4380 }
 0x486   : > { %9964 = vst [vmem:[#allocation45_spill] sm:$0xff] %v8767_v42  ;;  %9965 = vst [vmem:[#allocation46_spill] sm:$0xff] %v8769_v59  ;;  %v3552_v42 = vmul.bf16 %v8551_v9, %v9968_v30  ;;  %v6842_v59 = vld [vmem:[#allocation9 + $0x34] ss:$12 sps:$4 sm:$0xff]  }
 0x487   : > { %5395 = vrot.lane.b32.xlu0 %v5374_v14, %s9947_s18  ;;  %4008 = vrot.lane.b32.xlu1 %v3990_v61, %s9916_s17  ;;  %v3925_v61 = vmul.bf16 %v3917_v26, %v9960_v60 }
 0x488   : > { %4901 = vmatprep.mubr.bf16.mxu0 %v6842_v59  ;;  %v3927_v59 = vmul.bf16 %v3919_v32, %v9960_v60 }
 0x489   : > { %v8776_v2 = vpop.permute.xlu0 %3638  ;;  %v8778_v8 = vpop.permute.xlu1 %4572 }
 0x48a   : > { %9966 = vst [vmem:[#allocation47_spill] sm:$0xff] %v8776_v2  ;;  %9967 = vst [vmem:[#allocation48_spill] sm:$0xff] %v8778_v8  ;;  %v3859_v8 = vld [vmem:[#allocation3 + $0x38] sm:$0xf] }
 0x48b   : > { %5399 = vrot.lane.b32.xlu0 %v5376_v22, %s9947_s18  ;;  %3572 = vrot.lane.b32.xlu1 %v3552_v42, %s9947_s18  ;;  %v5501_v42 = vmul.bf16 %v8407_v51, %v7439_v39 }
 0x48d   : > { %v8785_v7 = vpop.permute.xlu0 %4318  ;;  %v8787_v14 = vpop.permute.xlu1 %3696 }
 0x48e   : > { %9969 = vst [vmem:[#allocation20_spill] sm:$0xff] %v8787_v14  ;;  %v5362_v14 = vld [vmem:[#allocation3 + $0xc] sm:$0xf]  ;;  %v4327_v54 = vrot.slane %v8785_v7, 4 }
 0x48f   : > { %3942 = vrot.lane.b32.xlu0 %v3925_v61, %s9961_s10  ;;  %3576 = vrot.lane.b32.xlu1 %v3554_v53, %s9947_s18  ;;  %v5370_v53 = vmul.bf16 %v5362_v14, %v9945_v35  ;;  %v5503_v61 = vmul.bf16 %v8415_v19, %v7439_v39 }
 0x491   : > { %v8794_v2 = vpop.permute.xlu0 %4254  ;;  %v8796_v22 = vpop.permute.xlu1 %3508 }
 0x492   : > { %9970 = vst [vmem:[#allocation49_spill] sm:$0xff] %v8796_v22  ;;  %v5364_v22 = vld [vmem:[#allocation3 + $0x1c] sm:$0xf] }
 0x493   : > { %3946 = vrot.lane.b32.xlu0 %v3927_v59, %s9961_s10  ;;  %5521 = vrot.lane.b32.xlu1 %v5501_v42, %s9934_s11  ;;  %v5372_v59 = vmul.bf16 %v5364_v22, %v9945_v35  ;;  %v3548_v42 = vmul.bf16 %v8409_v17, %v9968_v30 }
 0x495   : > { %v8803_v26 = vpop.permute.xlu0 %4190  ;;  %v8805_v11 = vpop.permute.xlu1 %4312 }
 0x497   : > { %5387 = vrot.lane.b32.xlu0 %v5370_v53, %s9947_s18  ;;  %5525 = vrot.lane.b32.xlu1 %v5503_v61, %s9934_s11  ;;  %v9973_v53 = vld [vmem:[#allocation25_spill] sm:$0xff] }
 0x498   : > { %v3865_v61 = vmul.bf16 %v3857_v50, %v9973_v53  ;;  %v3867_v22 = vmul.bf16 %v3859_v8, %v9973_v53 }
 0x499   : > { %v8812_v51 = vpop.permute.xlu0 %4126  ;;  %v8814_v32 = vpop.permute.xlu1 %4248 }
 0x49a   : > { %9971 = vst [vmem:[#allocation50_spill] sm:$0xff] %v8812_v51  ;;  %v4261_v51 = vrot.slane %v8740_v62, 4  ;;  %v4257_v62 = vrot.slane %v8630_v15, 4 }
 0x49b   : > { %5391 = vrot.lane.b32.xlu0 %v5372_v59, %s9947_s18  ;;  %3564 = vrot.lane.b32.xlu1 %v3548_v42, %s9947_s18  ;;  %v5497_v59 = vmul.bf16 %v8465_v23, %v7439_v39  ;;  %v5302_v42 = vld [vmem:[#allocation3 + $0x2c] sm:$0xf] }
 0x49d   : > { %v8821_v19 = vpop.permute.xlu0 %3706  ;;  %v8823_v14 = vpop.permute.xlu1 %4184 }
 0x49e   : > { %9972 = vst [vmem:[#allocation51_spill] sm:$0xff] %v8821_v19 }
 0x49f   : > { %3886 = vrot.lane.b32.xlu0 %v3865_v61, %s9974_s26  ;;  %3568 = vrot.lane.b32.xlu1 %v3550_v49, %s9947_s18  ;;  %v5310_v49 = vmul.bf16 %v5302_v42, %v9911_v3  ;;  %v5499_v61 = vmul.bf16 %v8459_v41, %v7439_v39 }
 0x4a1   : > { %v8830_v17 = vpop.permute.xlu0 %3642  ;;  %v8832_v35 = vpop.permute.xlu1 %4120 }
 0x4a2   : > { %9975 = vst [vmem:[#allocation25_spill] sm:$0xff] %v8830_v17  ;;  %9976 = vst [vmem:[#allocation52_spill] sm:$0xff] %v8832_v35  ;;  %v5304_v17 = vld [vmem:[#allocation3 + $0x3c] sm:$0xf] }
 0x4a3   : > { %3890 = vrot.lane.b32.xlu0 %v3867_v22, %s9974_s26  ;;  %5513 = vrot.lane.b32.xlu1 %v5497_v59, %s9934_s11  ;;  %v5312_v22 = vmul.bf16 %v5304_v17, %v9911_v3  ;;  %v3490_v59 = vmul.bf16 %v8637_v38, %v9910_v16  ;;  %v3795_v16 = vld [vmem:[#allocation3 + $0x38] sm:$0xf] }
 0x4a5   : > { %v8839_v43 = vpop.permute.xlu0 %4014  ;;  %v8841_v50 = vpop.permute.xlu1 %4512 }
 0x4a6   : > { %9977 = vst [vmem:[#allocation53_spill] sm:$0xff] %v8839_v43  ;;  %9978 = vst [vmem:[#allocation54_spill] sm:$0xff] %v8841_v50  ;;  %v3853_v43 = vld [vmem:[#allocation3 + $0x8] sm:$0xf] }
 0x4a7   : > { %5331 = vrot.lane.b32.xlu0 %v5310_v49, %s7043_s16  ;;  %5517 = vrot.lane.b32.xlu1 %v5499_v61, %s9934_s11  ;;  %v3861_v49 = vmul.bf16 %v3853_v43, %v9973_v53  ;;  %v5437_v61 = vmul.bf16 %v8463_v13, %v9944_v58  ;;  %s10109_s11 = sshll.u32 %s7210_s9, 6 }
 0x4a9   : > { %v8848_v8 = vpop.permute.xlu0 %4018  ;;  %v8850_v19 = vpop.permute.xlu1 %4448 }
 0x4aa   : > { %9979 = vst [vmem:[#allocation55_spill] sm:$0xff] %v8848_v8  ;;  %9980 = vst [vmem:[#allocation56_spill] sm:$0xff] %v8850_v19  ;;  %v3855_v8 = vld [vmem:[#allocation3 + $0x18] sm:$0xf] }
 0x4ab   : > { %5335 = vrot.lane.b32.xlu0 %v5312_v22, %s7043_s16  ;;  %3512 = vrot.lane.b32.xlu1 %v3490_v59, %s7043_s16  ;;  %v3863_v22 = vmul.bf16 %v3855_v8, %v9973_v53  ;;  %v5439_v59 = vmul.bf16 %v8457_v44, %v9944_v58 }
 0x4ad   : > { %v8857_v39 = vpop.permute.xlu0 %3630  ;;  %v8859_v42 = vpop.permute.xlu1 %4384 }
 0x4ae   : > { %9981 = vst [vmem:[#allocation57_spill] sm:$0xff] %v8857_v39  ;;  %9982 = vst [vmem:[#allocation58_spill] sm:$0xff] %v8859_v42  ;;  %v5298_v39 = vld [vmem:[#allocation3 + $0xc] sm:$0xf] }
 0x4af   : > { %3878 = vrot.lane.b32.xlu0 %v3861_v49, %s9974_s26  ;;  %5457 = vrot.lane.b32.xlu1 %v5437_v61, %s7033_s13  ;;  %v5306_v49 = vmul.bf16 %v5298_v39, %v9911_v3  ;;  %v5433_v61 = vmul.bf16 %v8465_v23, %v9944_v58  ;;  %v5742_v39 = vld [vmem:[#allocation3 + $0x2c] sm:$0xf] }
 0x4b1   : > { %v8866_v17 = vpop.permute.xlu0 %3634  ;;  %v8868_v19 = vpop.permute.xlu1 %4576 }
 0x4b2   : > { %9983 = vst [vmem:[#allocation59_spill] sm:$0xff] %v8866_v17  ;;  %9984 = vst [vmem:[#allocation60_spill] sm:$0xff] %v8868_v19  ;;  %v5300_v17 = vld [vmem:[#allocation3 + $0x1c] sm:$0xf] }
 0x4b3   : > { %3882 = vrot.lane.b32.xlu0 %v3863_v22, %s9974_s26  ;;  %5461 = vrot.lane.b32.xlu1 %v5439_v59, %s7033_s13  ;;  %v5308_v22 = vmul.bf16 %v5300_v17, %v9911_v3  ;;  %v5435_v59 = vmul.bf16 %v8459_v41, %v9944_v58  ;;  %v8901_v17 = vld [vmem:[#allocation3 + $0x3c] sm:$0xf]  ;;  %v4324_v58 = vrot.slane %v8805_v11, 4 }
 0x4b4   : > { %v5752_v36 = vmul.bf16 %v8901_v17, %v9960_v60 }
 0x4b5   : > { %v8875_v43 = vpop.permute.xlu0 %4006  ;;  %v8877_v42 = vpop.permute.xlu1 %3700  ;;  %v4332_v35 = vsel %vm428_vm11, %v4324_v58, %v4325_v28 }
 0x4b6   : > { %9985 = vst [vmem:[#allocation61_spill] sm:$0xff] %v8875_v43  ;;  %9986 = vst [vmem:[#allocation62_spill] sm:$0xff] %v8877_v42  ;;  %v3793_v43 = vld [vmem:[#allocation3 + $0x28] sm:$0xf]  ;;  %v4322_v42 = vrot.slane %v8715_v6, 4 }
 0x4b7   : > { %5323 = vrot.lane.b32.xlu0 %v5306_v49, %s7043_s16  ;;  %5449 = vrot.lane.b32.xlu1 %v5433_v61, %s7033_s13 }
 0x4b9   : > { %v8884_v8 = vpop.permute.xlu0 %4010  ;;  %v8886_v50 = vpop.permute.xlu1 %3636 }
 0x4ba   : > { %9987 = vst [vmem:[#allocation63_spill] sm:$0xff] %v8884_v8  ;;  %9988 = vst [vmem:[#allocation64_spill] sm:$0xff] %v8886_v50  ;;  %v9991_v8 = vld [vmem:[#allocation30_spill] sm:$0xff]  ;;  %v9992_v50 = vld [vmem:[#allocation23_spill] sm:$0xff] }
 0x4bb   : > { %5327 = vrot.lane.b32.xlu0 %v5308_v22, %s7043_s16  ;;  %5453 = vrot.lane.b32.xlu1 %v5435_v59, %s7033_s13  ;;  %v3801_v19 = vmul.bf16 %v3793_v43, %v9991_v8  ;;  %v3928_v3 = vmul.bf16 %v8551_v9, %v9992_v50  ;;  %v8904_v22 = vld [vmem:[#allocation3 + $0xc] sm:$0xf]  ;;  %v4323_v59 = vrot.slane %v8677_v48, 4  ;;  %v4321_v9 = vrot.slane %v8621_v5, 4  ;;  %v8919_v48 = vld [vmem:[#allocation3 + $0x3c] sm:$0xf] }
 0x4bc   : > { %v8912_v43 = vld [vmem:[#allocation3 + $0x2c] sm:$0xf]  ;;  %9994 = vst [vmem:[#allocation30_spill] sm:$0xff] %v8919_v48  ;;  %v3803_v25 = vmul.bf16 %v3795_v16, %v9991_v8  ;;  %v3930_v1 = vmul.bf16 %v8637_v38, %v9992_v50  ;;  %v5373_v16 = vmul.bf16 %v8463_v13, %v9968_v30  ;;  %v4333_v5 = vsel %vm1471_vm15, %v8805_v11, %v4332_v35 }
 0x4bd   : > { %v8894_v49 = vpop.permute.xlu0 %3574  ;;  %v8896_v61 = vpop.permute.xlu1 %4012  ;;  %v4328_v28 = vsel %vm428_vm11, %v4320_v33, %v4321_v9  ;;  %v4263_v33 = vrot.slane %v8794_v2, 4  ;;  %v4259_v11 = vrot.slane %v8686_v21, 4  ;;  %v3791_v21 = vld [vmem:[#allocation3 + $0x18] sm:$0xf] }
 0x4be   : > { %9989 = vst [vmem:[#allocation65_spill] sm:$0xff] %v8894_v49  ;;  %9990 = vst [vmem:[#allocation66_spill] sm:$0xff] %v8896_v61  ;;  %v5750_v49 = vmul.bf16 %v5742_v39, %v9960_v60  ;;  %v8910_v61 = vld [vmem:[#allocation3 + $0x1c] sm:$0xf] }
 0x4bf   : > { %3822 = vrot.lane.b32.xlu0 %v3801_v19, %s9993_s27  ;;  %3948 = vrot.lane.b32.xlu1 %v3928_v3, %s9961_s10  ;;  %v4330_v19 = vsel %vm428_vm11, %v4322_v42, %v4323_v59  ;;  %v4260_v42 = vrot.slane %v8814_v32, 4 }
 0x4c0   : > { %v4331_v58 = vsel %vm1471_vm15, %v8715_v6, %v4330_v19 }
 0x4c1   : > { %v8922_v3 = vpop.permute.xlu0 %3578  ;;  %v4317_v39 = vpop.permute.xlu1 %4316  ;;  %v4268_v2 = vsel %vm428_vm11, %v4260_v42, %v4261_v51  ;;  %v4192_v51 = vrot.slane %v8643_v31, 4 }
 0x4c2   : > { %9995 = vst [vmem:[#allocation23_spill] sm:$0xff] %v8922_v3  ;;  %v4326_v17 = vrot.slane %v4317_v39, 4 }
 0x4c3   : > { %3826 = vrot.lane.b32.xlu0 %v3803_v25, %s9993_s27  ;;  %3952 = vrot.lane.b32.xlu1 %v3930_v1, %s9961_s10  ;;  %v4258_v1 = vrot.slane %v8724_v37, 4 }
 0x4c4   : > { %v4334_v25 = vsel %vm428_vm11, %v4326_v17, %v4327_v54  ;;  %v4329_v54 = vsel %vm1471_vm15, %v8623_v0, %v4328_v28  ;;  %v4256_v17 = vrot.slane %v8632_v20, 4  ;;  %v10001_v0 = vld [vmem:[#allocation50_spill] sm:$0xff] }
 0x4c5   : > { %v4335_v59 = vsel %vm1471_vm15, %v4317_v39, %v4334_v25  ;;  %v8952_v3 = vpop.permute.xlu0 %5523  ;;  %v4253_v7 = vpop.permute.xlu1 %4252  ;;  %v6576_v39 = vcombine.high %v4329_v54, %v4331_v58  ;;  %v4266_v42 = vsel %vm428_vm11, %v4258_v1, %v4259_v11  ;;  %v3789_v25 = vld [vmem:[#allocation3 + $0x8] sm:$0xf]  ;;  %v4199_v1 = vrot.slane %v8803_v26, 4 }
 0x4c6   : > { %v6577_v9 = vcombine.low %v4333_v5, %v4335_v59  ;;  %v4262_v6 = vrot.slane %v4253_v7, 4  ;;  %v6578_v19 = vcombine.high %v4333_v5, %v4335_v59  ;;  %v4196_v11 = vrot.slane %v8823_v14, 4 }
 0x4c7   : > { %5771 = vrot.lane.b32.xlu0 %v5750_v49, %s9961_s10  ;;  %5393 = vrot.lane.b32.xlu1 %v5373_v16, %s9947_s18  ;;  %v5375_v16 = vmul.bf16 %v8457_v44, %v9968_v30 }
 0x4c8   : > { %v4270_v35 = vsel %vm428_vm11, %v4262_v6, %v4263_v33  ;;  %4869 = vmatprep.subr.bf16.mxu0 %v6578_v19  ;;  %v8975_v33 = vld [vmem:[#allocation3] sm:$0xff]  ;;  %v4269_v19 = vsel %vm1399_vm12, %v8814_v32, %v4268_v2  ;;  %v4197_v2 = vrot.slane %v8749_v46, 4  ;;  %v4195_v46 = vrot.slane %v8695_v56, 4  ;;  %v10004_v6 = vld [vmem:[#allocation39_spill] sm:$0xff] }
 0x4c9   : > { %v4271_v15 = vsel %vm1399_vm12, %v4253_v7, %v4270_v35  ;;  %v8968_v59 = vpop.permute.xlu0 %5527  ;;  %4870 = vmatpush1.bf16.msra.mxu0 %v6577_v9  ;;  %v4189_v49 = vpop.permute.xlu1 %4188  ;;  %v6575_v9 = vcombine.low %v4329_v54, %v4331_v58  ;;  %v4264_v35 = vsel %vm428_vm11, %v4256_v17, %v4257_v62  ;;  %v4267_v58 = vsel %vm1399_vm12, %v8724_v37, %v4266_v42  ;;  %v9000_v37 = vld [vmem:[#allocation3 + $0x10] sm:$0xff] }
 0x4ca   : > { %v4198_v28 = vrot.slane %v4189_v49, 4  ;;  %4871 = vmatprep.subr.bf16.mxu0 %v6576_v39  ;;  %v6574_v39 = vcombine.high %v4269_v19, %v4271_v15  ;;  %v3924_v62 = vmul.bf16 %v8975_v33, %v9992_v50  ;;  %v4194_v17 = vrot.slane %v8733_v27, 4 }
 0x4cb   : > { %5775 = vrot.lane.b32.xlu0 %v5752_v36, %s9961_s10  ;;  %5397 = vrot.lane.b32.xlu1 %v5375_v16, %s9947_s18  ;;  %v3797_v36 = vmul.bf16 %v3789_v25, %v9991_v8  ;;  %v4265_v42 = vsel %vm1399_vm12, %v8632_v20, %v4264_v35  ;;  %v6573_v25 = vcombine.low %v4269_v19, %v4271_v15  ;;  %v4129_v19 = vrot.slane %v8650_v55, 4  ;;  %vm9999_vm12 = vmmov %vm9997_vm14  ;;  %v10007_v55 = vld [vmem:[#allocation21_spill] sm:$0xff] }
 0x4cc   : > { %v4206_v16 = vsel %vm428_vm11, %v4198_v28, %v4199_v1  ;;  %v3799_v7 = vmul.bf16 %v3791_v21, %v9991_v8  ;;  %v4204_v28 = vsel %vm428_vm11, %v4196_v11, %v4197_v2  ;;  %v6572_v1 = vcombine.high %v4265_v42, %v4267_v58  ;;  %vm10005_vm15 = vmmov %vm9999_vm12 }
 0x4cd   : > { %v8989_v54 = vpop.permute.xlu0 %3566  ;;  %4872 = vmatpush1.bf16.msra.mxu0 %v6575_v9  ;;  %v8991_v32 = vpop.permute.xlu1 %4124  ;;  %v4193_v9 = vrot.slane %v8641_v29, 4  ;;  %v4207_v20 = vsel %vm9997_vm14, %v4189_v49, %v4206_v16  ;;  %v3926_v15 = vmul.bf16 %v9000_v37, %v9992_v50  ;;  %v5369_v21 = vmul.bf16 %v8465_v23, %v9968_v30  ;;  %vm10009_vm3 = vmmov %vm9999_vm12 }
 0x4ce   : > { %9996 = vst [vmem:[#allocation67_spill] sm:$0xff] %v8989_v54  ;;  %4873 = vmatprep.subr.bf16.mxu0 %v6574_v39  ;;  %v9011_v39 = vld [vmem:[#allocation3 + $0x20] sm:$0xff]  ;;  %v5371_v56 = vmul.bf16 %v8459_v41, %v9968_v30  ;;  %v4128_v11 = vrot.slane %v8652_v47, 4  ;;  %v4202_v49 = vsel %vm428_vm11, %v4194_v17, %v4195_v46  ;;  %v4130_v2 = vrot.slane %v8742_v12, 4  ;;  %v10002_v46 = vld [vmem:[#allocation52_spill] sm:$0xff] }
 0x4cf   : > { %3814 = vrot.lane.b32.xlu0 %v3797_v36, %s9993_s27  ;;  %3940 = vrot.lane.b32.xlu1 %v3924_v62, %s9961_s10  ;;  %v4134_v36 = vrot.slane %v8991_v32, 4  ;;  %v6571_v62 = vcombine.low %v4265_v42, %v4267_v58  ;;  %v4205_v16 = vsel %vm9999_vm12, %v8823_v14, %v4204_v28  ;;  %v10000_v30 = vld [vmem:[#allocation26_spill] sm:$0xff]  ;;  %v4135_v17 = vrot.slane %v10001_v0, 4  ;;  %v10003_v58 = vld [vmem:[#allocation17_spill] sm:$0xff] }
 0x4d0   : > { %v4132_v48 = vrot.slane %v10002_v46, 4  ;;  %v4520_v42 = vrot.slane %v10003_v58, 4  ;;  %v4131_v26 = vrot.slane %v10004_v6, 4  ;;  %v4203_v14 = vsel %vm10005_vm15, %v8733_v27, %v4202_v49  ;;  %v10008_v6 = vld [vmem:[#allocation32_spill] sm:$0xff] }
 0x4d1   : > { %v9014_v35 = vpop.permute.xlu0 %3570  ;;  %4874 = vmatpush1.bf16.msra.mxu0 %v6573_v25  ;;  %v9016_v29 = vpop.permute.xlu1 %4516  ;;  %v4200_v25 = vsel %vm428_vm11, %v4192_v51, %v4193_v9  ;;  %v4136_v0 = vsel %vm428_vm11, %v4128_v11, %v4129_v19  ;;  %v10006_v9 = vld [vmem:[#allocation37_spill] sm:$0xff]  ;;  %v4133_v5 = vrot.slane %v10007_v55, 4  ;;  %v4587_v54 = vrot.slane %v10008_v6, 4  ;;  %v10011_v19 = vld [vmem:[#allocation48_spill] sm:$0xff]  ;;  %v10017_v6 = vld [vmem:[#allocation43_spill] sm:$0xff] }
 0x4d2   : > { %9998 = vst [vmem:[#allocation68_spill] sm:$0xff] %v9014_v35  ;;  %4875 = vmatprep.subr.bf16.mxu0 %v6572_v1  ;;  %v6570_v1 = vcombine.high %v4205_v16, %v4207_v20  ;;  %v4142_v35 = vsel %vm428_vm11, %v4134_v36, %v4135_v17  ;;  %v4201_v27 = vsel %vm10009_vm3, %v8643_v31, %v4200_v25  ;;  %v4586_v11 = vrot.slane %v10011_v19, 4  ;;  %v10012_v17 = vld [vmem:[#allocation16_spill] sm:$0xff] }
 0x4d3   : > { %3818 = vrot.lane.b32.xlu0 %v3799_v7, %s9993_s27  ;;  %3944 = vrot.lane.b32.xlu1 %v3926_v15, %s9961_s10  ;;  %v4584_v15 = vrot.slane %v10006_v9, 4  ;;  %v4138_v49 = vsel %vm428_vm11, %v4130_v2, %v4131_v26  ;;  %v10010_v51 = vmul.bf16 %v8904_v22, %v9960_v60  ;;  %v4140_v36 = vsel %vm428_vm11, %v4132_v48, %v4133_v5  ;;  %v9078_v48 = vld [vmem:[#allocation3 + $0x34] sm:$0xff] }
 0x4d4   : > { %v6568_v55 = vcombine.high %v4201_v27, %v4203_v14  ;;  %v9067_v31 = vsel %vm1254_vm1, %v8652_v47, %v4136_v0  ;;  %v10013_v26 = vrot.slane %v8478_v40, 4  ;;  %v4143_v22 = vsel %vm1254_vm1, %v8991_v32, %v4142_v35  ;;  %v10015_v25 = vld [vmem:[#allocation60_spill] sm:$0xff] }
 0x4d5   : > { %v9042_v7 = vpop.permute.xlu0 %5515  ;;  %4876 = vmatpush1.bf16.msra.mxu0 %v6571_v62  ;;  %v9044_v28 = vpop.permute.xlu1 %4452  ;;  %v6569_v62 = vcombine.low %v4205_v16, %v4207_v20  ;;  %v10014_v47 = vrot.slane %v8596_v45, 4  ;;  %v9087_v40 = vsel %vm1254_vm1, %v8742_v12, %v4138_v49  ;;  %v4588_v32 = vrot.slane %v10015_v25, 4  ;;  %v10019_v49 = vld [vmem:[#allocation54_spill] sm:$0xff] }
 0x4d6   : > { %4877 = vmatprep.subr.bf16.mxu0 %v6570_v1  ;;  %v4528_v20 = vsel %vm428_vm11, %v4520_v42, %v10013_v26  ;;  %v4526_v35 = vrot.slane %v9016_v29, 4  ;;  %v10016_v42 = vld [vmem:[#allocation35_spill] sm:$0xff]  ;;  %v6567_v0 = vcombine.low %v4201_v27, %v4203_v14  ;;  %v4141_v26 = vsel %vm1254_vm1, %v10002_v46, %v4140_v36  ;;  %v10022_v36 = vld [vmem:[#allocation38_spill] sm:$0xff] }
 0x4d7   : > { %5763 = vrot.lane.b32.xlu0 %v10010_v51, %s9961_s10  ;;  %5385 = vrot.lane.b32.xlu1 %v5369_v21, %s9947_s18  ;;  %v4592_v16 = vsel %vm428_vm11, %v4584_v15, %v10014_v47  ;;  %v3709_v51 = vrot.slane %v10016_v42, 4  ;;  %v10018_v45 = vmul.bf16 %v8910_v61, %v9960_v60  ;;  %v9102_v12 = vsel %vm1282_vm10, %v10003_v58, %v4528_v20 }
 0x4d8   : > { %v4594_v15 = vsel %vm428_vm11, %v4586_v11, %v4587_v54  ;;  %v4524_v14 = vrot.slane %v10019_v49, 4  ;;  %v6566_v27 = vcombine.high %v4141_v26, %v4143_v22  ;;  %vm10021_vm1 = vcmask 973824  }
 0x4d9   : > { %v9074_v21 = vpop.permute.xlu0 %5519  ;;  %4878 = vmatpush1.bf16.msra.mxu0 %v6569_v62  ;;  %v9076_v2 = vpop.permute.xlu1 %4388  ;;  %v4522_v62 = vrot.slane %v10017_v6, 4  ;;  %v9109_v46 = vsel %vm10021_vm1, %v10006_v9, %v4592_v16  ;;  %v3708_v60 = vrot.slane %v10022_v36, 4  ;;  %v6563_v61 = vcombine.low %v9067_v31, %v9087_v40  ;;  %v3737_v9 = vld [vmem:[#allocation3 + $0x28] sm:$0xf]  ;;  %vm10028_vm14 = vmmov %vm10021_vm1 }
 0x4da   : > { %4879 = vmatprep.subr.bf16.mxu0 %v6568_v55  ;;  %v10020_v55 = vld [vmem:[#allocation19_spill] sm:$0xff]  ;;  %v10024_v54 = vrot.slane %v8577_v24, 4  ;;  %v10025_v20 = vrot.slane %v8452_v4, 4  ;;  %v6564_v16 = vcombine.high %v9067_v31, %v9087_v40  ;;  %v10026_v5 = vrot.slane %v8489_v63, 4  ;;  %v10033_v40 = vld [vmem:[#allocation62_spill] sm:$0xff]  ;;  %vm10036_vm12 = vmmov %vm10021_vm1 }
 0x4db   : > { %5767 = vrot.lane.b32.xlu0 %v10018_v45, %s9961_s10  ;;  %5389 = vrot.lane.b32.xlu1 %v5371_v56, %s9947_s18  ;;  %v4456_v47 = vrot.slane %v10020_v55, 4  ;;  %v9130_v24 = vsel %vm10028_vm14, %v10011_v19, %v4594_v15  ;;  %v10030_v4 = vmul.bf16 %v9011_v39, %v10000_v30  ;;  %v10032_v63 = vrot.slane %v8443_v34, 4  ;;  %vm10037_vm15 = vmmov %vm10021_vm1  ;;  %s9693_s18 = scalar_lea.vmem [#allocation10], %s10109_s11 }
 0x4dc   : > { %v4596_v11 = vsel %vm428_vm11, %v4588_v32, %v10024_v54  ;;  %v4534_v42 = vsel %vm428_vm11, %v4526_v35, %v10025_v20  ;;  %v4530_v1 = vsel %vm428_vm11, %v4522_v62, %v10026_v5  ;;  %v6565_v32 = vcombine.low %v4141_v26, %v4143_v22  ;;  %v10031_v35 = vld [vmem:[#allocation20_spill] sm:$0xff]  ;;  %v10035_v22 = vld [vmem:[#allocation51_spill] sm:$0xff] }
 0x4dd   : > { %v9114_v56 = vpop.permute.xlu0 %3514  ;;  %4880 = vmatpush1.bf16.msra.mxu0 %v6567_v0  ;;  %v4581_v58 = vpop.permute.xlu1 %4580  ;;  %v10027_v0 = vld [vmem:[#allocation45_spill] sm:$0xff]  ;;  %v3710_v31 = vrot.slane %v10031_v35, 4  ;;  %v4532_v5 = vsel %vm428_vm11, %v4524_v14, %v10032_v63  ;;  %v3712_v62 = vrot.slane %v10033_v40, 4  ;;  %v3715_v26 = vrot.slane %v10035_v22, 4  ;;  %v10042_v22 = vld [vmem:[#allocation44_spill] sm:$0xff] }
 0x4de   : > { %10023 = vst [vmem:[#allocation26_spill] sm:$0xff] %v9114_v56  ;;  %v4590_v45 = vrot.slane %v4581_v58, 4  ;;  %4881 = vmatprep.subr.bf16.mxu0 %v6566_v27  ;;  %v3713_v56 = vrot.slane %v10027_v0, 4  ;;  %v10034_v27 = vrot.slane %v8586_v57, 4  ;;  %v4597_v15 = vsel %vm10036_vm12, %v10015_v25, %v4596_v11  ;;  %v10038_v63 = vld [vmem:[#allocation41_spill] sm:$0xff] }
 0x4df   : > { %3758 = vrot.lane.b32.xlu0 %v3737_v9, %s10029_s29  ;;  %3884 = vrot.lane.b32.xlu1 %v10030_v4, %s9974_s26  ;;  %v4535_v54 = vsel %vm1282_vm10, %v9016_v29, %v4534_v42  ;;  %v4462_v14 = vrot.slane %v9044_v28, 4  ;;  %v9157_v25 = vsel %vm1282_vm10, %v10017_v6, %v4530_v1  ;;  %v4533_v29 = vsel %vm1282_vm10, %v10019_v49, %v4532_v5  ;;  %v10040_v42 = vld [vmem:[#allocation56_spill] sm:$0xff] }
 0x4e0   : > { %v4598_v19 = vsel %vm428_vm11, %v4590_v45, %v10034_v27  ;;  %v3739_v45 = vld [vmem:[#allocation3 + $0x38] sm:$0xf]  ;;  %v3711_v27 = vrot.slane %v10038_v63, 4  ;;  %v6596_v11 = vcombine.high %v9109_v46, %v9130_v24  ;;  %v6594_v6 = vcombine.high %v4533_v29, %v4535_v54 }
 0x4e1   : > { %v4599_v20 = vsel %vm10037_vm15, %v4581_v58, %v4598_v19  ;;  %v9151_v9 = vpop.permute.xlu0 %5459  ;;  %4882 = vmatpush1.bf16.msra.mxu0 %v6565_v32  ;;  %v3705_v34 = vpop.permute.xlu1 %3704  ;;  %v10039_v58 = vmul.bf16 %v8637_v38, %v10000_v30  ;;  %v3720_v32 = vsel %vm428_vm11, %v3712_v62, %v3713_v56  ;;  %v10041_v49 = vrot.slane %v8518_v18, 4 }
 0x4e2   : > { %v6597_v0 = vcombine.low %v4597_v15, %v4599_v20  ;;  %v3714_v57 = vrot.slane %v3705_v34, 4  ;;  %4883 = vmatprep.subr.bf16.mxu0 %v6564_v16  ;;  %v6598_v4 = vcombine.high %v4597_v15, %v4599_v20  ;;  %v4460_v16 = vrot.slane %v10040_v42, 4 }
 0x4e3   : > { %3762 = vrot.lane.b32.xlu0 %v3739_v45, %s10029_s29  ;;  %3888 = vrot.lane.b32.xlu1 %v10039_v58, %s9974_s26  ;;  %v4464_v5 = vsel %vm428_vm11, %v4456_v47, %v10041_v49  ;;  %v3716_v19 = vsel %vm428_vm11, %v3708_v60, %v3709_v51  ;;  %v4458_v38 = vrot.slane %v10042_v22, 4  ;;  %v3718_v56 = vsel %vm428_vm11, %v3710_v31, %v3711_v27  ;;  %v10044_v47 = vld [vmem:[#allocation14_spill] sm:$0xff] }
 0x4e4   : > { %v3722_v1 = vsel %vm428_vm11, %v3714_v57, %v3715_v26  ;;  %4934 = vmatprep.subr.bf16.mxu1 %v6598_v4  ;;  %v10043_v62 = vrot.slane %v8508_v10, 4  ;;  %v6592_v51 = vcombine.high %v9102_v12, %v9157_v25  ;;  %v4459_v60 = vrot.slane %v10044_v47, 4  ;;  %v10050_v27 = vld [vmem:[#allocation22_spill] sm:$0xff] }
 0x4e5   : > { %v3723_v15 = vsel %vm708_vm9, %v3705_v34, %v3722_v1  ;;  %v9177_v20 = vpop.permute.xlu0 %5463  ;;  %4884 = vmatpush1.bf16.msra.mxu0 %v6563_v61  ;;  %4935 = vmatpush1.bf16.msra.mxu1 %v6597_v0  ;;  %v3641_v45 = vpop.permute.xlu1 %3640  ;;  %v6595_v34 = vcombine.low %v9109_v46, %v9130_v24  ;;  %v3721_v61 = vsel %vm708_vm9, %v10033_v40, %v3720_v32  ;;  %v10048_v4 = vrot.slane %v8499_v52, 4  ;;  %v10049_v24 = vld [vmem:[#allocation64_spill] sm:$0xff]  ;;  %v10051_v1 = vld [vmem:[#allocation47_spill] sm:$0xff] }
 0x4e6   : > { %v4470_v26 = vsel %vm428_vm11, %v4462_v14, %v10043_v62  ;;  %v3650_v18 = vrot.slane %v3641_v45, 4  ;;  %4885 = vmatprep.subr.bf16.mxu0 %v6594_v6  ;;  %4936 = vmatprep.subr.bf16.mxu1 %v6596_v11  ;;  %v6593_v0 = vcombine.low %v4533_v29, %v4535_v54  ;;  %v10045_v10 = vmul.bf16 %v8912_v43, %v9973_v53  ;;  %v10047_v14 = vld [vmem:[#allocation25_spill] sm:$0xff]  ;;  %v6835_v54 = vld [vmem:[#allocation9 + $0x38] ss:$12 sps:$4 sm:$0xff]  }
 0x4e7   : > { %v10046_v31 = vmul.bf16 %v8463_v13, %v10012_v17  ;;  %v3651_v57 = vrot.slane %v10047_v14, 4  ;;  %v4468_v46 = vsel %vm428_vm11, %v4460_v16, %v10048_v4  ;;  %v3648_v63 = vrot.slane %v10049_v24, 4 }
 0x4e8   : > { %5707 = vrot.lane.b32.xlu0 %v10045_v10, %s9974_s26  ;;  %v6622_v40 = vcombine.high %v3721_v61, %v3723_v15  ;;  %v4397_v29 = vrot.slane %v10050_v27, 4  ;;  %v3717_v43 = vsel %vm708_vm9, %v10022_v36, %v3716_v19  ;;  %v3719_v58 = vsel %vm708_vm9, %v10031_v35, %v3718_v56  ;;  %v10052_v35 = vld [vmem:[#allocation24_spill] sm:$0xff] }
 0x4e9   : > { %5329 = vrot.lane.b32.xlu1 %v10046_v31, %s7043_s16  ;;  %v4471_v11 = vsel %vm1354_vm8, %v9044_v28, %v4470_v26  ;;  %v9210_v32 = vpop.permute.xlu0 %5451  ;;  %4886 = vmatpush2.bf16.msra.mxu0 %v6593_v0  ;;  %v9212_v52 = vpop.permute.xlu1 %4016  ;;  %v4466_v16 = vsel %vm428_vm11, %v4458_v38, %v4459_v60  ;;  %v3649_v6 = vrot.slane %v10051_v1, 4  ;;  %v4398_v49 = vrot.slane %v9076_v2, 4  ;;  %v10053_v26 = vld [vmem:[#allocation30_spill] sm:$0xff] }
 0x4ea   : > { %4937 = vmatpush1.bf16.msra.mxu1 %v6595_v34  ;;  %v3658_v36 = vsel %vm428_vm11, %v3650_v18, %v3651_v57  ;;  %4887 = vmatprep.subr.bf16.mxu0 %v6592_v51  ;;  %v4399_v19 = vrot.slane %v10052_v35, 4  ;;  %v6591_v28 = vcombine.low %v9102_v12, %v9157_v25  ;;  %v4469_v56 = vsel %vm1354_vm8, %v10040_v42, %v4468_v46  ;;  %v10056_v51 = vld [vmem:[#allocation58_spill] sm:$0xff]  ;;  %v10058_v42 = vld [vmem:[#allocation29_spill] sm:$0xff] }
 0x4eb   : > { %5191 = vmatprep.subr.bf16.mxu1 %v6622_v40  ;;  %v6621_v62 = vcombine.low %v3721_v61, %v3723_v15  ;;  %v10054_v38 = vmul.bf16 %v10053_v26, %v9973_v53  ;;  %v10055_v18 = vmul.bf16 %v9078_v48, %v10012_v17  ;;  %v4396_v47 = vrot.slane %v10056_v51, 4  ;;  %v10059_v57 = vld [vmem:[#allocation46_spill] sm:$0xff]  ;;  %v10060_v40 = vld [vmem:[#allocation36_spill] sm:$0xff] }
 0x4ec   : > { %v3656_v60 = vsel %vm428_vm11, %v3648_v63, %v3649_v6  ;;  %vm10057_vm10 = vcmask 261120   ;;  %v6590_v12 = vcombine.high %v4469_v56, %v4471_v11  ;;  %v6620_v25 = vcombine.high %v3717_v43, %v3719_v58 }
 0x4ed   : > { %5711 = vrot.lane.b32.xlu0 %v10054_v38, %s9974_s26  ;;  %5333 = vrot.lane.b32.xlu1 %v10055_v18, %s7043_s16  ;;  %v4395_v15 = vrot.slane %v10058_v42, 4  ;;  %v4467_v34 = vsel %vm1354_vm8, %v10042_v22, %v4466_v16  ;;  %v3659_v61 = vsel %vm617_vm7, %v3641_v45, %v3658_v36  ;;  %v9238_v0 = vpop.permute.xlu0 %5455  ;;  %v3629_v10 = vpop.permute.xlu1 %3628  ;;  %v3860_v31 = vmul.bf16 %v8975_v33, %v10000_v30  ;;  %v3733_v22 = vld [vmem:[#allocation3 + $0x8] sm:$0xf]  ;;  %v5674_v45 = vld [vmem:[#allocation3 + $0xc] sm:$0xf] }
 0x4ee   : > { %6599 = vmatmul.mubr.msk.bf16.vlgmr.msra.gmra.mxu1 %vm10057_vm10, %v6835_v54  ;;  %4888 = vmatpush2.bf16.msra.mxu0 %v6591_v28  ;;  %v4465_v14 = vsel %vm1354_vm8, %v10020_v55, %v4464_v5  ;;  %v4394_v4 = vrot.slane %v10059_v57, 4  ;;  %v4406_v46 = vsel %vm428_vm11, %v4398_v49, %v4399_v19  ;;  %v3644_v63 = vrot.slane %v3629_v10, 4  ;;  %v10061_v55 = vld [vmem:[#allocation57_spill] sm:$0xff]  ;;  %v10063_v19 = vld [vmem:[#allocation27_spill] sm:$0xff] }
 0x4ef   : > { %5192 = vmatpush1.bf16.msra.mxu1 %v6621_v62  ;;  %4889 = vmatprep.subr.bf16.mxu0 %v6590_v12  ;;  %v4392_v54 = vrot.slane %v10060_v40, 4  ;;  %v6619_v27 = vcombine.low %v3717_v43, %v3719_v58  ;;  %v3657_v16 = vsel %vm617_vm7, %v10049_v24, %v3656_v60  ;;  %v6589_v1 = vcombine.low %v4469_v56, %v4471_v11  ;;  %v10064_v62 = vld [vmem:[#allocation59_spill] sm:$0xff] }
 0x4f0   : > { %5193 = vmatprep.subr.bf16.mxu1 %v6620_v25  ;;  %v3645_v5 = vrot.slane %v10061_v55, 4  ;;  %v4404_v6 = vsel %vm428_vm11, %v4396_v47, %v4397_v29  ;;  %v6588_v49 = vcombine.high %v4465_v14, %v4467_v34  ;;  %v6618_v36 = vcombine.high %v3657_v16, %v3659_v61  ;;  %v9290_v55 = vld [vmem:[#allocation3 + $0x14] sm:$0xff] }
 0x4f1   : > { %3750 = vrot.lane.b32.xlu0 %v3733_v22, %s10029_s29  ;;  %3876 = vrot.lane.b32.xlu1 %v3860_v31, %s9974_s26  ;;  %v10062_v35 = vmov 0   ;;  %v4393_v28 = vrot.slane %v10063_v19, 4  ;;  %v4407_v43 = vsel %vm1426_vm6, %v9076_v2, %v4406_v46  ;;  %v9257_v58 = vpop.permute.xlu0 %3950  ;;  %v3633_v24 = vpop.permute.xlu1 %3632  ;;  %v3862_v11 = vmul.bf16 %v9000_v37, %v10000_v30  ;;  %v3735_v2 = vld [vmem:[#allocation3 + $0x18] sm:$0xf]  ;;  %v9271_v31 = vld [vmem:[#allocation3 + $0x4] sm:$0xff] }
 0x4f2   : > { %4964 = vmatprep.mubr.bf16.mxu1 %v10062_v35  ;;  %4890 = vmatpush2.bf16.msra.mxu0 %v6589_v1  ;;  %v5682_v56 = vmul.bf16 %v5674_v45, %v9973_v53  ;;  %v4402_v29 = vsel %vm428_vm11, %v4394_v4, %v4395_v15  ;;  %v3647_v26 = vrot.slane %v10064_v62, 4  ;;  %v3652_v38 = vsel %vm428_vm11, %v3644_v63, %v3645_v5  ;;  %v5676_v45 = vld [vmem:[#allocation3 + $0x1c] sm:$0xf] }
 0x4f3   : > { %5194 = vmatpush1.bf16.msra.mxu1 %v6619_v27  ;;  %v3646_v18 = vrot.slane %v3633_v24, 4  ;;  %4891 = vmatprep.subr.bf16.mxu0 %v6588_v49  ;;  %v6587_v47 = vcombine.low %v4465_v14, %v4467_v34  ;;  %v4405_v60 = vsel %vm1426_vm6, %v10056_v51, %v4404_v6  ;;  %v6617_v12 = vcombine.low %v3657_v16, %v3659_v61  ;;  %v5614_v6 = vld [vmem:[#allocation3 + $0x2c] sm:$0xf] }
 0x4f4   : > { %5195 = vmatprep.subr.bf16.mxu1 %v6618_v36  ;;  %v4400_v25 = vsel %vm428_vm11, %v4392_v54, %v4393_v28  ;;  %v6586_v15 = vcombine.high %v4405_v60, %v4407_v43  ;;  %v5305_v4 = vmul.bf16 %v9271_v31, %v10012_v17  ;;  %v4403_v34 = vsel %vm1426_vm6, %v10059_v57, %v4402_v29  ;;  %v10065_v36 = vld [vmem:[#allocation55_spill] sm:$0xff]  ;;  %v10066_v28 = vld [vmem:[#allocation66_spill] sm:$0xff]  ;;  %v10068_v29 = vld [vmem:[#allocation53_spill] sm:$0xff] }
 0x4f5   : > { %3754 = vrot.lane.b32.xlu0 %v3735_v2, %s10029_s29  ;;  %3880 = vrot.lane.b32.xlu1 %v3862_v11, %s9974_s26  ;;  %v3654_v42 = vsel %vm428_vm11, %v3646_v18, %v3647_v26  ;;  %v3653_v51 = vsel %vm617_vm7, %v3629_v10, %v3652_v38  ;;  %v9279_v14 = vpop.permute.xlu0 %3954  ;;  %v9281_v46 = vpop.permute.xlu1 %4004  ;;  %v4401_v54 = vsel %vm1426_vm6, %v10060_v40, %v4400_v25  ;;  %v4026_v40 = vrot.slane %v9212_v52, 4  ;;  %vm10080_vm6 = vmmov %vm10057_vm10 }
 0x4f6   : > { %v3655_v61 = vsel %vm617_vm7, %v3633_v24, %v3654_v42  ;;  %4892 = vmatpush2.bf16.msra.mxu0 %v6587_v47  ;;  %v6585_v27 = vcombine.low %v4405_v60, %v4407_v43  ;;  %v6584_v10 = vcombine.high %v4401_v54, %v4403_v34  ;;  %v5684_v1 = vmul.bf16 %v5676_v45, %v9973_v53  ;;  %v5616_v47 = vld [vmem:[#allocation3 + $0x3c] sm:$0xf]  ;;  %v9309_v60 = vld [vmem:[#allocation3 + $0x30] sm:$0xff]  ;;  %vm10088_vm8 = vmmov %vm10080_vm6 }
 0x4f7   : > { %5196 = vmatpush1.bf16.msra.mxu1 %v6617_v12  ;;  %v6615_v63 = vcombine.low %v3653_v51, %v3655_v61  ;;  %4893 = vmatprep.subr.bf16.mxu0 %v6586_v15  ;;  %v6616_v22 = vcombine.high %v3653_v51, %v3655_v61  ;;  %v5307_v5 = vmul.bf16 %v9290_v55, %v10012_v17  ;;  %v4027_v19 = vrot.slane %v10065_v36, 4  ;;  %v10067_v17 = vld [vmem:[#allocation31_spill] sm:$0xff]  ;;  %v10071_v42 = vld [vmem:[#allocation65_spill] sm:$0xff]  ;;  %vm10091_vm3 = vmmov %vm10080_vm6 }
 0x4f8   : > { %v6583_v49 = vcombine.low %v4401_v54, %v4403_v34  ;;  %v4024_v43 = vrot.slane %v10066_v28, 4  ;;  %v5622_v11 = vmul.bf16 %v5614_v6, %v9991_v8  ;;  %v4025_v62 = vrot.slane %v10068_v29, 4  ;;  %v10070_v12 = vld [vmem:[#allocation63_spill] sm:$0xff]  ;;  %v10072_v51 = vld [vmem:[#allocation61_spill] sm:$0xff] }
 0x4f9   : > { %5699 = vrot.lane.b32.xlu0 %v5682_v56, %s9974_s26  ;;  %5321 = vrot.lane.b32.xlu1 %v5305_v4, %s7043_s16  ;;  %v9287_v57 = vpop.permute.xlu0 %5395  ;;  %v4009_v16 = vpop.permute.xlu1 %4008  ;;  %v3800_v56 = vmul.bf16 %v9011_v39, %v10067_v17  ;;  %v4034_v26 = vsel %vm428_vm11, %v4026_v40, %v4027_v19  ;;  %v10069_v2 = vcombine.high %v8463_v13, %v8457_v44  ;;  %v4023_v25 = vrot.slane %v10070_v12, 4 }
 0x4fa   : > { %5197 = vmatprep.subr.bf16.mxu1 %v6616_v22  ;;  %4894 = vmatpush2.bf16.msra.mxu0 %v6585_v27  ;;  %v4022_v38 = vrot.slane %v4009_v16, 4  ;;  %v3585_v15 = vrot.slane %v10071_v42, 4  ;;  %v4032_v4 = vsel %vm428_vm11, %v4024_v43, %v4025_v62  ;;  %v4020_v34 = vrot.slane %v9281_v46, 4  ;;  %v5612_v42 = vld [vmem:[#allocation3 + $0x1c] sm:$0xf] }
 0x4fb   : > { %5198 = vmatpush1.bf16.msra.mxu1 %v6615_v63  ;;  %4895 = vmatprep.subr.bf16.mxu0 %v6584_v10  ;;  %v4021_v61 = vrot.slane %v10072_v51, 4  ;;  %v4035_v63 = vsel %vm384_vm0, %v9212_v52, %v4034_v26  ;;  %v10073_v45 = vcombine.low %v8463_v13, %v8457_v44  ;;  %v5624_v27 = vmul.bf16 %v5616_v47, %v9991_v8 }
 0x4fc   : > { %v3802_v10 = vmul.bf16 %v9309_v60, %v10067_v17  ;;  %v4030_v6 = vsel %vm428_vm11, %v4022_v38, %v4023_v25  ;;  %v10075_v36 = vcombine.high %v8465_v23, %v8459_v41  ;;  %v4033_v44 = vsel %vm384_vm0, %v10066_v28, %v4032_v4 }
 0x4fd   : > { %5703 = vrot.lane.b32.xlu0 %v5684_v1, %s9974_s26  ;;  %5325 = vrot.lane.b32.xlu1 %v5307_v5, %s7043_s16  ;;  %v9299_v24 = vpop.permute.xlu0 %5399  ;;  %v3573_v53 = vpop.permute.xlu1 %3572  ;;  %v5610_v1 = vld [vmem:[#allocation3 + $0xc] sm:$0xf]  ;;  %v4028_v13 = vsel %vm428_vm11, %v4020_v34, %v4021_v61  ;;  %v6642_v43 = vcombine.high %v4033_v44, %v4035_v63  ;;  %v4031_v29 = vsel %vm384_vm0, %v4009_v16, %v4030_v6  ;;  %vm10099_vm10 = vcmask 523264   ;;  %s6281_s16 = scalar_lea.sflag [#allocation6], %s7210_s9 }
 0x4fe   : > { %4896 = vmatpush2.bf16.msra.mxu0 %v6583_v49  ;;  %v3584_v18 = vrot.slane %v3573_v53, 4  ;;  %v10074_v5 = vld [vmem:[#allocation23_spill] sm:$0xff]  ;;  %v10076_v28 = vcombine.low %v8465_v23, %v8459_v41  ;;  %v4029_v4 = vsel %vm384_vm0, %v9281_v46, %v4028_v13  ;;  %v5534_v41 = vrot.slane %v8952_v3, 4  ;;  %v5560_v13 = vld [vmem:[#allocation3 + $0x3c] sm:$0xf] }
 0x4ff   : > { %4897 = vmatprep.subr.bf16.mxu0 %v10069_v2  ;;  %v3587_v40 = vrot.slane %v10074_v5, 4  ;;  %v9349_v2 = vld [vmem:[#allocation3 + $0x24] sm:$0xff]  ;;  %v6640_v23 = vcombine.high %v4029_v4, %v4031_v29  ;;  %v5620_v61 = vmul.bf16 %v5612_v42, %v9991_v8  ;;  %v5536_v46 = vrot.slane %v8968_v59, 4 }
 0x500   : > { %v3592_v49 = vsel %vm428_vm11, %v3584_v18, %v3585_v15  ;;  %v5749_v47 = vmul.bf16 %v9349_v2, %v9992_v50  ;;  %v6641_v15 = vcombine.low %v4033_v44, %v4035_v63  ;;  %v5751_v63 = vmul.bf16 %v9078_v48, %v9992_v50 }
 0x501   : > { %5643 = vrot.lane.b32.xlu0 %v5622_v11, %s9993_s27  ;;  %3820 = vrot.lane.b32.xlu1 %v3800_v56, %s9993_s27  ;;  %v9320_v22 = vpop.permute.xlu0 %3942  ;;  %v3577_v54 = vpop.permute.xlu1 %3576  ;;  %v6840_v11 = vld [vmem:[#allocation9 + $0x30] ss:$12 sps:$4 sm:$0xff]   ;;  %v5618_v56 = vmul.bf16 %v5610_v1, %v9991_v8  ;;  %v3593_v62 = vsel %vm521_vm5, %v3573_v53, %v3592_v49  ;;  %v6843_v53 = vld [vmem:[#allocation9 + $0x4c] ss:$12 sps:$4 sm:$0xff]   ;;  %v6639_v3 = vcombine.low %v4029_v4, %v4031_v29  ;;  %v6845_v1 = vld [vmem:[#allocation9 + $0x48] ss:$12 sps:$4 sm:$0xff]  }
 0x502   : > { %4898 = vmatpush2.bf16.msra.mxu0 %v10073_v45  ;;  %v3586_v52 = vrot.slane %v3577_v54, 4  ;;  %v3796_v6 = vmul.bf16 %v8975_v33, %v10067_v17  ;;  %v5745_v4 = vmul.bf16 %v9271_v31, %v9992_v50 }
 0x503   : > { %4899 = vmatprep.subr.bf16.mxu0 %v10075_v36  ;;  %v10077_v36 = vld [vmem:[#allocation67_spill] sm:$0xff] }
 0x504   : > { %v3594_v19 = vsel %vm428_vm11, %v3586_v52, %v3587_v40  ;;  %v3581_v44 = vrot.slane %v10077_v36, 4 }
 0x505   : > { %5647 = vrot.lane.b32.xlu0 %v5624_v27, %s9993_s27  ;;  %3824 = vrot.lane.b32.xlu1 %v3802_v10, %s9993_s27  ;;  %v3595_v26 = vsel %vm521_vm5, %v3577_v54, %v3594_v19  ;;  %v9344_v38 = vpop.permute.xlu0 %3946  ;;  %v5522_v18 = vpop.permute.xlu1 %5521  ;;  %v5558_v10 = vld [vmem:[#allocation3 + $0x2c] sm:$0xf] }
 0x506   : > { %4900 = vmatpush2.bf16.msra.mxu0 %v10076_v28  ;;  %v6613_v12 = vcombine.low %v3593_v62, %v3595_v26  ;;  %v5533_v25 = vrot.slane %v5522_v18, 4  ;;  %v6614_v16 = vcombine.high %v3593_v62, %v3595_v26  ;;  %v5806_v28 = vld [vmem:[#allocation3 + $0x2c] sm:$0xf] }
 0x507   : > { %5256 = vmatprep.subr.bf16.mxu0 %v6642_v43 }
 0x508   : > { %5199 = vmatprep.subr.bf16.mxu1 %v6614_v16  ;;  %v5541_v45 = vsel %vm428_vm11, %v5533_v25, %v5534_v41 }
 0x509   : > { %5635 = vrot.lane.b32.xlu0 %v5618_v56, %s9993_s27  ;;  %5769 = vrot.lane.b32.xlu1 %v5749_v47, %s9961_s10  ;;  %v9358_v34 = vpop.permute.xlu0 %5387  ;;  %v5526_v51 = vpop.permute.xlu1 %5525  ;;  %v5542_v8 = vsel %vm708_vm9, %v5522_v18, %v5541_v45  ;;  %v10078_v56 = vld [vmem:[#allocation68_spill] sm:$0xff]  ;;  %v6846_v47 = vld [vmem:[#allocation9 + $0x8] ss:$12 sps:$4 sm:$0xff]  }
 0x50a   : > { %4902 = vmatmul.mubr.bf16.vlgmr.msra.gmra.mxu0 %v6840_v11  ;;  %5200 = vmatpush1.bf16.msra.mxu1 %v6613_v12  ;;  %v5535_v54 = vrot.slane %v5526_v51, 4  ;;  %v3798_v11 = vmul.bf16 %v9000_v37, %v10067_v17  ;;  %v3583_v29 = vrot.slane %v10078_v56, 4  ;;  %v10081_v45 = vld [vmem:[#allocation40_spill] sm:$0xff] }
 0x50b   : > { %5257 = vmatpush1.bf16.msra.mxu0 %v6641_v15  ;;  %4911 = vmatprep.mubr.bf16.mxu0 %v6843_v53  ;;  %v10079_v53 = vld [vmem:[#allocation28_spill] sm:$0xff] }
 0x50c   : > { %5258 = vmatprep.subr.bf16.mxu0 %v6640_v23  ;;  %v5543_v27 = vsel %vm428_vm11, %v5535_v54, %v5536_v46  ;;  %v5814_v15 = vmul.bf16 %v5806_v28, %v10079_v53  ;;  %v5530_v46 = vrot.slane %v9042_v7, 4  ;;  %v3518_v54 = vrot.slane %v10081_v45, 4 }
 0x50d   : > { %5639 = vrot.lane.b32.xlu0 %v5620_v61, %s9993_s27  ;;  %5773 = vrot.lane.b32.xlu1 %v5751_v63, %s9961_s10  ;;  %v5544_v5 = vsel %vm708_vm9, %v5526_v51, %v5543_v27  ;;  %v9370_v40 = vpop.permute.xlu0 %5391  ;;  %v3565_v59 = vpop.permute.xlu1 %3564  ;;  %v5808_v61 = vld [vmem:[#allocation3 + $0x3c] sm:$0xf] }
 0x50e   : > { %v3580_v49 = vrot.slane %v3565_v59, 4  ;;  %v6666_v52 = vcombine.high %v5542_v8, %v5544_v5  ;;  %v6665_v63 = vcombine.low %v5542_v8, %v5544_v5  ;;  %v5747_v8 = vmul.bf16 %v9290_v55, %v9992_v50 }
 0x50f   : > { %5259 = vmatpush1.bf16.msra.mxu0 %v6639_v3  ;;  %v10082_v3 = vld [vmem:[#allocation49_spill] sm:$0xff]  ;;  %v5532_v5 = vrot.slane %v9074_v21, 4  ;;  %v5554_v21 = vld [vmem:[#allocation3 + $0xc] sm:$0xf] }
 0x510   : > { %6126 = vmatprep.subr.bf16.mxu0 %v6666_v52  ;;  %v3588_v62 = vsel %vm428_vm11, %v3580_v49, %v3581_v44  ;;  %v3520_v27 = vrot.slane %v10082_v3, 4  ;;  %v10084_v52 = vld [vmem:[#allocation42_spill] sm:$0xff]  ;;  %v10085_v44 = vld [vmem:[#allocation33_spill] sm:$0xff] }
 0x511   : > { %5579 = vrot.lane.b32.xlu0 %v5558_v10, %s10029_s29  ;;  %3812 = vrot.lane.b32.xlu1 %v3796_v6, %s9993_s27  ;;  %v9377_v19 = vpop.permute.xlu0 %3886  ;;  %v3569_v43 = vpop.permute.xlu1 %3568  ;;  %v3589_v12 = vsel %vm521_vm5, %v3565_v59, %v3588_v62  ;;  %v10083_v6 = vld [vmem:[#allocation18_spill] sm:$0xff]  ;;  %v3521_v36 = vrot.slane %v10084_v52, 4 }
 0x512   : > { %4912 = vmatmul.mubr.bf16.gmra.mxu0 %v6845_v1  ;;  %v3582_v26 = vrot.slane %v3569_v43, 4  ;;  %v5816_v1 = vmul.bf16 %v5808_v61, %v10079_v53  ;;  %v3519_v49 = vrot.slane %v10083_v6, 4  ;;  %v5472_v6 = vrot.slane %v9177_v20, 4 }
 0x513   : > { %5276 = vmatprep.mubr.bf16.mxu0 %v10062_v35  ;;  %v3528_v56 = vsel %vm428_vm11, %v3520_v27, %v3521_v36 }
 0x514   : > { %v3590_v18 = vsel %vm428_vm11, %v3582_v26, %v3583_v29  ;;  %v3526_v55 = vsel %vm428_vm11, %v3518_v54, %v3519_v49 }
 0x515   : > { %5583 = vrot.lane.b32.xlu0 %v5560_v13, %s10029_s29  ;;  %3816 = vrot.lane.b32.xlu1 %v3798_v11, %s9993_s27  ;;  %v3591_v25 = vsel %vm521_vm5, %v3569_v43, %v3590_v18  ;;  %v9389_v16 = vpop.permute.xlu0 %3890  ;;  %v5514_v42 = vpop.permute.xlu1 %5513  ;;  %v3517_v13 = vrot.slane %v10085_v44, 4  ;;  %v10086_v43 = vld [vmem:[#allocation34_spill] sm:$0xff] }
 0x516   : > { %v6611_v41 = vcombine.low %v3589_v12, %v3591_v25  ;;  %v5529_v23 = vrot.slane %v5514_v42, 4  ;;  %v6612_v51 = vcombine.high %v3589_v12, %v3591_v25  ;;  %v3516_v11 = vrot.slane %v10086_v43, 4  ;;  %v10087_v18 = vld [vmem:[#allocation26_spill] sm:$0xff] }
 0x518   : > { %5201 = vmatprep.subr.bf16.mxu1 %v6612_v51  ;;  %v5537_v7 = vsel %vm428_vm11, %v5529_v23, %v5530_v46  ;;  %v3527_v23 = vsel %vm430_vm13, %v10081_v45, %v3526_v55  ;;  %v3529_v51 = vsel %vm430_vm13, %v10082_v3, %v3528_v56  ;;  %v5470_v45 = vrot.slane %v9151_v9, 4 }
 0x519   : > { %5835 = vrot.lane.b32.xlu0 %v5814_v15, %s9916_s17  ;;  %5761 = vrot.lane.b32.xlu1 %v5745_v4, %s9961_s10  ;;  %v9400_v31 = vpop.permute.xlu0 %5331  ;;  %v5518_v10 = vpop.permute.xlu1 %5517  ;;  %v5538_v29 = vsel %vm708_vm9, %v5514_v42, %v5537_v7  ;;  %v3524_v4 = vsel %vm428_vm11, %v3516_v11, %v3517_v13  ;;  %v5556_v42 = vld [vmem:[#allocation3 + $0x1c] sm:$0xf]  ;;  %v5687_v11 = vmul.bf16 %v9078_v48, %v10000_v30  ;;  %v5466_v56 = vrot.slane %v9210_v32, 4 }
 0x51a   : > { %6643 = vmatmul.mubr.msk.bf16.vlgmr.msra.gmra.mxu0 %vm10080_vm6, %v6846_v47  ;;  %5202 = vmatpush1.bf16.msra.mxu1 %v6611_v41  ;;  %v5531_v59 = vrot.slane %v5518_v10, 4  ;;  %v3523_v47 = vrot.slane %v10087_v18, 4  ;;  %v5468_v48 = vrot.slane %v9238_v0, 4  ;;  %vm10100_vm6 = vmmov %vm10099_vm10 }
 0x51b   : > { %6127 = vmatpush1.bf16.msra.mxu0 %v6665_v63  ;;  %5286 = vmatprep.mubr.bf16.mxu0 %v10062_v35 }
 0x51c   : > { %v5539_v50 = vsel %vm428_vm11, %v5531_v59, %v5532_v5  ;;  %v5685_v59 = vmul.bf16 %v9349_v2, %v10000_v30 }
 0x51d   : > { %5839 = vrot.lane.b32.xlu0 %v5816_v1, %s9916_s17  ;;  %5765 = vrot.lane.b32.xlu1 %v5747_v8, %s9961_s10  ;;  %v5540_v62 = vsel %vm708_vm9, %v5518_v10, %v5539_v50  ;;  %v9419_v26 = vpop.permute.xlu0 %5335  ;;  %v3513_v28 = vpop.permute.xlu1 %3512  ;;  %v5802_v10 = vld [vmem:[#allocation3 + $0xc] sm:$0xf]  ;;  %v3525_v8 = vsel %vm430_vm13, %v10086_v43, %v3524_v4  ;;  %s6703_s10 = sshll.u32 %s7104_s25, 10 }
 0x51e   : > { %v6663_v12 = vcombine.low %v5538_v29, %v5540_v62  ;;  %v3522_v25 = vrot.slane %v3513_v28, 4  ;;  %v6664_v15 = vcombine.high %v5538_v29, %v5540_v62  ;;  %v6847_v1 = vld [vmem:[#allocation9 + $0x50] ss:$12 sps:$4 sm:$0xff]   ;;  %v6608_v3 = vcombine.high %v3525_v8, %v3527_v23  ;;  %s9708_s13 = scalar_lea.hbm %s9761_s6, %s6703_s10 }
 0x51f   : > { %6600 = vmatmul.mubr.msk.bf16.gmra.mxu1 %vm10088_vm8, %v6847_v1  ;;  %v5810_v7 = vmul.bf16 %v5802_v10, %v10079_v53  ;;  %v6607_v36 = vcombine.low %v3525_v8, %v3527_v23  ;;  %v6241_v29 = vld [vmem:[%s9760_s5 + $0x8] sm:$0xff]  ;;  %v6850_v23 = vld [vmem:[#allocation9 + $0x4] ss:$12 sps:$4 sm:$0xff]   ;;  %vm10101_vm8 = vmmov %vm10100_vm6 }
 0x520   : > { %v3530_v41 = vsel %vm428_vm11, %v3522_v25, %v3523_v47  ;;  %6128 = vmatprep.subr.bf16.mxu0 %v6664_v15  ;;  %v6243_v47 = vld [vmem:[%s9760_s5 + $0x18] sm:$0xff]  ;;  %5223 = vmatprep.mubr.bf16.mxu1 %v6850_v23 }
 0x521   : > { %5571 = vrot.lane.b32.xlu0 %v5554_v21, %s10029_s29  ;;  %3756 = vrot.lane.b32.xlu1 %v9011_v39, %s10029_s29  ;;  %v3531_v61 = vsel %vm430_vm13, %v3513_v28, %v3530_v41  ;;  %v9432_v63 = vpop.permute.xlu0 %3878  ;;  %v5458_v46 = vpop.permute.xlu1 %5457  ;;  %v9485_v10 = vld [vmem:[#allocation3 + $0x14] sm:$0xff] }
 0x522   : > { %6129 = vmatpush1.bf16.msra.mxu0 %v6663_v12  ;;  %v6609_v54 = vcombine.low %v3529_v51, %v3531_v61  ;;  %v5469_v39 = vrot.slane %v5458_v46, 4  ;;  %v6610_v27 = vcombine.high %v3529_v51, %v3531_v61 }
 0x524   : > { %5203 = vmatprep.subr.bf16.mxu1 %v6610_v27  ;;  %v5477_v49 = vsel %vm428_vm11, %v5469_v39, %v5470_v45 }
 0x525   : > { %5575 = vrot.lane.b32.xlu0 %v5556_v42, %s10029_s29  ;;  %3760 = vrot.lane.b32.xlu1 %v9309_v60, %s10029_s29  ;;  %v5462_v5 = vpop.permute.xlu1 %5461  ;;  %v5804_v60 = vld [vmem:[#allocation3 + $0x1c] sm:$0xf]  ;;  %v9446_v9 = vpop.permute.xlu0 %3882  ;;  %v5478_v13 = vsel %vm617_vm7, %v5458_v46, %v5477_v49  ;;  %v9474_v42 = vld [vmem:[#allocation3 + $0x4] sm:$0xff] }
 0x526   : > { %5204 = vmatpush1.bf16.msra.mxu1 %v6609_v54  ;;  %v5471_v52 = vrot.slane %v5462_v5, 4  ;;  %v5812_v43 = vmul.bf16 %v5804_v60, %v10079_v53  ;;  %v5681_v46 = vmul.bf16 %v9474_v42, %v10000_v30  ;;  %v3963_v54 = vrot.slane %v9279_v14, 4  ;;  %v6854_v60 = vld [vmem:[#allocation9 + $0x20] ss:$12 sps:$4 sm:$0xff]  }
 0x527   : > { %5205 = vmatprep.subr.bf16.mxu1 %v6608_v3  ;;  %v5683_v3 = vmul.bf16 %v9485_v10, %v10000_v30  ;;  %6644 = vmatmul.mubr.msk.bf16.gmra.mxu0 %vm10091_vm3, %v6854_v60 }
 0x528   : > { %v5479_v44 = vsel %vm428_vm11, %v5471_v52, %v5472_v6  ;;  %v5406_v6 = vrot.slane %v9287_v57, 4 }
 0x529   : > { %5827 = vrot.lane.b32.xlu0 %v5810_v7, %s9916_s17  ;;  %5705 = vrot.lane.b32.xlu1 %v5685_v59, %s9974_s26  ;;  %v5480_v2 = vsel %vm617_vm7, %v5462_v5, %v5479_v44  ;;  %v5450_v20 = vpop.permute.xlu1 %5449  ;;  %v9462_v62 = vpop.permute.xlu0 %5323  ;;  %v9495_v59 = vld [vmem:[#allocation3 + $0x24] sm:$0xff] }
 0x52a   : > { %5206 = vmatpush1.bf16.msra.mxu1 %v6607_v36  ;;  %v6661_v50 = vcombine.low %v5478_v13, %v5480_v2  ;;  %v6662_v21 = vcombine.high %v5478_v13, %v5480_v2  ;;  %v5465_v55 = vrot.slane %v5450_v20, 4  ;;  %v5621_v52 = vmul.bf16 %v9495_v59, %v10067_v17  ;;  %v9503_v13 = vld [vmem:[#allocation3 + $0x34] sm:$0xff] }
 0x52b   : > { %v5408_v36 = vrot.slane %v9299_v24, 4  ;;  %v5623_v24 = vmul.bf16 %v9503_v13, %v10067_v17 }
 0x52c   : > { %6130 = vmatprep.subr.bf16.mxu0 %v6662_v21  ;;  %v5473_v28 = vsel %vm428_vm11, %v5465_v55, %v5466_v56  ;;  %v3957_v56 = vrot.slane %v9320_v22, 4 }
 0x52d   : > { %5831 = vrot.lane.b32.xlu0 %v5812_v43, %s9916_s17  ;;  %5709 = vrot.lane.b32.xlu1 %v5687_v11, %s9974_s26  ;;  %v5454_v53 = vpop.permute.xlu1 %5453  ;;  %v5474_v12 = vsel %vm617_vm7, %v5450_v20, %v5473_v28  ;;  %v9476_v51 = vpop.permute.xlu0 %5327  ;;  %v3959_v28 = vrot.slane %v9344_v38, 4  ;;  %v5402_v38 = vrot.slane %v9358_v34, 4 }
 0x52e   : > { %6131 = vmatpush1.bf16.msra.mxu0 %v6661_v50  ;;  %v5467_v18 = vrot.slane %v5454_v53, 4 }
 0x530   : > { %v5475_v32 = vsel %vm428_vm11, %v5467_v18, %v5468_v48  ;;  %v5617_v48 = vmul.bf16 %v9474_v42, %v10067_v17 }
 0x531   : > { %6251 = vperm.xlu0 %6795, %v6241_v29   ;;  %3748 = vrot.lane.b32.xlu1 %v8975_v33, %s10029_s29  ;;  %v5476_v25 = vsel %vm617_vm7, %v5454_v53, %v5475_v32  ;;  %v3949_v15 = vpop.permute.xlu1 %3948  ;;  %v3961_v33 = vrot.slane %v9257_v58, 4  ;;  %v9489_v1 = vpop.permute.xlu0 %3822  ;;  %vm10089_vm7 = vcmask 457728  }
 0x532   : > { %v6659_v4 = vcombine.low %v5474_v12, %v5476_v25  ;;  %v6660_v0 = vcombine.high %v5474_v12, %v5476_v25  ;;  %v3960_v41 = vrot.slane %v3949_v15, 4  ;;  %vm10090_vm9 = vmmov %vm10089_vm7 }
 0x533   : > { %vm10092_vm1 = vmmov %vm10089_vm7 }
 0x534   : > { %6132 = vmatprep.subr.bf16.mxu0 %v6660_v0  ;;  %v3968_v39 = vsel %vm428_vm11, %v3960_v41, %v3961_v33  ;;  %vm10093_vm14 = vmmov %vm10092_vm1 }
 0x535   : > { %6261 = vperm.xlu0 %6795, %v6243_v47   ;;  %3752 = vrot.lane.b32.xlu1 %v9000_v37, %s10029_s29  ;;  %v3953_v61 = vpop.permute.xlu1 %3952  ;;  %v3969_v58 = vsel %vm10089_vm7, %v3949_v15, %v3968_v39  ;;  %v9505_v2 = vpop.permute.xlu0 %3826  ;;  %v5619_v15 = vmul.bf16 %v9485_v10, %v10067_v17  ;;  %vm10097_vm12 = vmmov %vm10092_vm1 }
 0x536   : > { %6133 = vmatpush1.bf16.msra.mxu0 %v6659_v4  ;;  %v3962_v27 = vrot.slane %v3953_v61, 4  ;;  %vm10098_vm15 = vmmov %vm10092_vm1 }
 0x537   : > { %vm10102_vm7 = vmmov %vm10100_vm6 }
 0x538   : > { %v3970_v37 = vsel %vm428_vm11, %v3962_v27, %v3963_v54 }
 0x539   : > { %5697 = vrot.lane.b32.xlu1 %v5681_v46, %s9974_s26  ;;  %v3971_v8 = vsel %vm10090_vm9, %v3953_v61, %v3970_v37  ;;  %v5394_v45 = vpop.permute.xlu1 %5393  ;;  %v9516_v29 = vpop.permute.xlu0 %5771  ;;  %v5404_v61 = vrot.slane %v9370_v40, 4  ;;  %v3897_v40 = vrot.slane %v9377_v19, 4 }
 0x53a   : > { %v6637_v14 = vcombine.low %v3969_v58, %v3971_v8  ;;  %v6638_v5 = vcombine.high %v3969_v58, %v3971_v8  ;;  %v5405_v7 = vrot.slane %v5394_v45, 4 }
 0x53c   : > { %5207 = vmatprep.subr.bf16.mxu1 %v6638_v5  ;;  %v5413_v30 = vsel %vm428_vm11, %v5405_v7, %v5406_v6  ;;  %v3899_v7 = vrot.slane %v9389_v16, 4 }
 0x53d   : > { %5701 = vrot.lane.b32.xlu1 %v5683_v3, %s9974_s26  ;;  %5208 = vmatpush2.bf16.msra.mxu1 %v6637_v14  ;;  %v5398_v49 = vpop.permute.xlu1 %5397  ;;  %v5414_v20 = vsel %vm521_vm5, %v5394_v45, %v5413_v30  ;;  %v9528_v23 = vpop.permute.xlu0 %5775  ;;  %v10094_v14 = vld [vmem:[#allocation15_spill] sm:$0xff]  ;;  %s6294_s26 = sshll.u32 %s9693_s18, 4  ;;  %s9710_s26 = int_to_ptr.vmem [resolvable:$true] %s6294_s26 }
 0x53e   : > { %v5407_v44 = vrot.slane %v5398_v49, 4  ;;  %v5813_v5 = vmul.bf16 %v9495_v59, %v10094_v14  ;;  %s6950_s25 = scalar_lea.vmem %s9710_s26, 1024  ;;  %p6957_p6 = scmp.lt.s32.totalorder %s9710_s26, %s6955_s14 }
 0x53f   : > { %p6951_p11 = scmp.ne.s32.totalorder %s9710_s26, %s6950_s25  ;;  %p6958_p12 = scmp.lt.s32.totalorder %s6956_s20, %s6950_s25 }
 0x540   : > { %v5415_v57 = vsel %vm428_vm11, %v5407_v44, %v5408_v36  ;;  %v5815_v44 = vmul.bf16 %v9503_v13, %v10094_v14 }
 0x541   : > { %5641 = vrot.lane.b32.xlu1 %v5621_v52, %s9993_s27  ;;  %v5416_v43 = vsel %vm521_vm5, %v5398_v49, %v5415_v57  ;;  %v3941_v11 = vpop.permute.xlu1 %3940  ;;  %v9537_v39 = vpop.permute.xlu0 %3814  ;;  %p6952_p1 = pnand %p6951_p11, %p10110_p10  ;;  %p6959_p7 = por %p6958_p12, %p6957_p6 }
 0x542   : > { %v6657_v50 = vcombine.low %v5414_v20, %v5416_v43  ;;  %v6658_v21 = vcombine.high %v5414_v20, %v5416_v43  ;;  %v3956_v55 = vrot.slane %v3941_v11, 4  ;;  %v5342_v20 = vrot.slane %v9400_v31, 4 }
 0x543   : > { %p6953_p2 = pneg %p6952_p1 }
 0x544   : > { %6134 = vmatprep.subr.bf16.mxu0 %v6658_v21  ;;  %v3964_v18 = vsel %vm428_vm11, %v3956_v55, %v3957_v56 }
 0x545   : > { %5645 = vrot.lane.b32.xlu1 %v5623_v24, %s9993_s27  ;;  %6135 = vmatpush1.bf16.msra.mxu0 %v6657_v50  ;;  %v3945_v53 = vpop.permute.xlu1 %3944  ;;  %v3965_v12 = vsel %vm10092_vm1, %v3941_v11, %v3964_v18  ;;  %v9548_v52 = vpop.permute.xlu0 %3818  ;;  %v5344_v24 = vrot.slane %v9419_v26, 4  ;;  %v3893_v26 = vrot.slane %v9432_v63, 4  ;;  %p6960_p9 = pnand %p6959_p7, %p6953_p2 }
 0x546   : > { %v3958_v32 = vrot.slane %v3945_v53, 4 }
 0x548   : > { %v3966_v47 = vsel %vm428_vm11, %v3958_v32, %v3959_v28 }
 0x549   : > { %5633 = vrot.lane.b32.xlu1 %v5617_v48, %s9993_s27  ;;  %v3967_v22 = vsel %vm10093_vm14, %v3945_v53, %v3966_v47  ;;  %v5386_v25 = vpop.permute.xlu1 %5385  ;;  %v9558_v43 = vpop.permute.xlu0 %5763  ;;  %v5809_v47 = vmul.bf16 %v9474_v42, %v10094_v14 }
 0x54a   : > { %v6635_v4 = vcombine.low %v3965_v12, %v3967_v22  ;;  %v6636_v0 = vcombine.high %v3965_v12, %v3967_v22  ;;  %v5401_v41 = vrot.slane %v5386_v25, 4  ;;  %v6857_v12 = vld [vmem:[#allocation9 + $0x64] ss:$12 sps:$4 sm:$0xff]   ;;  %v3895_v22 = vrot.slane %v9446_v9, 4 }
 0x54b   : > { %6158 = vmatprep.mubr.bf16.mxu0 %v6857_v12 }
 0x54c   : > { %5209 = vmatprep.subr.bf16.mxu1 %v6636_v0  ;;  %v5409_v46 = vsel %vm428_vm11, %v5401_v41, %v5402_v38 }
 0x54d   : > { %5637 = vrot.lane.b32.xlu1 %v5619_v15, %s9993_s27  ;;  %5210 = vmatpush2.bf16.msra.mxu1 %v6635_v4  ;;  %v5390_v33 = vpop.permute.xlu1 %5389  ;;  %v5410_v27 = vsel %vm521_vm5, %v5386_v25, %v5409_v46  ;;  %v9567_v18 = vpop.permute.xlu0 %5767  ;;  %v5338_v46 = vrot.slane %v9462_v62, 4  ;;  %v6242_v62 = vld [vmem:[%s9760_s5 + $0x10] sm:$0xff] }
 0x54e   : > { %v5403_v54 = vrot.slane %v5390_v33, 4 }
 0x550   : > { %v5411_v17 = vsel %vm428_vm11, %v5403_v54, %v5404_v61  ;;  %v6240_v54 = vld [vmem:[%s9760_s5] sm:$0xff] }
 0x551   : > { %5577 = vrot.lane.b32.xlu1 %v9495_v59, %s10029_s29  ;;  %v5412_v37 = vsel %vm521_vm5, %v5390_v33, %v5411_v17  ;;  %v3885_v34 = vpop.permute.xlu1 %3884  ;;  %v9578_v0 = vpop.permute.xlu0 %3758  ;;  %vm10095_vm5 = vmmov %vm10092_vm1 }
 0x552   : > { %v6655_v58 = vcombine.low %v5410_v27, %v5412_v37  ;;  %v6656_v8 = vcombine.high %v5410_v27, %v5412_v37  ;;  %v3896_v45 = vrot.slane %v3885_v34, 4  ;;  %v5340_v27 = vrot.slane %v9476_v51, 4 }
 0x554   : > { %6136 = vmatprep.subr.bf16.mxu0 %v6656_v8  ;;  %v3904_v6 = vsel %vm428_vm11, %v3896_v45, %v3897_v40 }
 0x555   : > { %5581 = vrot.lane.b32.xlu1 %v9503_v13, %s10029_s29  ;;  %6137 = vmatpush1.bf16.msra.mxu0 %v6655_v58  ;;  %v3889_v3 = vpop.permute.xlu1 %3888  ;;  %v3905_v36 = vsel %vm572_vm2, %v3885_v34, %v3904_v6 }
 0x556   : > { %v3898_v49 = vrot.slane %v3889_v3, 4 }
 0x558   : > { %v3906_v60 = vsel %vm428_vm11, %v3898_v49, %v3899_v7  ;;  %v3835_v49 = vrot.slane %v9505_v2, 4 }
 0x559   : > { %5833 = vrot.lane.b32.xlu1 %v5813_v5, %s9916_s17  ;;  %v3907_v19 = vsel %vm572_vm2, %v3889_v3, %v3906_v60  ;;  %v3833_v5 = vrot.slane %v9489_v1, 4 }
 0x55a   : > { %v6633_v59 = vcombine.low %v3905_v36, %v3907_v19  ;;  %v6634_v57 = vcombine.high %v3905_v36, %v3907_v19 }
 0x55b   : > { %v5330_v30 = vpop.permute.xlu1 %5329 }
 0x55c   : > { %v5341_v16 = vrot.slane %v5330_v30, 4  ;;  %5211 = vmatprep.subr.bf16.mxu1 %v6634_v57 }
 0x55d   : > { %5837 = vrot.lane.b32.xlu1 %v5815_v44, %s9916_s17  ;;  %5212 = vmatpush2.bf16.msra.mxu1 %v6633_v59 }
 0x55e   : > { %v5349_v50 = vsel %vm428_vm11, %v5341_v16, %v5342_v20 }
 0x55f   : > { %v5334_v11 = vpop.permute.xlu1 %5333  ;;  %v5350_v55 = vsel %vm430_vm13, %v5330_v30, %v5349_v50 }
 0x560   : > { %v5343_v21 = vrot.slane %v5334_v11, 4 }
 0x561   : > { %5569 = vrot.lane.b32.xlu1 %v9474_v42, %s10029_s29  ;;  %v5811_v42 = vmul.bf16 %v9485_v10, %v10094_v14 }
 0x562   : > { %v5351_v13 = vsel %vm428_vm11, %v5343_v21, %v5344_v24  ;;  %v5784_v24 = vrot.slane %v9528_v23, 4 }
 0x563   : > { %v5352_v56 = vsel %vm430_vm13, %v5334_v11, %v5351_v13  ;;  %v3877_v31 = vpop.permute.xlu1 %3876  ;;  %v5782_v11 = vrot.slane %v9516_v29, 4 }
 0x564   : > { %v6653_v53 = vcombine.low %v5350_v55, %v5352_v56  ;;  %v6654_v48 = vcombine.high %v5350_v55, %v5352_v56  ;;  %v3892_v28 = vrot.slane %v3877_v31, 4 }
 0x565   : > { %5573 = vrot.lane.b32.xlu1 %v9485_v10, %s10029_s29  ;;  %v9591_v10 = vpop.permute.xlu0 %3762 }
 0x566   : > { %6138 = vmatprep.subr.bf16.mxu0 %v6654_v48  ;;  %v3900_v25 = vsel %vm428_vm11, %v3892_v28, %v3893_v26  ;;  %v3829_v26 = vrot.slane %v9537_v39, 4 }
 0x567   : > { %6139 = vmatpush1.bf16.msra.mxu0 %v6653_v53  ;;  %v3881_v32 = vpop.permute.xlu1 %3880  ;;  %v3901_v63 = vsel %vm572_vm2, %v3877_v31, %v3900_v25 }
 0x568   : > { %v3894_v15 = vrot.slane %v3881_v32, 4 }
 0x569   : > { %5825 = vrot.lane.b32.xlu1 %v5809_v47, %s9916_s17  ;;  %v9600_v7 = vpop.permute.xlu0 %5707 }
 0x56a   : > { %v3902_v4 = vsel %vm428_vm11, %v3894_v15, %v3895_v22 }
 0x56b   : > { %v3903_v41 = vsel %vm572_vm2, %v3881_v32, %v3902_v4  ;;  %v5322_v38 = vpop.permute.xlu1 %5321  ;;  %v3831_v32 = vrot.slane %v9548_v52, 4 }
 0x56c   : > { %v6631_v33 = vcombine.low %v3901_v63, %v3903_v41  ;;  %v6632_v9 = vcombine.high %v3901_v63, %v3903_v41  ;;  %v5337_v61 = vrot.slane %v5322_v38, 4 }
 0x56d   : > { %5829 = vrot.lane.b32.xlu1 %v5811_v42, %s9916_s17  ;;  %v9607_v20 = vpop.permute.xlu0 %5711  ;;  %v5778_v42 = vrot.slane %v9558_v43, 4 }
 0x56e   : > { %5213 = vmatprep.subr.bf16.mxu1 %v6632_v9  ;;  %v5345_v37 = vsel %vm428_vm11, %v5337_v61, %v5338_v46  ;;  %v5780_v9 = vrot.slane %v9567_v18, 4  ;;  %v3771_v18 = vrot.slane %v9591_v10, 4 }
 0x56f   : > { %5214 = vmatpush2.bf16.msra.mxu1 %v6631_v33  ;;  %v5326_v17 = vpop.permute.xlu1 %5325  ;;  %v5346_v8 = vsel %vm430_vm13, %v5322_v38, %v5345_v37 }
 0x570   : > { %v5339_v34 = vrot.slane %v5326_v17, 4 }
 0x571   : > { %6246 = vperm.xlu1 %6796, %v6240_v54   ;;  %v9613_v55 = vpop.permute.xlu0 %3750 }
 0x572   : > { %v5347_v58 = vsel %vm428_vm11, %v5339_v34, %v5340_v27 }
 0x573   : > { %v5348_v45 = vsel %vm430_vm13, %v5326_v17, %v5347_v58  ;;  %v3821_v40 = vpop.permute.xlu1 %3820  ;;  %vm10096_vm13 = vmmov %vm10092_vm1  ;;  %vm10107_vm1 = vcmask 261120  }
 0x574   : > { %v6651_v3 = vcombine.low %v5346_v8, %v5348_v45  ;;  %v6652_v14 = vcombine.high %v5346_v8, %v5348_v45  ;;  %v3832_v51 = vrot.slane %v3821_v40, 4  ;;  %v3769_v8 = vrot.slane %v9578_v0, 4  ;;  %vm10108_vm14 = vmmov %vm10107_vm1 }
 0x575   : > { %6256 = vperm.xlu1 %6796, %v6242_v62   ;;  %v9620_v22 = vpop.permute.xlu0 %3754 }
 0x576   : > { %6140 = vmatprep.subr.bf16.mxu0 %v6652_v14  ;;  %v3840_v60 = vsel %vm428_vm11, %v3832_v51, %v3833_v5 }
 0x577   : > { %6141 = vmatpush1.bf16.msra.mxu0 %v6651_v3  ;;  %v3825_v6 = vpop.permute.xlu1 %3824  ;;  %v3841_v30 = vsel %vm663_vm4, %v3821_v40, %v3840_v60 }
 0x578   : > { %v3834_v36 = vrot.slane %v3825_v6, 4 }
 0x579   : > { %v9626_v33 = vpop.permute.xlu0 %5699 }
 0x57a   : > { %v3842_v19 = vsel %vm428_vm11, %v3834_v36, %v3835_v49 }
 0x57b   : > { %v3843_v44 = vsel %vm663_vm4, %v3825_v6, %v3842_v19  ;;  %v5770_v59 = vpop.permute.xlu1 %5769  ;;  %v5718_v19 = vrot.slane %v9600_v7, 4  ;;  %v3765_v7 = vrot.slane %v9613_v55, 4 }
 0x57c   : > { %v6629_v57 = vcombine.low %v3841_v30, %v3843_v44  ;;  %v6630_v16 = vcombine.high %v3841_v30, %v3843_v44  ;;  %v5781_v1 = vrot.slane %v5770_v59, 4  ;;  %v5720_v30 = vrot.slane %v9607_v20, 4 }
 0x57d   : > { %v5704_v62 = vpop.permute.xlu0 %5703 }
 0x57e   : > { %5215 = vmatprep.subr.bf16.mxu1 %v6630_v16  ;;  %v5789_v50 = vsel %vm428_vm11, %v5781_v1, %v5782_v11 }
 0x57f   : > { %5216 = vmatpush2.bf16.msra.mxu1 %v6629_v57  ;;  %v5774_v2 = vpop.permute.xlu1 %5773  ;;  %v5790_v56 = vsel %vm10095_vm5, %v5770_v59, %v5789_v50 }
 0x580   : > { %v5783_v21 = vrot.slane %v5774_v2, 4 }
 0x581   : > { %v9637_v51 = vpop.permute.xlu0 %5643 }
 0x582   : > { %v5791_v13 = vsel %vm428_vm11, %v5783_v21, %v5784_v24 }
 0x583   : > { %v5792_v31 = vsel %vm10096_vm13, %v5774_v2, %v5791_v13  ;;  %v3813_v53 = vpop.permute.xlu1 %3812 }
 0x584   : > { %v6681_v48 = vcombine.low %v5790_v56, %v5792_v31  ;;  %v6682_v28 = vcombine.high %v5790_v56, %v5792_v31  ;;  %v3828_v29 = vrot.slane %v3813_v53, 4  ;;  %v3767_v56 = vrot.slane %v9620_v22, 4 }
 0x585   : > { %v5648_v57 = vpop.permute.xlu0 %5647 }
 0x586   : > { %6142 = vmatprep.subr.bf16.mxu0 %v6682_v28  ;;  %v3836_v47 = vsel %vm428_vm11, %v3828_v29, %v3829_v26 }
 0x587   : > { %6143 = vmatpush2.bf16.msra.mxu0 %v6681_v48  ;;  %v3817_v23 = vpop.permute.xlu1 %3816  ;;  %v3837_v15 = vsel %vm663_vm4, %v3813_v53, %v3836_v47 }
 0x588   : > { %v3830_v12 = vrot.slane %v3817_v23, 4 }
 0x589   : > { %v5636_v13 = vpop.permute.xlu0 %5635 }
 0x58a   : > { %v3838_v25 = vsel %vm428_vm11, %v3830_v12, %v3831_v32  ;;  %v5714_v12 = vrot.slane %v9626_v33, 4 }
 0x58b   : > { %v3839_v4 = vsel %vm663_vm4, %v3817_v23, %v3838_v25  ;;  %v5762_v63 = vpop.permute.xlu1 %5761  ;;  %v6848_v25 = vld [vmem:[#allocation9] ss:$12 sps:$4 sm:$0xff]  }
 0x58c   : > { %v6627_v41 = vcombine.low %v3837_v15, %v3839_v4  ;;  %v6628_v38 = vcombine.high %v3837_v15, %v3839_v4  ;;  %v5777_v39 = vrot.slane %v5762_v63, 4  ;;  %v6851_v15 = vld [vmem:[#allocation9 + $0x1c] ss:$12 sps:$4 sm:$0xff]   ;;  %v5716_v4 = vrot.slane %v5704_v62, 4 }
 0x58d   : > { %v5640_v55 = vpop.permute.xlu0 %5639 }
 0x58e   : > { %5217 = vmatprep.subr.bf16.mxu1 %v6628_v38  ;;  %v5785_v61 = vsel %vm428_vm11, %v5777_v39, %v5778_v42 }
 0x58f   : > { %5218 = vmatpush2.bf16.msra.mxu1 %v6627_v41  ;;  %v5766_v52 = vpop.permute.xlu1 %5765  ;;  %v5786_v17 = vsel %vm10097_vm12, %v5762_v63, %v5785_v61 }
 0x590   : > { %v5779_v46 = vrot.slane %v5766_v52, 4 }
 0x591   : > { %v5580_v39 = vpop.permute.xlu0 %5579 }
 0x592   : > { %v5787_v54 = vsel %vm428_vm11, %v5779_v46, %v5780_v9 }
 0x593   : > { %v5788_v27 = vsel %vm10098_vm15, %v5766_v52, %v5787_v54  ;;  %v3757_v37 = vpop.permute.xlu1 %3756  ;;  %v5654_v54 = vrot.slane %v9637_v51, 4  ;;  %v5650_v51 = vrot.slane %v5636_v13, 4 }
 0x594   : > { %v6679_v34 = vcombine.low %v5786_v17, %v5788_v27  ;;  %v6680_v58 = vcombine.high %v5786_v17, %v5788_v27  ;;  %v3768_v43 = vrot.slane %v3757_v37, 4  ;;  %v6853_v17 = vld [vmem:[#allocation9 + $0x18] ss:$12 sps:$4 sm:$0xff]  }
 0x596   : > { %6144 = vmatprep.subr.bf16.mxu0 %v6680_v58  ;;  %v3776_v40 = vsel %vm428_vm11, %v3768_v43, %v3769_v8  ;;  %v5584_v43 = vpop.permute.xlu0 %5583 }
 0x597   : > { %6145 = vmatpush2.bf16.msra.mxu0 %v6679_v34  ;;  %v3761_v45 = vpop.permute.xlu1 %3760  ;;  %v3777_v5 = vsel %vm10099_vm10, %v3757_v37, %v3776_v40  ;;  %v5656_v37 = vrot.slane %v5648_v57, 4 }
 0x598   : > { %v3770_v3 = vrot.slane %v3761_v45, 4 }
 0x59a   : > { %v3778_v14 = vsel %vm428_vm11, %v3770_v3, %v3771_v18 }
 0x59b   : > { %v3779_v6 = vsel %vm10100_vm6, %v3761_v45, %v3778_v14  ;;  %v5706_v49 = vpop.permute.xlu1 %5705 }
 0x59c   : > { %v6625_v60 = vcombine.low %v3777_v5, %v3779_v6  ;;  %v6626_v36 = vcombine.high %v3777_v5, %v3779_v6  ;;  %v5717_v0 = vrot.slane %v5706_v49, 4  ;;  %v5836_v5 = vpop.permute.xlu0 %5835 }
 0x59e   : > { %5219 = vmatprep.subr.bf16.mxu1 %v6626_v36  ;;  %v5725_v44 = vsel %vm428_vm11, %v5717_v0, %v5718_v19 }
 0x59f   : > { %5220 = vmatpush2.bf16.msra.mxu1 %v6625_v60  ;;  %v5710_v10 = vpop.permute.xlu1 %5709  ;;  %v5726_v1 = vsel %vm572_vm2, %v5706_v49, %v5725_v44  ;;  %v5652_v49 = vrot.slane %v5640_v55, 4  ;;  %v5590_v44 = vrot.slane %v5580_v39, 4 }
 0x5a0   : > { %v5719_v59 = vrot.slane %v5710_v10, 4 }
 0x5a2   : > { %v5727_v16 = vsel %vm428_vm11, %v5719_v59, %v5720_v30 }
 0x5a3   : > { %v5728_v11 = vsel %vm572_vm2, %v5710_v10, %v5727_v16  ;;  %v3749_v2 = vpop.permute.xlu1 %3748 }
 0x5a4   : > { %v6677_v24 = vcombine.low %v5726_v1, %v5728_v11  ;;  %v6678_v50 = vcombine.high %v5726_v1, %v5728_v11  ;;  %v3764_v21 = vrot.slane %v3749_v2, 4  ;;  %v5840_v1 = vpop.permute.xlu0 %5839  ;;  %v5592_v11 = vrot.slane %v5584_v43, 4  ;;  %v6855_v43 = vld [vmem:[#allocation9 + $0x60] ss:$12 sps:$4 sm:$0xff]  }
 0x5a6   : > { %6146 = vmatprep.subr.bf16.mxu0 %v6678_v50  ;;  %v3772_v31 = vsel %vm428_vm11, %v3764_v21, %v3765_v7 }
 0x5a7   : > { %6147 = vmatpush2.bf16.msra.mxu0 %v6677_v24  ;;  %v3753_v20 = vpop.permute.xlu1 %3752  ;;  %v3773_v28 = vsel %vm10101_vm8, %v3749_v2, %v3772_v31 }
 0x5a8   : > { %v3766_v53 = vrot.slane %v3753_v20, 4  ;;  %v5572_v7 = vpop.permute.xlu0 %5571 }
 0x5aa   : > { %v3774_v48 = vsel %vm428_vm11, %v3766_v53, %v3767_v56 }
 0x5ab   : > { %v3775_v29 = vsel %vm10102_vm7, %v3753_v20, %v3774_v48  ;;  %v5698_v26 = vpop.permute.xlu1 %5697 }
 0x5ac   : > { %v6623_v23 = vcombine.low %v3773_v28, %v3775_v29  ;;  %v6624_v32 = vcombine.high %v3773_v28, %v3775_v29  ;;  %v5713_v47 = vrot.slane %v5698_v26, 4  ;;  %v5846_v28 = vrot.slane %v5836_v5, 4 }
 0x5ae   : > { %5221 = vmatprep.subr.bf16.mxu1 %v6624_v32  ;;  %v5721_v63 = vsel %vm428_vm11, %v5713_v47, %v5714_v12  ;;  %v5576_v47 = vpop.permute.xlu0 %5575 }
 0x5af   : > { %5222 = vmatpush2.bf16.msra.mxu1 %v6623_v23  ;;  %v5702_v22 = vpop.permute.xlu1 %5701  ;;  %v5722_v42 = vsel %vm572_vm2, %v5698_v26, %v5721_v63  ;;  %v5848_v26 = vrot.slane %v5840_v1, 4 }
 0x5b0   : > { %v5715_v41 = vrot.slane %v5702_v22, 4 }
 0x5b2   : > { %v5723_v38 = vsel %vm428_vm11, %v5715_v41, %v5716_v4  ;;  %5224 = vmatmul.mubr.bf16.vlgmr.msra.gmra.mxu1 %v6848_v25  ;;  %v5828_v39 = vpop.permute.xlu0 %5827 }
 0x5b3   : > { %v5724_v52 = vsel %vm572_vm2, %v5702_v22, %v5723_v38  ;;  %v5642_v9 = vpop.permute.xlu1 %5641  ;;  %5233 = vmatprep.mubr.bf16.mxu1 %v6851_v15  ;;  %vm10103_vm2 = vmmov %vm10100_vm6  ;;  %v5586_v15 = vrot.slane %v5572_v7, 4  ;;  %v5588_v38 = vrot.slane %v5576_v47, 4 }
 0x5b4   : > { %v6675_v33 = vcombine.low %v5722_v42, %v5724_v52  ;;  %v6676_v61 = vcombine.high %v5722_v42, %v5724_v52  ;;  %v5653_v46 = vrot.slane %v5642_v9, 4  ;;  %vm10104_vm9 = vmmov %vm10103_vm2 }
 0x5b5   : > { %vm10106_vm3 = vmmov %vm10103_vm2 }
 0x5b6   : > { %6148 = vmatprep.subr.bf16.mxu0 %v6676_v61  ;;  %v5661_v34 = vsel %vm428_vm11, %v5653_v46, %v5654_v54 }
 0x5b7   : > { %6149 = vmatpush2.bf16.msra.mxu0 %v6675_v33  ;;  %v5646_v27 = vpop.permute.xlu1 %5645  ;;  %v5662_v8 = vsel %vm663_vm4, %v5642_v9, %v5661_v34  ;;  %v5832_v34 = vpop.permute.xlu0 %5831 }
 0x5b8   : > { %v5655_v58 = vrot.slane %v5646_v27, 4 }
 0x5ba   : > { %v5663_v62 = vsel %vm428_vm11, %v5655_v58, %v5656_v37  ;;  %5234 = vmatmul.mubr.bf16.gmra.mxu1 %v6853_v17  ;;  %v5842_v58 = vrot.slane %v5828_v39, 4 }
 0x5bb   : > { %v5664_v45 = vsel %vm663_vm4, %v5646_v27, %v5663_v62  ;;  %v5634_v18 = vpop.permute.xlu1 %5633  ;;  %6211 = vmatprep.mubr.bf16.mxu1 %v10062_v35 }
 0x5bc   : > { %v6673_v40 = vcombine.low %v5662_v8, %v5664_v45  ;;  %v6674_v3 = vcombine.high %v5662_v8, %v5664_v45  ;;  %v5649_v14 = vrot.slane %v5634_v18, 4  ;;  %v6859_v8 = vld [vmem:[#allocation9 + $0x7c] ss:$12 sps:$4 sm:$0xff]   ;;  %v5844_v45 = vrot.slane %v5832_v34, 4 }
 0x5be   : > { %6150 = vmatprep.subr.bf16.mxu0 %v6674_v3  ;;  %v5657_v60 = vsel %vm428_vm11, %v5649_v14, %v5650_v51 }
 0x5bf   : > { %6151 = vmatpush2.bf16.msra.mxu0 %v6673_v40  ;;  %v5638_v6 = vpop.permute.xlu1 %5637  ;;  %v5658_v19 = vsel %vm663_vm4, %v5634_v18, %v5657_v60  ;;  %v6861_v60 = vld [vmem:[#allocation9 + $0x78] ss:$12 sps:$4 sm:$0xff]  }
 0x5c0   : > { %v5651_v36 = vrot.slane %v5638_v6, 4 }
 0x5c2   : > { %v5659_v0 = vsel %vm428_vm11, %v5651_v36, %v5652_v49  ;;  %v6858_v49 = vld [vmem:[#allocation9 + $0x68] ss:$12 sps:$4 sm:$0xff]   ;;  %v6862_v36 = vld [vmem:[#allocation9 + $0x80] ss:$12 sps:$4 sm:$0xff]  }
 0x5c3   : > { %v5660_v10 = vsel %vm663_vm4, %v5638_v6, %v5659_v0  ;;  %v5578_v30 = vpop.permute.xlu1 %5577  ;;  %vm10105_vm4 = vmmov %vm10103_vm2 }
 0x5c4   : > { %v6671_v59 = vcombine.low %v5658_v19, %v5660_v10  ;;  %v6672_v57 = vcombine.high %v5658_v19, %v5660_v10  ;;  %v5589_v16 = vrot.slane %v5578_v30, 4  ;;  %v4956_v10 = vpop.f32.mrf.mxu1 }
 0x5c6   : > { %6152 = vmatprep.subr.bf16.mxu0 %v6672_v57  ;;  %v5597_v24 = vsel %vm428_vm11, %v5589_v16, %v5590_v44  ;;  %v4958_v44 = vpop.f32.mrf.mxu1 }
 0x5c7   : > { %6153 = vmatpush2.bf16.msra.mxu0 %v6671_v59  ;;  %v5582_v2 = vpop.permute.xlu1 %5581  ;;  %v5598_v13 = vsel %vm10103_vm2, %v5578_v30, %v5597_v24 }
 0x5c8   : > { %v5591_v50 = vrot.slane %v5582_v2, 4  ;;  %v4960_v57 = vpop.f32.mrf.mxu1 }
 0x5ca   : > { %v5599_v21 = vsel %vm428_vm11, %v5591_v50, %v5592_v11  ;;  %v4903_v0 = vpop.f32.mrf.mxu0  ;;  %v4962_v1 = vpop.f32.mrf.mxu1 }
 0x5cb   : > { %v5600_v20 = vsel %vm10104_vm9, %v5582_v2, %v5599_v21  ;;  %v5834_v56 = vpop.permute.xlu1 %5833 }
 0x5cc   : > { %v6669_v31 = vcombine.low %v5598_v13, %v5600_v20  ;;  %v6670_v53 = vcombine.high %v5598_v13, %v5600_v20  ;;  %v5845_v48 = vrot.slane %v5834_v56, 4  ;;  %v4905_v19 = vpop.f32.mrf.mxu0 }
 0x5ce   : > { %6154 = vmatprep.subr.bf16.mxu0 %v6670_v53  ;;  %v5853_v23 = vsel %vm428_vm11, %v5845_v48, %v5846_v28  ;;  %v4907_v30 = vpop.f32.mrf.mxu0 }
 0x5cf   : > { %6155 = vmatpush2.bf16.msra.mxu0 %v6669_v31  ;;  %v5838_v29 = vpop.permute.xlu1 %5837  ;;  %v5854_v12 = vsel %vm384_vm0, %v5834_v56, %v5853_v23 }
 0x5d0   : > { %v5847_v32 = vrot.slane %v5838_v29, 4  ;;  %v4909_v59 = vpop.f32.mrf.mxu0 }
 0x5d2   : > { %v5855_v55 = vsel %vm428_vm11, %v5847_v32, %v5848_v26  ;;  %v4913_v16 = vpop.f32.mrf.mxu0 }
 0x5d3   : > { %v5856_v25 = vsel %vm384_vm0, %v5838_v29, %v5855_v55  ;;  %v5570_v22 = vpop.permute.xlu1 %5569 }
 0x5d4   : > { %v6685_v4 = vcombine.low %v5854_v12, %v5856_v25  ;;  %v6686_v63 = vcombine.high %v5854_v12, %v5856_v25  ;;  %v5585_v41 = vrot.slane %v5570_v22, 4  ;;  %v4915_v11 = vpop.f32.mrf.mxu0 }
 0x5d6   : > { %6191 = vmatprep.subr.bf16.mxu1 %v6686_v63  ;;  %v5593_v52 = vsel %vm428_vm11, %v5585_v41, %v5586_v15  ;;  %v4917_v24 = vpop.f32.mrf.mxu0  ;;  %v4959_v41 = vadd.f32 %v4958_v44, %v4905_v19 }
 0x5d7   : > { %6192 = vmatpush1.bf16.msra.mxu1 %v6685_v4  ;;  %v5574_v42 = vpop.permute.xlu1 %5573  ;;  %v5594_v61 = vsel %vm10105_vm4, %v5570_v22, %v5593_v52  ;;  %v4957_v4 = vadd.f32 %v4956_v10, %v4903_v0  ;;  %v4961_v52 = vadd.f32 %v4960_v57, %v4907_v30 }
 0x5d8   : > { %v5587_v9 = vrot.slane %v5574_v42, 4  ;;  %v4919_v21 = vpop.f32.mrf.mxu0 }
 0x5da   : > { %v5595_v33 = vsel %vm428_vm11, %v5587_v9, %v5588_v38  ;;  %v5278_v13 = vpop.f32.mrf.mxu0 }
 0x5db   : > { %v5596_v46 = vsel %vm10106_vm3, %v5574_v42, %v5595_v33  ;;  %v5826_v54 = vpop.permute.xlu1 %5825 }
 0x5dc   : > { %v6667_v17 = vcombine.low %v5594_v61, %v5596_v46  ;;  %v6668_v27 = vcombine.high %v5594_v61, %v5596_v46  ;;  %v5841_v37 = vrot.slane %v5826_v54, 4  ;;  %v5280_v20 = vpop.f32.mrf.mxu0  ;;  %v4963_v61 = vadd.f32 %v4962_v1, %v4909_v59  ;;  %v6252_v59 = vpop.permute.xlu0 %6251 }
 0x5de   : > { %6156 = vmatprep.subr.bf16.mxu0 %v6668_v27  ;;  %v5849_v18 = vsel %vm428_vm11, %v5841_v37, %v5842_v58  ;;  %v5282_v31 = vpop.f32.mrf.mxu0 }
 0x5df   : > { %6157 = vmatpush2.bf16.msra.mxu0 %v6667_v17  ;;  %v5830_v62 = vpop.permute.xlu1 %5829  ;;  %v5850_v14 = vsel %vm384_vm0, %v5826_v54, %v5849_v18  ;;  %v4966_v2 = vpop.f32.mrf.mxu1 }
 0x5e0   : > { %v5843_v40 = vrot.slane %v5830_v62, 4  ;;  %v5284_v48 = vpop.f32.mrf.mxu0  ;;  %v4967_v27 = vadd.f32 %v4966_v2, %v4913_v16 }
 0x5e1   : > { %v4968_v50 = vpop.f32.mrf.mxu1 }
 0x5e2   : > { %v5851_v3 = vsel %vm428_vm11, %v5843_v40, %v5844_v45  ;;  %6159 = vmatmul.mubr.bf16.vlgmr.msra.gmra.mxu0 %v6855_v43  ;;  %v4969_v18 = vadd.f32 %v4968_v50, %v4915_v11 }
 0x5e3   : > { %v5852_v51 = vsel %vm384_vm0, %v5830_v62, %v5851_v3  ;;  %6168 = vmatprep.mubr.bf16.mxu0 %v6859_v8  ;;  %v4970_v7 = vpop.f32.mrf.mxu1 }
 0x5e4   : > { %v6683_v5 = vcombine.low %v5850_v14, %v5852_v51  ;;  %v6684_v6 = vcombine.high %v5850_v14, %v5852_v51 }
 0x5e6   : > { %6193 = vmatprep.subr.bf16.mxu1 %v6684_v6 }
 0x5e7   : > { %6194 = vmatpush1.bf16.msra.mxu1 %v6683_v5  ;;  %v5288_v29 = vpop.f32.mrf.mxu0 }
 0x5e9   : > { %v5290_v23 = vpop.f32.mrf.mxu0 }
 0x5ea   : > { %6687 = vmatmul.mubr.msk.bf16.vlgmr.msra.gmra.mxu1 %vm10107_vm1, %v6858_v49  ;;  %6169 = vmatmul.mubr.bf16.gmra.mxu0 %v6861_v60  ;;  %v4971_v49 = vadd.f32 %v4970_v7, %v4917_v24 }
 0x5eb   : > { %6221 = vmatprep.mubr.bf16.mxu1 %v10062_v35  ;;  %v4972_v35 = vpop.f32.mrf.mxu1  ;;  %v9687_v47 = vpop.f32.mrf.mxu0 }
 0x5ec   : > { %v6247_v45 = vpop.permute.xlu1 %6246  ;;  %v4973_v57 = vadd.f32 %v4972_v35, %v4919_v21 }
 0x5ed   : > { %v9689_v12 = vpop.f32.mrf.mxu0 }
 0x5f0   : > { %v6257_v21 = vpop.permute.xlu1 %6256 }
 0x5f2   : > { %6688 = vmatmul.mubr.msk.bf16.gmra.mxu1 %vm10108_vm14, %v6862_v36 }
 0x672   : > { %v5225_v56 = vpop.f32.mrf.mxu1 }
 0x673   : > { %v5226_v38 = vadd.f32 %v5225_v56, %v4957_v4 }
 0x674   : > { %v5227_v53 = vpop.f32.mrf.mxu1 }
 0x675   : > { %v5228_v9 = vadd.f32 %v5227_v53, %v4959_v41  ;;  %v5279_v46 = vadd.f32 %v5278_v13, %v5226_v38 }
 0x676   : > { %v5229_v28 = vpop.f32.mrf.mxu1 }
 0x677   : > { %v5230_v54 = vadd.f32 %v5229_v28, %v4961_v52  ;;  %v5281_v58 = vadd.f32 %v5280_v20, %v5228_v9 }
 0x678   : > { %v5231_v26 = vpop.f32.mrf.mxu1 }
 0x679   : > { %v5232_v43 = vadd.f32 %v5231_v26, %v4963_v61  ;;  %v5283_v14 = vadd.f32 %v5282_v31, %v5230_v54 }
 0x67a   : > { %v5235_v32 = vpop.f32.mrf.mxu1 }
 0x67b   : > { %v5236_v40 = vadd.f32 %v5235_v32, %v4967_v27  ;;  %v5285_v19 = vadd.f32 %v5284_v48, %v5232_v43 }
 0x67c   : > { %v5237_v55 = vpop.f32.mrf.mxu1 }
 0x67d   : > { %v5238_v60 = vadd.f32 %v5237_v55, %v4969_v18  ;;  %v5289_v16 = vadd.f32 %v5288_v29, %v5236_v40 }
 0x67e   : > { %v5239_v22 = vpop.f32.mrf.mxu1 }
 0x67f   : > { %v5240_v11 = vadd.f32 %v5239_v22, %v4971_v49  ;;  %v5291_v7 = vadd.f32 %v5290_v23, %v5238_v60 }
 0x680   : > { %v5241_v39 = vpop.f32.mrf.mxu1 }
 0x681   : > { %v5242_v56 = vadd.f32 %v5241_v39, %v4973_v57  ;;  %v5293_v28 = vadd.f32 %v9687_v47, %v5240_v11 }
 0x6a2   : > { %v6160_v25 = vpop.f32.mrf.mxu0 }
 0x6a4   : > { %v6162_v15 = vpop.f32.mrf.mxu0 }
 0x6a6   : > { %v6164_v63 = vpop.f32.mrf.mxu0 }
 0x6a8   : > { %v6166_v42 = vpop.f32.mrf.mxu0 }
 0x6aa   : > { %v6213_v33 = vpop.f32.mrf.mxu1  ;;  %v6170_v34 = vpop.f32.mrf.mxu0 }
 0x6ab   : > { %v6214_v17 = vadd.f32 %v6213_v33, %v6160_v25  ;;  %v5295_v25 = vadd.f32 %v9689_v12, %v5242_v56 }
 0x6ac   : > { %v6215_v37 = vpop.f32.mrf.mxu1  ;;  %v6172_v0 = vpop.f32.mrf.mxu0 }
 0x6ad   : > { %v6232_v62 = vadd.f32 %v6214_v17, %v5279_v46  ;;  %v6216_v8 = vadd.f32 %v6215_v37, %v6162_v15 }
 0x6ae   : > { %v6217_v3 = vpop.f32.mrf.mxu1  ;;  %v6174_v20 = vpop.f32.mrf.mxu0 }
 0x6af   : > { %v6264_v51 = vadd.f32 %v6247_v45, %v6232_v62  ;;  %v6233_v5 = vadd.f32 %v6216_v8, %v5281_v58  ;;  %v6218_v6 = vadd.f32 %v6217_v3, %v6164_v63  ;;  %v6262_v63 = vpop.permute.xlu0 %6261 }
 0x6b0   : > { %v6219_v36 = vpop.f32.mrf.mxu1  ;;  %v6176_v23 = vpop.f32.mrf.mxu0 }
 0x6b1   : > { %6272 = vst [vmem:[%s9693_s18] sm:$0xff] %v6264_v51  ;;  %v6265_v10 = vadd.f32 %v6247_v45, %v6233_v5  ;;  %v6234_v30 = vadd.f32 %v6218_v6, %v5283_v14  ;;  %v6220_v44 = vadd.f32 %v6219_v36, %v6166_v42 }
 0x6b2   : > { %v6223_v1 = vpop.f32.mrf.mxu1 }
 0x6b3   : > { %6273 = vst [vmem:[%s9693_s18 + $0x8] sm:$0xff] %v6265_v10  ;;  %v6266_v2 = vadd.f32 %v6252_v59, %v6234_v30  ;;  %v6235_v24 = vadd.f32 %v6220_v44, %v5285_v19  ;;  %v6224_v50 = vadd.f32 %v6223_v1, %v6170_v34 }
 0x6b4   : > { %v6225_v13 = vpop.f32.mrf.mxu1 }
 0x6b5   : > { %6274 = vst [vmem:[%s9693_s18 + $0x10] sm:$0xff] %v6266_v2  ;;  %v6267_v31 = vadd.f32 %v6252_v59, %v6235_v24  ;;  %v6236_v53 = vadd.f32 %v6224_v50, %v5289_v16  ;;  %v6226_v48 = vadd.f32 %v6225_v13, %v6172_v0 }
 0x6b6   : > { %v6227_v35 = vpop.f32.mrf.mxu1 }
 0x6b7   : > { %6275 = vst [vmem:[%s9693_s18 + $0x18] sm:$0xff] %v6267_v31  ;;  %v6268_v29 = vadd.f32 %v6257_v21, %v6236_v53  ;;  %v6237_v26 = vadd.f32 %v6226_v48, %v5291_v7  ;;  %v6228_v32 = vadd.f32 %v6227_v35, %v6174_v20 }
 0x6b8   : > { %v6229_v55 = vpop.f32.mrf.mxu1 }
 0x6b9   : > { %6276 = vst [vmem:[%s9693_s18 + $0x20] sm:$0xff] %v6268_v29  ;;  %v6269_v22 = vadd.f32 %v6257_v21, %v6237_v26  ;;  %v6238_v15 = vadd.f32 %v6228_v32, %v5293_v28  ;;  %v6230_v4 = vadd.f32 %v6229_v55, %v6176_v23 }
 0x6bb   : > { %6277 = vst [vmem:[%s9693_s18 + $0x28] sm:$0xff] %v6269_v22  ;;  %v6270_v47 = vadd.f32 %v6262_v63, %v6238_v15  ;;  %v6239_v41 = vadd.f32 %v6230_v4, %v5295_v25 }
 0x6bd   : > { %6278 = vst [vmem:[%s9693_s18 + $0x30] sm:$0xff] %v6270_v47  ;;  %v6271_v12 = vadd.f32 %v6262_v63, %v6239_v41 }
 0x6bf   : > { %6279 = vst [vmem:[%s9693_s18 + $0x38] sm:$0xff] %v6271_v12 }
 0x6c0   : > { %6963 = shalt.err (!%p6960_p9)
}
 0x6c1   : > { %s6964_s8 = scalar_lea.hbm %s9708_s13, 1024  ;;  %s6968_s11 = scalar_lea.hbm %s9761_s6, 2048 }
 0x6c2   : > { %p6965_p13 = scmp.ne.s32.totalorder %s9708_s13, %s6964_s8  ;;  %p6969_p4 = scmp.lt.s32.totalorder %s9708_s13, %s9761_s6 }
 0x6c3   : > { %p6970_p8 = scmp.lt.s32.totalorder %s6968_s11, %s6964_s8 }
 0x6c4   : > { %p6966_p5 = pnand %p6965_p13, %p10110_p10 }
 0x6c5   : > { %p6971_p3 = por %p6970_p8, %p6969_p4 }
 0x6c6   : > { %p6967_p0 = pneg %p6966_p5 }
 0x6c8   : > { %p6972_p11 = pnand %p6971_p3, %p6967_p0 }
 0x6ca   : > { %6975 = shalt.err (!%p6972_p11)
}
 0x6cb   : > { %s7046_s27 = smov 256   ;;  %s7047_s29 = smov 16  }
 0x6cc   : > { %6714 = dma.vmem_to_hbm [thread:$0]  (%p10110_p10), %s9710_s26, 1024, %s9708_s13, %s6281_s16, %s7046_s27, %s7046_s27, %s7047_s29  }
 0x6cd PF: > { %s6309_s25 = sand.u32 1, %s7006_s21   ;;  %p10111_p1 = scmp.ne.s32.totalorder %s9873_s28, 0 }
 0x6ce   : > { %p10112_p2 = scmp.ge.s32.totalorder %s7018_s24, 2  ;;  %s6310_s12 = scalar_lea.sflag [#allocation6], %s6309_s25 }
 0x6d0   : > { %p6728_p6 = pnand %p10112_p2, %p10111_p1 }
 0x6d2   : > { %p6729_p12 = pneg %p6728_p6 }
 0x6d4   : > { %7001 = dma.done.wait (%p6729_p12), %s6310_s12, 1024  }
 0x6d5   : > { %7003 = vsyncadd (%p6729_p12), %s6310_s12, 4294966272  ;;  %p20_p7 = scmp.ge.s32.totalorder %s7155_s19, 4   ;;  %s10113_s21 = smov %s7010_s22 }
 0x6d6   : > { %s10114_s22 = smov %s7014_s23  ;;  %s10115_s23 = smov %s7171_s7 }
 0x6d7   : > { %s10116_s24 = smov %s7155_s19  ;;  %22 = sbr.rel (!%p20_p7) target bundleno = 6 (0x6), region = 102 }
 0x6dc   :  { %6315 = vsyncpa [#allocation5], 1 }
 0x6dd   :  { %6317 = vsyncpa [#allocation5 + $0x1], 1 }
 0x6de   :  { %6318 = vsyncpa [#allocation8], 1 }
 0x6df   :  { %6319 = vsyncpa [#allocation6], 1 }
 0x6e0   :  { %6321 = vsyncpa [#allocation6 + $0x1], 1 }

</bundles_post_ra>
